<compile_context>
chip_gen: v7x
topology: tpu7x:2x2x1
jax: 0.10.0
libtpu: 0.0.40
codegen_flags: <defaults>
</compile_context>

<pallas_src>
import functools

import jax
import jax.numpy as jnp
from jax.experimental import pallas as pl
from jax.experimental.pallas import tpu as pltpu


# --------------------------------------------------------------------------
# helpers shared by the Pallas kernels and the pure-JAX reference path
# --------------------------------------------------------------------------
def _round_up(x, m):
    return (x + m - 1) // m * m


def _sigmoid(v):
    # Stable single-transcendental sigmoid: 0.5*(tanh(v/2)+1)  (no divide).
    return 0.5 * (jnp.tanh(0.5 * v) + 1.0)


def _apply_act(v, act):
    if act == "none":
        return v
    if act == "prelu":                      # nn.PReLU() default slope 0.25
        return jnp.where(v >= 0.0, v, 0.25 * v)
    if act == "mish":                       # x * tanh(softplus(x)), stable
        sp = jnp.maximum(v, 0.0) + jnp.log(1.0 + jnp.exp(-jnp.abs(v)))
        return v * jnp.tanh(sp)
    raise ValueError(act)


# --------------------------------------------------------------------------
# Kernel 1: tap-accumulated KxK conv (stride 1), bias + act (+residual) fused
#   grid = (image, kernel-row); KW taps unrolled in-kernel; f32 accumulator.
# --------------------------------------------------------------------------
def _conv_tap_kernel(x_ref, w_ref, b_ref, *rest, act, H, W, KW, has_res):
    # x_ref  : (Hp, Wp, Cin)   f32  padded NHWC image, resident across ky
    # w_ref  : (KW, Cin, Cout) bf16 weight slab for this kernel row
    # b_ref  : (1, Cout)       f32  bias (BN folded)
    # res_ref: (H*W, Cout)     f32  optional fused residual
    # o_ref  : (H*W, Cout)          output
    # acc_ref: (H*W, Cout)     f32  accumulator scratch
    if has_res:
        res_ref, o_ref, acc_ref = rest
    else:
        o_ref, acc_ref = rest
    ky = pl.program_id(1)

    @pl.when(ky == 0)
    def _():
        acc_ref[...] = jnp.zeros_like(acc_ref)

    xs = x_ref[pl.ds(ky, H), :, :]                       # (H, Wp, Cin)
    acc = acc_ref[...]
    for dx in range(KW):                                 # static unroll, KW <= 9
        xt = xs[:, dx:dx + W, :].reshape(H * W, xs.shape[-1])
        acc = acc + jnp.dot(xt.astype(jnp.bfloat16), w_ref[dx],
                            preferred_element_type=jnp.float32)
    acc_ref[...] = acc

    @pl.when(ky == pl.num_programs(1) - 1)
    def _():
        y = _apply_act(acc + b_ref[...], act)
        if has_res:
            y = y + res_ref[...]
        o_ref[...] = y.astype(o_ref.dtype)


def conv2d_act(x, w, b, padding, act="none", res=None, use_pallas=True):
    """x: (B, H, W, Cin) NHWC; w: (Cout, Cin, kh, kw); stride 1.
    Returns act(conv(x) + b) [+ res], NHWC."""
    B, H, W_, Cin = x.shape
    Cout, _, kh, kw = w.shape
    if padding > 0:
        xp = jnp.pad(x, ((0, 0), (padding, padding), (padding, padding), (0, 0)))
    else:
        xp = x
    Hp, Wp = H + 2 * padding, W_ + 2 * padding
    wt = jnp.transpose(w, (2, 3, 1, 0)).astype(jnp.bfloat16)   # (kh, kw, Cin, Cout)
    bias = b.reshape(1, Cout).astype(jnp.float32)

    if not use_pallas:
        acc = jnp.zeros((B * H * W_, Cout), jnp.float32)
        for dy in range(kh):
            for dx in range(kw):
                xt = xp[:, dy:dy + H, dx:dx + W_, :].astype(jnp.bfloat16)
                acc = acc + jnp.dot(xt.reshape(B * H * W_, Cin), wt[dy, dx],
                                    preferred_element_type=jnp.float32)
        y = _apply_act(acc + bias, act)
        if res is not None:
            y = y + res.reshape(B * H * W_, Cout).astype(jnp.float32)
        return y.reshape(B, H, W_, Cout).astype(x.dtype)

    kernel = functools.partial(_conv_tap_kernel, act=act, H=H, W=W_, KW=kw,
                               has_res=res is not None)
    in_specs = [
        pl.BlockSpec((None, Hp, Wp, Cin), lambda bi, ky: (bi, 0, 0, 0)),
        pl.BlockSpec((None, kw, Cin, Cout), lambda bi, ky: (ky, 0, 0, 0)),
        pl.BlockSpec((1, Cout), lambda bi, ky: (0, 0)),
    ]
    args = [xp, wt, bias]
    if res is not None:
        in_specs.append(pl.BlockSpec((None, H * W_, Cout),
                                     lambda bi, ky: (bi, 0, 0)))
        args.append(res.reshape(B, H * W_, Cout).astype(jnp.float32))
    y = pl.pallas_call(
        kernel,
        out_shape=jax.ShapeDtypeStruct((B, H * W_, Cout), x.dtype),
        grid=(B, kh),
        in_specs=in_specs,
        out_specs=pl.BlockSpec((None, H * W_, Cout), lambda bi, ky: (bi, 0, 0)),
        scratch_shapes=[pltpu.VMEM((H * W_, Cout), jnp.float32)],
        compiler_params=pltpu.CompilerParams(
            dimension_semantics=("parallel", "arbitrary")),
    )(*args)
    return y.reshape(B, H, W_, Cout)


# --------------------------------------------------------------------------
# Kernel 2: tiled matmul + bias + act (1x1 convs, fused GRU input projection)
#   optional second input x2 fuses `x + residual` before gru2's 1x1 conv.
# --------------------------------------------------------------------------
def _matmul_bias_act_kernel(*refs, act, has_add):
    if has_add:
        x_ref, x2_ref, w_ref, b_ref, o_ref = refs
    else:
        x_ref, w_ref, b_ref, o_ref = refs
    x = x_ref[...].astype(jnp.float32)
    if has_add:
        x = x + x2_ref[...].astype(jnp.float32)
    acc = jnp.dot(x.astype(jnp.bfloat16), w_ref[...],
                  preferred_element_type=jnp.float32)
    acc = acc + b_ref[...]
    o_ref[...] = _apply_act(acc, act).astype(o_ref.dtype)


def matmul_bias_act(x, w, b, act="none", x2=None, use_pallas=True):
    """act((x [+ x2]) @ w + b); x, x2: (M, K) f32, w: (K, N), b: (N,)."""
    M, K = x.shape
    N = w.shape[1]
    bias = b.reshape(1, N).astype(jnp.float32)
    if not use_pallas:
        xin = x + x2 if x2 is not None else x
        y = jnp.dot(xin.astype(jnp.bfloat16), w.astype(jnp.bfloat16),
                    preferred_element_type=jnp.float32) + bias
        return _apply_act(y, act).astype(x.dtype)

    Npad = _round_up(N, 128)               # lane-dense (unmasked) output stores
    wp = jnp.pad(w, ((0, 0), (0, Npad - N))).astype(jnp.bfloat16)
    bp = jnp.pad(bias, ((0, 0), (0, Npad - N)))
    TM = 512 if M >= 512 else _round_up(M, 8)
    Mp = _round_up(M, TM)
    xp = jnp.pad(x, ((0, Mp - M), (0, 0))) if Mp != M else x
    args = [xp]
    in_specs = [pl.BlockSpec((TM, K), lambda i: (i, 0))]
    if x2 is not None:
        x2p = jnp.pad(x2, ((0, Mp - M), (0, 0))) if Mp != M else x2
        args.append(x2p)
        in_specs.append(pl.BlockSpec((TM, K), lambda i: (i, 0)))
    args += [wp, bp]
    in_specs += [pl.BlockSpec((K, Npad), lambda i: (0, 0)),     # weight resident
                 pl.BlockSpec((1, Npad), lambda i: (0, 0))]     # bias resident
    y = pl.pallas_call(
        functools.partial(_matmul_bias_act_kernel, act=act,
                          has_add=x2 is not None),
        out_shape=jax.ShapeDtypeStruct((Mp, Npad), x.dtype),
        grid=(Mp // TM,),
        in_specs=in_specs,
        out_specs=pl.BlockSpec((TM, Npad), lambda i: (i, 0)),
        compiler_params=pltpu.CompilerParams(
            dimension_semantics=("parallel",)),
    )(*args)
    return y[:M, :N]


# --------------------------------------------------------------------------
# Kernel 3: bidirectional GRU recurrence
#   xg_* : (T, 3, Ns, Hh)  precomputed  x @ W_ih^T + b_ih (+ folded b_hh r,z)
#   whh_*: (Hh, 3*Hh)      fused recurrent gate weights (h @ whh -> r|z|n)
#   bn_* : (1, Hh)         recurrent bias of the n gate only
# --------------------------------------------------------------------------
def _bigru_kernel(xg_f_ref, xg_b_ref, whh_f_ref, whh_b_ref,
                  bn_f_ref, bn_b_ref, of_ref, ob_ref):
    T, Nb, Hh = of_ref.shape
    whh_f = whh_f_ref[...]          # hoisted, loop-invariant
    whh_b = whh_b_ref[...]
    bn_f = bn_f_ref[...]
    bn_b = bn_b_ref[...]

    def cell(xg, h, whh, bn):
        g = jnp.dot(h, whh, preferred_element_type=jnp.float32)   # (Nb, 3*Hh)
        r = _sigmoid(xg[0].astype(jnp.float32) + g[:, :Hh])
        z = _sigmoid(xg[1].astype(jnp.float32) + g[:, Hh:2 * Hh])
        n = jnp.tanh(xg[2].astype(jnp.float32) + r * (g[:, 2 * Hh:] + bn))
        return (1.0 - z) * n + z * h

    def step(i, carry):
        h_f, h_b = carry
        tb = T - 1 - i
        h_f = cell(xg_f_ref[i], h_f, whh_f, bn_f)        # forward direction
        h_b = cell(xg_b_ref[tb], h_b, whh_b, bn_b)       # backward, interleaved
        of_ref[i] = h_f.astype(of_ref.dtype)
        ob_ref[tb] = h_b.astype(ob_ref.dtype)
        return (h_f, h_b)

    h0 = jnp.zeros((Nb, Hh), jnp.float32)
    jax.lax.fori_loop(0, T, step, (h0, h0))


def _bigru_ref(xg_f, xg_b, whh_f, whh_b, bn_f, bn_b):
    T, _, Ns, Hh = xg_f.shape
    hi = jax.lax.Precision.HIGHEST

    def cell(xg, h, whh, bn):
        g = jnp.dot(h, whh, precision=hi)
        r = _sigmoid(xg[0] + g[:, :Hh])
        z = _sigmoid(xg[1] + g[:, Hh:2 * Hh])
        n = jnp.tanh(xg[2] + r * (g[:, 2 * Hh:] + bn))
        return (1.0 - z) * n + z * h

    def run(xg, whh, bn, reverse):
        h = jnp.zeros((Ns, Hh), jnp.float32)
        outs = [None] * T
        order = range(T - 1, -1, -1) if reverse else range(T)
        for t in order:
            h = cell(xg[t], h, whh, bn)
            outs[t] = h
        return jnp.stack(outs, axis=0)

    return run(xg_f, whh_f, bn_f, False), run(xg_b, whh_b, bn_b, True)


def bigru(x_seq, gp, use_pallas=True):
    """x_seq: (Ns, T, C) -> (Ns, T, C); bidirectional GRU, hidden C//2."""
    Ns, T, C = x_seq.shape
    Hh = C // 2
    # One fused input projection for both directions; b_hh(r,z) folded in.
    w_cat = jnp.concatenate([gp["w_ih_f"].T, gp["w_ih_b"].T], axis=1)  # (C, 6Hh)

    def folded_bias(d):
        b_ih = gp[f"b_ih_{d}"]
        b_hh = gp[f"b_hh_{d}"]
        return b_ih + jnp.concatenate(
            [b_hh[:2 * Hh], jnp.zeros((Hh,), b_hh.dtype)])

    b_cat = jnp.concatenate([folded_bias("f"), folded_bias("b")])       # (6Hh,)
    y = matmul_bias_act(x_seq.reshape(Ns * T, C), w_cat, b_cat,
                        act="none", use_pallas=use_pallas)              # (Ns*T, 6Hh)
    xg = y.reshape(Ns, T, 2, 3, Hh).transpose(2, 1, 3, 0, 4)            # (2,T,3,Ns,Hh)
    xg_f, xg_b = xg[0], xg[1]
    whh_f = gp["w_hh_f"].T                                              # (Hh, 3Hh)
    whh_b = gp["w_hh_b"].T
    bn_f = gp["b_hh_f"][2 * Hh:].reshape(1, Hh)
    bn_b = gp["b_hh_b"][2 * Hh:].reshape(1, Hh)

    if not use_pallas:
        out_f, out_b = _bigru_ref(xg_f, xg_b, whh_f, whh_b, bn_f, bn_b)
    else:
        TN = 128 if Ns >= 128 else _round_up(Ns, 8)
        Nsp = _round_up(Ns, TN)
        if Nsp != Ns:
            pad = ((0, 0), (0, 0), (0, Nsp - Ns), (0, 0))
            xg_f = jnp.pad(xg_f, pad)
            xg_b = jnp.pad(xg_b, pad)
        out_f, out_b = pl.pallas_call(
            _bigru_kernel,
            out_shape=(jax.ShapeDtypeStruct((T, Nsp, Hh), x_seq.dtype),
                       jax.ShapeDtypeStruct((T, Nsp, Hh), x_seq.dtype)),
            grid=(Nsp // TN,),
            in_specs=[
                pl.BlockSpec((T, 3, TN, Hh), lambda i: (0, 0, i, 0)),
                pl.BlockSpec((T, 3, TN, Hh), lambda i: (0, 0, i, 0)),
                pl.BlockSpec((Hh, 3 * Hh), lambda i: (0, 0)),
                pl.BlockSpec((Hh, 3 * Hh), lambda i: (0, 0)),
                pl.BlockSpec((1, Hh), lambda i: (0, 0)),
                pl.BlockSpec((1, Hh), lambda i: (0, 0)),
            ],
            out_specs=(pl.BlockSpec((T, TN, Hh), lambda i: (0, i, 0)),
                       pl.BlockSpec((T, TN, Hh), lambda i: (0, i, 0))),
            compiler_params=pltpu.CompilerParams(
                dimension_semantics=("parallel",)),
        )(xg_f, xg_b, whh_f, whh_b, bn_f, bn_b)
        out_f, out_b = out_f[:, :Ns], out_b[:, :Ns]

    out = jnp.concatenate([out_f, out_b], axis=-1)       # (T, Ns, C)
    return out.transpose(1, 0, 2)


# --------------------------------------------------------------------------
# Module-level forward (GruBlock / RecurrentResidualBlock / TSRNEncoder)
# Everything runs in NHWC internally.
# --------------------------------------------------------------------------
def gru_block(x, p, add=None, use_pallas=True):
    """GruBlock on an NHWC map; optional `add` fused into the 1x1-conv input."""
    B, H, W_, C = x.shape
    w1 = p["conv_w"][:, :, 0, 0].T                       # (Cin, Cout)
    xm = x.reshape(B * H * W_, C)
    am = add.reshape(B * H * W_, C) if add is not None else None
    y = matmul_bias_act(xm, w1, p["conv_b"], act="none", x2=am,
                        use_pallas=use_pallas)           # (B*H*W, C)
    seq = y.reshape(B * H, W_, C)                        # batch_first sequences
    out = bigru(seq, p, use_pallas)                      # (B*H, W, C)
    return out.reshape(B, H, W_, C)


def rrb_forward(x, p, use_pallas=True):
    r = conv2d_act(x, p["conv1_w"], p["conv1_b"], padding=1, act="mish",
                   use_pallas=use_pallas)                # conv1 + bn1 + mish
    r = conv2d_act(r, p["conv2_w"], p["conv2_b"], padding=1, act="none",
                   use_pallas=use_pallas)                # conv2 + bn2
    # gru1 on the H<->W transposed map (PyTorch .transpose(-1, -2) on NCHW)
    g1 = gru_block(jnp.swapaxes(r, 1, 2), p["gru1"], use_pallas=use_pallas)
    residual = jnp.swapaxes(g1, 1, 2)
    # gru2(x + residual): add fused into gru2's 1x1 conv (no standalone pass)
    return gru_block(x, p["gru2"], add=residual, use_pallas=use_pallas)


def tsrn_forward(x_nchw, params, use_pallas=True):
    # TODO(synk): STN/TPS branch (stn=True) not implemented (stn=False path).
    x = jnp.transpose(x_nchw, (0, 2, 3, 1))              # NCHW -> NHWC once
    b1 = conv2d_act(x, params["block1"]["w"], params["block1"]["b"],
                    padding=4, act="prelu", use_pallas=use_pallas)
    cur = b1
    for p in params["srb"]:
        cur = rrb_forward(cur, p, use_pallas)
    # block{srb+2}: conv3x3 + BN with `block1 + block_last` fused in epilogue.
    out = conv2d_act(cur, params["last"]["w"], params["last"]["b"],
                     padding=1, act="none", res=b1, use_pallas=use_pallas)
    # PyTorch module returns [block1 + block_last]; we return the tensor (NCHW).
    return jnp.transpose(out, (0, 3, 1, 2))


# --------------------------------------------------------------------------
# Deterministic parameter construction (BN folded, eval semantics)
# --------------------------------------------------------------------------
def init_params(key, in_planes, C, srb_nums, dtype=jnp.float32):
    eps = 1e-5
    keys = iter(jax.random.split(key, 1024))
    nk = lambda: next(keys)

    def u(shape, bound):
        return jax.random.uniform(nk(), shape, dtype=dtype,
                                  minval=-bound, maxval=bound)

    def conv_params(cin, cout, k):
        bound = 1.0 / float((cin * k * k) ** 0.5)
        return u((cout, cin, k, k), bound), u((cout,), bound)

    def bn_params(c):
        gamma = jax.random.uniform(nk(), (c,), dtype=dtype, minval=0.5, maxval=1.5)
        beta = u((c,), 0.1)
        mean = u((c,), 0.1)
        var = jax.random.uniform(nk(), (c,), dtype=dtype, minval=0.5, maxval=1.5)
        return gamma, beta, mean, var

    def fold_bn(w, b, bn):
        gamma, beta, mean, var = bn
        s = gamma / jnp.sqrt(var + eps)
        return w * s[:, None, None, None], (b - mean) * s + beta

    def gru_params(c):
        Hh = c // 2
        bound = 1.0 / float(Hh ** 0.5)
        cw, cb = conv_params(c, c, 1)
        p = {"conv_w": cw, "conv_b": cb}
        for d in ("f", "b"):
            p[f"w_ih_{d}"] = u((3 * Hh, c), bound)
            p[f"w_hh_{d}"] = u((3 * Hh, Hh), bound)
            p[f"b_ih_{d}"] = u((3 * Hh,), bound)
            p[f"b_hh_{d}"] = u((3 * Hh,), bound)
        return p

    w, b = conv_params(in_planes, C, 9)
    params = {"block1": {"w": w, "b": b}, "srb": []}
    for _ in range(srb_nums):
        w1, b1 = fold_bn(*conv_params(C, C, 3), bn_params(C))
        w2, b2 = fold_bn(*conv_params(C, C, 3), bn_params(C))
        params["srb"].append({"conv1_w": w1, "conv1_b": b1,
                              "conv2_w": w2, "conv2_b": b2,
                              "gru1": gru_params(C), "gru2": gru_params(C)})
    wl, bl = fold_bn(*conv_params(C, C, 3), bn_params(C))
    params["last"] = {"w": wl, "b": bl}
    return params


if __name__ == "__main__":
    # Small shapes consistent with the module: mask=True -> in_planes=4,
    # hidden_units=16 -> 32 channels, spatial 8x16, batch 2, 2 SRB blocks.
    B, H, W = 2, 8, 16
    in_planes = 4
    hidden_units = 16
    C = 2 * hidden_units
    srb_nums = 2

    key = jax.random.PRNGKey(0)
    kx, kp = jax.random.split(key)
    x = jax.random.normal(kx, (B, in_planes, H, W), dtype=jnp.float32)
    params = init_params(kp, in_planes, C, srb_nums)

    fwd = jax.jit(lambda inp: tsrn_forward(inp, params, use_pallas=True))
    out = jax.block_until_ready(fwd(x))

    # Pure-JAX reference sharing the same glue/parameters and mirroring the
    # kernels' bf16-operand / f32-accumulate numerics.
    ref_fn = jax.jit(lambda inp: tsrn_forward(inp, params, use_pallas=False))
    ref = jax.block_until_ready(ref_fn(x))

    assert out.shape == (B, C, H, W)
    assert bool(jnp.all(jnp.isfinite(out)))
    assert bool(jnp.allclose(out, ref, atol=2e-2, rtol=2e-2))
    print("KERNEL_OK")
</pallas_src>

<mosaic_0001>
module attributes {stable_mosaic.version = 11 : i64} {
  func.func @_conv_tap_kernel(%arg0: i32, %arg1: i32, %arg2: memref<1x16x24x4xf32, #tpu.memory_space<vmem>>, %arg3: memref<1x9x4x32xbf16, #tpu.memory_space<vmem>>, %arg4: memref<1x32xf32, #tpu.memory_space<vmem>>, %arg5: memref<1x128x32xf32, #tpu.memory_space<vmem>>, %arg6: memref<128x32xf32, #tpu.memory_space<vmem>>) attributes {dimension_semantics = [#tpu.dimension_semantics<parallel>, #tpu.dimension_semantics<arbitrary>], iteration_bounds = array<i64: 2, 9>, scalar_prefetch = 0 : i64, scratch_operands = 1 : i64, tpu.core_type = #tpu.core_type<tc>, window_params = [{transform_indices = @transform_0, window_bounds = array<i64: 1, 16, 24, 4>}, {transform_indices = @transform_1, window_bounds = array<i64: 1, 9, 4, 32>}, {pipeline_mode = #tpu.pipeline_mode<synchronous>, transform_indices = @transform_2, window_bounds = array<i64: 1, 32>}, {transform_indices = @transform_3, window_bounds = array<i64: 1, 128, 32>}]} {
    %c0_i32 = arith.constant 0 : i32
    %0 = arith.cmpi eq, %arg1, %c0_i32 : i32
    %1 = arith.extui %0 : i1 to i32
    %c0_i32_0 = arith.constant 0 : i32
    %2 = arith.cmpi ne, %1, %c0_i32_0 : i32
    scf.if %2 {
      %cst_44 = arith.constant 0.000000e+00 : f32
      %74 = vector.broadcast %cst_44 : f32 to vector<128x32xf32>
      %c0_45 = arith.constant 0 : index
      %c0_46 = arith.constant 0 : index
      %75 = vector.load %arg6[%c0_45, %c0_46] : memref<128x32xf32, #tpu.memory_space<vmem>>, vector<128x32xf32>
      tpu.vector_store %arg6[%c0_45, %c0_46], %74 {strides = array<i32>} : memref<128x32xf32, #tpu.memory_space<vmem>>, vector<128x32xf32>,
    } else {
    }
    %c0 = arith.constant 0 : index
    %3 = arith.index_cast %arg1 : i32 to index
    %c0_1 = arith.constant 0 : index
    %c0_2 = arith.constant 0 : index
    %4 = vector.load %arg2[%c0, %3, %c0_1, %c0_2] : memref<1x16x24x4xf32, #tpu.memory_space<vmem>>, vector<1x8x24x4xf32>
    %5 = vector.shape_cast %4 : vector<1x8x24x4xf32> to vector<8x24x4xf32>
    %c0_3 = arith.constant 0 : index
    %c0_4 = arith.constant 0 : index
    %6 = vector.load %arg6[%c0_3, %c0_4] : memref<128x32xf32, #tpu.memory_space<vmem>>, vector<128x32xf32>
    %7 = vector.extract_strided_slice %5 {offsets = [0, 0, 0], sizes = [8, 16, 4], strides = [1, 1, 1]} : vector<8x24x4xf32> to vector<8x16x4xf32>
    %8 = vector.shape_cast %7 : vector<8x16x4xf32> to vector<128x4xf32>
    %9 = arith.truncf %8 : vector<128x4xf32> to vector<128x4xbf16>
    %c0_5 = arith.constant 0 : index
    %c0_6 = arith.constant 0 : index
    %c0_7 = arith.constant 0 : index
    %c0_8 = arith.constant 0 : index
    %10 = vector.load %arg3[%c0_5, %c0_6, %c0_7, %c0_8] : memref<1x9x4x32xbf16, #tpu.memory_space<vmem>>, vector<1x1x4x32xbf16>
    %11 = vector.shape_cast %10 : vector<1x1x4x32xbf16> to vector<4x32xbf16>
    %cst = arith.constant dense<0.000000e+00> : vector<128x32xf32>
    %12 = tpu.matmul %9, %11, %cst {dimension_numbers = #tpu.dot_dimension_numbers<[1], [0], [0], [1], [0, 0, 1, 1], [], []>} : vector<128x4xbf16>, vector<4x32xbf16>, vector<128x32xf32> -> vector<128x32xf32>
    %13 = arith.addf %6, %12 : vector<128x32xf32>
    %14 = vector.extract_strided_slice %5 {offsets = [0, 1, 0], sizes = [8, 16, 4], strides = [1, 1, 1]} : vector<8x24x4xf32> to vector<8x16x4xf32>
    %15 = vector.shape_cast %14 : vector<8x16x4xf32> to vector<128x4xf32>
    %16 = arith.truncf %15 : vector<128x4xf32> to vector<128x4xbf16>
    %c0_9 = arith.constant 0 : index
    %c1 = arith.constant 1 : index
    %c0_10 = arith.constant 0 : index
    %c0_11 = arith.constant 0 : index
    %17 = vector.load %arg3[%c0_9, %c1, %c0_10, %c0_11] : memref<1x9x4x32xbf16, #tpu.memory_space<vmem>>, vector<1x1x4x32xbf16>
    %18 = vector.shape_cast %17 : vector<1x1x4x32xbf16> to vector<4x32xbf16>
    %cst_12 = arith.constant dense<0.000000e+00> : vector<128x32xf32>
    %19 = tpu.matmul %16, %18, %cst_12 {dimension_numbers = #tpu.dot_dimension_numbers<[1], [0], [0], [1], [0, 0, 1, 1], [], []>} : vector<128x4xbf16>, vector<4x32xbf16>, vector<128x32xf32> -> vector<128x32xf32>
    %20 = arith.addf %13, %19 : vector<128x32xf32>
    %21 = vector.extract_strided_slice %5 {offsets = [0, 2, 0], sizes = [8, 16, 4], strides = [1, 1, 1]} : vector<8x24x4xf32> to vector<8x16x4xf32>
    %22 = vector.shape_cast %21 : vector<8x16x4xf32> to vector<128x4xf32>
    %23 = arith.truncf %22 : vector<128x4xf32> to vector<128x4xbf16>
    %c0_13 = arith.constant 0 : index
    %c2 = arith.constant 2 : index
    %c0_14 = arith.constant 0 : index
    %c0_15 = arith.constant 0 : index
    %24 = vector.load %arg3[%c0_13, %c2, %c0_14, %c0_15] : memref<1x9x4x32xbf16, #tpu.memory_space<vmem>>, vector<1x1x4x32xbf16>
    %25 = vector.shape_cast %24 : vector<1x1x4x32xbf16> to vector<4x32xbf16>
    %cst_16 = arith.constant dense<0.000000e+00> : vector<128x32xf32>
    %26 = tpu.matmul %23, %25, %cst_16 {dimension_numbers = #tpu.dot_dimension_numbers<[1], [0], [0], [1], [0, 0, 1, 1], [], []>} : vector<128x4xbf16>, vector<4x32xbf16>, vector<128x32xf32> -> vector<128x32xf32>
    %27 = arith.addf %20, %26 : vector<128x32xf32>
    %28 = vector.extract_strided_slice %5 {offsets = [0, 3, 0], sizes = [8, 16, 4], strides = [1, 1, 1]} : vector<8x24x4xf32> to vector<8x16x4xf32>
    %29 = vector.shape_cast %28 : vector<8x16x4xf32> to vector<128x4xf32>
    %30 = arith.truncf %29 : vector<128x4xf32> to vector<128x4xbf16>
    %c0_17 = arith.constant 0 : index
    %c3 = arith.constant 3 : index
    %c0_18 = arith.constant 0 : index
    %c0_19 = arith.constant 0 : index
    %31 = vector.load %arg3[%c0_17, %c3, %c0_18, %c0_19] : memref<1x9x4x32xbf16, #tpu.memory_space<vmem>>, vector<1x1x4x32xbf16>
    %32 = vector.shape_cast %31 : vector<1x1x4x32xbf16> to vector<4x32xbf16>
    %cst_20 = arith.constant dense<0.000000e+00> : vector<128x32xf32>
    %33 = tpu.matmul %30, %32, %cst_20 {dimension_numbers = #tpu.dot_dimension_numbers<[1], [0], [0], [1], [0, 0, 1, 1], [], []>} : vector<128x4xbf16>, vector<4x32xbf16>, vector<128x32xf32> -> vector<128x32xf32>
    %34 = arith.addf %27, %33 : vector<128x32xf32>
    %35 = vector.extract_strided_slice %5 {offsets = [0, 4, 0], sizes = [8, 16, 4], strides = [1, 1, 1]} : vector<8x24x4xf32> to vector<8x16x4xf32>
    %36 = vector.shape_cast %35 : vector<8x16x4xf32> to vector<128x4xf32>
    %37 = arith.truncf %36 : vector<128x4xf32> to vector<128x4xbf16>
    %c0_21 = arith.constant 0 : index
    %c4 = arith.constant 4 : index
    %c0_22 = arith.constant 0 : index
    %c0_23 = arith.constant 0 : index
    %38 = vector.load %arg3[%c0_21, %c4, %c0_22, %c0_23] : memref<1x9x4x32xbf16, #tpu.memory_space<vmem>>, vector<1x1x4x32xbf16>
    %39 = vector.shape_cast %38 : vector<1x1x4x32xbf16> to vector<4x32xbf16>
    %cst_24 = arith.constant dense<0.000000e+00> : vector<128x32xf32>
    %40 = tpu.matmul %37, %39, %cst_24 {dimension_numbers = #tpu.dot_dimension_numbers<[1], [0], [0], [1], [0, 0, 1, 1], [], []>} : vector<128x4xbf16>, vector<4x32xbf16>, vector<128x32xf32> -> vector<128x32xf32>
    %41 = arith.addf %34, %40 : vector<128x32xf32>
    %42 = vector.extract_strided_slice %5 {offsets = [0, 5, 0], sizes = [8, 16, 4], strides = [1, 1, 1]} : vector<8x24x4xf32> to vector<8x16x4xf32>
    %43 = vector.shape_cast %42 : vector<8x16x4xf32> to vector<128x4xf32>
    %44 = arith.truncf %43 : vector<128x4xf32> to vector<128x4xbf16>
    %c0_25 = arith.constant 0 : index
    %c5 = arith.constant 5 : index
    %c0_26 = arith.constant 0 : index
    %c0_27 = arith.constant 0 : index
    %45 = vector.load %arg3[%c0_25, %c5, %c0_26, %c0_27] : memref<1x9x4x32xbf16, #tpu.memory_space<vmem>>, vector<1x1x4x32xbf16>
    %46 = vector.shape_cast %45 : vector<1x1x4x32xbf16> to vector<4x32xbf16>
    %cst_28 = arith.constant dense<0.000000e+00> : vector<128x32xf32>
    %47 = tpu.matmul %44, %46, %cst_28 {dimension_numbers = #tpu.dot_dimension_numbers<[1], [0], [0], [1], [0, 0, 1, 1], [], []>} : vector<128x4xbf16>, vector<4x32xbf16>, vector<128x32xf32> -> vector<128x32xf32>
    %48 = arith.addf %41, %47 : vector<128x32xf32>
    %49 = vector.extract_strided_slice %5 {offsets = [0, 6, 0], sizes = [8, 16, 4], strides = [1, 1, 1]} : vector<8x24x4xf32> to vector<8x16x4xf32>
    %50 = vector.shape_cast %49 : vector<8x16x4xf32> to vector<128x4xf32>
    %51 = arith.truncf %50 : vector<128x4xf32> to vector<128x4xbf16>
    %c0_29 = arith.constant 0 : index
    %c6 = arith.constant 6 : index
    %c0_30 = arith.constant 0 : index
    %c0_31 = arith.constant 0 : index
    %52 = vector.load %arg3[%c0_29, %c6, %c0_30, %c0_31] : memref<1x9x4x32xbf16, #tpu.memory_space<vmem>>, vector<1x1x4x32xbf16>
    %53 = vector.shape_cast %52 : vector<1x1x4x32xbf16> to vector<4x32xbf16>
    %cst_32 = arith.constant dense<0.000000e+00> : vector<128x32xf32>
    %54 = tpu.matmul %51, %53, %cst_32 {dimension_numbers = #tpu.dot_dimension_numbers<[1], [0], [0], [1], [0, 0, 1, 1], [], []>} : vector<128x4xbf16>, vector<4x32xbf16>, vector<128x32xf32> -> vector<128x32xf32>
    %55 = arith.addf %48, %54 : vector<128x32xf32>
    %56 = vector.extract_strided_slice %5 {offsets = [0, 7, 0], sizes = [8, 16, 4], strides = [1, 1, 1]} : vector<8x24x4xf32> to vector<8x16x4xf32>
    %57 = vector.shape_cast %56 : vector<8x16x4xf32> to vector<128x4xf32>
    %58 = arith.truncf %57 : vector<128x4xf32> to vector<128x4xbf16>
    %c0_33 = arith.constant 0 : index
    %c7 = arith.constant 7 : index
    %c0_34 = arith.constant 0 : index
    %c0_35 = arith.constant 0 : index
    %59 = vector.load %arg3[%c0_33, %c7, %c0_34, %c0_35] : memref<1x9x4x32xbf16, #tpu.memory_space<vmem>>, vector<1x1x4x32xbf16>
    %60 = vector.shape_cast %59 : vector<1x1x4x32xbf16> to vector<4x32xbf16>
    %cst_36 = arith.constant dense<0.000000e+00> : vector<128x32xf32>
    %61 = tpu.matmul %58, %60, %cst_36 {dimension_numbers = #tpu.dot_dimension_numbers<[1], [0], [0], [1], [0, 0, 1, 1], [], []>} : vector<128x4xbf16>, vector<4x32xbf16>, vector<128x32xf32> -> vector<128x32xf32>
    %62 = arith.addf %55, %61 : vector<128x32xf32>
    %63 = vector.extract_strided_slice %5 {offsets = [0, 8, 0], sizes = [8, 16, 4], strides = [1, 1, 1]} : vector<8x24x4xf32> to vector<8x16x4xf32>
    %64 = vector.shape_cast %63 : vector<8x16x4xf32> to vector<128x4xf32>
    %65 = arith.truncf %64 : vector<128x4xf32> to vector<128x4xbf16>
    %c0_37 = arith.constant 0 : index
    %c8 = arith.constant 8 : index
    %c0_38 = arith.constant 0 : index
    %c0_39 = arith.constant 0 : index
    %66 = vector.load %arg3[%c0_37, %c8, %c0_38, %c0_39] : memref<1x9x4x32xbf16, #tpu.memory_space<vmem>>, vector<1x1x4x32xbf16>
    %67 = vector.shape_cast %66 : vector<1x1x4x32xbf16> to vector<4x32xbf16>
    %cst_40 = arith.constant dense<0.000000e+00> : vector<128x32xf32>
    %68 = tpu.matmul %65, %67, %cst_40 {dimension_numbers = #tpu.dot_dimension_numbers<[1], [0], [0], [1], [0, 0, 1, 1], [], []>} : vector<128x4xbf16>, vector<4x32xbf16>, vector<128x32xf32> -> vector<128x32xf32>
    %69 = arith.addf %62, %68 : vector<128x32xf32>
    %c0_41 = arith.constant 0 : index
    %c0_42 = arith.constant 0 : index
    %70 = vector.load %arg6[%c0_41, %c0_42] : memref<128x32xf32, #tpu.memory_space<vmem>>, vector<128x32xf32>
    tpu.vector_store %arg6[%c0_41, %c0_42], %69 {strides = array<i32>} : memref<128x32xf32, #tpu.memory_space<vmem>>, vector<128x32xf32>,
    %c8_i32 = arith.constant 8 : i32
    %71 = arith.cmpi eq, %arg1, %c8_i32 : i32
    %72 = arith.extui %71 : i1 to i32
    %c0_i32_43 = arith.constant 0 : i32
    %73 = arith.cmpi ne, %72, %c0_i32_43 : i32
    scf.if %73 {
      %c0_44 = arith.constant 0 : index
      %c0_45 = arith.constant 0 : index
      %74 = vector.load %arg4[%c0_44, %c0_45] : memref<1x32xf32, #tpu.memory_space<vmem>>, vector<1x32xf32>
      %75 = vector.broadcast %74 : vector<1x32xf32> to vector<128x32xf32>
      %76 = arith.addf %69, %75 : vector<128x32xf32>
      %cst_46 = arith.constant 0.000000e+00 : f32
      %77 = vector.broadcast %cst_46 : f32 to vector<128x32xf32>
      %78 = arith.cmpf oge, %76, %77 : vector<128x32xf32>
      %cst_47 = arith.constant 2.500000e-01 : f32
      %79 = vector.broadcast %cst_47 : f32 to vector<128x32xf32>
      %80 = arith.mulf %79, %76 : vector<128x32xf32>
      %81 = arith.select %78, %76, %80 : vector<128x32xi1>, vector<128x32xf32>
      %c0_48 = arith.constant 0 : index
      %c0_49 = arith.constant 0 : index
      %c0_50 = arith.constant 0 : index
      %82 = vector.load %arg5[%c0_48, %c0_49, %c0_50] : memref<1x128x32xf32, #tpu.memory_space<vmem>>, vector<1x128x32xf32>
      %83 = vector.shape_cast %82 : vector<1x128x32xf32> to vector<128x32xf32>
      %84 = vector.shape_cast %81 : vector<128x32xf32> to vector<1x128x32xf32>
      tpu.vector_store %arg5[%c0_48, %c0_49, %c0_50], %84 {strides = array<i32>} : memref<1x128x32xf32, #tpu.memory_space<vmem>>, vector<1x128x32xf32>,
    } else {
    }
    return
  }
  func.func @transform_0(%arg0: i32, %arg1: i32) -> (i32, i32, i32, i32) {
    %c0_i32 = arith.constant 0 : i32
    %c0_i32_0 = arith.constant 0 : i32
    %c0_i32_1 = arith.constant 0 : i32
    %c0_i32_2 = arith.constant 0 : i32
    return %arg0, %c0_i32, %c0_i32_0, %c0_i32_1 : i32, i32, i32, i32
  }
  func.func @transform_1(%arg0: i32, %arg1: i32) -> (i32, i32, i32, i32) {
    %c0_i32 = arith.constant 0 : i32
    %c0_i32_0 = arith.constant 0 : i32
    %c0_i32_1 = arith.constant 0 : i32
    %c0_i32_2 = arith.constant 0 : i32
    return %arg1, %c0_i32, %c0_i32_0, %c0_i32_1 : i32, i32, i32, i32
  }
  func.func @transform_2(%arg0: i32, %arg1: i32) -> (i32, i32) {
    %c0_i32 = arith.constant 0 : i32
    %c0_i32_0 = arith.constant 0 : i32
    %c0_i32_1 = arith.constant 0 : i32
    return %c0_i32, %c0_i32_0 : i32, i32
  }
  func.func @transform_3(%arg0: i32, %arg1: i32) -> (i32, i32, i32) {
    %c0_i32 = arith.constant 0 : i32
    %c0_i32_0 = arith.constant 0 : i32
    %c0_i32_1 = arith.constant 0 : i32
    return %arg0, %c0_i32, %c0_i32_0 : i32, i32, i32
  }
}

module attributes {stable_mosaic.version = 11 : i64} {
  func.func @_conv_tap_kernel(%arg0: i32, %arg1: i32, %arg2: memref<1x10x18x32xf32, #tpu.memory_space<vmem>>, %arg3: memref<1x3x32x32xbf16, #tpu.memory_space<vmem>>, %arg4: memref<1x32xf32, #tpu.memory_space<vmem>>, %arg5: memref<1x128x32xf32, #tpu.memory_space<vmem>>, %arg6: memref<128x32xf32, #tpu.memory_space<vmem>>) attributes {dimension_semantics = [#tpu.dimension_semantics<parallel>, #tpu.dimension_semantics<arbitrary>], iteration_bounds = array<i64: 2, 3>, scalar_prefetch = 0 : i64, scratch_operands = 1 : i64, tpu.core_type = #tpu.core_type<tc>, window_params = [{transform_indices = @transform_0, window_bounds = array<i64: 1, 10, 18, 32>}, {transform_indices = @transform_1, window_bounds = array<i64: 1, 3, 32, 32>}, {pipeline_mode = #tpu.pipeline_mode<synchronous>, transform_indices = @transform_2, window_bounds = array<i64: 1, 32>}, {transform_indices = @transform_3, window_bounds = array<i64: 1, 128, 32>}]} {
    %c0_i32 = arith.constant 0 : i32
    %0 = arith.cmpi eq, %arg1, %c0_i32 : i32
    %1 = arith.extui %0 : i1 to i32
    %c0_i32_0 = arith.constant 0 : i32
    %2 = arith.cmpi ne, %1, %c0_i32_0 : i32
    scf.if %2 {
      %cst_20 = arith.constant 0.000000e+00 : f32
      %32 = vector.broadcast %cst_20 : f32 to vector<128x32xf32>
      %c0_21 = arith.constant 0 : index
      %c0_22 = arith.constant 0 : index
      %33 = vector.load %arg6[%c0_21, %c0_22] : memref<128x32xf32, #tpu.memory_space<vmem>>, vector<128x32xf32>
      tpu.vector_store %arg6[%c0_21, %c0_22], %32 {strides = array<i32>} : memref<128x32xf32, #tpu.memory_space<vmem>>, vector<128x32xf32>,
    } else {
    }
    %c0 = arith.constant 0 : index
    %3 = arith.index_cast %arg1 : i32 to index
    %c0_1 = arith.constant 0 : index
    %c0_2 = arith.constant 0 : index
    %4 = vector.load %arg2[%c0, %3, %c0_1, %c0_2] : memref<1x10x18x32xf32, #tpu.memory_space<vmem>>, vector<1x8x18x32xf32>
    %5 = vector.shape_cast %4 : vector<1x8x18x32xf32> to vector<8x18x32xf32>
    %c0_3 = arith.constant 0 : index
    %c0_4 = arith.constant 0 : index
    %6 = vector.load %arg6[%c0_3, %c0_4] : memref<128x32xf32, #tpu.memory_space<vmem>>, vector<128x32xf32>
    %7 = vector.extract_strided_slice %5 {offsets = [0, 0, 0], sizes = [8, 16, 32], strides = [1, 1, 1]} : vector<8x18x32xf32> to vector<8x16x32xf32>
    %8 = vector.shape_cast %7 : vector<8x16x32xf32> to vector<128x32xf32>
    %9 = arith.truncf %8 : vector<128x32xf32> to vector<128x32xbf16>
    %c0_5 = arith.constant 0 : index
    %c0_6 = arith.constant 0 : index
    %c0_7 = arith.constant 0 : index
    %c0_8 = arith.constant 0 : index
    %10 = vector.load %arg3[%c0_5, %c0_6, %c0_7, %c0_8] : memref<1x3x32x32xbf16, #tpu.memory_space<vmem>>, vector<1x1x32x32xbf16>
    %11 = vector.shape_cast %10 : vector<1x1x32x32xbf16> to vector<32x32xbf16>
    %cst = arith.constant dense<0.000000e+00> : vector<128x32xf32>
    %12 = tpu.matmul %9, %11, %cst {dimension_numbers = #tpu.dot_dimension_numbers<[1], [0], [0], [1], [0, 0, 1, 1], [], []>} : vector<128x32xbf16>, vector<32x32xbf16>, vector<128x32xf32> -> vector<128x32xf32>
    %13 = arith.addf %6, %12 : vector<128x32xf32>
    %14 = vector.extract_strided_slice %5 {offsets = [0, 1, 0], sizes = [8, 16, 32], strides = [1, 1, 1]} : vector<8x18x32xf32> to vector<8x16x32xf32>
    %15 = vector.shape_cast %14 : vector<8x16x32xf32> to vector<128x32xf32>
    %16 = arith.truncf %15 : vector<128x32xf32> to vector<128x32xbf16>
    %c0_9 = arith.constant 0 : index
    %c1 = arith.constant 1 : index
    %c0_10 = arith.constant 0 : index
    %c0_11 = arith.constant 0 : index
    %17 = vector.load %arg3[%c0_9, %c1, %c0_10, %c0_11] : memref<1x3x32x32xbf16, #tpu.memory_space<vmem>>, vector<1x1x32x32xbf16>
    %18 = vector.shape_cast %17 : vector<1x1x32x32xbf16> to vector<32x32xbf16>
    %cst_12 = arith.constant dense<0.000000e+00> : vector<128x32xf32>
    %19 = tpu.matmul %16, %18, %cst_12 {dimension_numbers = #tpu.dot_dimension_numbers<[1], [0], [0], [1], [0, 0, 1, 1], [], []>} : vector<128x32xbf16>, vector<32x32xbf16>, vector<128x32xf32> -> vector<128x32xf32>
    %20 = arith.addf %13, %19 : vector<128x32xf32>
    %21 = vector.extract_strided_slice %5 {offsets = [0, 2, 0], sizes = [8, 16, 32], strides = [1, 1, 1]} : vector<8x18x32xf32> to vector<8x16x32xf32>
    %22 = vector.shape_cast %21 : vector<8x16x32xf32> to vector<128x32xf32>
    %23 = arith.truncf %22 : vector<128x32xf32> to vector<128x32xbf16>
    %c0_13 = arith.constant 0 : index
    %c2 = arith.constant 2 : index
    %c0_14 = arith.constant 0 : index
    %c0_15 = arith.constant 0 : index
    %24 = vector.load %arg3[%c0_13, %c2, %c0_14, %c0_15] : memref<1x3x32x32xbf16, #tpu.memory_space<vmem>>, vector<1x1x32x32xbf16>
    %25 = vector.shape_cast %24 : vector<1x1x32x32xbf16> to vector<32x32xbf16>
    %cst_16 = arith.constant dense<0.000000e+00> : vector<128x32xf32>
    %26 = tpu.matmul %23, %25, %cst_16 {dimension_numbers = #tpu.dot_dimension_numbers<[1], [0], [0], [1], [0, 0, 1, 1], [], []>} : vector<128x32xbf16>, vector<32x32xbf16>, vector<128x32xf32> -> vector<128x32xf32>
    %27 = arith.addf %20, %26 : vector<128x32xf32>
    %c0_17 = arith.constant 0 : index
    %c0_18 = arith.constant 0 : index
    %28 = vector.load %arg6[%c0_17, %c0_18] : memref<128x32xf32, #tpu.memory_space<vmem>>, vector<128x32xf32>
    tpu.vector_store %arg6[%c0_17, %c0_18], %27 {strides = array<i32>} : memref<128x32xf32, #tpu.memory_space<vmem>>, vector<128x32xf32>,
    %c2_i32 = arith.constant 2 : i32
    %29 = arith.cmpi eq, %arg1, %c2_i32 : i32
    %30 = arith.extui %29 : i1 to i32
    %c0_i32_19 = arith.constant 0 : i32
    %31 = arith.cmpi ne, %30, %c0_i32_19 : i32
    scf.if %31 {
      %c0_20 = arith.constant 0 : index
      %c0_21 = arith.constant 0 : index
      %32 = vector.load %arg4[%c0_20, %c0_21] : memref<1x32xf32, #tpu.memory_space<vmem>>, vector<1x32xf32>
      %33 = vector.broadcast %32 : vector<1x32xf32> to vector<128x32xf32>
      %34 = arith.addf %27, %33 : vector<128x32xf32>
      %c0_22 = arith.constant 0 : index
      %c0_23 = arith.constant 0 : index
      %c0_24 = arith.constant 0 : index
      %35 = vector.load %arg5[%c0_22, %c0_23, %c0_24] : memref<1x128x32xf32, #tpu.memory_space<vmem>>, vector<1x128x32xf32>
      %36 = vector.shape_cast %35 : vector<1x128x32xf32> to vector<128x32xf32>
      %37 = vector.shape_cast %34 : vector<128x32xf32> to vector<1x128x32xf32>
      tpu.vector_store %arg5[%c0_22, %c0_23, %c0_24], %37 {strides = array<i32>} : memref<1x128x32xf32, #tpu.memory_space<vmem>>, vector<1x128x32xf32>,
    } else {
    }
    return
  }
  func.func @transform_0(%arg0: i32, %arg1: i32) -> (i32, i32, i32, i32) {
    %c0_i32 = arith.constant 0 : i32
    %c0_i32_0 = arith.constant 0 : i32
    %c0_i32_1 = arith.constant 0 : i32
    %c0_i32_2 = arith.constant 0 : i32
    return %arg0, %c0_i32, %c0_i32_0, %c0_i32_1 : i32, i32, i32, i32
  }
  func.func @transform_1(%arg0: i32, %arg1: i32) -> (i32, i32, i32, i32) {
    %c0_i32 = arith.constant 0 : i32
    %c0_i32_0 = arith.constant 0 : i32
    %c0_i32_1 = arith.constant 0 : i32
    %c0_i32_2 = arith.constant 0 : i32
    return %arg1, %c0_i32, %c0_i32_0, %c0_i32_1 : i32, i32, i32, i32
  }
  func.func @transform_2(%arg0: i32, %arg1: i32) -> (i32, i32) {
    %c0_i32 = arith.constant 0 : i32
    %c0_i32_0 = arith.constant 0 : i32
    %c0_i32_1 = arith.constant 0 : i32
    return %c0_i32, %c0_i32_0 : i32, i32
  }
  func.func @transform_3(%arg0: i32, %arg1: i32) -> (i32, i32, i32) {
    %c0_i32 = arith.constant 0 : i32
    %c0_i32_0 = arith.constant 0 : i32
    %c0_i32_1 = arith.constant 0 : i32
    return %arg0, %c0_i32, %c0_i32_0 : i32, i32, i32
  }
}

module attributes {stable_mosaic.version = 11 : i64} {
  func.func @_conv_tap_kernel(%arg0: i32, %arg1: i32, %arg2: memref<1x10x18x32xf32, #tpu.memory_space<vmem>>, %arg3: memref<1x3x32x32xbf16, #tpu.memory_space<vmem>>, %arg4: memref<1x32xf32, #tpu.memory_space<vmem>>, %arg5: memref<1x128x32xf32, #tpu.memory_space<vmem>>, %arg6: memref<128x32xf32, #tpu.memory_space<vmem>>) attributes {dimension_semantics = [#tpu.dimension_semantics<parallel>, #tpu.dimension_semantics<arbitrary>], iteration_bounds = array<i64: 2, 3>, scalar_prefetch = 0 : i64, scratch_operands = 1 : i64, tpu.core_type = #tpu.core_type<tc>, window_params = [{transform_indices = @transform_0, window_bounds = array<i64: 1, 10, 18, 32>}, {transform_indices = @transform_1, window_bounds = array<i64: 1, 3, 32, 32>}, {pipeline_mode = #tpu.pipeline_mode<synchronous>, transform_indices = @transform_2, window_bounds = array<i64: 1, 32>}, {transform_indices = @transform_3, window_bounds = array<i64: 1, 128, 32>}]} {
    %c0_i32 = arith.constant 0 : i32
    %0 = arith.cmpi eq, %arg1, %c0_i32 : i32
    %1 = arith.extui %0 : i1 to i32
    %c0_i32_0 = arith.constant 0 : i32
    %2 = arith.cmpi ne, %1, %c0_i32_0 : i32
    scf.if %2 {
      %cst_20 = arith.constant 0.000000e+00 : f32
      %32 = vector.broadcast %cst_20 : f32 to vector<128x32xf32>
      %c0_21 = arith.constant 0 : index
      %c0_22 = arith.constant 0 : index
      %33 = vector.load %arg6[%c0_21, %c0_22] : memref<128x32xf32, #tpu.memory_space<vmem>>, vector<128x32xf32>
      tpu.vector_store %arg6[%c0_21, %c0_22], %32 {strides = array<i32>} : memref<128x32xf32, #tpu.memory_space<vmem>>, vector<128x32xf32>,
    } else {
    }
    %c0 = arith.constant 0 : index
    %3 = arith.index_cast %arg1 : i32 to index
    %c0_1 = arith.constant 0 : index
    %c0_2 = arith.constant 0 : index
    %4 = vector.load %arg2[%c0, %3, %c0_1, %c0_2] : memref<1x10x18x32xf32, #tpu.memory_space<vmem>>, vector<1x8x18x32xf32>
    %5 = vector.shape_cast %4 : vector<1x8x18x32xf32> to vector<8x18x32xf32>
    %c0_3 = arith.constant 0 : index
    %c0_4 = arith.constant 0 : index
    %6 = vector.load %arg6[%c0_3, %c0_4] : memref<128x32xf32, #tpu.memory_space<vmem>>, vector<128x32xf32>
    %7 = vector.extract_strided_slice %5 {offsets = [0, 0, 0], sizes = [8, 16, 32], strides = [1, 1, 1]} : vector<8x18x32xf32> to vector<8x16x32xf32>
    %8 = vector.shape_cast %7 : vector<8x16x32xf32> to vector<128x32xf32>
    %9 = arith.truncf %8 : vector<128x32xf32> to vector<128x32xbf16>
    %c0_5 = arith.constant 0 : index
    %c0_6 = arith.constant 0 : index
    %c0_7 = arith.constant 0 : index
    %c0_8 = arith.constant 0 : index
    %10 = vector.load %arg3[%c0_5, %c0_6, %c0_7, %c0_8] : memref<1x3x32x32xbf16, #tpu.memory_space<vmem>>, vector<1x1x32x32xbf16>
    %11 = vector.shape_cast %10 : vector<1x1x32x32xbf16> to vector<32x32xbf16>
    %cst = arith.constant dense<0.000000e+00> : vector<128x32xf32>
    %12 = tpu.matmul %9, %11, %cst {dimension_numbers = #tpu.dot_dimension_numbers<[1], [0], [0], [1], [0, 0, 1, 1], [], []>} : vector<128x32xbf16>, vector<32x32xbf16>, vector<128x32xf32> -> vector<128x32xf32>
    %13 = arith.addf %6, %12 : vector<128x32xf32>
    %14 = vector.extract_strided_slice %5 {offsets = [0, 1, 0], sizes = [8, 16, 32], strides = [1, 1, 1]} : vector<8x18x32xf32> to vector<8x16x32xf32>
    %15 = vector.shape_cast %14 : vector<8x16x32xf32> to vector<128x32xf32>
    %16 = arith.truncf %15 : vector<128x32xf32> to vector<128x32xbf16>
    %c0_9 = arith.constant 0 : index
    %c1 = arith.constant 1 : index
    %c0_10 = arith.constant 0 : index
    %c0_11 = arith.constant 0 : index
    %17 = vector.load %arg3[%c0_9, %c1, %c0_10, %c0_11] : memref<1x3x32x32xbf16, #tpu.memory_space<vmem>>, vector<1x1x32x32xbf16>
    %18 = vector.shape_cast %17 : vector<1x1x32x32xbf16> to vector<32x32xbf16>
    %cst_12 = arith.constant dense<0.000000e+00> : vector<128x32xf32>
    %19 = tpu.matmul %16, %18, %cst_12 {dimension_numbers = #tpu.dot_dimension_numbers<[1], [0], [0], [1], [0, 0, 1, 1], [], []>} : vector<128x32xbf16>, vector<32x32xbf16>, vector<128x32xf32> -> vector<128x32xf32>
    %20 = arith.addf %13, %19 : vector<128x32xf32>
    %21 = vector.extract_strided_slice %5 {offsets = [0, 2, 0], sizes = [8, 16, 32], strides = [1, 1, 1]} : vector<8x18x32xf32> to vector<8x16x32xf32>
    %22 = vector.shape_cast %21 : vector<8x16x32xf32> to vector<128x32xf32>
    %23 = arith.truncf %22 : vector<128x32xf32> to vector<128x32xbf16>
    %c0_13 = arith.constant 0 : index
    %c2 = arith.constant 2 : index
    %c0_14 = arith.constant 0 : index
    %c0_15 = arith.constant 0 : index
    %24 = vector.load %arg3[%c0_13, %c2, %c0_14, %c0_15] : memref<1x3x32x32xbf16, #tpu.memory_space<vmem>>, vector<1x1x32x32xbf16>
    %25 = vector.shape_cast %24 : vector<1x1x32x32xbf16> to vector<32x32xbf16>
    %cst_16 = arith.constant dense<0.000000e+00> : vector<128x32xf32>
    %26 = tpu.matmul %23, %25, %cst_16 {dimension_numbers = #tpu.dot_dimension_numbers<[1], [0], [0], [1], [0, 0, 1, 1], [], []>} : vector<128x32xbf16>, vector<32x32xbf16>, vector<128x32xf32> -> vector<128x32xf32>
    %27 = arith.addf %20, %26 : vector<128x32xf32>
    %c0_17 = arith.constant 0 : index
    %c0_18 = arith.constant 0 : index
    %28 = vector.load %arg6[%c0_17, %c0_18] : memref<128x32xf32, #tpu.memory_space<vmem>>, vector<128x32xf32>
    tpu.vector_store %arg6[%c0_17, %c0_18], %27 {strides = array<i32>} : memref<128x32xf32, #tpu.memory_space<vmem>>, vector<128x32xf32>,
    %c2_i32 = arith.constant 2 : i32
    %29 = arith.cmpi eq, %arg1, %c2_i32 : i32
    %30 = arith.extui %29 : i1 to i32
    %c0_i32_19 = arith.constant 0 : i32
    %31 = arith.cmpi ne, %30, %c0_i32_19 : i32
    scf.if %31 {
      %c0_20 = arith.constant 0 : index
      %c0_21 = arith.constant 0 : index
      %32 = vector.load %arg4[%c0_20, %c0_21] : memref<1x32xf32, #tpu.memory_space<vmem>>, vector<1x32xf32>
      %33 = vector.broadcast %32 : vector<1x32xf32> to vector<128x32xf32>
      %34 = arith.addf %27, %33 : vector<128x32xf32>
      %cst_22 = arith.constant 0.000000e+00 : f32
      %35 = vector.broadcast %cst_22 : f32 to vector<128x32xf32>
      %36 = arith.maximumf %34, %35 : vector<128x32xf32>
      %37 = math.absf %34 : vector<128x32xf32>
      %cst_23 = arith.constant 0.000000e+00 : f32
      %38 = vector.broadcast %cst_23 : f32 to vector<128x32xf32>
      %39 = arith.subf %38, %37 : vector<128x32xf32>
      %40 = math.exp %39 : vector<128x32xf32>
      %cst_24 = arith.constant 1.000000e+00 : f32
      %41 = vector.broadcast %cst_24 : f32 to vector<128x32xf32>
      %42 = arith.addf %41, %40 : vector<128x32xf32>
      %43 = math.log %42 : vector<128x32xf32>
      %44 = arith.addf %36, %43 : vector<128x32xf32>
      %45 = math.tanh %44 : vector<128x32xf32>
      %46 = arith.mulf %34, %45 : vector<128x32xf32>
      %c0_25 = arith.constant 0 : index
      %c0_26 = arith.constant 0 : index
      %c0_27 = arith.constant 0 : index
      %47 = vector.load %arg5[%c0_25, %c0_26, %c0_27] : memref<1x128x32xf32, #tpu.memory_space<vmem>>, vector<1x128x32xf32>
      %48 = vector.shape_cast %47 : vector<1x128x32xf32> to vector<128x32xf32>
      %49 = vector.shape_cast %46 : vector<128x32xf32> to vector<1x128x32xf32>
      tpu.vector_store %arg5[%c0_25, %c0_26, %c0_27], %49 {strides = array<i32>} : memref<1x128x32xf32, #tpu.memory_space<vmem>>, vector<1x128x32xf32>,
    } else {
    }
    return
  }
  func.func @transform_0(%arg0: i32, %arg1: i32) -> (i32, i32, i32, i32) {
    %c0_i32 = arith.constant 0 : i32
    %c0_i32_0 = arith.constant 0 : i32
    %c0_i32_1 = arith.constant 0 : i32
    %c0_i32_2 = arith.constant 0 : i32
    return %arg0, %c0_i32, %c0_i32_0, %c0_i32_1 : i32, i32, i32, i32
  }
  func.func @transform_1(%arg0: i32, %arg1: i32) -> (i32, i32, i32, i32) {
    %c0_i32 = arith.constant 0 : i32
    %c0_i32_0 = arith.constant 0 : i32
    %c0_i32_1 = arith.constant 0 : i32
    %c0_i32_2 = arith.constant 0 : i32
    return %arg1, %c0_i32, %c0_i32_0, %c0_i32_1 : i32, i32, i32, i32
  }
  func.func @transform_2(%arg0: i32, %arg1: i32) -> (i32, i32) {
    %c0_i32 = arith.constant 0 : i32
    %c0_i32_0 = arith.constant 0 : i32
    %c0_i32_1 = arith.constant 0 : i32
    return %c0_i32, %c0_i32_0 : i32, i32
  }
  func.func @transform_3(%arg0: i32, %arg1: i32) -> (i32, i32, i32) {
    %c0_i32 = arith.constant 0 : i32
    %c0_i32_0 = arith.constant 0 : i32
    %c0_i32_1 = arith.constant 0 : i32
    return %arg0, %c0_i32, %c0_i32_0 : i32, i32, i32
  }
}

module attributes {stable_mosaic.version = 11 : i64} {
  func.func @_matmul_bias_act_kernel(%arg0: i32, %arg1: memref<256x32xf32, #tpu.memory_space<vmem>>, %arg2: memref<32x128xbf16, #tpu.memory_space<vmem>>, %arg3: memref<1x128xf32, #tpu.memory_space<vmem>>, %arg4: memref<256x128xf32, #tpu.memory_space<vmem>>) attributes {dimension_semantics = [#tpu.dimension_semantics<parallel>], iteration_bounds = array<i64: 1>, scalar_prefetch = 0 : i64, scratch_operands = 0 : i64, tpu.core_type = #tpu.core_type<tc>, window_params = [{transform_indices = @transform_0, window_bounds = array<i64: 256, 32>}, {pipeline_mode = #tpu.pipeline_mode<synchronous>, transform_indices = @transform_1, window_bounds = array<i64: 32, 128>}, {pipeline_mode = #tpu.pipeline_mode<synchronous>, transform_indices = @transform_2, window_bounds = array<i64: 1, 128>}, {transform_indices = @transform_3, window_bounds = array<i64: 256, 128>}]} {
    %c0 = arith.constant 0 : index
    %c0_0 = arith.constant 0 : index
    %0 = vector.load %arg1[%c0, %c0_0] : memref<256x32xf32, #tpu.memory_space<vmem>>, vector<256x32xf32>
    %1 = arith.truncf %0 : vector<256x32xf32> to vector<256x32xbf16>
    %c0_1 = arith.constant 0 : index
    %c0_2 = arith.constant 0 : index
    %2 = vector.load %arg2[%c0_1, %c0_2] : memref<32x128xbf16, #tpu.memory_space<vmem>>, vector<32x128xbf16>
    %cst = arith.constant dense<0.000000e+00> : vector<256x128xf32>
    %3 = tpu.matmul %1, %2, %cst {dimension_numbers = #tpu.dot_dimension_numbers<[1], [0], [0], [1], [0, 0, 1, 1], [], []>} : vector<256x32xbf16>, vector<32x128xbf16>, vector<256x128xf32> -> vector<256x128xf32>
    %c0_3 = arith.constant 0 : index
    %c0_4 = arith.constant 0 : index
    %4 = vector.load %arg3[%c0_3, %c0_4] : memref<1x128xf32, #tpu.memory_space<vmem>>, vector<1x128xf32>
    %5 = vector.broadcast %4 : vector<1x128xf32> to vector<256x128xf32>
    %6 = arith.addf %3, %5 : vector<256x128xf32>
    %c0_5 = arith.constant 0 : index
    %c0_6 = arith.constant 0 : index
    %7 = vector.load %arg4[%c0_5, %c0_6] : memref<256x128xf32, #tpu.memory_space<vmem>>, vector<256x128xf32>
    tpu.vector_store %arg4[%c0_5, %c0_6], %6 {strides = array<i32>} : memref<256x128xf32, #tpu.memory_space<vmem>>, vector<256x128xf32>,
    return
  }
  func.func @transform_0(%arg0: i32) -> (i32, i32) {
    %c0_i32 = arith.constant 0 : i32
    %c0_i32_0 = arith.constant 0 : i32
    return %arg0, %c0_i32 : i32, i32
  }
  func.func @transform_1(%arg0: i32) -> (i32, i32) {
    %c0_i32 = arith.constant 0 : i32
    %c0_i32_0 = arith.constant 0 : i32
    %c0_i32_1 = arith.constant 0 : i32
    return %c0_i32, %c0_i32_0 : i32, i32
  }
  func.func @transform_2(%arg0: i32) -> (i32, i32) {
    %c0_i32 = arith.constant 0 : i32
    %c0_i32_0 = arith.constant 0 : i32
    %c0_i32_1 = arith.constant 0 : i32
    return %c0_i32, %c0_i32_0 : i32, i32
  }
  func.func @transform_3(%arg0: i32) -> (i32, i32) {
    %c0_i32 = arith.constant 0 : i32
    %c0_i32_0 = arith.constant 0 : i32
    return %arg0, %c0_i32 : i32, i32
  }
}

module attributes {stable_mosaic.version = 11 : i64} {
  func.func @_bigru_kernel(%arg0: i32, %arg1: memref<8x3x32x16xf32, #tpu.memory_space<vmem>>, %arg2: memref<8x3x32x16xf32, #tpu.memory_space<vmem>>, %arg3: memref<16x48xf32, #tpu.memory_space<vmem>>, %arg4: memref<16x48xf32, #tpu.memory_space<vmem>>, %arg5: memref<1x16xf32, #tpu.memory_space<vmem>>, %arg6: memref<1x16xf32, #tpu.memory_space<vmem>>, %arg7: memref<8x32x16xf32, #tpu.memory_space<vmem>>, %arg8: memref<8x32x16xf32, #tpu.memory_space<vmem>>) attributes {dimension_semantics = [#tpu.dimension_semantics<parallel>], iteration_bounds = array<i64: 1>, scalar_prefetch = 0 : i64, scratch_operands = 0 : i64, tpu.core_type = #tpu.core_type<tc>, window_params = [{transform_indices = @transform_0, window_bounds = array<i64: 8, 3, 32, 16>}, {transform_indices = @transform_1, window_bounds = array<i64: 8, 3, 32, 16>}, {pipeline_mode = #tpu.pipeline_mode<synchronous>, transform_indices = @transform_2, window_bounds = array<i64: 16, 48>}, {pipeline_mode = #tpu.pipeline_mode<synchronous>, transform_indices = @transform_3, window_bounds = array<i64: 16, 48>}, {pipeline_mode = #tpu.pipeline_mode<synchronous>, transform_indices = @transform_4, window_bounds = array<i64: 1, 16>}, {pipeline_mode = #tpu.pipeline_mode<synchronous>, transform_indices = @transform_5, window_bounds = array<i64: 1, 16>}, {transform_indices = @transform_6, window_bounds = array<i64: 8, 32, 16>}, {transform_indices = @transform_7, window_bounds = array<i64: 8, 32, 16>}]} {
    %c0 = arith.constant 0 : index
    %c0_0 = arith.constant 0 : index
    %0 = vector.load %arg3[%c0, %c0_0] : memref<16x48xf32, #tpu.memory_space<vmem>>, vector<16x48xf32>
    %c0_1 = arith.constant 0 : index
    %c0_2 = arith.constant 0 : index
    %1 = vector.load %arg4[%c0_1, %c0_2] : memref<16x48xf32, #tpu.memory_space<vmem>>, vector<16x48xf32>
    %c0_3 = arith.constant 0 : index
    %c0_4 = arith.constant 0 : index
    %2 = vector.load %arg5[%c0_3, %c0_4] : memref<1x16xf32, #tpu.memory_space<vmem>>, vector<1x16xf32>
    %c0_5 = arith.constant 0 : index
    %c0_6 = arith.constant 0 : index
    %3 = vector.load %arg6[%c0_5, %c0_6] : memref<1x16xf32, #tpu.memory_space<vmem>>, vector<1x16xf32>
    %cst = arith.constant 0.000000e+00 : f32
    %4 = vector.broadcast %cst : f32 to vector<32x16xf32>
    %c0_i32 = arith.constant 0 : i32
    %c8_i32 = arith.constant 8 : i32
    %5 = arith.addi %c0_i32, %c8_i32 : i32
    %c1_i32 = arith.constant 1 : i32
    %6:2 = scf.for %arg9 = %c0_i32 to %5 step %c1_i32 iter_args(%arg10 = %4, %arg11 = %4) -> (vector<32x16xf32>, vector<32x16xf32>)  : i32 {
      %c7_i32 = arith.constant 7 : i32
      %7 = arith.subi %c7_i32, %arg9 : i32
      %8 = arith.index_cast %arg9 : i32 to index
      %c0_8 = arith.constant 0 : index
      %c0_9 = arith.constant 0 : index
      %c0_10 = arith.constant 0 : index
      %9 = vector.load %arg1[%8, %c0_8, %c0_9, %c0_10] : memref<8x3x32x16xf32, #tpu.memory_space<vmem>>, vector<1x3x32x16xf32>
      %10 = vector.shape_cast %9 : vector<1x3x32x16xf32> to vector<3x32x16xf32>
      %cst_11 = arith.constant dense<0.000000e+00> : vector<32x48xf32>
      %11 = tpu.matmul %arg10, %0, %cst_11 {dimension_numbers = #tpu.dot_dimension_numbers<[1], [0], [0], [1], [0, 0, 1, 1], [], []>} : vector<32x16xf32>, vector<16x48xf32>, vector<32x48xf32> -> vector<32x48xf32>
      %12 = vector.extract_strided_slice %10 {offsets = [0, 0, 0], sizes = [1, 32, 16], strides = [1, 1, 1]} : vector<3x32x16xf32> to vector<1x32x16xf32>
      %13 = vector.shape_cast %12 : vector<1x32x16xf32> to vector<32x16xf32>
      %14 = vector.extract_strided_slice %11 {offsets = [0, 0], sizes = [32, 16], strides = [1, 1]} : vector<32x48xf32> to vector<32x16xf32>
      %15 = arith.addf %13, %14 : vector<32x16xf32>
      %cst_12 = arith.constant 5.000000e-01 : f32
      %16 = vector.broadcast %cst_12 : f32 to vector<32x16xf32>
      %17 = arith.mulf %16, %15 : vector<32x16xf32>
      %18 = math.tanh %17 : vector<32x16xf32>
      %cst_13 = arith.constant 1.000000e+00 : f32
      %19 = vector.broadcast %cst_13 : f32 to vector<32x16xf32>
      %20 = arith.addf %18, %19 : vector<32x16xf32>
      %cst_14 = arith.constant 5.000000e-01 : f32
      %21 = vector.broadcast %cst_14 : f32 to vector<32x16xf32>
      %22 = arith.mulf %21, %20 : vector<32x16xf32>
      %23 = vector.extract_strided_slice %10 {offsets = [1, 0, 0], sizes = [1, 32, 16], strides = [1, 1, 1]} : vector<3x32x16xf32> to vector<1x32x16xf32>
      %24 = vector.shape_cast %23 : vector<1x32x16xf32> to vector<32x16xf32>
      %25 = vector.extract_strided_slice %11 {offsets = [0, 16], sizes = [32, 16], strides = [1, 1]} : vector<32x48xf32> to vector<32x16xf32>
      %26 = arith.addf %24, %25 : vector<32x16xf32>
      %cst_15 = arith.constant 5.000000e-01 : f32
      %27 = vector.broadcast %cst_15 : f32 to vector<32x16xf32>
      %28 = arith.mulf %27, %26 : vector<32x16xf32>
      %29 = math.tanh %28 : vector<32x16xf32>
      %cst_16 = arith.constant 1.000000e+00 : f32
      %30 = vector.broadcast %cst_16 : f32 to vector<32x16xf32>
      %31 = arith.addf %29, %30 : vector<32x16xf32>
      %cst_17 = arith.constant 5.000000e-01 : f32
      %32 = vector.broadcast %cst_17 : f32 to vector<32x16xf32>
      %33 = arith.mulf %32, %31 : vector<32x16xf32>
      %34 = vector.extract_strided_slice %10 {offsets = [2, 0, 0], sizes = [1, 32, 16], strides = [1, 1, 1]} : vector<3x32x16xf32> to vector<1x32x16xf32>
      %35 = vector.shape_cast %34 : vector<1x32x16xf32> to vector<32x16xf32>
      %36 = vector.extract_strided_slice %11 {offsets = [0, 32], sizes = [32, 16], strides = [1, 1]} : vector<32x48xf32> to vector<32x16xf32>
      %37 = vector.broadcast %2 : vector<1x16xf32> to vector<32x16xf32>
      %38 = arith.addf %36, %37 : vector<32x16xf32>
      %39 = arith.mulf %22, %38 : vector<32x16xf32>
      %40 = arith.addf %35, %39 : vector<32x16xf32>
      %41 = math.tanh %40 : vector<32x16xf32>
      %cst_18 = arith.constant 1.000000e+00 : f32
      %42 = vector.broadcast %cst_18 : f32 to vector<32x16xf32>
      %43 = arith.subf %42, %33 : vector<32x16xf32>
      %44 = arith.mulf %43, %41 : vector<32x16xf32>
      %45 = arith.mulf %33, %arg10 : vector<32x16xf32>
      %46 = arith.addf %44, %45 : vector<32x16xf32>
      %47 = arith.index_cast %7 : i32 to index
      %c0_19 = arith.constant 0 : index
      %c0_20 = arith.constant 0 : index
      %c0_21 = arith.constant 0 : index
      %48 = vector.load %arg2[%47, %c0_19, %c0_20, %c0_21] : memref<8x3x32x16xf32, #tpu.memory_space<vmem>>, vector<1x3x32x16xf32>
      %49 = vector.shape_cast %48 : vector<1x3x32x16xf32> to vector<3x32x16xf32>
      %cst_22 = arith.constant dense<0.000000e+00> : vector<32x48xf32>
      %50 = tpu.matmul %arg11, %1, %cst_22 {dimension_numbers = #tpu.dot_dimension_numbers<[1], [0], [0], [1], [0, 0, 1, 1], [], []>} : vector<32x16xf32>, vector<16x48xf32>, vector<32x48xf32> -> vector<32x48xf32>
      %51 = vector.extract_strided_slice %49 {offsets = [0, 0, 0], sizes = [1, 32, 16], strides = [1, 1, 1]} : vector<3x32x16xf32> to vector<1x32x16xf32>
      %52 = vector.shape_cast %51 : vector<1x32x16xf32> to vector<32x16xf32>
      %53 = vector.extract_strided_slice %50 {offsets = [0, 0], sizes = [32, 16], strides = [1, 1]} : vector<32x48xf32> to vector<32x16xf32>
      %54 = arith.addf %52, %53 : vector<32x16xf32>
      %cst_23 = arith.constant 5.000000e-01 : f32
      %55 = vector.broadcast %cst_23 : f32 to vector<32x16xf32>
      %56 = arith.mulf %55, %54 : vector<32x16xf32>
      %57 = math.tanh %56 : vector<32x16xf32>
      %cst_24 = arith.constant 1.000000e+00 : f32
      %58 = vector.broadcast %cst_24 : f32 to vector<32x16xf32>
      %59 = arith.addf %57, %58 : vector<32x16xf32>
      %cst_25 = arith.constant 5.000000e-01 : f32
      %60 = vector.broadcast %cst_25 : f32 to vector<32x16xf32>
      %61 = arith.mulf %60, %59 : vector<32x16xf32>
      %62 = vector.extract_strided_slice %49 {offsets = [1, 0, 0], sizes = [1, 32, 16], strides = [1, 1, 1]} : vector<3x32x16xf32> to vector<1x32x16xf32>
      %63 = vector.shape_cast %62 : vector<1x32x16xf32> to vector<32x16xf32>
      %64 = vector.extract_strided_slice %50 {offsets = [0, 16], sizes = [32, 16], strides = [1, 1]} : vector<32x48xf32> to vector<32x16xf32>
      %65 = arith.addf %63, %64 : vector<32x16xf32>
      %cst_26 = arith.constant 5.000000e-01 : f32
      %66 = vector.broadcast %cst_26 : f32 to vector<32x16xf32>
      %67 = arith.mulf %66, %65 : vector<32x16xf32>
      %68 = math.tanh %67 : vector<32x16xf32>
      %cst_27 = arith.constant 1.000000e+00 : f32
      %69 = vector.broadcast %cst_27 : f32 to vector<32x16xf32>
      %70 = arith.addf %68, %69 : vector<32x16xf32>
      %cst_28 = arith.constant 5.000000e-01 : f32
      %71 = vector.broadcast %cst_28 : f32 to vector<32x16xf32>
      %72 = arith.mulf %71, %70 : vector<32x16xf32>
      %73 = vector.extract_strided_slice %49 {offsets = [2, 0, 0], sizes = [1, 32, 16], strides = [1, 1, 1]} : vector<3x32x16xf32> to vector<1x32x16xf32>
      %74 = vector.shape_cast %73 : vector<1x32x16xf32> to vector<32x16xf32>
      %75 = vector.extract_strided_slice %50 {offsets = [0, 32], sizes = [32, 16], strides = [1, 1]} : vector<32x48xf32> to vector<32x16xf32>
      %76 = vector.broadcast %3 : vector<1x16xf32> to vector<32x16xf32>
      %77 = arith.addf %75, %76 : vector<32x16xf32>
      %78 = arith.mulf %61, %77 : vector<32x16xf32>
      %79 = arith.addf %74, %78 : vector<32x16xf32>
      %80 = math.tanh %79 : vector<32x16xf32>
      %cst_29 = arith.constant 1.000000e+00 : f32
      %81 = vector.broadcast %cst_29 : f32 to vector<32x16xf32>
      %82 = arith.subf %81, %72 : vector<32x16xf32>
      %83 = arith.mulf %82, %80 : vector<32x16xf32>
      %84 = arith.mulf %72, %arg11 : vector<32x16xf32>
      %85 = arith.addf %83, %84 : vector<32x16xf32>
      %86 = arith.index_cast %arg9 : i32 to index
      %c0_30 = arith.constant 0 : index
      %c0_31 = arith.constant 0 : index
      %87 = vector.load %arg7[%86, %c0_30, %c0_31] : memref<8x32x16xf32, #tpu.memory_space<vmem>>, vector<1x32x16xf32>
      %88 = vector.shape_cast %87 : vector<1x32x16xf32> to vector<32x16xf32>
      %89 = vector.shape_cast %46 : vector<32x16xf32> to vector<1x32x16xf32>
      tpu.vector_store %arg7[%86, %c0_30, %c0_31], %89 {strides = array<i32>} : memref<8x32x16xf32, #tpu.memory_space<vmem>>, vector<1x32x16xf32>,
      %90 = arith.index_cast %7 : i32 to index
      %c0_32 = arith.constant 0 : index
      %c0_33 = arith.constant 0 : index
      %91 = vector.load %arg8[%90, %c0_32, %c0_33] : memref<8x32x16xf32, #tpu.memory_space<vmem>>, vector<1x32x16xf32>
      %92 = vector.shape_cast %91 : vector<1x32x16xf32> to vector<32x16xf32>
      %93 = vector.shape_cast %85 : vector<32x16xf32> to vector<1x32x16xf32>
      tpu.vector_store %arg8[%90, %c0_32, %c0_33], %93 {strides = array<i32>} : memref<8x32x16xf32, #tpu.memory_space<vmem>>, vector<1x32x16xf32>,
      scf.yield %46, %85 : vector<32x16xf32>, vector<32x16xf32>
    }
    %c8_i32_7 = arith.constant 8 : i32
    return
  }
  func.func @transform_0(%arg0: i32) -> (i32, i32, i32, i32) {
    %c0_i32 = arith.constant 0 : i32
    %c0_i32_0 = arith.constant 0 : i32
    %c0_i32_1 = arith.constant 0 : i32
    %c0_i32_2 = arith.constant 0 : i32
    return %c0_i32, %c0_i32_0, %arg0, %c0_i32_1 : i32, i32, i32, i32
  }
  func.func @transform_1(%arg0: i32) -> (i32, i32, i32, i32) {
    %c0_i32 = arith.constant 0 : i32
    %c0_i32_0 = arith.constant 0 : i32
    %c0_i32_1 = arith.constant 0 : i32
    %c0_i32_2 = arith.constant 0 : i32
    return %c0_i32, %c0_i32_0, %arg0, %c0_i32_1 : i32, i32, i32, i32
  }
  func.func @transform_2(%arg0: i32) -> (i32, i32) {
    %c0_i32 = arith.constant 0 : i32
    %c0_i32_0 = arith.constant 0 : i32
    %c0_i32_1 = arith.constant 0 : i32
    return %c0_i32, %c0_i32_0 : i32, i32
  }
  func.func @transform_3(%arg0: i32) -> (i32, i32) {
    %c0_i32 = arith.constant 0 : i32
    %c0_i32_0 = arith.constant 0 : i32
    %c0_i32_1 = arith.constant 0 : i32
    return %c0_i32, %c0_i32_0 : i32, i32
  }
  func.func @transform_4(%arg0: i32) -> (i32, i32) {
    %c0_i32 = arith.constant 0 : i32
    %c0_i32_0 = arith.constant 0 : i32
    %c0_i32_1 = arith.constant 0 : i32
    return %c0_i32, %c0_i32_0 : i32, i32
  }
  func.func @transform_5(%arg0: i32) -> (i32, i32) {
    %c0_i32 = arith.constant 0 : i32
    %c0_i32_0 = arith.constant 0 : i32
    %c0_i32_1 = arith.constant 0 : i32
    return %c0_i32, %c0_i32_0 : i32, i32
  }
  func.func @transform_6(%arg0: i32) -> (i32, i32, i32) {
    %c0_i32 = arith.constant 0 : i32
    %c0_i32_0 = arith.constant 0 : i32
    %c0_i32_1 = arith.constant 0 : i32
    return %c0_i32, %arg0, %c0_i32_0 : i32, i32, i32
  }
  func.func @transform_7(%arg0: i32) -> (i32, i32, i32) {
    %c0_i32 = arith.constant 0 : i32
    %c0_i32_0 = arith.constant 0 : i32
    %c0_i32_1 = arith.constant 0 : i32
    return %c0_i32, %arg0, %c0_i32_0 : i32, i32, i32
  }
}

module attributes {stable_mosaic.version = 11 : i64} {
  func.func @_matmul_bias_act_kernel(%arg0: i32, %arg1: memref<256x32xf32, #tpu.memory_space<vmem>>, %arg2: memref<256x32xf32, #tpu.memory_space<vmem>>, %arg3: memref<32x128xbf16, #tpu.memory_space<vmem>>, %arg4: memref<1x128xf32, #tpu.memory_space<vmem>>, %arg5: memref<256x128xf32, #tpu.memory_space<vmem>>) attributes {dimension_semantics = [#tpu.dimension_semantics<parallel>], iteration_bounds = array<i64: 1>, scalar_prefetch = 0 : i64, scratch_operands = 0 : i64, tpu.core_type = #tpu.core_type<tc>, window_params = [{transform_indices = @transform_0, window_bounds = array<i64: 256, 32>}, {transform_indices = @transform_1, window_bounds = array<i64: 256, 32>}, {pipeline_mode = #tpu.pipeline_mode<synchronous>, transform_indices = @transform_2, window_bounds = array<i64: 32, 128>}, {pipeline_mode = #tpu.pipeline_mode<synchronous>, transform_indices = @transform_3, window_bounds = array<i64: 1, 128>}, {transform_indices = @transform_4, window_bounds = array<i64: 256, 128>}]} {
    %c0 = arith.constant 0 : index
    %c0_0 = arith.constant 0 : index
    %0 = vector.load %arg1[%c0, %c0_0] : memref<256x32xf32, #tpu.memory_space<vmem>>, vector<256x32xf32>
    %c0_1 = arith.constant 0 : index
    %c0_2 = arith.constant 0 : index
    %1 = vector.load %arg2[%c0_1, %c0_2] : memref<256x32xf32, #tpu.memory_space<vmem>>, vector<256x32xf32>
    %2 = arith.addf %0, %1 : vector<256x32xf32>
    %3 = arith.truncf %2 : vector<256x32xf32> to vector<256x32xbf16>
    %c0_3 = arith.constant 0 : index
    %c0_4 = arith.constant 0 : index
    %4 = vector.load %arg3[%c0_3, %c0_4] : memref<32x128xbf16, #tpu.memory_space<vmem>>, vector<32x128xbf16>
    %cst = arith.constant dense<0.000000e+00> : vector<256x128xf32>
    %5 = tpu.matmul %3, %4, %cst {dimension_numbers = #tpu.dot_dimension_numbers<[1], [0], [0], [1], [0, 0, 1, 1], [], []>} : vector<256x32xbf16>, vector<32x128xbf16>, vector<256x128xf32> -> vector<256x128xf32>
    %c0_5 = arith.constant 0 : index
    %c0_6 = arith.constant 0 : index
    %6 = vector.load %arg4[%c0_5, %c0_6] : memref<1x128xf32, #tpu.memory_space<vmem>>, vector<1x128xf32>
    %7 = vector.broadcast %6 : vector<1x128xf32> to vector<256x128xf32>
    %8 = arith.addf %5, %7 : vector<256x128xf32>
    %c0_7 = arith.constant 0 : index
    %c0_8 = arith.constant 0 : index
    %9 = vector.load %arg5[%c0_7, %c0_8] : memref<256x128xf32, #tpu.memory_space<vmem>>, vector<256x128xf32>
    tpu.vector_store %arg5[%c0_7, %c0_8], %8 {strides = array<i32>} : memref<256x128xf32, #tpu.memory_space<vmem>>, vector<256x128xf32>,
    return
  }
  func.func @transform_0(%arg0: i32) -> (i32, i32) {
    %c0_i32 = arith.constant 0 : i32
    %c0_i32_0 = arith.constant 0 : i32
    return %arg0, %c0_i32 : i32, i32
  }
  func.func @transform_1(%arg0: i32) -> (i32, i32) {
    %c0_i32 = arith.constant 0 : i32
    %c0_i32_0 = arith.constant 0 : i32
    return %arg0, %c0_i32 : i32, i32
  }
  func.func @transform_2(%arg0: i32) -> (i32, i32) {
    %c0_i32 = arith.constant 0 : i32
    %c0_i32_0 = arith.constant 0 : i32
    %c0_i32_1 = arith.constant 0 : i32
    return %c0_i32, %c0_i32_0 : i32, i32
  }
  func.func @transform_3(%arg0: i32) -> (i32, i32) {
    %c0_i32 = arith.constant 0 : i32
    %c0_i32_0 = arith.constant 0 : i32
    %c0_i32_1 = arith.constant 0 : i32
    return %c0_i32, %c0_i32_0 : i32, i32
  }
  func.func @transform_4(%arg0: i32) -> (i32, i32) {
    %c0_i32 = arith.constant 0 : i32
    %c0_i32_0 = arith.constant 0 : i32
    return %arg0, %c0_i32 : i32, i32
  }
}

module attributes {stable_mosaic.version = 11 : i64} {
  func.func @_bigru_kernel(%arg0: i32, %arg1: memref<16x3x16x16xf32, #tpu.memory_space<vmem>>, %arg2: memref<16x3x16x16xf32, #tpu.memory_space<vmem>>, %arg3: memref<16x48xf32, #tpu.memory_space<vmem>>, %arg4: memref<16x48xf32, #tpu.memory_space<vmem>>, %arg5: memref<1x16xf32, #tpu.memory_space<vmem>>, %arg6: memref<1x16xf32, #tpu.memory_space<vmem>>, %arg7: memref<16x16x16xf32, #tpu.memory_space<vmem>>, %arg8: memref<16x16x16xf32, #tpu.memory_space<vmem>>) attributes {dimension_semantics = [#tpu.dimension_semantics<parallel>], iteration_bounds = array<i64: 1>, scalar_prefetch = 0 : i64, scratch_operands = 0 : i64, tpu.core_type = #tpu.core_type<tc>, window_params = [{transform_indices = @transform_0, window_bounds = array<i64: 16, 3, 16, 16>}, {transform_indices = @transform_1, window_bounds = array<i64: 16, 3, 16, 16>}, {pipeline_mode = #tpu.pipeline_mode<synchronous>, transform_indices = @transform_2, window_bounds = array<i64: 16, 48>}, {pipeline_mode = #tpu.pipeline_mode<synchronous>, transform_indices = @transform_3, window_bounds = array<i64: 16, 48>}, {pipeline_mode = #tpu.pipeline_mode<synchronous>, transform_indices = @transform_4, window_bounds = array<i64: 1, 16>}, {pipeline_mode = #tpu.pipeline_mode<synchronous>, transform_indices = @transform_5, window_bounds = array<i64: 1, 16>}, {transform_indices = @transform_6, window_bounds = array<i64: 16, 16, 16>}, {transform_indices = @transform_7, window_bounds = array<i64: 16, 16, 16>}]} {
    %c0 = arith.constant 0 : index
    %c0_0 = arith.constant 0 : index
    %0 = vector.load %arg3[%c0, %c0_0] : memref<16x48xf32, #tpu.memory_space<vmem>>, vector<16x48xf32>
    %c0_1 = arith.constant 0 : index
    %c0_2 = arith.constant 0 : index
    %1 = vector.load %arg4[%c0_1, %c0_2] : memref<16x48xf32, #tpu.memory_space<vmem>>, vector<16x48xf32>
    %c0_3 = arith.constant 0 : index
    %c0_4 = arith.constant 0 : index
    %2 = vector.load %arg5[%c0_3, %c0_4] : memref<1x16xf32, #tpu.memory_space<vmem>>, vector<1x16xf32>
    %c0_5 = arith.constant 0 : index
    %c0_6 = arith.constant 0 : index
    %3 = vector.load %arg6[%c0_5, %c0_6] : memref<1x16xf32, #tpu.memory_space<vmem>>, vector<1x16xf32>
    %cst = arith.constant 0.000000e+00 : f32
    %4 = vector.broadcast %cst : f32 to vector<16x16xf32>
    %c0_i32 = arith.constant 0 : i32
    %c16_i32 = arith.constant 16 : i32
    %5 = arith.addi %c0_i32, %c16_i32 : i32
    %c1_i32 = arith.constant 1 : i32
    %6:2 = scf.for %arg9 = %c0_i32 to %5 step %c1_i32 iter_args(%arg10 = %4, %arg11 = %4) -> (vector<16x16xf32>, vector<16x16xf32>)  : i32 {
      %c15_i32 = arith.constant 15 : i32
      %7 = arith.subi %c15_i32, %arg9 : i32
      %8 = arith.index_cast %arg9 : i32 to index
      %c0_8 = arith.constant 0 : index
      %c0_9 = arith.constant 0 : index
      %c0_10 = arith.constant 0 : index
      %9 = vector.load %arg1[%8, %c0_8, %c0_9, %c0_10] : memref<16x3x16x16xf32, #tpu.memory_space<vmem>>, vector<1x3x16x16xf32>
      %10 = vector.shape_cast %9 : vector<1x3x16x16xf32> to vector<3x16x16xf32>
      %cst_11 = arith.constant dense<0.000000e+00> : vector<16x48xf32>
      %11 = tpu.matmul %arg10, %0, %cst_11 {dimension_numbers = #tpu.dot_dimension_numbers<[1], [0], [0], [1], [0, 0, 1, 1], [], []>} : vector<16x16xf32>, vector<16x48xf32>, vector<16x48xf32> -> vector<16x48xf32>
      %12 = vector.extract_strided_slice %10 {offsets = [0, 0, 0], sizes = [1, 16, 16], strides = [1, 1, 1]} : vector<3x16x16xf32> to vector<1x16x16xf32>
      %13 = vector.shape_cast %12 : vector<1x16x16xf32> to vector<16x16xf32>
      %14 = vector.extract_strided_slice %11 {offsets = [0, 0], sizes = [16, 16], strides = [1, 1]} : vector<16x48xf32> to vector<16x16xf32>
      %15 = arith.addf %13, %14 : vector<16x16xf32>
      %cst_12 = arith.constant 5.000000e-01 : f32
      %16 = vector.broadcast %cst_12 : f32 to vector<16x16xf32>
      %17 = arith.mulf %16, %15 : vector<16x16xf32>
      %18 = math.tanh %17 : vector<16x16xf32>
      %cst_13 = arith.constant 1.000000e+00 : f32
      %19 = vector.broadcast %cst_13 : f32 to vector<16x16xf32>
      %20 = arith.addf %18, %19 : vector<16x16xf32>
      %cst_14 = arith.constant 5.000000e-01 : f32
      %21 = vector.broadcast %cst_14 : f32 to vector<16x16xf32>
      %22 = arith.mulf %21, %20 : vector<16x16xf32>
      %23 = vector.extract_strided_slice %10 {offsets = [1, 0, 0], sizes = [1, 16, 16], strides = [1, 1, 1]} : vector<3x16x16xf32> to vector<1x16x16xf32>
      %24 = vector.shape_cast %23 : vector<1x16x16xf32> to vector<16x16xf32>
      %25 = vector.extract_strided_slice %11 {offsets = [0, 16], sizes = [16, 16], strides = [1, 1]} : vector<16x48xf32> to vector<16x16xf32>
      %26 = arith.addf %24, %25 : vector<16x16xf32>
      %cst_15 = arith.constant 5.000000e-01 : f32
      %27 = vector.broadcast %cst_15 : f32 to vector<16x16xf32>
      %28 = arith.mulf %27, %26 : vector<16x16xf32>
      %29 = math.tanh %28 : vector<16x16xf32>
      %cst_16 = arith.constant 1.000000e+00 : f32
      %30 = vector.broadcast %cst_16 : f32 to vector<16x16xf32>
      %31 = arith.addf %29, %30 : vector<16x16xf32>
      %cst_17 = arith.constant 5.000000e-01 : f32
      %32 = vector.broadcast %cst_17 : f32 to vector<16x16xf32>
      %33 = arith.mulf %32, %31 : vector<16x16xf32>
      %34 = vector.extract_strided_slice %10 {offsets = [2, 0, 0], sizes = [1, 16, 16], strides = [1, 1, 1]} : vector<3x16x16xf32> to vector<1x16x16xf32>
      %35 = vector.shape_cast %34 : vector<1x16x16xf32> to vector<16x16xf32>
      %36 = vector.extract_strided_slice %11 {offsets = [0, 32], sizes = [16, 16], strides = [1, 1]} : vector<16x48xf32> to vector<16x16xf32>
      %37 = vector.broadcast %2 : vector<1x16xf32> to vector<16x16xf32>
      %38 = arith.addf %36, %37 : vector<16x16xf32>
      %39 = arith.mulf %22, %38 : vector<16x16xf32>
      %40 = arith.addf %35, %39 : vector<16x16xf32>
      %41 = math.tanh %40 : vector<16x16xf32>
      %cst_18 = arith.constant 1.000000e+00 : f32
      %42 = vector.broadcast %cst_18 : f32 to vector<16x16xf32>
      %43 = arith.subf %42, %33 : vector<16x16xf32>
      %44 = arith.mulf %43, %41 : vector<16x16xf32>
      %45 = arith.mulf %33, %arg10 : vector<16x16xf32>
      %46 = arith.addf %44, %45 : vector<16x16xf32>
      %47 = arith.index_cast %7 : i32 to index
      %c0_19 = arith.constant 0 : index
      %c0_20 = arith.constant 0 : index
      %c0_21 = arith.constant 0 : index
      %48 = vector.load %arg2[%47, %c0_19, %c0_20, %c0_21] : memref<16x3x16x16xf32, #tpu.memory_space<vmem>>, vector<1x3x16x16xf32>
      %49 = vector.shape_cast %48 : vector<1x3x16x16xf32> to vector<3x16x16xf32>
      %cst_22 = arith.constant dense<0.000000e+00> : vector<16x48xf32>
      %50 = tpu.matmul %arg11, %1, %cst_22 {dimension_numbers = #tpu.dot_dimension_numbers<[1], [0], [0], [1], [0, 0, 1, 1], [], []>} : vector<16x16xf32>, vector<16x48xf32>, vector<16x48xf32> -> vector<16x48xf32>
      %51 = vector.extract_strided_slice %49 {offsets = [0, 0, 0], sizes = [1, 16, 16], strides = [1, 1, 1]} : vector<3x16x16xf32> to vector<1x16x16xf32>
      %52 = vector.shape_cast %51 : vector<1x16x16xf32> to vector<16x16xf32>
      %53 = vector.extract_strided_slice %50 {offsets = [0, 0], sizes = [16, 16], strides = [1, 1]} : vector<16x48xf32> to vector<16x16xf32>
      %54 = arith.addf %52, %53 : vector<16x16xf32>
      %cst_23 = arith.constant 5.000000e-01 : f32
      %55 = vector.broadcast %cst_23 : f32 to vector<16x16xf32>
      %56 = arith.mulf %55, %54 : vector<16x16xf32>
      %57 = math.tanh %56 : vector<16x16xf32>
      %cst_24 = arith.constant 1.000000e+00 : f32
      %58 = vector.broadcast %cst_24 : f32 to vector<16x16xf32>
      %59 = arith.addf %57, %58 : vector<16x16xf32>
      %cst_25 = arith.constant 5.000000e-01 : f32
      %60 = vector.broadcast %cst_25 : f32 to vector<16x16xf32>
      %61 = arith.mulf %60, %59 : vector<16x16xf32>
      %62 = vector.extract_strided_slice %49 {offsets = [1, 0, 0], sizes = [1, 16, 16], strides = [1, 1, 1]} : vector<3x16x16xf32> to vector<1x16x16xf32>
      %63 = vector.shape_cast %62 : vector<1x16x16xf32> to vector<16x16xf32>
      %64 = vector.extract_strided_slice %50 {offsets = [0, 16], sizes = [16, 16], strides = [1, 1]} : vector<16x48xf32> to vector<16x16xf32>
      %65 = arith.addf %63, %64 : vector<16x16xf32>
      %cst_26 = arith.constant 5.000000e-01 : f32
      %66 = vector.broadcast %cst_26 : f32 to vector<16x16xf32>
      %67 = arith.mulf %66, %65 : vector<16x16xf32>
      %68 = math.tanh %67 : vector<16x16xf32>
      %cst_27 = arith.constant 1.000000e+00 : f32
      %69 = vector.broadcast %cst_27 : f32 to vector<16x16xf32>
      %70 = arith.addf %68, %69 : vector<16x16xf32>
      %cst_28 = arith.constant 5.000000e-01 : f32
      %71 = vector.broadcast %cst_28 : f32 to vector<16x16xf32>
      %72 = arith.mulf %71, %70 : vector<16x16xf32>
      %73 = vector.extract_strided_slice %49 {offsets = [2, 0, 0], sizes = [1, 16, 16], strides = [1, 1, 1]} : vector<3x16x16xf32> to vector<1x16x16xf32>
      %74 = vector.shape_cast %73 : vector<1x16x16xf32> to vector<16x16xf32>
      %75 = vector.extract_strided_slice %50 {offsets = [0, 32], sizes = [16, 16], strides = [1, 1]} : vector<16x48xf32> to vector<16x16xf32>
      %76 = vector.broadcast %3 : vector<1x16xf32> to vector<16x16xf32>
      %77 = arith.addf %75, %76 : vector<16x16xf32>
      %78 = arith.mulf %61, %77 : vector<16x16xf32>
      %79 = arith.addf %74, %78 : vector<16x16xf32>
      %80 = math.tanh %79 : vector<16x16xf32>
      %cst_29 = arith.constant 1.000000e+00 : f32
      %81 = vector.broadcast %cst_29 : f32 to vector<16x16xf32>
      %82 = arith.subf %81, %72 : vector<16x16xf32>
      %83 = arith.mulf %82, %80 : vector<16x16xf32>
      %84 = arith.mulf %72, %arg11 : vector<16x16xf32>
      %85 = arith.addf %83, %84 : vector<16x16xf32>
      %86 = arith.index_cast %arg9 : i32 to index
      %c0_30 = arith.constant 0 : index
      %c0_31 = arith.constant 0 : index
      %87 = vector.load %arg7[%86, %c0_30, %c0_31] : memref<16x16x16xf32, #tpu.memory_space<vmem>>, vector<1x16x16xf32>
      %88 = vector.shape_cast %87 : vector<1x16x16xf32> to vector<16x16xf32>
      %89 = vector.shape_cast %46 : vector<16x16xf32> to vector<1x16x16xf32>
      tpu.vector_store %arg7[%86, %c0_30, %c0_31], %89 {strides = array<i32>} : memref<16x16x16xf32, #tpu.memory_space<vmem>>, vector<1x16x16xf32>,
      %90 = arith.index_cast %7 : i32 to index
      %c0_32 = arith.constant 0 : index
      %c0_33 = arith.constant 0 : index
      %91 = vector.load %arg8[%90, %c0_32, %c0_33] : memref<16x16x16xf32, #tpu.memory_space<vmem>>, vector<1x16x16xf32>
      %92 = vector.shape_cast %91 : vector<1x16x16xf32> to vector<16x16xf32>
      %93 = vector.shape_cast %85 : vector<16x16xf32> to vector<1x16x16xf32>
      tpu.vector_store %arg8[%90, %c0_32, %c0_33], %93 {strides = array<i32>} : memref<16x16x16xf32, #tpu.memory_space<vmem>>, vector<1x16x16xf32>,
      scf.yield %46, %85 : vector<16x16xf32>, vector<16x16xf32>
    }
    %c16_i32_7 = arith.constant 16 : i32
    return
  }
  func.func @transform_0(%arg0: i32) -> (i32, i32, i32, i32) {
    %c0_i32 = arith.constant 0 : i32
    %c0_i32_0 = arith.constant 0 : i32
    %c0_i32_1 = arith.constant 0 : i32
    %c0_i32_2 = arith.constant 0 : i32
    return %c0_i32, %c0_i32_0, %arg0, %c0_i32_1 : i32, i32, i32, i32
  }
  func.func @transform_1(%arg0: i32) -> (i32, i32, i32, i32) {
    %c0_i32 = arith.constant 0 : i32
    %c0_i32_0 = arith.constant 0 : i32
    %c0_i32_1 = arith.constant 0 : i32
    %c0_i32_2 = arith.constant 0 : i32
    return %c0_i32, %c0_i32_0, %arg0, %c0_i32_1 : i32, i32, i32, i32
  }
  func.func @transform_2(%arg0: i32) -> (i32, i32) {
    %c0_i32 = arith.constant 0 : i32
    %c0_i32_0 = arith.constant 0 : i32
    %c0_i32_1 = arith.constant 0 : i32
    return %c0_i32, %c0_i32_0 : i32, i32
  }
  func.func @transform_3(%arg0: i32) -> (i32, i32) {
    %c0_i32 = arith.constant 0 : i32
    %c0_i32_0 = arith.constant 0 : i32
    %c0_i32_1 = arith.constant 0 : i32
    return %c0_i32, %c0_i32_0 : i32, i32
  }
  func.func @transform_4(%arg0: i32) -> (i32, i32) {
    %c0_i32 = arith.constant 0 : i32
    %c0_i32_0 = arith.constant 0 : i32
    %c0_i32_1 = arith.constant 0 : i32
    return %c0_i32, %c0_i32_0 : i32, i32
  }
  func.func @transform_5(%arg0: i32) -> (i32, i32) {
    %c0_i32 = arith.constant 0 : i32
    %c0_i32_0 = arith.constant 0 : i32
    %c0_i32_1 = arith.constant 0 : i32
    return %c0_i32, %c0_i32_0 : i32, i32
  }
  func.func @transform_6(%arg0: i32) -> (i32, i32, i32) {
    %c0_i32 = arith.constant 0 : i32
    %c0_i32_0 = arith.constant 0 : i32
    %c0_i32_1 = arith.constant 0 : i32
    return %c0_i32, %arg0, %c0_i32_0 : i32, i32, i32
  }
  func.func @transform_7(%arg0: i32) -> (i32, i32, i32) {
    %c0_i32 = arith.constant 0 : i32
    %c0_i32_0 = arith.constant 0 : i32
    %c0_i32_1 = arith.constant 0 : i32
    return %c0_i32, %arg0, %c0_i32_0 : i32, i32, i32
  }
}

module attributes {stable_mosaic.version = 11 : i64} {
  func.func @_conv_tap_kernel(%arg0: i32, %arg1: i32, %arg2: memref<1x10x18x32xf32, #tpu.memory_space<vmem>>, %arg3: memref<1x3x32x32xbf16, #tpu.memory_space<vmem>>, %arg4: memref<1x32xf32, #tpu.memory_space<vmem>>, %arg5: memref<1x128x32xf32, #tpu.memory_space<vmem>>, %arg6: memref<1x128x32xf32, #tpu.memory_space<vmem>>, %arg7: memref<128x32xf32, #tpu.memory_space<vmem>>) attributes {dimension_semantics = [#tpu.dimension_semantics<parallel>, #tpu.dimension_semantics<arbitrary>], iteration_bounds = array<i64: 2, 3>, scalar_prefetch = 0 : i64, scratch_operands = 1 : i64, tpu.core_type = #tpu.core_type<tc>, window_params = [{transform_indices = @transform_0, window_bounds = array<i64: 1, 10, 18, 32>}, {transform_indices = @transform_1, window_bounds = array<i64: 1, 3, 32, 32>}, {pipeline_mode = #tpu.pipeline_mode<synchronous>, transform_indices = @transform_2, window_bounds = array<i64: 1, 32>}, {transform_indices = @transform_3, window_bounds = array<i64: 1, 128, 32>}, {transform_indices = @transform_4, window_bounds = array<i64: 1, 128, 32>}]} {
    %c0_i32 = arith.constant 0 : i32
    %0 = arith.cmpi eq, %arg1, %c0_i32 : i32
    %1 = arith.extui %0 : i1 to i32
    %c0_i32_0 = arith.constant 0 : i32
    %2 = arith.cmpi ne, %1, %c0_i32_0 : i32
    scf.if %2 {
      %cst_20 = arith.constant 0.000000e+00 : f32
      %32 = vector.broadcast %cst_20 : f32 to vector<128x32xf32>
      %c0_21 = arith.constant 0 : index
      %c0_22 = arith.constant 0 : index
      %33 = vector.load %arg7[%c0_21, %c0_22] : memref<128x32xf32, #tpu.memory_space<vmem>>, vector<128x32xf32>
      tpu.vector_store %arg7[%c0_21, %c0_22], %32 {strides = array<i32>} : memref<128x32xf32, #tpu.memory_space<vmem>>, vector<128x32xf32>,
    } else {
    }
    %c0 = arith.constant 0 : index
    %3 = arith.index_cast %arg1 : i32 to index
    %c0_1 = arith.constant 0 : index
    %c0_2 = arith.constant 0 : index
    %4 = vector.load %arg2[%c0, %3, %c0_1, %c0_2] : memref<1x10x18x32xf32, #tpu.memory_space<vmem>>, vector<1x8x18x32xf32>
    %5 = vector.shape_cast %4 : vector<1x8x18x32xf32> to vector<8x18x32xf32>
    %c0_3 = arith.constant 0 : index
    %c0_4 = arith.constant 0 : index
    %6 = vector.load %arg7[%c0_3, %c0_4] : memref<128x32xf32, #tpu.memory_space<vmem>>, vector<128x32xf32>
    %7 = vector.extract_strided_slice %5 {offsets = [0, 0, 0], sizes = [8, 16, 32], strides = [1, 1, 1]} : vector<8x18x32xf32> to vector<8x16x32xf32>
    %8 = vector.shape_cast %7 : vector<8x16x32xf32> to vector<128x32xf32>
    %9 = arith.truncf %8 : vector<128x32xf32> to vector<128x32xbf16>
    %c0_5 = arith.constant 0 : index
    %c0_6 = arith.constant 0 : index
    %c0_7 = arith.constant 0 : index
    %c0_8 = arith.constant 0 : index
    %10 = vector.load %arg3[%c0_5, %c0_6, %c0_7, %c0_8] : memref<1x3x32x32xbf16, #tpu.memory_space<vmem>>, vector<1x1x32x32xbf16>
    %11 = vector.shape_cast %10 : vector<1x1x32x32xbf16> to vector<32x32xbf16>
    %cst = arith.constant dense<0.000000e+00> : vector<128x32xf32>
    %12 = tpu.matmul %9, %11, %cst {dimension_numbers = #tpu.dot_dimension_numbers<[1], [0], [0], [1], [0, 0, 1, 1], [], []>} : vector<128x32xbf16>, vector<32x32xbf16>, vector<128x32xf32> -> vector<128x32xf32>
    %13 = arith.addf %6, %12 : vector<128x32xf32>
    %14 = vector.extract_strided_slice %5 {offsets = [0, 1, 0], sizes = [8, 16, 32], strides = [1, 1, 1]} : vector<8x18x32xf32> to vector<8x16x32xf32>
    %15 = vector.shape_cast %14 : vector<8x16x32xf32> to vector<128x32xf32>
    %16 = arith.truncf %15 : vector<128x32xf32> to vector<128x32xbf16>
    %c0_9 = arith.constant 0 : index
    %c1 = arith.constant 1 : index
    %c0_10 = arith.constant 0 : index
    %c0_11 = arith.constant 0 : index
    %17 = vector.load %arg3[%c0_9, %c1, %c0_10, %c0_11] : memref<1x3x32x32xbf16, #tpu.memory_space<vmem>>, vector<1x1x32x32xbf16>
    %18 = vector.shape_cast %17 : vector<1x1x32x32xbf16> to vector<32x32xbf16>
    %cst_12 = arith.constant dense<0.000000e+00> : vector<128x32xf32>
    %19 = tpu.matmul %16, %18, %cst_12 {dimension_numbers = #tpu.dot_dimension_numbers<[1], [0], [0], [1], [0, 0, 1, 1], [], []>} : vector<128x32xbf16>, vector<32x32xbf16>, vector<128x32xf32> -> vector<128x32xf32>
    %20 = arith.addf %13, %19 : vector<128x32xf32>
    %21 = vector.extract_strided_slice %5 {offsets = [0, 2, 0], sizes = [8, 16, 32], strides = [1, 1, 1]} : vector<8x18x32xf32> to vector<8x16x32xf32>
    %22 = vector.shape_cast %21 : vector<8x16x32xf32> to vector<128x32xf32>
    %23 = arith.truncf %22 : vector<128x32xf32> to vector<128x32xbf16>
    %c0_13 = arith.constant 0 : index
    %c2 = arith.constant 2 : index
    %c0_14 = arith.constant 0 : index
    %c0_15 = arith.constant 0 : index
    %24 = vector.load %arg3[%c0_13, %c2, %c0_14, %c0_15] : memref<1x3x32x32xbf16, #tpu.memory_space<vmem>>, vector<1x1x32x32xbf16>
    %25 = vector.shape_cast %24 : vector<1x1x32x32xbf16> to vector<32x32xbf16>
    %cst_16 = arith.constant dense<0.000000e+00> : vector<128x32xf32>
    %26 = tpu.matmul %23, %25, %cst_16 {dimension_numbers = #tpu.dot_dimension_numbers<[1], [0], [0], [1], [0, 0, 1, 1], [], []>} : vector<128x32xbf16>, vector<32x32xbf16>, vector<128x32xf32> -> vector<128x32xf32>
    %27 = arith.addf %20, %26 : vector<128x32xf32>
    %c0_17 = arith.constant 0 : index
    %c0_18 = arith.constant 0 : index
    %28 = vector.load %arg7[%c0_17, %c0_18] : memref<128x32xf32, #tpu.memory_space<vmem>>, vector<128x32xf32>
    tpu.vector_store %arg7[%c0_17, %c0_18], %27 {strides = array<i32>} : memref<128x32xf32, #tpu.memory_space<vmem>>, vector<128x32xf32>,
    %c2_i32 = arith.constant 2 : i32
    %29 = arith.cmpi eq, %arg1, %c2_i32 : i32
    %30 = arith.extui %29 : i1 to i32
    %c0_i32_19 = arith.constant 0 : i32
    %31 = arith.cmpi ne, %30, %c0_i32_19 : i32
    scf.if %31 {
      %c0_20 = arith.constant 0 : index
      %c0_21 = arith.constant 0 : index
      %32 = vector.load %arg4[%c0_20, %c0_21] : memref<1x32xf32, #tpu.memory_space<vmem>>, vector<1x32xf32>
      %33 = vector.broadcast %32 : vector<1x32xf32> to vector<128x32xf32>
      %34 = arith.addf %27, %33 : vector<128x32xf32>
      %c0_22 = arith.constant 0 : index
      %c0_23 = arith.constant 0 : index
      %c0_24 = arith.constant 0 : index
      %35 = vector.load %arg5[%c0_22, %c0_23, %c0_24] : memref<1x128x32xf32, #tpu.memory_space<vmem>>, vector<1x128x32xf32>
      %36 = vector.shape_cast %35 : vector<1x128x32xf32> to vector<128x32xf32>
      %37 = arith.addf %34, %36 : vector<128x32xf32>
      %c0_25 = arith.constant 0 : index
      %c0_26 = arith.constant 0 : index
      %c0_27 = arith.constant 0 : index
      %38 = vector.load %arg6[%c0_25, %c0_26, %c0_27] : memref<1x128x32xf32, #tpu.memory_space<vmem>>, vector<1x128x32xf32>
      %39 = vector.shape_cast %38 : vector<1x128x32xf32> to vector<128x32xf32>
      %40 = vector.shape_cast %37 : vector<128x32xf32> to vector<1x128x32xf32>
      tpu.vector_store %arg6[%c0_25, %c0_26, %c0_27], %40 {strides = array<i32>} : memref<1x128x32xf32, #tpu.memory_space<vmem>>, vector<1x128x32xf32>,
    } else {
    }
    return
  }
  func.func @transform_0(%arg0: i32, %arg1: i32) -> (i32, i32, i32, i32) {
    %c0_i32 = arith.constant 0 : i32
    %c0_i32_0 = arith.constant 0 : i32
    %c0_i32_1 = arith.constant 0 : i32
    %c0_i32_2 = arith.constant 0 : i32
    return %arg0, %c0_i32, %c0_i32_0, %c0_i32_1 : i32, i32, i32, i32
  }
  func.func @transform_1(%arg0: i32, %arg1: i32) -> (i32, i32, i32, i32) {
    %c0_i32 = arith.constant 0 : i32
    %c0_i32_0 = arith.constant 0 : i32
    %c0_i32_1 = arith.constant 0 : i32
    %c0_i32_2 = arith.constant 0 : i32
    return %arg1, %c0_i32, %c0_i32_0, %c0_i32_1 : i32, i32, i32, i32
  }
  func.func @transform_2(%arg0: i32, %arg1: i32) -> (i32, i32) {
    %c0_i32 = arith.constant 0 : i32
    %c0_i32_0 = arith.constant 0 : i32
    %c0_i32_1 = arith.constant 0 : i32
    return %c0_i32, %c0_i32_0 : i32, i32
  }
  func.func @transform_3(%arg0: i32, %arg1: i32) -> (i32, i32, i32) {
    %c0_i32 = arith.constant 0 : i32
    %c0_i32_0 = arith.constant 0 : i32
    %c0_i32_1 = arith.constant 0 : i32
    return %arg0, %c0_i32, %c0_i32_0 : i32, i32, i32
  }
  func.func @transform_4(%arg0: i32, %arg1: i32) -> (i32, i32, i32) {
    %c0_i32 = arith.constant 0 : i32
    %c0_i32_0 = arith.constant 0 : i32
    %c0_i32_1 = arith.constant 0 : i32
    return %arg0, %c0_i32, %c0_i32_0 : i32, i32, i32
  }
}

</mosaic_0001>

<bundles_post_ra>
// kernel: _lambda_.21
= control target key start
LH: loop header
LB: loop body
LE: loop exit
PB: predicated region body
PF: predicated region fallthrough
CT: control target
= control target key end

     0   :  { %vm86_vm0 = vcmask 261120   ;;  %s682_s1 = inlined_call_operand.vmem [shape: bf16[32,128], index: 1, kind: input, shape index: {}]   ;;  %s683_s0 = inlined_call_operand.vmem [shape: f32[256,32], index: 0, kind: input, shape index: {}]   ;;  %s684_s2 = inlined_call_operand.vmem [shape: f32[1,128], index: 2, kind: input, shape index: {}]   ;;  %s685_s3 = inlined_call_operand.vmem [shape: f32[256,128], index: 3, kind: output, shape index: {}]  }
   0x1   :  { %v409_v0 = vld [vmem:[%s682_s1] sm:$0xff]   ;;  %v410_v1 = vld [vmem:[%s682_s1 + $0x8] sm:$0xff]   ;;  %v17_v7 = vld [vmem:[%s683_s0 + $0x10] sm:$0xff] }
   0x2   :  { %369 = vmatprep.subr.bf16.mxu0 %v409_v0  ;;  %405 = vmatprep.subr.bf16.mxu1 %v409_v0  ;;  %v15_v2 = vld [vmem:[%s683_s0] sm:$0xff]  ;;  %v16_v3 = vld [vmem:[%s683_s0 + $0x8] sm:$0xff]  ;;  %v18_v8 = vld [vmem:[%s683_s0 + $0x18] sm:$0xff] }
   0x3   :  { %v31_v4 = vld [vmem:[%s683_s0 + $0x80] sm:$0xff]  ;;  %370 = vmatpush3.bf16.msra.mxu0 %v409_v0  ;;  %407 = vmatpush3.bf16.msra.mxu1 %v409_v0  ;;  %v47_v5 = vpack.c.bf16 %v16_v3, %v15_v2  ;;  %v32_v6 = vld [vmem:[%s683_s0 + $0x88] sm:$0xff]  ;;  %v33_v10 = vld [vmem:[%s683_s0 + $0x90] sm:$0xff]  ;;  %v48_v16 = vpack.c.bf16 %v18_v8, %v17_v7 }
   0x4   :  { %371 = vmatprep.subr.bf16.mxu0 %v410_v1  ;;  %406 = vmatprep.subr.bf16.mxu1 %v410_v1  ;;  %v55_v9 = vpack.c.bf16 %v32_v6, %v31_v4  ;;  %v34_v11 = vld [vmem:[%s683_s0 + $0x98] sm:$0xff]  ;;  %v19_v12 = vld [vmem:[%s683_s0 + $0x20] sm:$0xff]  ;;  %v20_v13 = vld [vmem:[%s683_s0 + $0x28] sm:$0xff] }
   0x5   :  { %373 = vmatprep.mubr.msk.bf16.mxu0 %vm86_vm0, %v47_v5  ;;  %v35_v14 = vld [vmem:[%s683_s0 + $0xa0] sm:$0xff]  ;;  %v36_v15 = vld [vmem:[%s683_s0 + $0xa8] sm:$0xff]  ;;  %v56_v17 = vpack.c.bf16 %v34_v11, %v33_v10  ;;  %v49_v18 = vpack.c.bf16 %v20_v13, %v19_v12  ;;  %v21_v20 = vld [vmem:[%s683_s0 + $0x30] sm:$0xff] }
   0x6   :  { %389 = vmatprep.mubr.msk.bf16.mxu1 %vm86_vm0, %v55_v9  ;;  %v57_v19 = vpack.c.bf16 %v36_v15, %v35_v14  ;;  %v22_v21 = vld [vmem:[%s683_s0 + $0x38] sm:$0xff]  ;;  %v37_v22 = vld [vmem:[%s683_s0 + $0xb0] sm:$0xff]  ;;  %v23_v24 = vld [vmem:[%s683_s0 + $0x40] sm:$0xff] }
   0x7   :  { %372 = vmatpush3.bf16.msra.mxu0 %v410_v1  ;;  %408 = vmatpush3.bf16.msra.mxu1 %v410_v1  ;;  %v38_v23 = vld [vmem:[%s683_s0 + $0xb8] sm:$0xff]  ;;  %v24_v25 = vld [vmem:[%s683_s0 + $0x48] sm:$0xff]  ;;  %v39_v26 = vld [vmem:[%s683_s0 + $0xc0] sm:$0xff]  ;;  %v50_v28 = vpack.c.bf16 %v22_v21, %v21_v20 }
   0x8   :  { %v40_v27 = vld [vmem:[%s683_s0 + $0xc8] sm:$0xff]  ;;  %v58_v29 = vpack.c.bf16 %v38_v23, %v37_v22  ;;  %v51_v30 = vpack.c.bf16 %v24_v25, %v23_v24  ;;  %v25_v32 = vld [vmem:[%s683_s0 + $0x50] sm:$0xff]  ;;  %v26_v33 = vld [vmem:[%s683_s0 + $0x58] sm:$0xff] }
   0x9   :  { %v59_v31 = vpack.c.bf16 %v40_v27, %v39_v26  ;;  %v41_v34 = vld [vmem:[%s683_s0 + $0xd0] sm:$0xff]  ;;  %v42_v35 = vld [vmem:[%s683_s0 + $0xd8] sm:$0xff]  ;;  %v27_v36 = vld [vmem:[%s683_s0 + $0x60] sm:$0xff]  ;;  %v52_v40 = vpack.c.bf16 %v26_v33, %v25_v32 }
   0xa   :  { %374 = vmatmul.mubr.msk.bf16.vlgmr.msra.gmra.mrb[0].mxu0 %vm86_vm0, %v48_v16  ;;  %390 = vmatmul.mubr.msk.bf16.vlgmr.msra.gmra.mrb[0].mxu1 %vm86_vm0, %v56_v17  ;;  %v28_v37 = vld [vmem:[%s683_s0 + $0x68] sm:$0xff]  ;;  %v43_v38 = vld [vmem:[%s683_s0 + $0xe0] sm:$0xff]  ;;  %v60_v41 = vpack.c.bf16 %v42_v35, %v41_v34  ;;  %v29_v44 = vld [vmem:[%s683_s0 + $0x70] sm:$0xff] }
   0xb   :  { %377 = vmatprep.mubr.msk.bf16.mxu0 %vm86_vm0, %v49_v18  ;;  %393 = vmatprep.mubr.msk.bf16.mxu1 %vm86_vm0, %v57_v19  ;;  %v44_v39 = vld [vmem:[%s683_s0 + $0xe8] sm:$0xff]  ;;  %v53_v42 = vpack.c.bf16 %v28_v37, %v27_v36  ;;  %v30_v45 = vld [vmem:[%s683_s0 + $0x78] sm:$0xff]  ;;  %v45_v46 = vld [vmem:[%s683_s0 + $0xf0] sm:$0xff] }
   0xc   :  { %v61_v43 = vpack.c.bf16 %v44_v39, %v43_v38  ;;  %v46_v47 = vld [vmem:[%s683_s0 + $0xf8] sm:$0xff]  ;;  %v54_v48 = vpack.c.bf16 %v30_v45, %v29_v44  ;;  %v552_v50 = vld [vmem:[%s684_s2] ss:$0 sm:$0xff] }
   0xd   :  { %v62_v49 = vpack.c.bf16 %v46_v47, %v45_v46 }
  0x12   :  { %378 = vmatmul.mubr.msk.bf16.gmra.mrb[4].mxu0 %vm86_vm0, %v50_v28  ;;  %394 = vmatmul.mubr.msk.bf16.gmra.mrb[4].mxu1 %vm86_vm0, %v58_v29 }
  0x13   :  { %381 = vmatprep.mubr.msk.bf16.mxu0 %vm86_vm0, %v51_v30  ;;  %397 = vmatprep.mubr.msk.bf16.mxu1 %vm86_vm0, %v59_v31 }
  0x1a   :  { %382 = vmatmul.mubr.msk.bf16.gmra.mrb[8].mxu0 %vm86_vm0, %v52_v40  ;;  %398 = vmatmul.mubr.msk.bf16.gmra.mrb[8].mxu1 %vm86_vm0, %v60_v41 }
  0x1b   :  { %385 = vmatprep.mubr.msk.bf16.mxu0 %vm86_vm0, %v53_v42  ;;  %401 = vmatprep.mubr.msk.bf16.mxu1 %vm86_vm0, %v61_v43 }
  0x22   :  { %386 = vmatmul.mubr.msk.bf16.gmra.mrb[12].mxu0 %vm86_vm0, %v54_v48  ;;  %402 = vmatmul.mubr.msk.bf16.gmra.mrb[12].mxu1 %vm86_vm0, %v62_v49 }
  0xdd   :  { %v375_v51 = vpop.f32.mrb[0].mxu0  ;;  %v391_v52 = vpop.f32.mrb[0].mxu1 }
  0xde   :  { %v178_v53 = vadd.f32 %v375_v51, %v552_v50  ;;  %v242_v54 = vadd.f32 %v391_v52, %v552_v50  ;;  %v169_v55 = vpop.f32.mrb[1].mxu0  ;;  %v233_v56 = vpop.f32.mrb[1].mxu1 }
  0xdf   :  { %v170_v57 = vadd.f32 %v552_v50, %v169_v55  ;;  %v234_v58 = vadd.f32 %v552_v50, %v233_v56  ;;  %v376_v59 = vpop.f32.mrb[2].mxu0  ;;  %v392_v60 = vpop.f32.mrb[2].mxu1 }
  0xe0   :  { %298 = vst [vmem:[%s685_s3 + $0x10] sm:$0xff] %v178_v53  ;;  %314 = vst [vmem:[%s685_s3 + $0x90] sm:$0xff] %v242_v54  ;;  %v181_v61 = vadd.f32 %v376_v59, %v552_v50  ;;  %v245_v62 = vadd.f32 %v392_v60, %v552_v50  ;;  %v172_v63 = vpop.f32.mrb[3].mxu0  ;;  %v236_v0 = vpop.f32.mrb[3].mxu1 }
  0xe1   :  { %296 = vst [vmem:[%s685_s3] sm:$0xff] %v170_v57  ;;  %312 = vst [vmem:[%s685_s3 + $0x80] sm:$0xff] %v234_v58  ;;  %v173_v1 = vadd.f32 %v552_v50, %v172_v63  ;;  %v237_v2 = vadd.f32 %v552_v50, %v236_v0 }
  0xe2   :  { %299 = vst [vmem:[%s685_s3 + $0x18] sm:$0xff] %v181_v61  ;;  %315 = vst [vmem:[%s685_s3 + $0x98] sm:$0xff] %v245_v62 }
  0xe3   :  { %297 = vst [vmem:[%s685_s3 + $0x8] sm:$0xff] %v173_v1  ;;  %313 = vst [vmem:[%s685_s3 + $0x88] sm:$0xff] %v237_v2 }
  0xe5   :  { %v379_v3 = vpop.f32.mrb[4].mxu0  ;;  %v395_v4 = vpop.f32.mrb[4].mxu1 }
  0xe6   :  { %v194_v5 = vadd.f32 %v379_v3, %v552_v50  ;;  %v258_v6 = vadd.f32 %v395_v4, %v552_v50  ;;  %v185_v7 = vpop.f32.mrb[5].mxu0  ;;  %v249_v8 = vpop.f32.mrb[5].mxu1 }
  0xe7   :  { %v186_v9 = vadd.f32 %v552_v50, %v185_v7  ;;  %v250_v10 = vadd.f32 %v552_v50, %v249_v8  ;;  %v380_v11 = vpop.f32.mrb[6].mxu0  ;;  %v396_v12 = vpop.f32.mrb[6].mxu1 }
  0xe8   :  { %302 = vst [vmem:[%s685_s3 + $0x30] sm:$0xff] %v194_v5  ;;  %318 = vst [vmem:[%s685_s3 + $0xb0] sm:$0xff] %v258_v6  ;;  %v197_v13 = vadd.f32 %v380_v11, %v552_v50  ;;  %v261_v14 = vadd.f32 %v396_v12, %v552_v50  ;;  %v188_v15 = vpop.f32.mrb[7].mxu0  ;;  %v252_v16 = vpop.f32.mrb[7].mxu1 }
  0xe9   :  { %300 = vst [vmem:[%s685_s3 + $0x20] sm:$0xff] %v186_v9  ;;  %316 = vst [vmem:[%s685_s3 + $0xa0] sm:$0xff] %v250_v10  ;;  %v189_v17 = vadd.f32 %v552_v50, %v188_v15  ;;  %v253_v18 = vadd.f32 %v552_v50, %v252_v16 }
  0xea   :  { %303 = vst [vmem:[%s685_s3 + $0x38] sm:$0xff] %v197_v13  ;;  %319 = vst [vmem:[%s685_s3 + $0xb8] sm:$0xff] %v261_v14 }
  0xeb   :  { %301 = vst [vmem:[%s685_s3 + $0x28] sm:$0xff] %v189_v17  ;;  %317 = vst [vmem:[%s685_s3 + $0xa8] sm:$0xff] %v253_v18 }
  0xed   :  { %v383_v19 = vpop.f32.mrb[8].mxu0  ;;  %v399_v20 = vpop.f32.mrb[8].mxu1 }
  0xee   :  { %v210_v21 = vadd.f32 %v383_v19, %v552_v50  ;;  %v274_v22 = vadd.f32 %v399_v20, %v552_v50  ;;  %v201_v23 = vpop.f32.mrb[9].mxu0  ;;  %v265_v24 = vpop.f32.mrb[9].mxu1 }
  0xef   :  { %v202_v25 = vadd.f32 %v552_v50, %v201_v23  ;;  %v266_v26 = vadd.f32 %v552_v50, %v265_v24  ;;  %v384_v27 = vpop.f32.mrb[10].mxu0  ;;  %v400_v28 = vpop.f32.mrb[10].mxu1 }
  0xf0   :  { %306 = vst [vmem:[%s685_s3 + $0x50] sm:$0xff] %v210_v21  ;;  %322 = vst [vmem:[%s685_s3 + $0xd0] sm:$0xff] %v274_v22  ;;  %v213_v29 = vadd.f32 %v384_v27, %v552_v50  ;;  %v277_v30 = vadd.f32 %v400_v28, %v552_v50  ;;  %v204_v31 = vpop.f32.mrb[11].mxu0  ;;  %v268_v32 = vpop.f32.mrb[11].mxu1 }
  0xf1   :  { %304 = vst [vmem:[%s685_s3 + $0x40] sm:$0xff] %v202_v25  ;;  %320 = vst [vmem:[%s685_s3 + $0xc0] sm:$0xff] %v266_v26  ;;  %v205_v33 = vadd.f32 %v552_v50, %v204_v31  ;;  %v269_v34 = vadd.f32 %v552_v50, %v268_v32 }
  0xf2   :  { %307 = vst [vmem:[%s685_s3 + $0x58] sm:$0xff] %v213_v29  ;;  %323 = vst [vmem:[%s685_s3 + $0xd8] sm:$0xff] %v277_v30 }
  0xf3   :  { %305 = vst [vmem:[%s685_s3 + $0x48] sm:$0xff] %v205_v33  ;;  %321 = vst [vmem:[%s685_s3 + $0xc8] sm:$0xff] %v269_v34 }
  0xf5   :  { %v387_v35 = vpop.f32.mrb[12].mxu0  ;;  %v403_v36 = vpop.f32.mrb[12].mxu1 }
  0xf6   :  { %v226_v37 = vadd.f32 %v387_v35, %v552_v50  ;;  %v290_v38 = vadd.f32 %v403_v36, %v552_v50  ;;  %v217_v39 = vpop.f32.mrb[13].mxu0  ;;  %v281_v40 = vpop.f32.mrb[13].mxu1 }
  0xf7   :  { %v218_v41 = vadd.f32 %v552_v50, %v217_v39  ;;  %v282_v42 = vadd.f32 %v552_v50, %v281_v40  ;;  %v388_v43 = vpop.f32.mrb[14].mxu0  ;;  %v404_v44 = vpop.f32.mrb[14].mxu1 }
  0xf8   :  { %310 = vst [vmem:[%s685_s3 + $0x70] sm:$0xff] %v226_v37  ;;  %326 = vst [vmem:[%s685_s3 + $0xf0] sm:$0xff] %v290_v38  ;;  %v229_v45 = vadd.f32 %v388_v43, %v552_v50  ;;  %v293_v46 = vadd.f32 %v404_v44, %v552_v50  ;;  %v220_v47 = vpop.f32.mrb[15].mxu0  ;;  %v284_v48 = vpop.f32.mrb[15].mxu1 }
  0xf9   :  { %308 = vst [vmem:[%s685_s3 + $0x60] sm:$0xff] %v218_v41  ;;  %324 = vst [vmem:[%s685_s3 + $0xe0] sm:$0xff] %v282_v42  ;;  %v221_v49 = vadd.f32 %v552_v50, %v220_v47  ;;  %v285_v51 = vadd.f32 %v552_v50, %v284_v48 }
  0xfa   :  { %311 = vst [vmem:[%s685_s3 + $0x78] sm:$0xff] %v229_v45  ;;  %327 = vst [vmem:[%s685_s3 + $0xf8] sm:$0xff] %v293_v46 }
  0xfb   :  { %309 = vst [vmem:[%s685_s3 + $0x68] sm:$0xff] %v221_v49  ;;  %325 = vst [vmem:[%s685_s3 + $0xe8] sm:$0xff] %v285_v51 }

// kernel: _lambda_.20
= control target key start
LH: loop header
LB: loop body
LE: loop exit
PB: predicated region body
PF: predicated region fallthrough
CT: control target
= control target key end

     0   :  { %s1335_s12 = smov 0   ;;  %s1337_s13 = smov 0   ;;  %s1671_s0 = inlined_call_operand.vmem [shape: f32[2,10,18,32], index: 0, kind: input, shape index: {}]   ;;  %s1672_s1 = inlined_call_operand.vmem [shape: bf16[3,3,32,32], index: 1, kind: input, shape index: {}]   ;;  %s1673_s2 = inlined_call_operand.vmem [shape: f32[1,32], index: 2, kind: input, shape index: {}]   ;;  %s1674_s3 = inlined_call_operand.vmem [shape: f32[2,128,32], index: 3, kind: output, shape index: {}]  }
   0x1   :  { %s1339_s14 = smov 0   ;;  %s1341_s15 = smov 0  }
   0x2   :  { %s1343_s16 = smov 0  }
   0x3 LB: > { %s22_s17 = sadd.s32 1, %s1304_s14  ;;  %s25_s18 = sadd.s32 1, %s1308_s15  ;;  %s1312_s16 = sphi %s1343_s16, %s13_s16   ;;  %s1308_s15 = sphi %s1341_s15, %s1678_s15   ;;  %s1304_s14 = sphi %s1339_s14, %s1677_s14   ;;  %s1300_s13 = sphi %s1337_s13, %s1676_s13   ;;  %s1296_s12 = sphi %s1335_s12, %s1675_s12  }
   0x4   : > { %p23_p0 = scmp.ge.s32.totalorder %s22_s17, 3  ;;  %p1034_p1 = scmp.ge.s32.totalorder %s1312_s16, 1 }
   0x5   : > { %p159_p2 = scmp.lt.s32.totalorder %s1312_s16, 7 }
   0x6   : > { %s1680_s17 = smov (%p23_p0, %s22_s17), 0  ;;  %s1682_s18 = smov (!%p23_p0, %s25_s18), %s1308_s15 }
   0x7   : > { %p160_p3 = pnand %p1034_p1, %p159_p2  ;;  %p27_p4 = scmp.ge.s32.totalorder %s1682_s18, 2 }
   0x8   : > { %p188_p5 = scmp.lt.s32.totalorder (!%p160_p3), %s1300_s13, 1  ;;  %p193_p6 = scmp.lt.s32.totalorder (!%p160_p3), %s1296_s12, 2 }
   0x9   : > { %s1684_s18 = smov (%p27_p4, %s1682_s18), 0  ;;  %163 = sbr.rel (%p160_p3) target bundleno = 298 (0x12a), region = 32 }
   0xa   : > { %p1039_p7 = scmp.ne.s32.totalorder (!%p160_p3), %s1296_s12, 0 }
  0x10   : > { %s1686_s13 = smov (!%p188_p5, %s1300_s13), 1  ;;  %207 = sbr.rel (%p1039_p7) target bundleno = 27 (0x1b), region = 36 }
  0x11   : > { %s194_s19 = scalar_select %p193_p6, %s1296_s12, 2 }
  0x12   : > { %s1225_s20 = smul.u32 240, %s1686_s13  ;;  %s1082_s21 = sshll.u32 %s1686_s13, 7  ;;  %vm208_vm0 = vcmask (!%p1039_p7), 261120   ;;  %v1314_v0 = vmov (!%p1039_p7), 0.0  }
  0x13   : > { %s1226_s22 = smul.u32 48, %s194_s19  ;;  %s1372_s25 = scalar_lea.vmem %s1674_s3, %s1082_s21  ;;  %209 = vst.msk [vmem:[#allocation2] sm:$0xff] (!%p1039_p7), %vm208_vm0, %v1314_v0  ;;  %210 = vst.msk [vmem:[#allocation2 + $0x8] sm:$0xff] (!%p1039_p7), %vm208_vm0, %v1314_v0 }
  0x14   : > { %s192_s28 = scalar_lea.vmem %s1671_s0, %s1225_s20  ;;  %211 = vst.msk [vmem:[#allocation2 + $0x10] sm:$0xff] (!%p1039_p7), %vm208_vm0, %v1314_v0  ;;  %212 = vst.msk [vmem:[#allocation2 + $0x18] sm:$0xff] (!%p1039_p7), %vm208_vm0, %v1314_v0 }
  0x15   : > { %s1380_s4 = scalar_lea.vmem %s1672_s1, %s1226_s22  ;;  %213 = vst.msk [vmem:[#allocation2 + $0x20] sm:$0xff] (!%p1039_p7), %vm208_vm0, %v1314_v0  ;;  %214 = vst.msk [vmem:[#allocation2 + $0x28] sm:$0xff] (!%p1039_p7), %vm208_vm0, %v1314_v0 }
  0x16   : > { %215 = vst.msk [vmem:[#allocation2 + $0x30] sm:$0xff] (!%p1039_p7), %vm208_vm0, %v1314_v0  ;;  %216 = vst.msk [vmem:[#allocation2 + $0x38] sm:$0xff] (!%p1039_p7), %vm208_vm0, %v1314_v0 }
  0x17   : > { %217 = vst.msk [vmem:[#allocation2 + $0x40] sm:$0xff] %vm208_vm0, %v1314_v0  ;;  %218 = vst.msk [vmem:[#allocation2 + $0x48] sm:$0xff] %vm208_vm0, %v1314_v0 }
  0x18   : > { %219 = vst.msk [vmem:[#allocation2 + $0x50] sm:$0xff] %vm208_vm0, %v1314_v0  ;;  %220 = vst.msk [vmem:[#allocation2 + $0x58] sm:$0xff] %vm208_vm0, %v1314_v0 }
  0x19   : > { %221 = vst.msk [vmem:[#allocation2 + $0x60] sm:$0xff] %vm208_vm0, %v1314_v0  ;;  %222 = vst.msk [vmem:[#allocation2 + $0x68] sm:$0xff] %vm208_vm0, %v1314_v0 }
  0x1a   : > { %223 = vst.msk [vmem:[#allocation2 + $0x70] sm:$0xff] %vm208_vm0, %v1314_v0  ;;  %224 = vst.msk [vmem:[#allocation2 + $0x78] sm:$0xff] %vm208_vm0, %v1314_v0 }
  0x1b PF: > { %v1268_v1 = vld [vmem:[%s1380_s4] sm:$0xff]   ;;  %s225_s5 = smul.u32 24, %s1296_s12  ;;  %v1269_v2 = vld [vmem:[%s1380_s4 + $0x10] sm:$0xff]   ;;  %v1270_v3 = vld [vmem:[%s1380_s4 + $0x8] sm:$0xff]   ;;  %vm291_vm1 = vcmask 261120   ;;  %vm453_vm2 = vcmask 1046528  }
  0x1c   : > { %1113 = vmatprep.subr.bf16.mxu1 %v1268_v1  ;;  %1133 = vmatprep.subr.bf16.mxu0 %v1269_v2  ;;  %v1406_v4 = vld [vmem:[%s1380_s4 + $0x18] sm:$0xff]   ;;  %v1272_v13 = vld [vmem:[%s1380_s4 + $0x20] sm:$0xff]   ;;  %vm672_vm3 = vcmask 1045504   ;;  %v1273_v38 = vld [vmem:[%s1380_s4 + $0x28] sm:$0xff]   ;;  %p1078_p8 = scmp.ne.s32.totalorder %s1296_s12, 2 }
  0x1d   : > { %s1403_s6 = scalar_lea.vmem %s192_s28, %s225_s5  ;;  %1114 = vmatpush3.bf16.msra.mxu1 %v1268_v1  ;;  %1134 = vmatpush3.bf16.msra.mxu0 %v1269_v2 }
  0x1e   : > { %1115 = vmatprep.subr.bf16.mxu1 %v1270_v3  ;;  %v1409_v5 = vld [vmem:[%s1403_s6] sm:$0xff]  ;;  %v1412_v6 = vld [vmem:[%s1403_s6 + $0x8] sm:$0xff]  ;;  %v1415_v7 = vld [vmem:[%s1403_s6 + $0x10] sm:$0x3]  ;;  %1135 = vmatprep.subr.bf16.mxu0 %v1406_v4 }
  0x1f   : > { %v267_v8 = vpack.c.bf16 %v1412_v6, %v1409_v5  ;;  %v454_v9 = vrot.slane %v1409_v5, 1  ;;  %v455_v10 = vrot.slane %v1412_v6, 1  ;;  %v1423_v11 = vld [vmem:[%s1403_s6 + $0x18] sm:$0xff]  ;;  %v1426_v12 = vld [vmem:[%s1403_s6 + $0x20] sm:$0xff]  ;;  %v457_v14 = vrot.slane %v1415_v7, 1  ;;  %v1436_v17 = vld [vmem:[%s1403_s6 + $0x30] sm:$0xff] }
  0x20   : > { %v268_v15 = vpack.c.bf16 %v1426_v12, %v1423_v11  ;;  %v1433_v16 = vld [vmem:[%s1403_s6 + $0x28] sm:$0x3]  ;;  %v459_v19 = vrot.slane %v1423_v11, 1  ;;  %v460_v20 = vrot.slane %v1426_v12, 1  ;;  %v1443_v21 = vld [vmem:[%s1403_s6 + $0x38] sm:$0xff]  ;;  %v464_v28 = vrot.slane %v1436_v17, 1 }
  0x21   : > { %1116 = vmatpush3.bf16.msra.mxu1 %v1270_v3  ;;  %1117 = vmatprep.mubr.msk.bf16.mxu1 %vm291_vm1, %v267_v8  ;;  %v456_v18 = vsel %vm453_vm2, %v454_v9, %v455_v10  ;;  %v458_v22 = vsel %vm453_vm2, %v455_v10, %v457_v14  ;;  %v462_v23 = vrot.slane %v1433_v16, 1  ;;  %v1449_v24 = vld [vmem:[%s1403_s6 + $0x48] sm:$0xff]  ;;  %v269_v27 = vpack.c.bf16 %v1443_v21, %v1436_v17  ;;  %v235_v29 = vld [vmem:[%s1403_s6 + $0x40] sm:$0x3]  ;;  %v1457_v30 = vld [vmem:[%s1403_s6 + $0x50] sm:$0xff] }
  0x22   : > { %1136 = vmatpush3.bf16.msra.mxu0 %v1406_v4  ;;  %1173 = vmatprep.subr.bf16.mxu1 %v1269_v2  ;;  %v510_v25 = vpack.c.bf16 %v458_v22, %v456_v18  ;;  %v461_v26 = vsel %vm453_vm2, %v459_v19, %v460_v20  ;;  %v1460_v31 = vld [vmem:[%s1403_s6 + $0x58] sm:$0x3]  ;;  %v465_v33 = vrot.slane %v1443_v21, 1  ;;  %v673_v34 = vrot.slane %v1409_v5, 2  ;;  %v1475_v43 = vld [vmem:[%s1403_s6 + $0x60] sm:$0xff]  ;;  %v1478_v44 = vld [vmem:[%s1403_s6 + $0x68] sm:$0xff] }
  0x23   : > { %1153 = vmatprep.subr.bf16.mxu0 %v1272_v13  ;;  %v463_v32 = vsel %vm453_vm2, %v460_v20, %v462_v23  ;;  %v674_v35 = vrot.slane %v1412_v6, 2  ;;  %v467_v37 = vrot.slane %v235_v29, 1  ;;  %v676_v39 = vrot.slane %v1415_v7, 2  ;;  %v1502_v61 = vld [vmem:[%s1403_s6 + $0x78] sm:$0xff]  ;;  %v1505_v62 = vld [vmem:[%s1403_s6 + $0x80] sm:$0xff]  ;;  %v1508_v63 = vld [vmem:[%s1403_s6 + $0x90] sm:$0xff] }
  0x24   : > { %1118 = vmatmul.mubr.msk.bf16.vlgmr.msra.gmra.mrb[0].mxu1 %vm291_vm1, %v268_v15  ;;  %1137 = vmatprep.mubr.msk.bf16.mxu0 %vm291_vm1, %v510_v25  ;;  %v511_v36 = vpack.c.bf16 %v463_v32, %v461_v26  ;;  %v466_v40 = vsel %vm453_vm2, %v464_v28, %v465_v33  ;;  %v469_v41 = vrot.slane %v1449_v24, 1  ;;  %v470_v42 = vrot.slane %v1457_v30, 1  ;;  %v1511_v0 = vld [vmem:[%s1403_s6 + $0x98] sm:$0xff]  ;;  %v248_v19 = vld [vmem:[%s1403_s6 + $0xa8] sm:$0xff]  ;;  %v249_v20 = vld [vmem:[%s1403_s6 + $0xb0] sm:$0xff] }
  0x25   : > { %1175 = vmatpush3.bf16.msra.mxu1 %v1269_v2  ;;  %1121 = vmatprep.mubr.msk.bf16.mxu1 %vm291_vm1, %v269_v27  ;;  %v468_v45 = vsel %vm453_vm2, %v465_v33, %v467_v37  ;;  %v472_v46 = vrot.slane %v1460_v31, 1  ;;  %v270_v48 = vpack.c.bf16 %v1457_v30, %v1449_v24  ;;  %v271_v51 = vpack.c.bf16 %v1478_v44, %v1475_v43  ;;  %v241_v2 = vld [vmem:[%s1403_s6 + $0x70] sm:$0x3]  ;;  %v244_v22 = vld [vmem:[%s1403_s6 + $0x88] sm:$0x3] }
  0x26   : > { %1174 = vmatprep.subr.bf16.mxu1 %v1406_v4  ;;  %1138 = vmatmul.mubr.msk.bf16.vlgmr.msra.gmra.mrb[0].mxu0 %vm291_vm1, %v511_v36  ;;  %v512_v47 = vpack.c.bf16 %v468_v45, %v466_v40  ;;  %v471_v49 = vsel %vm453_vm2, %v469_v41, %v470_v42  ;;  %v675_v52 = vsel %vm672_vm3, %v673_v34, %v674_v35  ;;  %v678_v55 = vrot.slane %v1423_v11, 2  ;;  %v247_v26 = vld [vmem:[%s1403_s6 + $0xa0] sm:$0x3] }
  0x27   : > { %1154 = vmatpush3.bf16.msra.mxu0 %v1272_v13  ;;  %v473_v50 = vsel %vm453_vm2, %v470_v42, %v472_v46  ;;  %v677_v53 = vsel %vm672_vm3, %v674_v35, %v676_v39  ;;  %v679_v56 = vrot.slane %v1426_v12, 2  ;;  %v681_v57 = vrot.slane %v1433_v16, 2 }
  0x28   : > { %1155 = vmatprep.subr.bf16.mxu0 %v1273_v38  ;;  %1141 = vmatprep.mubr.msk.bf16.mxu0 %vm291_vm1, %v512_v47  ;;  %v513_v54 = vpack.c.bf16 %v473_v50, %v471_v49  ;;  %v729_v58 = vpack.c.bf16 %v677_v53, %v675_v52  ;;  %v683_v59 = vrot.slane %v1436_v17, 2  ;;  %v684_v60 = vrot.slane %v1443_v21, 2  ;;  %v250_v50 = vld [vmem:[%s1403_s6 + $0xb8] sm:$0x3] }
  0x29   : > { %1176 = vmatpush3.bf16.msra.mxu1 %v1406_v4  ;;  %v686_v1 = vrot.slane %v235_v29, 2  ;;  %v680_v3 = vsel %vm672_vm3, %v678_v55, %v679_v56  ;;  %v272_v4 = vpack.c.bf16 %v1505_v62, %v1502_v61  ;;  %v682_v5 = vsel %vm672_vm3, %v679_v56, %v681_v57 }
  0x2a   : > { %v273_v6 = vpack.c.bf16 %v1511_v0, %v1508_v63  ;;  %v685_v7 = vsel %vm672_vm3, %v683_v59, %v684_v60  ;;  %v474_v9 = vrot.slane %v1475_v43, 1  ;;  %v475_v10 = vrot.slane %v1478_v44, 1 }
  0x2b   : > { %1156 = vmatpush3.bf16.msra.mxu0 %v1273_v38  ;;  %v687_v8 = vsel %vm672_vm3, %v684_v60, %v686_v1  ;;  %v477_v11 = vrot.slane %v241_v2, 1  ;;  %v730_v12 = vpack.c.bf16 %v682_v5, %v680_v3  ;;  %v688_v13 = vrot.slane %v1449_v24, 2 }
  0x2c   : > { %1122 = vmatmul.mubr.msk.bf16.gmra.mrb[4].mxu1 %vm291_vm1, %v270_v48  ;;  %v689_v14 = vrot.slane %v1457_v30, 2  ;;  %v731_v15 = vpack.c.bf16 %v687_v8, %v685_v7  ;;  %v691_v16 = vrot.slane %v1460_v31, 2  ;;  %v693_v17 = vrot.slane %v1475_v43, 2 }
  0x2d   : > { %1125 = vmatprep.mubr.msk.bf16.mxu1 %vm291_vm1, %v271_v51  ;;  %v694_v18 = vrot.slane %v1478_v44, 2  ;;  %v696_v21 = vrot.slane %v241_v2, 2  ;;  %v476_v23 = vsel %vm453_vm2, %v474_v9, %v475_v10  ;;  %v478_v24 = vsel %vm453_vm2, %v475_v10, %v477_v11 }
  0x2e   : > { %1142 = vmatmul.mubr.msk.bf16.gmra.mrb[4].mxu0 %vm291_vm1, %v513_v54  ;;  %v479_v25 = vrot.slane %v1502_v61, 1  ;;  %v480_v27 = vrot.slane %v1505_v62, 1  ;;  %v274_v28 = vpack.c.bf16 %v249_v20, %v248_v19  ;;  %v690_v29 = vsel %vm672_vm3, %v688_v13, %v689_v14 }
  0x2f   : > { %1157 = vmatprep.mubr.msk.bf16.mxu0 %vm291_vm1, %v729_v58  ;;  %v692_v30 = vsel %vm672_vm3, %v689_v14, %v691_v16  ;;  %v482_v31 = vrot.slane %v244_v22, 1  ;;  %v514_v32 = vpack.c.bf16 %v478_v24, %v476_v23  ;;  %v695_v33 = vsel %vm672_vm3, %v693_v17, %v694_v18  ;;  %v251_v16 = vld [vmem:[#allocation2] sm:$0xff]  ;;  %v254_v17 = vld [vmem:[#allocation2 + $0x18] sm:$0xff] }
  0x30   : > { %v697_v34 = vsel %vm672_vm3, %v694_v18, %v696_v21  ;;  %v484_v35 = vrot.slane %v1508_v63, 1  ;;  %v485_v36 = vrot.slane %v1511_v0, 1  ;;  %v487_v37 = vrot.slane %v247_v26, 1 }
  0x31   : > { %v698_v38 = vrot.slane %v1502_v61, 2  ;;  %v732_v39 = vpack.c.bf16 %v692_v30, %v690_v29  ;;  %v481_v40 = vsel %vm453_vm2, %v479_v25, %v480_v27  ;;  %v699_v41 = vrot.slane %v1505_v62, 2  ;;  %v257_v30 = vld [vmem:[#allocation2 + $0x30] sm:$0xff] }
  0x32   : > { %v733_v42 = vpack.c.bf16 %v697_v34, %v695_v33  ;;  %v701_v43 = vrot.slane %v244_v22, 2  ;;  %v483_v44 = vsel %vm453_vm2, %v480_v27, %v482_v31  ;;  %v703_v45 = vrot.slane %v1508_v63, 2  ;;  %v258_v33 = vld [vmem:[#allocation2 + $0x38] sm:$0xff] }
  0x33   : > { %v704_v46 = vrot.slane %v1511_v0, 2  ;;  %v706_v47 = vrot.slane %v247_v26, 2  ;;  %v486_v48 = vsel %vm453_vm2, %v484_v35, %v485_v36  ;;  %v488_v49 = vsel %vm453_vm2, %v485_v36, %v487_v37  ;;  %v256_v35 = vld [vmem:[#allocation2 + $0x28] sm:$0xff] }
  0x34   : > { %1126 = vmatmul.mubr.msk.bf16.gmra.mrb[8].mxu1 %vm291_vm1, %v272_v4  ;;  %v489_v51 = vrot.slane %v248_v19, 1  ;;  %v490_v52 = vrot.slane %v249_v20, 1  ;;  %v515_v53 = vpack.c.bf16 %v483_v44, %v481_v40  ;;  %v700_v54 = vsel %vm672_vm3, %v698_v38, %v699_v41 }
  0x35   : > { %1129 = vmatprep.mubr.msk.bf16.mxu1 %vm291_vm1, %v273_v6  ;;  %v702_v55 = vsel %vm672_vm3, %v699_v41, %v701_v43  ;;  %v516_v56 = vpack.c.bf16 %v488_v49, %v486_v48  ;;  %v705_v57 = vsel %vm672_vm3, %v703_v45, %v704_v46  ;;  %v707_v58 = vsel %vm672_vm3, %v704_v46, %v706_v47  ;;  %v261_v46 = vld [vmem:[#allocation2 + $0x50] sm:$0xff]  ;;  %v259_v48 = vld [vmem:[#allocation2 + $0x40] sm:$0xff] }
  0x36   : > { %1158 = vmatmul.mubr.msk.bf16.vlgmr.msra.gmra.mrb[0].mxu0 %vm291_vm1, %v730_v12  ;;  %v492_v59 = vrot.slane %v250_v50, 1  ;;  %v734_v60 = vpack.c.bf16 %v702_v55, %v700_v54  ;;  %v708_v61 = vrot.slane %v248_v19, 2  ;;  %v709_v62 = vrot.slane %v249_v20, 2  ;;  %v252_v19 = vld [vmem:[#allocation2 + $0x8] sm:$0xff] }
  0x37   : > { %1161 = vmatprep.mubr.msk.bf16.mxu0 %vm291_vm1, %v731_v15  ;;  %v735_v63 = vpack.c.bf16 %v707_v58, %v705_v57  ;;  %v711_v0 = vrot.slane %v250_v50, 2  ;;  %v491_v1 = vsel %vm453_vm2, %v489_v51, %v490_v52  ;;  %v253_v15 = vld [vmem:[#allocation2 + $0x10] sm:$0xff]  ;;  %v262_v50 = vld [vmem:[#allocation2 + $0x58] sm:$0xff] }
  0x38   : > { %v493_v2 = vsel %vm453_vm2, %v490_v52, %v492_v59  ;;  %v710_v4 = vsel %vm672_vm3, %v708_v61, %v709_v62 }
  0x39   : > { %v517_v3 = vpack.c.bf16 %v493_v2, %v491_v1  ;;  %v712_v5 = vsel %vm672_vm3, %v709_v62, %v711_v0  ;;  %v265_v2 = vld [vmem:[#allocation2 + $0x70] sm:$0xff] }
  0x3a   : > { %v736_v6 = vpack.c.bf16 %v712_v5, %v710_v4  ;;  %v263_v4 = vld [vmem:[#allocation2 + $0x60] sm:$0xff] }
  0x3c   : > { %1130 = vmatmul.mubr.msk.bf16.gmra.mrb[12].mxu1 %vm291_vm1, %v274_v28 }
  0x3d   : > { %1145 = vmatprep.mubr.msk.bf16.mxu1 %vm291_vm1, %v514_v32  ;;  %v255_v32 = vld [vmem:[#allocation2 + $0x20] sm:$0xff] }
  0x3e   : > { %1162 = vmatmul.mubr.msk.bf16.gmra.mrb[4].mxu0 %vm291_vm1, %v732_v39 }
  0x3f   : > { %1165 = vmatprep.mubr.msk.bf16.mxu0 %vm291_vm1, %v733_v42 }
  0x44   : > { %1146 = vmatmul.mubr.msk.bf16.vlgmr.msra.gmra.mrb[8].mxu1 %vm291_vm1, %v515_v53  ;;  %v260_v53 = vld [vmem:[#allocation2 + $0x48] sm:$0xff] }
  0x45   : > { %1149 = vmatprep.mubr.msk.bf16.mxu1 %vm291_vm1, %v516_v56 }
  0x46   : > { %1166 = vmatmul.mubr.msk.bf16.gmra.mrb[8].mxu0 %vm291_vm1, %v734_v60 }
  0x47   : > { %1169 = vmatprep.mubr.msk.bf16.mxu0 %vm291_vm1, %v735_v63 }
  0x4c   : > { %1150 = vmatmul.mubr.msk.bf16.gmra.mrb[12].mxu1 %vm291_vm1, %v517_v3 }
  0x4e   : > { %1170 = vmatmul.mubr.msk.bf16.gmra.mrb[12].mxu0 %vm291_vm1, %v736_v6  ;;  %v266_v6 = vld [vmem:[#allocation2 + $0x78] sm:$0xff] }
  0xf7   : > { %v1119_v7 = vpop.f32.mrb[0].mxu1 }
  0xf8   : > { %v350_v8 = vpop.f32.mrb[1].mxu1  ;;  %v415_v18 = vadd.f32 %v1119_v7, %v253_v15 }
  0xf9   : > { %v1120_v9 = vpop.f32.mrb[2].mxu1  ;;  %v413_v20 = vadd.f32 %v350_v8, %v251_v16 }
  0xfa   : > { %v353_v10 = vpop.f32.mrb[3].mxu1  ;;  %v416_v22 = vadd.f32 %v1120_v9, %v254_v17  ;;  %v264_v9 = vld [vmem:[#allocation2 + $0x68] sm:$0xff] }
  0xfb   : > { %v414_v25 = vadd.f32 %v353_v10, %v252_v19 }
  0xff   : > { %v1123_v11 = vpop.f32.mrb[4].mxu1 }
 0x100   : > { %v366_v12 = vpop.f32.mrb[5].mxu1  ;;  %v419_v34 = vadd.f32 %v1123_v11, %v257_v30 }
 0x101   : > { %v1124_v13 = vpop.f32.mrb[6].mxu1  ;;  %v417_v36 = vadd.f32 %v366_v12, %v255_v32 }
 0x102   : > { %v369_v14 = vpop.f32.mrb[7].mxu1  ;;  %v420_v38 = vadd.f32 %v1124_v13, %v258_v33 }
 0x103   : > { %v418_v41 = vadd.f32 %v369_v14, %v256_v35 }
 0x109   : > { %v1159_v21 = vpop.f32.mrb[0].mxu0 }
 0x10a   : > { %v1576_v23 = vadd.f32 %v1159_v21, %v415_v18  ;;  %v812_v24 = vpop.f32.mrb[1].mxu0 }
 0x10b   : > { %v1578_v26 = vadd.f32 %v812_v24, %v413_v20  ;;  %v1160_v27 = vpop.f32.mrb[2].mxu0  ;;  %v1079_v24 = vld [vmem:[%s1673_s2] ss:$0 sm:$0xff] (!%p1078_p8) }
 0x10c   : > { %893 = vst.msk [vmem:[#allocation2 + $0x10] sm:$0xff] %vm291_vm1, %v1576_v23  ;;  %v1582_v28 = vadd.f32 %v1160_v27, %v416_v22  ;;  %v815_v29 = vpop.f32.mrb[3].mxu0 }
 0x10d   : > { %891 = vst.msk [vmem:[#allocation2] sm:$0xff] %vm291_vm1, %v1578_v26  ;;  %v1586_v31 = vadd.f32 %v815_v29, %v414_v25  ;;  %v918_v25 = vadd.f32 (!%p1078_p8), %v1578_v26, %v1079_v24  ;;  %v920_v29 = vadd.f32 (!%p1078_p8), %v1576_v23, %v1079_v24 }
 0x10e   : > { %894 = vst.msk [vmem:[#allocation2 + $0x18] sm:$0xff] %vm291_vm1, %v1582_v28  ;;  %v921_v30 = vadd.f32 (!%p1078_p8), %v1582_v28, %v1079_v24 }
 0x10f   : > { %892 = vst.msk [vmem:[#allocation2 + $0x8] sm:$0xff] %vm291_vm1, %v1586_v31  ;;  %v919_v27 = vadd.f32 (!%p1078_p8), %v1586_v31, %v1079_v24  ;;  %934 = vst.msk [vmem:[%s1372_s25] sm:$0xff] (!%p1078_p8), %vm291_vm1, %v918_v25 }
 0x110   : > { %936 = vst.msk [vmem:[%s1372_s25 + $0x10] sm:$0xff] (!%p1078_p8), %vm291_vm1, %v920_v29  ;;  %937 = vst.msk [vmem:[%s1372_s25 + $0x18] sm:$0xff] (!%p1078_p8), %vm291_vm1, %v921_v30 }
 0x111   : > { %v1163_v37 = vpop.f32.mrb[4].mxu0  ;;  %935 = vst.msk [vmem:[%s1372_s25 + $0x8] sm:$0xff] (!%p1078_p8), %vm291_vm1, %v919_v27 }
 0x112   : > { %v1592_v39 = vadd.f32 %v1163_v37, %v419_v34  ;;  %v828_v40 = vpop.f32.mrb[5].mxu0 }
 0x113   : > { %v1594_v42 = vadd.f32 %v828_v40, %v417_v36  ;;  %v1164_v43 = vpop.f32.mrb[6].mxu0 }
 0x114   : > { %897 = vst.msk [vmem:[#allocation2 + $0x30] sm:$0xff] %vm291_vm1, %v1592_v39  ;;  %v1598_v44 = vadd.f32 %v1164_v43, %v420_v38  ;;  %v831_v45 = vpop.f32.mrb[7].mxu0  ;;  %v924_v34 = vadd.f32 (!%p1078_p8), %v1592_v39, %v1079_v24 }
 0x115   : > { %895 = vst.msk [vmem:[#allocation2 + $0x20] sm:$0xff] %vm291_vm1, %v1594_v42  ;;  %v1192_v47 = vadd.f32 %v831_v45, %v418_v41  ;;  %v922_v32 = vadd.f32 (!%p1078_p8), %v1594_v42, %v1079_v24 }
 0x116   : > { %898 = vst.msk [vmem:[#allocation2 + $0x38] sm:$0xff] %vm291_vm1, %v1598_v44  ;;  %v925_v35 = vadd.f32 (!%p1078_p8), %v1598_v44, %v1079_v24  ;;  %940 = vst.msk [vmem:[%s1372_s25 + $0x30] sm:$0xff] (!%p1078_p8), %vm291_vm1, %v924_v34 }
 0x117   : > { %v1147_v49 = vpop.f32.mrb[8].mxu1  ;;  %896 = vst.msk [vmem:[#allocation2 + $0x28] sm:$0xff] %vm291_vm1, %v1192_v47  ;;  %v923_v33 = vadd.f32 (!%p1078_p8), %v1192_v47, %v1079_v24  ;;  %938 = vst.msk [vmem:[%s1372_s25 + $0x20] sm:$0xff] (!%p1078_p8), %vm291_vm1, %v922_v32 }
 0x118   : > { %v1193_v51 = vadd.f32 %v1147_v49, %v261_v46  ;;  %v625_v52 = vpop.f32.mrb[9].mxu1  ;;  %941 = vst.msk [vmem:[%s1372_s25 + $0x38] sm:$0xff] (!%p1078_p8), %vm291_vm1, %v925_v35 }
 0x119   : > { %v1195_v54 = vadd.f32 %v625_v52, %v259_v48  ;;  %v1148_v55 = vpop.f32.mrb[10].mxu1  ;;  %v1167_v56 = vpop.f32.mrb[8].mxu0  ;;  %939 = vst.msk [vmem:[%s1372_s25 + $0x28] sm:$0xff] (!%p1078_p8), %vm291_vm1, %v923_v33 }
 0x11a   : > { %v1197_v57 = vadd.f32 %v1148_v55, %v262_v50  ;;  %v628_v58 = vpop.f32.mrb[11].mxu1  ;;  %v1194_v59 = vadd.f32 %v1193_v51, %v1167_v56  ;;  %v844_v60 = vpop.f32.mrb[9].mxu0 }
 0x11b   : > { %v1199_v61 = vadd.f32 %v628_v58, %v260_v53  ;;  %v1196_v62 = vadd.f32 %v1195_v54, %v844_v60  ;;  %v1168_v63 = vpop.f32.mrb[10].mxu0 }
 0x11c   : > { %901 = vst.msk [vmem:[#allocation2 + $0x50] sm:$0xff] %vm291_vm1, %v1194_v59  ;;  %v1198_v0 = vadd.f32 %v1197_v57, %v1168_v63  ;;  %v847_v1 = vpop.f32.mrb[11].mxu0  ;;  %v928_v28 = vadd.f32 (!%p1078_p8), %v1194_v59, %v1079_v24 }
 0x11d   : > { %899 = vst.msk [vmem:[#allocation2 + $0x40] sm:$0xff] %vm291_vm1, %v1196_v62  ;;  %v1200_v3 = vadd.f32 %v1199_v61, %v847_v1  ;;  %v926_v23 = vadd.f32 (!%p1078_p8), %v1196_v62, %v1079_v24 }
 0x11e   : > { %902 = vst.msk [vmem:[#allocation2 + $0x58] sm:$0xff] %vm291_vm1, %v1198_v0  ;;  %v929_v31 = vadd.f32 (!%p1078_p8), %v1198_v0, %v1079_v24  ;;  %944 = vst.msk [vmem:[%s1372_s25 + $0x50] sm:$0xff] (!%p1078_p8), %vm291_vm1, %v928_v28 }
 0x11f   : > { %v1151_v5 = vpop.f32.mrb[12].mxu1  ;;  %900 = vst.msk [vmem:[#allocation2 + $0x48] sm:$0xff] %vm291_vm1, %v1200_v3  ;;  %v927_v26 = vadd.f32 (!%p1078_p8), %v1200_v3, %v1079_v24  ;;  %942 = vst.msk [vmem:[%s1372_s25 + $0x40] sm:$0xff] (!%p1078_p8), %vm291_vm1, %v926_v23 }
 0x120   : > { %v1201_v7 = vadd.f32 %v1151_v5, %v265_v2  ;;  %v641_v8 = vpop.f32.mrb[13].mxu1  ;;  %945 = vst.msk [vmem:[%s1372_s25 + $0x58] sm:$0xff] (!%p1078_p8), %vm291_vm1, %v929_v31 }
 0x121   : > { %v1203_v10 = vadd.f32 %v641_v8, %v263_v4  ;;  %v1152_v11 = vpop.f32.mrb[14].mxu1  ;;  %v1171_v12 = vpop.f32.mrb[12].mxu0  ;;  %910 = sbr.rel (%p1078_p8) target bundleno = 298 (0x12a), region = 40  ;;  %943 = vst.msk [vmem:[%s1372_s25 + $0x48] sm:$0xff] (!%p1078_p8), %vm291_vm1, %v927_v26 }
 0x122   : > { %v1205_v13 = vadd.f32 %v1152_v11, %v266_v6  ;;  %v644_v14 = vpop.f32.mrb[15].mxu1  ;;  %v1202_v15 = vadd.f32 %v1201_v7, %v1171_v12  ;;  %v860_v16 = vpop.f32.mrb[13].mxu0 }
 0x123   : > { %v1207_v17 = vadd.f32 %v644_v14, %v264_v9  ;;  %v1204_v18 = vadd.f32 %v1203_v10, %v860_v16  ;;  %v1172_v19 = vpop.f32.mrb[14].mxu0 }
 0x124   : > { %905 = vst.msk [vmem:[#allocation2 + $0x70] sm:$0xff] %vm291_vm1, %v1202_v15  ;;  %v1206_v20 = vadd.f32 %v1205_v13, %v1172_v19  ;;  %v863_v21 = vpop.f32.mrb[15].mxu0  ;;  %v932_v38 = vadd.f32 (!%p1078_p8), %v1202_v15, %v1079_v24 }
 0x125   : > { %903 = vst.msk [vmem:[#allocation2 + $0x60] sm:$0xff] %vm291_vm1, %v1204_v18  ;;  %v1208_v22 = vadd.f32 %v1207_v17, %v863_v21  ;;  %v930_v36 = vadd.f32 (!%p1078_p8), %v1204_v18, %v1079_v24 }
 0x126   : > { %906 = vst.msk [vmem:[#allocation2 + $0x78] sm:$0xff] %vm291_vm1, %v1206_v20  ;;  %v933_v39 = vadd.f32 (!%p1078_p8), %v1206_v20, %v1079_v24  ;;  %948 = vst.msk [vmem:[%s1372_s25 + $0x70] sm:$0xff] (!%p1078_p8), %vm291_vm1, %v932_v38 }
 0x127   : > { %904 = vst.msk [vmem:[#allocation2 + $0x68] sm:$0xff] %vm291_vm1, %v1208_v22  ;;  %v931_v37 = vadd.f32 (!%p1078_p8), %v1208_v22, %v1079_v24  ;;  %946 = vst.msk [vmem:[%s1372_s25 + $0x60] sm:$0xff] (!%p1078_p8), %vm291_vm1, %v930_v36 }
 0x128   : > { %949 = vst.msk [vmem:[%s1372_s25 + $0x78] sm:$0xff] %vm291_vm1, %v933_v39 }
 0x129   : > { %947 = vst.msk [vmem:[%s1372_s25 + $0x68] sm:$0xff] %vm291_vm1, %v931_v37 }
 0x12a PF: > { %s13_s16 = sadd.s32 1, %s1312_s16   ;;  %s1675_s12 = smov %s1304_s14 }
 0x12b   : > { %p10_p9 = scmp.ge.s32.totalorder %s13_s16, 8   ;;  %s1676_s13 = smov %s1308_s15 }
 0x12c   : > { %s1677_s14 = smov %s1680_s17  ;;  %s1678_s15 = smov %s1684_s18 }
 0x12d   :  { %12 = sbr.rel (!%p10_p9) target bundleno = 3 (0x3), region = 76 }

// kernel: _lambda_.19
= control target key start
LH: loop header
LB: loop body
LE: loop exit
PB: predicated region body
PF: predicated region fallthrough
CT: control target
= control target key end

     0   :  { %s1607_s12 = smov 0   ;;  %s1609_s13 = smov 0   ;;  %s2069_s0 = inlined_call_operand.vmem [shape: f32[2,10,18,32], index: 0, kind: input, shape index: {}]   ;;  %s2070_s1 = inlined_call_operand.vmem [shape: bf16[3,3,32,32], index: 1, kind: input, shape index: {}]   ;;  %s2071_s2 = inlined_call_operand.vmem [shape: f32[1,32], index: 2, kind: input, shape index: {}]   ;;  %s2072_s3 = inlined_call_operand.vmem [shape: f32[2,128,32], index: 3, kind: output, shape index: {}]  }
   0x1   :  { %s1611_s14 = smov 0   ;;  %s1613_s15 = smov 0  }
   0x2   :  { %s1615_s16 = smov 0  }
   0x3 LB: > { %s22_s17 = sadd.s32 1, %s1576_s14  ;;  %s25_s18 = sadd.s32 1, %s1580_s15  ;;  %s1584_s16 = sphi %s1615_s16, %s13_s16   ;;  %s1580_s15 = sphi %s1613_s15, %s2076_s15   ;;  %s1576_s14 = sphi %s1611_s14, %s2075_s14   ;;  %s1572_s13 = sphi %s1609_s13, %s2074_s13   ;;  %s1568_s12 = sphi %s1607_s12, %s2073_s12  }
   0x4   : > { %p23_p0 = scmp.ge.s32.totalorder %s22_s17, 3  ;;  %p1210_p1 = scmp.ge.s32.totalorder %s1584_s16, 1 }
   0x5   : > { %p159_p2 = scmp.lt.s32.totalorder %s1584_s16, 7 }
   0x6   : > { %s2078_s17 = smov (%p23_p0, %s22_s17), 0  ;;  %s2080_s18 = smov (!%p23_p0, %s25_s18), %s1580_s15 }
   0x7   : > { %p160_p3 = pnand %p1210_p1, %p159_p2  ;;  %p27_p4 = scmp.ge.s32.totalorder %s2080_s18, 2 }
   0x8   : > { %p188_p5 = scmp.lt.s32.totalorder (!%p160_p3), %s1572_s13, 1  ;;  %p193_p6 = scmp.lt.s32.totalorder (!%p160_p3), %s1568_s12, 2 }
   0x9   : > { %s2082_s18 = smov (%p27_p4, %s2080_s18), 0  ;;  %163 = sbr.rel (%p160_p3) target bundleno = 372 (0x174), region = 32 }
   0xa   : > { %p1215_p7 = scmp.ne.s32.totalorder (!%p160_p3), %s1568_s12, 0 }
  0x10   : > { %s2084_s13 = smov (!%p188_p5, %s1572_s13), 1  ;;  %207 = sbr.rel (%p1215_p7) target bundleno = 27 (0x1b), region = 36 }
  0x11   : > { %s194_s19 = scalar_select %p193_p6, %s1568_s12, 2 }
  0x12   : > { %s1401_s20 = smul.u32 240, %s2084_s13  ;;  %s1258_s21 = sshll.u32 %s2084_s13, 7  ;;  %vm208_vm0 = vcmask (!%p1215_p7), 261120   ;;  %v1586_v0 = vmov (!%p1215_p7), 0.0  }
  0x13   : > { %s1402_s22 = smul.u32 48, %s194_s19  ;;  %s1644_s25 = scalar_lea.vmem %s2072_s3, %s1258_s21  ;;  %209 = vst.msk [vmem:[#allocation2] sm:$0xff] (!%p1215_p7), %vm208_vm0, %v1586_v0  ;;  %210 = vst.msk [vmem:[#allocation2 + $0x8] sm:$0xff] (!%p1215_p7), %vm208_vm0, %v1586_v0 }
  0x14   : > { %s192_s28 = scalar_lea.vmem %s2069_s0, %s1401_s20  ;;  %211 = vst.msk [vmem:[#allocation2 + $0x10] sm:$0xff] (!%p1215_p7), %vm208_vm0, %v1586_v0  ;;  %212 = vst.msk [vmem:[#allocation2 + $0x18] sm:$0xff] (!%p1215_p7), %vm208_vm0, %v1586_v0 }
  0x15   : > { %s1652_s4 = scalar_lea.vmem %s2070_s1, %s1402_s22  ;;  %213 = vst.msk [vmem:[#allocation2 + $0x20] sm:$0xff] (!%p1215_p7), %vm208_vm0, %v1586_v0  ;;  %214 = vst.msk [vmem:[#allocation2 + $0x28] sm:$0xff] (!%p1215_p7), %vm208_vm0, %v1586_v0 }
  0x16   : > { %215 = vst.msk [vmem:[#allocation2 + $0x30] sm:$0xff] (!%p1215_p7), %vm208_vm0, %v1586_v0  ;;  %216 = vst.msk [vmem:[#allocation2 + $0x38] sm:$0xff] (!%p1215_p7), %vm208_vm0, %v1586_v0 }
  0x17   : > { %217 = vst.msk [vmem:[#allocation2 + $0x40] sm:$0xff] %vm208_vm0, %v1586_v0  ;;  %218 = vst.msk [vmem:[#allocation2 + $0x48] sm:$0xff] %vm208_vm0, %v1586_v0 }
  0x18   : > { %219 = vst.msk [vmem:[#allocation2 + $0x50] sm:$0xff] %vm208_vm0, %v1586_v0  ;;  %220 = vst.msk [vmem:[#allocation2 + $0x58] sm:$0xff] %vm208_vm0, %v1586_v0 }
  0x19   : > { %221 = vst.msk [vmem:[#allocation2 + $0x60] sm:$0xff] %vm208_vm0, %v1586_v0  ;;  %222 = vst.msk [vmem:[#allocation2 + $0x68] sm:$0xff] %vm208_vm0, %v1586_v0 }
  0x1a   : > { %223 = vst.msk [vmem:[#allocation2 + $0x70] sm:$0xff] %vm208_vm0, %v1586_v0  ;;  %224 = vst.msk [vmem:[#allocation2 + $0x78] sm:$0xff] %vm208_vm0, %v1586_v0 }
  0x1b PF: > { %v1444_v1 = vld [vmem:[%s1652_s4] sm:$0xff]   ;;  %s225_s5 = smul.u32 24, %s1568_s12  ;;  %v1445_v2 = vld [vmem:[%s1652_s4 + $0x10] sm:$0xff]   ;;  %v1446_v3 = vld [vmem:[%s1652_s4 + $0x8] sm:$0xff]   ;;  %vm291_vm1 = vcmask 261120   ;;  %vm453_vm2 = vcmask 1046528  }
  0x1c   : > { %1289 = vmatprep.subr.bf16.mxu1 %v1444_v1  ;;  %1309 = vmatprep.subr.bf16.mxu0 %v1445_v2  ;;  %v1678_v4 = vld [vmem:[%s1652_s4 + $0x18] sm:$0xff]   ;;  %v1448_v13 = vld [vmem:[%s1652_s4 + $0x20] sm:$0xff]   ;;  %vm672_vm3 = vcmask 1045504   ;;  %v1449_v38 = vld [vmem:[%s1652_s4 + $0x28] sm:$0xff]   ;;  %p1254_p8 = scmp.ne.s32.totalorder %s1568_s12, 2 }
  0x1d   : > { %s1675_s6 = scalar_lea.vmem %s192_s28, %s225_s5  ;;  %1290 = vmatpush3.bf16.msra.mxu1 %v1444_v1  ;;  %1310 = vmatpush3.bf16.msra.mxu0 %v1445_v2 }
  0x1e   : > { %1291 = vmatprep.subr.bf16.mxu1 %v1446_v3  ;;  %v1681_v5 = vld [vmem:[%s1675_s6] sm:$0xff]  ;;  %v1684_v6 = vld [vmem:[%s1675_s6 + $0x8] sm:$0xff]  ;;  %v1687_v7 = vld [vmem:[%s1675_s6 + $0x10] sm:$0x3]  ;;  %1311 = vmatprep.subr.bf16.mxu0 %v1678_v4 }
  0x1f   : > { %v267_v8 = vpack.c.bf16 %v1684_v6, %v1681_v5  ;;  %v454_v9 = vrot.slane %v1681_v5, 1  ;;  %v455_v10 = vrot.slane %v1684_v6, 1  ;;  %v1695_v11 = vld [vmem:[%s1675_s6 + $0x18] sm:$0xff]  ;;  %v1698_v12 = vld [vmem:[%s1675_s6 + $0x20] sm:$0xff]  ;;  %v457_v14 = vrot.slane %v1687_v7, 1  ;;  %v1708_v17 = vld [vmem:[%s1675_s6 + $0x30] sm:$0xff] }
  0x20   : > { %v268_v15 = vpack.c.bf16 %v1698_v12, %v1695_v11  ;;  %v1705_v16 = vld [vmem:[%s1675_s6 + $0x28] sm:$0x3]  ;;  %v459_v19 = vrot.slane %v1695_v11, 1  ;;  %v460_v20 = vrot.slane %v1698_v12, 1  ;;  %v1715_v21 = vld [vmem:[%s1675_s6 + $0x38] sm:$0xff]  ;;  %v464_v28 = vrot.slane %v1708_v17, 1 }
  0x21   : > { %1292 = vmatpush3.bf16.msra.mxu1 %v1446_v3  ;;  %1293 = vmatprep.mubr.msk.bf16.mxu1 %vm291_vm1, %v267_v8  ;;  %v456_v18 = vsel %vm453_vm2, %v454_v9, %v455_v10  ;;  %v458_v22 = vsel %vm453_vm2, %v455_v10, %v457_v14  ;;  %v462_v23 = vrot.slane %v1705_v16, 1  ;;  %v1721_v24 = vld [vmem:[%s1675_s6 + $0x48] sm:$0xff]  ;;  %v269_v27 = vpack.c.bf16 %v1715_v21, %v1708_v17  ;;  %v235_v29 = vld [vmem:[%s1675_s6 + $0x40] sm:$0x3]  ;;  %v1729_v30 = vld [vmem:[%s1675_s6 + $0x50] sm:$0xff] }
  0x22   : > { %1312 = vmatpush3.bf16.msra.mxu0 %v1678_v4  ;;  %1349 = vmatprep.subr.bf16.mxu1 %v1445_v2  ;;  %v510_v25 = vpack.c.bf16 %v458_v22, %v456_v18  ;;  %v461_v26 = vsel %vm453_vm2, %v459_v19, %v460_v20  ;;  %v1732_v31 = vld [vmem:[%s1675_s6 + $0x58] sm:$0x3]  ;;  %v465_v33 = vrot.slane %v1715_v21, 1  ;;  %v673_v34 = vrot.slane %v1681_v5, 2  ;;  %v1747_v43 = vld [vmem:[%s1675_s6 + $0x60] sm:$0xff]  ;;  %v1750_v44 = vld [vmem:[%s1675_s6 + $0x68] sm:$0xff] }
  0x23   : > { %1329 = vmatprep.subr.bf16.mxu0 %v1448_v13  ;;  %v463_v32 = vsel %vm453_vm2, %v460_v20, %v462_v23  ;;  %v674_v35 = vrot.slane %v1684_v6, 2  ;;  %v467_v37 = vrot.slane %v235_v29, 1  ;;  %v676_v39 = vrot.slane %v1687_v7, 2  ;;  %v1774_v61 = vld [vmem:[%s1675_s6 + $0x78] sm:$0xff]  ;;  %v1777_v62 = vld [vmem:[%s1675_s6 + $0x80] sm:$0xff]  ;;  %v1780_v63 = vld [vmem:[%s1675_s6 + $0x90] sm:$0xff] }
  0x24   : > { %1294 = vmatmul.mubr.msk.bf16.vlgmr.msra.gmra.mrb[0].mxu1 %vm291_vm1, %v268_v15  ;;  %1313 = vmatprep.mubr.msk.bf16.mxu0 %vm291_vm1, %v510_v25  ;;  %v511_v36 = vpack.c.bf16 %v463_v32, %v461_v26  ;;  %v466_v40 = vsel %vm453_vm2, %v464_v28, %v465_v33  ;;  %v469_v41 = vrot.slane %v1721_v24, 1  ;;  %v470_v42 = vrot.slane %v1729_v30, 1  ;;  %v1783_v0 = vld [vmem:[%s1675_s6 + $0x98] sm:$0xff]  ;;  %v248_v19 = vld [vmem:[%s1675_s6 + $0xa8] sm:$0xff]  ;;  %v249_v20 = vld [vmem:[%s1675_s6 + $0xb0] sm:$0xff] }
  0x25   : > { %1351 = vmatpush3.bf16.msra.mxu1 %v1445_v2  ;;  %1297 = vmatprep.mubr.msk.bf16.mxu1 %vm291_vm1, %v269_v27  ;;  %v468_v45 = vsel %vm453_vm2, %v465_v33, %v467_v37  ;;  %v472_v46 = vrot.slane %v1732_v31, 1  ;;  %v270_v48 = vpack.c.bf16 %v1729_v30, %v1721_v24  ;;  %v271_v51 = vpack.c.bf16 %v1750_v44, %v1747_v43  ;;  %v241_v2 = vld [vmem:[%s1675_s6 + $0x70] sm:$0x3]  ;;  %v244_v22 = vld [vmem:[%s1675_s6 + $0x88] sm:$0x3] }
  0x26   : > { %1350 = vmatprep.subr.bf16.mxu1 %v1678_v4  ;;  %1314 = vmatmul.mubr.msk.bf16.vlgmr.msra.gmra.mrb[0].mxu0 %vm291_vm1, %v511_v36  ;;  %v512_v47 = vpack.c.bf16 %v468_v45, %v466_v40  ;;  %v471_v49 = vsel %vm453_vm2, %v469_v41, %v470_v42  ;;  %v675_v52 = vsel %vm672_vm3, %v673_v34, %v674_v35  ;;  %v678_v55 = vrot.slane %v1695_v11, 2  ;;  %v247_v26 = vld [vmem:[%s1675_s6 + $0xa0] sm:$0x3] }
  0x27   : > { %1330 = vmatpush3.bf16.msra.mxu0 %v1448_v13  ;;  %v473_v50 = vsel %vm453_vm2, %v470_v42, %v472_v46  ;;  %v677_v53 = vsel %vm672_vm3, %v674_v35, %v676_v39  ;;  %v679_v56 = vrot.slane %v1698_v12, 2  ;;  %v681_v57 = vrot.slane %v1705_v16, 2 }
  0x28   : > { %1331 = vmatprep.subr.bf16.mxu0 %v1449_v38  ;;  %1317 = vmatprep.mubr.msk.bf16.mxu0 %vm291_vm1, %v512_v47  ;;  %v513_v54 = vpack.c.bf16 %v473_v50, %v471_v49  ;;  %v729_v58 = vpack.c.bf16 %v677_v53, %v675_v52  ;;  %v683_v59 = vrot.slane %v1708_v17, 2  ;;  %v684_v60 = vrot.slane %v1715_v21, 2  ;;  %v250_v50 = vld [vmem:[%s1675_s6 + $0xb8] sm:$0x3] }
  0x29   : > { %1352 = vmatpush3.bf16.msra.mxu1 %v1678_v4  ;;  %v686_v1 = vrot.slane %v235_v29, 2  ;;  %v680_v3 = vsel %vm672_vm3, %v678_v55, %v679_v56  ;;  %v272_v4 = vpack.c.bf16 %v1777_v62, %v1774_v61  ;;  %v682_v5 = vsel %vm672_vm3, %v679_v56, %v681_v57 }
  0x2a   : > { %v273_v6 = vpack.c.bf16 %v1783_v0, %v1780_v63  ;;  %v685_v7 = vsel %vm672_vm3, %v683_v59, %v684_v60  ;;  %v474_v9 = vrot.slane %v1747_v43, 1  ;;  %v475_v10 = vrot.slane %v1750_v44, 1 }
  0x2b   : > { %1332 = vmatpush3.bf16.msra.mxu0 %v1449_v38  ;;  %v687_v8 = vsel %vm672_vm3, %v684_v60, %v686_v1  ;;  %v477_v11 = vrot.slane %v241_v2, 1  ;;  %v730_v12 = vpack.c.bf16 %v682_v5, %v680_v3  ;;  %v688_v13 = vrot.slane %v1721_v24, 2 }
  0x2c   : > { %1298 = vmatmul.mubr.msk.bf16.gmra.mrb[4].mxu1 %vm291_vm1, %v270_v48  ;;  %v689_v14 = vrot.slane %v1729_v30, 2  ;;  %v731_v15 = vpack.c.bf16 %v687_v8, %v685_v7  ;;  %v691_v16 = vrot.slane %v1732_v31, 2  ;;  %v693_v17 = vrot.slane %v1747_v43, 2 }
  0x2d   : > { %1301 = vmatprep.mubr.msk.bf16.mxu1 %vm291_vm1, %v271_v51  ;;  %v694_v18 = vrot.slane %v1750_v44, 2  ;;  %v696_v21 = vrot.slane %v241_v2, 2  ;;  %v476_v23 = vsel %vm453_vm2, %v474_v9, %v475_v10  ;;  %v478_v24 = vsel %vm453_vm2, %v475_v10, %v477_v11 }
  0x2e   : > { %1318 = vmatmul.mubr.msk.bf16.gmra.mrb[4].mxu0 %vm291_vm1, %v513_v54  ;;  %v479_v25 = vrot.slane %v1774_v61, 1  ;;  %v480_v27 = vrot.slane %v1777_v62, 1  ;;  %v274_v28 = vpack.c.bf16 %v249_v20, %v248_v19  ;;  %v690_v29 = vsel %vm672_vm3, %v688_v13, %v689_v14 }
  0x2f   : > { %1333 = vmatprep.mubr.msk.bf16.mxu0 %vm291_vm1, %v729_v58  ;;  %v692_v30 = vsel %vm672_vm3, %v689_v14, %v691_v16  ;;  %v482_v31 = vrot.slane %v244_v22, 1  ;;  %v514_v32 = vpack.c.bf16 %v478_v24, %v476_v23  ;;  %v695_v33 = vsel %vm672_vm3, %v693_v17, %v694_v18  ;;  %v251_v16 = vld [vmem:[#allocation2] sm:$0xff]  ;;  %v254_v17 = vld [vmem:[#allocation2 + $0x18] sm:$0xff] }
  0x30   : > { %v697_v34 = vsel %vm672_vm3, %v694_v18, %v696_v21  ;;  %v484_v35 = vrot.slane %v1780_v63, 1  ;;  %v485_v36 = vrot.slane %v1783_v0, 1  ;;  %v487_v37 = vrot.slane %v247_v26, 1 }
  0x31   : > { %v698_v38 = vrot.slane %v1774_v61, 2  ;;  %v732_v39 = vpack.c.bf16 %v692_v30, %v690_v29  ;;  %v481_v40 = vsel %vm453_vm2, %v479_v25, %v480_v27  ;;  %v699_v41 = vrot.slane %v1777_v62, 2  ;;  %v257_v30 = vld [vmem:[#allocation2 + $0x30] sm:$0xff] }
  0x32   : > { %v733_v42 = vpack.c.bf16 %v697_v34, %v695_v33  ;;  %v701_v43 = vrot.slane %v244_v22, 2  ;;  %v483_v44 = vsel %vm453_vm2, %v480_v27, %v482_v31  ;;  %v703_v45 = vrot.slane %v1780_v63, 2  ;;  %v258_v33 = vld [vmem:[#allocation2 + $0x38] sm:$0xff] }
  0x33   : > { %v704_v46 = vrot.slane %v1783_v0, 2  ;;  %v706_v47 = vrot.slane %v247_v26, 2  ;;  %v486_v48 = vsel %vm453_vm2, %v484_v35, %v485_v36  ;;  %v488_v49 = vsel %vm453_vm2, %v485_v36, %v487_v37  ;;  %v256_v35 = vld [vmem:[#allocation2 + $0x28] sm:$0xff] }
  0x34   : > { %1302 = vmatmul.mubr.msk.bf16.gmra.mrb[8].mxu1 %vm291_vm1, %v272_v4  ;;  %v489_v51 = vrot.slane %v248_v19, 1  ;;  %v490_v52 = vrot.slane %v249_v20, 1  ;;  %v515_v53 = vpack.c.bf16 %v483_v44, %v481_v40  ;;  %v700_v54 = vsel %vm672_vm3, %v698_v38, %v699_v41 }
  0x35   : > { %1305 = vmatprep.mubr.msk.bf16.mxu1 %vm291_vm1, %v273_v6  ;;  %v702_v55 = vsel %vm672_vm3, %v699_v41, %v701_v43  ;;  %v516_v56 = vpack.c.bf16 %v488_v49, %v486_v48  ;;  %v705_v57 = vsel %vm672_vm3, %v703_v45, %v704_v46  ;;  %v707_v58 = vsel %vm672_vm3, %v704_v46, %v706_v47  ;;  %v261_v46 = vld [vmem:[#allocation2 + $0x50] sm:$0xff]  ;;  %v259_v48 = vld [vmem:[#allocation2 + $0x40] sm:$0xff] }
  0x36   : > { %1334 = vmatmul.mubr.msk.bf16.vlgmr.msra.gmra.mrb[0].mxu0 %vm291_vm1, %v730_v12  ;;  %v492_v59 = vrot.slane %v250_v50, 1  ;;  %v734_v60 = vpack.c.bf16 %v702_v55, %v700_v54  ;;  %v708_v61 = vrot.slane %v248_v19, 2  ;;  %v709_v62 = vrot.slane %v249_v20, 2  ;;  %v252_v19 = vld [vmem:[#allocation2 + $0x8] sm:$0xff] }
  0x37   : > { %1337 = vmatprep.mubr.msk.bf16.mxu0 %vm291_vm1, %v731_v15  ;;  %v735_v63 = vpack.c.bf16 %v707_v58, %v705_v57  ;;  %v711_v0 = vrot.slane %v250_v50, 2  ;;  %v491_v1 = vsel %vm453_vm2, %v489_v51, %v490_v52  ;;  %v253_v15 = vld [vmem:[#allocation2 + $0x10] sm:$0xff]  ;;  %v262_v50 = vld [vmem:[#allocation2 + $0x58] sm:$0xff] }
  0x38   : > { %v493_v2 = vsel %vm453_vm2, %v490_v52, %v492_v59  ;;  %v710_v4 = vsel %vm672_vm3, %v708_v61, %v709_v62 }
  0x39   : > { %v517_v3 = vpack.c.bf16 %v493_v2, %v491_v1  ;;  %v712_v5 = vsel %vm672_vm3, %v709_v62, %v711_v0  ;;  %v265_v2 = vld [vmem:[#allocation2 + $0x70] sm:$0xff] }
  0x3a   : > { %v736_v6 = vpack.c.bf16 %v712_v5, %v710_v4  ;;  %v263_v4 = vld [vmem:[#allocation2 + $0x60] sm:$0xff] }
  0x3c   : > { %1306 = vmatmul.mubr.msk.bf16.gmra.mrb[12].mxu1 %vm291_vm1, %v274_v28 }
  0x3d   : > { %1321 = vmatprep.mubr.msk.bf16.mxu1 %vm291_vm1, %v514_v32  ;;  %v255_v32 = vld [vmem:[#allocation2 + $0x20] sm:$0xff] }
  0x3e   : > { %1338 = vmatmul.mubr.msk.bf16.gmra.mrb[4].mxu0 %vm291_vm1, %v732_v39 }
  0x3f   : > { %1341 = vmatprep.mubr.msk.bf16.mxu0 %vm291_vm1, %v733_v42 }
  0x44   : > { %1322 = vmatmul.mubr.msk.bf16.vlgmr.msra.gmra.mrb[8].mxu1 %vm291_vm1, %v515_v53  ;;  %v260_v53 = vld [vmem:[#allocation2 + $0x48] sm:$0xff] }
  0x45   : > { %1325 = vmatprep.mubr.msk.bf16.mxu1 %vm291_vm1, %v516_v56 }
  0x46   : > { %1342 = vmatmul.mubr.msk.bf16.gmra.mrb[8].mxu0 %vm291_vm1, %v734_v60 }
  0x47   : > { %1345 = vmatprep.mubr.msk.bf16.mxu0 %vm291_vm1, %v735_v63 }
  0x4c   : > { %1326 = vmatmul.mubr.msk.bf16.gmra.mrb[12].mxu1 %vm291_vm1, %v517_v3 }
  0x4e   : > { %1346 = vmatmul.mubr.msk.bf16.gmra.mrb[12].mxu0 %vm291_vm1, %v736_v6  ;;  %v266_v6 = vld [vmem:[#allocation2 + $0x78] sm:$0xff] }
  0xf7   : > { %v1295_v7 = vpop.f32.mrb[0].mxu1 }
  0xf8   : > { %v350_v8 = vpop.f32.mrb[1].mxu1  ;;  %v415_v18 = vadd.f32 %v1295_v7, %v253_v15 }
  0xf9   : > { %v1296_v9 = vpop.f32.mrb[2].mxu1  ;;  %v413_v20 = vadd.f32 %v350_v8, %v251_v16 }
  0xfa   : > { %v353_v10 = vpop.f32.mrb[3].mxu1  ;;  %v416_v22 = vadd.f32 %v1296_v9, %v254_v17  ;;  %v264_v9 = vld [vmem:[#allocation2 + $0x68] sm:$0xff] }
  0xfb   : > { %v414_v25 = vadd.f32 %v353_v10, %v252_v19 }
  0xff   : > { %v1299_v11 = vpop.f32.mrb[4].mxu1 }
 0x100   : > { %v366_v12 = vpop.f32.mrb[5].mxu1  ;;  %v419_v34 = vadd.f32 %v1299_v11, %v257_v30 }
 0x101   : > { %v1300_v13 = vpop.f32.mrb[6].mxu1  ;;  %v417_v36 = vadd.f32 %v366_v12, %v255_v32 }
 0x102   : > { %v369_v14 = vpop.f32.mrb[7].mxu1  ;;  %v420_v38 = vadd.f32 %v1300_v13, %v258_v33 }
 0x103   : > { %v418_v41 = vadd.f32 %v369_v14, %v256_v35 }
 0x109   : > { %v1335_v21 = vpop.f32.mrb[0].mxu0 }
 0x10a   : > { %v1848_v23 = vadd.f32 %v1335_v21, %v415_v18  ;;  %v812_v24 = vpop.f32.mrb[1].mxu0 }
 0x10b   : > { %v1850_v26 = vadd.f32 %v812_v24, %v413_v20  ;;  %v1336_v27 = vpop.f32.mrb[2].mxu0  ;;  %v1910_v24 = vld [vmem:[%s2071_s2] ss:$0 sm:$0xff] (!%p1254_p8) }
 0x10c   : > { %893 = vst.msk [vmem:[#allocation2 + $0x10] sm:$0xff] %vm291_vm1, %v1848_v23  ;;  %v1854_v28 = vadd.f32 %v1336_v27, %v416_v22  ;;  %v815_v29 = vpop.f32.mrb[3].mxu0 }
 0x10d   : > { %891 = vst.msk [vmem:[#allocation2] sm:$0xff] %vm291_vm1, %v1850_v26  ;;  %v1858_v31 = vadd.f32 %v815_v29, %v414_v25  ;;  %v1914_v25 = vadd.f32 (!%p1254_p8), %v1850_v26, %v1910_v24  ;;  %v1922_v29 = vadd.f32 (!%p1254_p8), %v1848_v23, %v1910_v24 }
 0x10e   : > { %894 = vst.msk [vmem:[#allocation2 + $0x18] sm:$0xff] %vm291_vm1, %v1854_v28  ;;  %v1926_v30 = vadd.f32 (!%p1254_p8), %v1854_v28, %v1910_v24 }
 0x10f   : > { %892 = vst.msk [vmem:[#allocation2 + $0x8] sm:$0xff] %vm291_vm1, %v1858_v31  ;;  %v1918_v27 = vadd.f32 (!%p1254_p8), %v1858_v31, %v1910_v24  ;;  %v950_v26 = vand.u32 (!%p1254_p8), 2147483647, %v1914_v25 }
 0x110   : > { %v953_v23 = vand.u32 (!%p1254_p8), 2147483647, %v1926_v30 }
 0x111   : > { %v1339_v37 = vpop.f32.mrb[4].mxu0  ;;  %v951_v31 = vand.u32 (!%p1254_p8), 2147483647, %v1918_v27  ;;  %v966_v28 = vsub.f32 (!%p1254_p8), 0.0, %v950_v26 }
 0x112   : > { %v1864_v39 = vadd.f32 %v1339_v37, %v419_v34  ;;  %v828_v40 = vpop.f32.mrb[5].mxu0  ;;  %v952_v34 = vand.u32 (!%p1254_p8), 2147483647, %v1922_v29 }
 0x113   : > { %v1866_v42 = vadd.f32 %v828_v40, %v417_v36  ;;  %v1340_v43 = vpop.f32.mrb[6].mxu0  ;;  %v967_v36 = vsub.f32 (!%p1254_p8), 0.0, %v951_v31 }
 0x114   : > { %897 = vst.msk [vmem:[#allocation2 + $0x30] sm:$0xff] %vm291_vm1, %v1864_v39  ;;  %v1870_v44 = vadd.f32 %v1340_v43, %v420_v38  ;;  %v831_v45 = vpop.f32.mrb[7].mxu0  ;;  %v1941_v35 = vadd.f32 (!%p1254_p8), %v1864_v39, %v1910_v24  ;;  %v968_v40 = vsub.f32 (!%p1254_p8), 0.0, %v952_v34  ;;  %v982_v43 = vmul.f32 (!%p1254_p8), 1.442695, %v966_v28 }
 0x115   : > { %895 = vst.msk [vmem:[#allocation2 + $0x20] sm:$0xff] %vm291_vm1, %v1866_v42  ;;  %v1368_v47 = vadd.f32 %v831_v45, %v418_v41  ;;  %v1930_v32 = vadd.f32 (!%p1254_p8), %v1866_v42, %v1910_v24  ;;  %v969_v41 = vsub.f32 (!%p1254_p8), 0.0, %v953_v23  ;;  %v984_v45 = vmul.f32 (!%p1254_p8), 1.442695, %v967_v36 }
 0x116   : > { %898 = vst.msk [vmem:[#allocation2 + $0x38] sm:$0xff] %vm291_vm1, %v1870_v44  ;;  %v1946_v38 = vadd.f32 (!%p1254_p8), %v1870_v44, %v1910_v24  ;;  %1450 = vpow2.f32 (!%p1254_p8), %v982_v43 }
 0x117   : > { %v1323_v49 = vpop.f32.mrb[8].mxu1  ;;  %896 = vst.msk [vmem:[#allocation2 + $0x28] sm:$0xff] %vm291_vm1, %v1368_v47  ;;  %v1933_v33 = vadd.f32 (!%p1254_p8), %v1368_v47, %v1910_v24  ;;  %v954_v37 = vand.u32 (!%p1254_p8), 2147483647, %v1930_v32  ;;  %1452 = vpow2.f32 (!%p1254_p8), %v984_v45 }
 0x118   : > { %v1369_v51 = vadd.f32 %v1323_v49, %v261_v46  ;;  %v625_v52 = vpop.f32.mrb[9].mxu1  ;;  %v986_v47 = vmul.f32 (!%p1254_p8), 1.442695, %v968_v40 }
 0x119   : > { %v1371_v54 = vadd.f32 %v625_v52, %v259_v48  ;;  %v1324_v55 = vpop.f32.mrb[10].mxu1  ;;  %v1343_v56 = vpop.f32.mrb[8].mxu0  ;;  %v955_v42 = vand.u32 (!%p1254_p8), 2147483647, %v1933_v33  ;;  %v970_v46 = vsub.f32 (!%p1254_p8), 0.0, %v954_v37 }
 0x11a   : > { %v1373_v57 = vadd.f32 %v1324_v55, %v262_v50  ;;  %v628_v58 = vpop.f32.mrb[11].mxu1  ;;  %v1877_v59 = vadd.f32 %v1369_v51, %v1343_v56  ;;  %v844_v60 = vpop.f32.mrb[9].mxu0  ;;  %v988_v48 = vmul.f32 (!%p1254_p8), 1.442695, %v969_v41  ;;  %v956_v50 = vand.u32 (!%p1254_p8), 2147483647, %v1941_v35 }
 0x11b   : > { %v1375_v61 = vadd.f32 %v628_v58, %v260_v53  ;;  %v1879_v62 = vadd.f32 %v1371_v54, %v844_v60  ;;  %v1344_v63 = vpop.f32.mrb[10].mxu0  ;;  %v971_v49 = vsub.f32 (!%p1254_p8), 0.0, %v955_v42  ;;  %v990_v39 = vmul.f32 (!%p1254_p8), 1.442695, %v970_v46 }
 0x11c   : > { %901 = vst.msk [vmem:[#allocation2 + $0x50] sm:$0xff] %vm291_vm1, %v1877_v59  ;;  %v1883_v0 = vadd.f32 %v1373_v57, %v1344_v63  ;;  %v847_v1 = vpop.f32.mrb[11].mxu0  ;;  %v957_v51 = vand.u32 (!%p1254_p8), 2147483647, %v1946_v38  ;;  %1454 = vpow2.f32 (!%p1254_p8), %v986_v47  ;;  %v972_v54 = vsub.f32 (!%p1254_p8), 0.0, %v956_v50 }
 0x11d   : > { %899 = vst.msk [vmem:[#allocation2 + $0x40] sm:$0xff] %vm291_vm1, %v1879_v62  ;;  %v1376_v3 = vadd.f32 %v1375_v61, %v847_v1  ;;  %v992_v52 = vmul.f32 (!%p1254_p8), 1.442695, %v971_v49  ;;  %v1953_v44 = vadd.f32 (!%p1254_p8), %v1879_v62, %v1910_v24  ;;  %v1960_v56 = vadd.f32 (!%p1254_p8), %v1877_v59, %v1910_v24 }
 0x11e   : > { %902 = vst.msk [vmem:[#allocation2 + $0x58] sm:$0xff] %vm291_vm1, %v1883_v0  ;;  %v973_v55 = vsub.f32 (!%p1254_p8), 0.0, %v957_v51  ;;  %1456 = vpow2.f32 (!%p1254_p8), %v988_v48  ;;  %v994_v58 = vmul.f32 (!%p1254_p8), 1.442695, %v972_v54  ;;  %v934_v50 = vmax.f32 (!%p1254_p8), %v1914_v25, 0.0 }
 0x11f   : > { %v1327_v5 = vpop.f32.mrb[12].mxu1  ;;  %900 = vst.msk [vmem:[#allocation2 + $0x48] sm:$0xff] %vm291_vm1, %v1376_v3  ;;  %v1956_v53 = vadd.f32 (!%p1254_p8), %v1376_v3, %v1910_v24  ;;  %v958_v57 = vand.u32 (!%p1254_p8), 2147483647, %v1953_v44  ;;  %1458 = vpow2.f32 (!%p1254_p8), %v990_v39  ;;  %v960_v63 = vand.u32 (!%p1254_p8), 2147483647, %v1960_v56 }
 0x120   : > { %v1377_v7 = vadd.f32 %v1327_v5, %v265_v2  ;;  %v641_v8 = vpop.f32.mrb[13].mxu1  ;;  %v996_v60 = vmul.f32 (!%p1254_p8), 1.442695, %v973_v55  ;;  %1460 = vpow2.f32 (!%p1254_p8), %v992_v52  ;;  %v1967_v2 = vadd.f32 (!%p1254_p8), %v1883_v0, %v1910_v24 }
 0x121   : > { %v1379_v10 = vadd.f32 %v641_v8, %v263_v4  ;;  %v1328_v11 = vpop.f32.mrb[14].mxu1  ;;  %v1347_v12 = vpop.f32.mrb[12].mxu0  ;;  %910 = sbr.rel (%p1254_p8) target bundleno = 372 (0x174), region = 40  ;;  %v959_v61 = vand.u32 (!%p1254_p8), 2147483647, %v1956_v53  ;;  %v974_v62 = vsub.f32 (!%p1254_p8), 0.0, %v958_v57  ;;  %1462 = vpow2.f32 (!%p1254_p8), %v994_v58 }
 0x122   : > { %v1381_v13 = vadd.f32 %v1328_v11, %v266_v6  ;;  %v644_v14 = vpop.f32.mrb[15].mxu1  ;;  %v1890_v15 = vadd.f32 %v1377_v7, %v1347_v12  ;;  %v860_v16 = vpop.f32.mrb[13].mxu0  ;;  %1464 = vpow2.f32 (!%p1254_p8), %v996_v60  ;;  %v976_v3 = vsub.f32 (!%p1254_p8), 0.0, %v960_v63 }
 0x123   : > { %v1383_v17 = vadd.f32 %v644_v14, %v264_v9  ;;  %v1892_v18 = vadd.f32 %v1379_v10, %v860_v16  ;;  %v1348_v19 = vpop.f32.mrb[14].mxu0  ;;  %v975_v1 = vsub.f32 (!%p1254_p8), 0.0, %v959_v61  ;;  %v998_v59 = vmul.f32 (!%p1254_p8), 1.442695, %v974_v62  ;;  %v1451_v8 = vpop.eup (!%p1254_p8), %1450 }
 0x124   : > { %905 = vst.msk [vmem:[#allocation2 + $0x70] sm:$0xff] %vm291_vm1, %v1890_v15  ;;  %v1896_v20 = vadd.f32 %v1381_v13, %v1348_v19  ;;  %v863_v21 = vpop.f32.mrb[15].mxu0  ;;  %v1002_v5 = vmul.f32 (!%p1254_p8), 1.442695, %v976_v3  ;;  %v1453_v0 = vpop.eup (!%p1254_p8), %1452  ;;  %v1014_v10 = vadd.f32 (!%p1254_p8), 1.0, %v1451_v8  ;;  %v1980_v11 = vadd.f32 (!%p1254_p8), %v1890_v15, %v1910_v24 }
 0x125   : > { %903 = vst.msk [vmem:[#allocation2 + $0x60] sm:$0xff] %vm291_vm1, %v1892_v18  ;;  %v1900_v22 = vadd.f32 %v1383_v17, %v863_v21  ;;  %v1000_v4 = vmul.f32 (!%p1254_p8), 1.442695, %v975_v1  ;;  %1466 = vpow2.f32 (!%p1254_p8), %v998_v59  ;;  %v961_v6 = vand.u32 (!%p1254_p8), 2147483647, %v1967_v2 }
 0x126   : > { %906 = vst.msk [vmem:[#allocation2 + $0x78] sm:$0xff] %vm291_vm1, %v1896_v20  ;;  %v1972_v7 = vadd.f32 (!%p1254_p8), %v1892_v18, %v1910_v24  ;;  %v1455_v12 = vpop.eup (!%p1254_p8), %1454  ;;  %v1015_v13 = vadd.f32 (!%p1254_p8), 1.0, %v1453_v0  ;;  %v964_v34 = vand.u32 (!%p1254_p8), 2147483647, %v1980_v11  ;;  %v935_v55 = vmax.f32 (!%p1254_p8), %v1918_v27, 0.0 }
 0x127   : > { %904 = vst.msk [vmem:[#allocation2 + $0x68] sm:$0xff] %vm291_vm1, %v1900_v22  ;;  %1468 = vpow2.f32 (!%p1254_p8), %v1000_v4  ;;  %v1976_v9 = vadd.f32 (!%p1254_p8), %v1900_v22, %v1910_v24  ;;  %v1016_v16 = vadd.f32 (!%p1254_p8), 1.0, %v1455_v12  ;;  %v977_v17 = vsub.f32 (!%p1254_p8), 0.0, %v961_v6 }
 0x128   : > { %1470 = vpow2.f32 %v1002_v5  ;;  %v1457_v14 = vpop.eup %1456  ;;  %v962_v18 = vand.u32 2147483647, %v1972_v7  ;;  %v980_v45 = vsub.f32 0.0, %v964_v34  ;;  %v936_v61 = vmax.f32 %v1922_v29, 0.0 }
 0x129   : > { %1472 = vlog2.f32 %v1014_v10  ;;  %v1459_v19 = vpop.eup %1458  ;;  %v1017_v21 = vadd.f32 1.0, %v1457_v14  ;;  %v963_v22 = vand.u32 2147483647, %v1976_v9  ;;  %v1004_v37 = vmul.f32 1.442695, %v977_v17 }
 0x12a   : > { %1474 = vlog2.f32 %v1015_v13  ;;  %v1461_v26 = vpop.eup %1460  ;;  %v1018_v31 = vadd.f32 1.0, %v1459_v19  ;;  %v978_v40 = vsub.f32 0.0, %v962_v18  ;;  %v1010_v57 = vmul.f32 1.442695, %v980_v45 }
 0x12b   : > { %1476 = vlog2.f32 %v1016_v16  ;;  %v1463_v15 = vpop.eup %1462  ;;  %v1019_v23 = vadd.f32 1.0, %v1461_v26  ;;  %v979_v42 = vsub.f32 0.0, %v963_v22  ;;  %v937_v1 = vmax.f32 %v1926_v30, 0.0 }
 0x12c   : > { %1478 = vlog2.f32 %v1017_v21  ;;  %v1465_v28 = vpop.eup %1464  ;;  %v1020_v36 = vadd.f32 1.0, %v1463_v15  ;;  %v1006_v39 = vmul.f32 1.442695, %v978_v40  ;;  %v938_v59 = vmax.f32 %v1930_v32, 0.0 }
 0x12d   : > { %1480 = vlog2.f32 %v1018_v31  ;;  %v1021_v41 = vadd.f32 1.0, %v1465_v28  ;;  %v1008_v52 = vmul.f32 1.442695, %v979_v42  ;;  %v939_v6 = vmax.f32 %v1933_v33, 0.0 }
 0x12e   : > { %1482 = vlog2.f32 %v1019_v23  ;;  %v1993_v12 = vadd.f32 %v1896_v20, %v1910_v24  ;;  %v940_v17 = vmax.f32 %v1941_v35, 0.0  ;;  %v941_v22 = vmax.f32 %v1946_v38, 0.0 }
 0x12f   : > { %v1467_v43 = vpop.eup %1466  ;;  %1484 = vlog2.f32 %v1020_v36  ;;  %v942_v15 = vmax.f32 %v1953_v44, 0.0  ;;  %v943_v40 = vmax.f32 %v1956_v53, 0.0 }
 0x130   : > { %1486 = vlog2.f32 %v1021_v41  ;;  %v1022_v47 = vadd.f32 1.0, %v1467_v43  ;;  %v965_v28 = vand.u32 2147483647, %v1993_v12 }
 0x131   : > { %v1469_v46 = vpop.eup %1468  ;;  %1488 = vpow2.f32 %v1004_v37 }
 0x132   : > { %v1471_v48 = vpop.eup %1470  ;;  %v1023_v49 = vadd.f32 1.0, %v1469_v46  ;;  %1490 = vlog2.f32 %v1022_v47  ;;  %v944_v46 = vmax.f32 %v1960_v56, 0.0 }
 0x133   : > { %v1024_v51 = vadd.f32 1.0, %v1471_v48  ;;  %v1473_v54 = vpop.eup %1472 }
 0x134   : > { %1492 = vlog2.f32 %v1023_v49  ;;  %v1475_v58 = vpop.eup %1474  ;;  %v1031_v60 = vmul.f32 0.6931472, %v1473_v54 }
 0x135   : > { %1494 = vlog2.f32 %v1024_v51  ;;  %v1477_v62 = vpop.eup %1476  ;;  %v1033_v63 = vmul.f32 0.6931472, %v1475_v58  ;;  %v981_v51 = vsub.f32 0.0, %v965_v28 }
 0x136   : > { %1496 = vpow2.f32 %v1006_v39  ;;  %v1479_v3 = vpop.eup %1478  ;;  %v1062_v4 = vadd.f32 %v1031_v60, %v934_v50  ;;  %v1035_v5 = vmul.f32 0.6931472, %v1477_v62 }
 0x137   : > { %1498 = vpow2.f32 %v1008_v52  ;;  %v1481_v8 = vpop.eup %1480  ;;  %v1063_v0 = vadd.f32 %v1033_v63, %v935_v55  ;;  %v1037_v10 = vmul.f32 0.6931472, %v1479_v3 }
 0x138   : > { %1500 = vpow2.f32 %v1010_v57  ;;  %v1483_v13 = vpop.eup %1482  ;;  %v1064_v14 = vadd.f32 %v1035_v5, %v936_v61  ;;  %v1039_v16 = vmul.f32 0.6931472, %v1481_v8 }
 0x139   : > { %1502 = vtanh.f32 %v1062_v4  ;;  %v1485_v18 = vpop.eup %1484  ;;  %v1065_v19 = vadd.f32 %v1037_v10, %v937_v1  ;;  %v1041_v21 = vmul.f32 0.6931472, %v1483_v13 }
 0x13a   : > { %1504 = vtanh.f32 %v1063_v0  ;;  %v1487_v26 = vpop.eup %1486  ;;  %v1066_v31 = vadd.f32 %v1039_v16, %v938_v59  ;;  %v1043_v34 = vmul.f32 0.6931472, %v1485_v18  ;;  %v1012_v59 = vmul.f32 1.442695, %v981_v51 }
 0x13b   : > { %1506 = vtanh.f32 %v1064_v14  ;;  %v1489_v20 = vpop.eup %1488  ;;  %v1067_v24 = vadd.f32 %v1041_v21, %v939_v6  ;;  %v1045_v23 = vmul.f32 0.6931472, %v1487_v26  ;;  %v946_v26 = vmax.f32 %v1972_v7, 0.0 }
 0x13c   : > { %1508 = vtanh.f32 %v1065_v19  ;;  %v1491_v36 = vpop.eup %1490  ;;  %v1068_v37 = vadd.f32 %v1043_v34, %v940_v17  ;;  %v1025_v41 = vadd.f32 1.0, %v1489_v20  ;;  %v947_v34 = vmax.f32 %v1976_v9, 0.0 }
 0x13d   : > { %1510 = vtanh.f32 %v1066_v31  ;;  %v1069_v43 = vadd.f32 %v1045_v23, %v941_v22  ;;  %v1047_v45 = vmul.f32 0.6931472, %v1491_v36 }
 0x13e   : > { %v1493_v42 = vpop.eup %1492  ;;  %1512 = vtanh.f32 %v1067_v24 }
 0x13f   : > { %v1495_v47 = vpop.eup %1494  ;;  %1514 = vtanh.f32 %v1068_v37  ;;  %v1049_v48 = vmul.f32 0.6931472, %v1493_v42  ;;  %v1070_v39 = vadd.f32 %v1047_v45, %v942_v15 }
 0x140   : > { %v1497_v49 = vpop.eup %1496  ;;  %1516 = vtanh.f32 %v1069_v43  ;;  %v1051_v50 = vmul.f32 0.6931472, %v1495_v47 }
 0x141   : > { %v1499_v52 = vpop.eup %1498  ;;  %v1071_v54 = vadd.f32 %v1049_v48, %v943_v40  ;;  %1518 = vlog2.f32 %v1025_v41  ;;  %v1026_v55 = vadd.f32 1.0, %v1497_v49  ;;  %v949_v49 = vmax.f32 %v1993_v12, 0.0 }
 0x142   : > { %v1501_v57 = vpop.eup %1500  ;;  %1520 = vtanh.f32 %v1070_v39  ;;  %v1072_v58 = vadd.f32 %v1051_v50, %v944_v46  ;;  %v1027_v60 = vadd.f32 1.0, %v1499_v52 }
 0x143   : > { %v1503_v61 = vpop.eup %1502  ;;  %1522 = vtanh.f32 %v1071_v54  ;;  %v1028_v62 = vadd.f32 1.0, %v1501_v57 }
 0x144   : > { %v1505_v63 = vpop.eup %1504  ;;  %v1094_v1 = vmul.f32 %v1503_v61, %v1914_v25  ;;  %1524 = vtanh.f32 %v1072_v58 }
 0x145   : > { %v1507_v3 = vpop.eup %1506  ;;  %v1095_v4 = vmul.f32 %v1505_v63, %v1918_v27  ;;  %1526 = vlog2.f32 %v1026_v55 }
 0x146   : > { %v1509_v5 = vpop.eup %1508  ;;  %1110 = vst.msk [vmem:[%s1644_s25] sm:$0xff] %vm291_vm1, %v1094_v1  ;;  %v1096_v6 = vmul.f32 %v1507_v3, %v1922_v29  ;;  %1528 = vlog2.f32 %v1027_v60 }
 0x147   : > { %v1511_v8 = vpop.eup %1510  ;;  %1111 = vst.msk [vmem:[%s1644_s25 + $0x8] sm:$0xff] %vm291_vm1, %v1095_v4  ;;  %v1097_v25 = vmul.f32 %v1509_v5, %v1926_v30  ;;  %1530 = vlog2.f32 %v1028_v62  ;;  %v945_v30 = vmax.f32 %v1967_v2, 0.0 }
 0x148   : > { %v1513_v0 = vpop.eup %1512  ;;  %1112 = vst.msk [vmem:[%s1644_s25 + $0x10] sm:$0xff] %vm291_vm1, %v1096_v6  ;;  %v1098_v27 = vmul.f32 %v1511_v8, %v1930_v32  ;;  %1532 = vpow2.f32 %v1012_v59 }
 0x149   : > { %v1515_v10 = vpop.eup %1514  ;;  %1113 = vst.msk [vmem:[%s1644_s25 + $0x18] sm:$0xff] %vm291_vm1, %v1097_v25  ;;  %v1099_v29 = vmul.f32 %v1513_v0, %v1933_v33 }
 0x14a   : > { %v1517_v13 = vpop.eup %1516  ;;  %1114 = vst.msk [vmem:[%s1644_s25 + $0x20] sm:$0xff] %vm291_vm1, %v1098_v27  ;;  %v1100_v14 = vmul.f32 %v1515_v10, %v1941_v35 }
 0x14b   : > { %v1519_v16 = vpop.eup %1518  ;;  %1115 = vst.msk [vmem:[%s1644_s25 + $0x28] sm:$0xff] %vm291_vm1, %v1099_v29  ;;  %v1101_v32 = vmul.f32 %v1517_v13, %v1946_v38 }
 0x14c   : > { %v1521_v17 = vpop.eup %1520  ;;  %1116 = vst.msk [vmem:[%s1644_s25 + $0x30] sm:$0xff] %vm291_vm1, %v1100_v14  ;;  %v1053_v18 = vmul.f32 0.6931472, %v1519_v16 }
 0x14d   : > { %v1523_v19 = vpop.eup %1522  ;;  %1117 = vst.msk [vmem:[%s1644_s25 + $0x38] sm:$0xff] %vm291_vm1, %v1101_v32  ;;  %v1102_v33 = vmul.f32 %v1521_v17, %v1953_v44  ;;  %v948_v44 = vmax.f32 %v1980_v11, 0.0 }
 0x14e   : > { %v1525_v35 = vpop.eup %1524  ;;  %v1103_v21 = vmul.f32 %v1523_v19, %v1956_v53  ;;  %v1073_v22 = vadd.f32 %v1053_v18, %v945_v30 }
 0x14f   : > { %v1527_v31 = vpop.eup %1526  ;;  %1118 = vst.msk [vmem:[%s1644_s25 + $0x40] sm:$0xff] %vm291_vm1, %v1102_v33  ;;  %v1104_v38 = vmul.f32 %v1525_v35, %v1960_v56 }
 0x150   : > { %v1529_v15 = vpop.eup %1528  ;;  %1119 = vst.msk [vmem:[%s1644_s25 + $0x48] sm:$0xff] %vm291_vm1, %v1103_v21  ;;  %1534 = vtanh.f32 %v1073_v22  ;;  %v1055_v20 = vmul.f32 0.6931472, %v1527_v31 }
 0x151   : > { %v1531_v24 = vpop.eup %1530  ;;  %1120 = vst.msk [vmem:[%s1644_s25 + $0x50] sm:$0xff] %vm291_vm1, %v1104_v38  ;;  %v1057_v53 = vmul.f32 0.6931472, %v1529_v15 }
 0x152   : > { %v1533_v23 = vpop.eup %1532  ;;  %v1074_v28 = vadd.f32 %v1055_v20, %v946_v26  ;;  %v1059_v36 = vmul.f32 0.6931472, %v1531_v24 }
 0x153   : > { %v1075_v37 = vadd.f32 %v1057_v53, %v947_v34  ;;  %v1029_v40 = vadd.f32 1.0, %v1533_v23 }
 0x154   : > { %1536 = vtanh.f32 %v1074_v28  ;;  %v1076_v56 = vadd.f32 %v1059_v36, %v948_v44 }
 0x155   : > { %1538 = vtanh.f32 %v1075_v37 }
 0x156   : > { %1540 = vtanh.f32 %v1076_v56 }
 0x157   : > { %1542 = vlog2.f32 %v1029_v40 }
 0x15a   : > { %v1535_v41 = vpop.eup %1534 }
 0x15b   : > { %v1105_v42 = vmul.f32 %v1535_v41, %v1967_v2 }
 0x15d   : > { %1121 = vst.msk [vmem:[%s1644_s25 + $0x58] sm:$0xff] %vm291_vm1, %v1105_v42 }
 0x15e   : > { %v1537_v43 = vpop.eup %1536 }
 0x15f   : > { %v1539_v45 = vpop.eup %1538  ;;  %v1106_v46 = vmul.f32 %v1537_v43, %v1972_v7 }
 0x160   : > { %v1541_v47 = vpop.eup %1540  ;;  %v1107_v48 = vmul.f32 %v1539_v45, %v1976_v9 }
 0x161   : > { %v1543_v39 = vpop.eup %1542  ;;  %1122 = vst.msk [vmem:[%s1644_s25 + $0x60] sm:$0xff] %vm291_vm1, %v1106_v46  ;;  %v1108_v50 = vmul.f32 %v1541_v47, %v1980_v11 }
 0x162   : > { %1123 = vst.msk [vmem:[%s1644_s25 + $0x68] sm:$0xff] %vm291_vm1, %v1107_v48  ;;  %v1061_v2 = vmul.f32 0.6931472, %v1543_v39 }
 0x163   : > { %1124 = vst.msk [vmem:[%s1644_s25 + $0x70] sm:$0xff] %vm291_vm1, %v1108_v50 }
 0x164   : > { %v1077_v51 = vadd.f32 %v1061_v2, %v949_v49 }
 0x166   : > { %1544 = vtanh.f32 %v1077_v51 }
 0x170   : > { %v1545_v52 = vpop.eup %1544 }
 0x171   : > { %v1109_v7 = vmul.f32 %v1545_v52, %v1993_v12 }
 0x173   : > { %1125 = vst.msk [vmem:[%s1644_s25 + $0x78] sm:$0xff] %vm291_vm1, %v1109_v7 }
 0x174 PF: > { %s13_s16 = sadd.s32 1, %s1584_s16   ;;  %s2073_s12 = smov %s1576_s14 }
 0x175   : > { %p10_p9 = scmp.ge.s32.totalorder %s13_s16, 8   ;;  %s2074_s13 = smov %s1580_s15 }
 0x176   : > { %s2075_s14 = smov %s2078_s17  ;;  %s2076_s15 = smov %s2082_s18 }
 0x177   :  { %12 = sbr.rel (!%p10_p9) target bundleno = 3 (0x3), region = 76 }

// kernel: _lambda_.18
= control target key start
LH: loop header
LB: loop body
LE: loop exit
PB: predicated region body
PF: predicated region fallthrough
CT: control target
= control target key end

     0   :  { %s2826_s12 = smov 0   ;;  %s2828_s13 = smov 0   ;;  %s3546_s0 = inlined_call_operand.vmem [shape: f32[2,16,24,4], index: 0, kind: input, shape index: {}]   ;;  %s3547_s1 = inlined_call_operand.vmem [shape: bf16[9,9,4,32], index: 1, kind: input, shape index: {}]   ;;  %s3548_s2 = inlined_call_operand.vmem [shape: f32[1,32], index: 2, kind: input, shape index: {}]   ;;  %s3549_s3 = inlined_call_operand.vmem [shape: f32[2,128,32], index: 3, kind: output, shape index: {}]  }
   0x1   :  { %s2830_s14 = smov 0   ;;  %s2832_s15 = smov 0  }
   0x2   :  { %s2834_s16 = smov 0  }
   0x3 LB: > { %s22_s17 = sadd.s32 1, %s2795_s14  ;;  %s25_s18 = sadd.s32 1, %s2799_s15  ;;  %s2803_s16 = sphi %s2834_s16, %s13_s16   ;;  %s2799_s15 = sphi %s2832_s15, %s3553_s15   ;;  %s2795_s14 = sphi %s2830_s14, %s3552_s14   ;;  %s2791_s13 = sphi %s2828_s13, %s3551_s13   ;;  %s2787_s12 = sphi %s2826_s12, %s3550_s12  }
   0x4   : > { %p23_p0 = scmp.ge.s32.totalorder %s22_s17, 9  ;;  %p2232_p1 = scmp.ge.s32.totalorder %s2803_s16, 1 }
   0x5   : > { %p159_p2 = scmp.lt.s32.totalorder %s2803_s16, 19 }
   0x6   : > { %s3555_s17 = smov (%p23_p0, %s22_s17), 0  ;;  %s3557_s18 = smov (!%p23_p0, %s25_s18), %s2799_s15 }
   0x7   : > { %p160_p3 = pnand %p2232_p1, %p159_p2  ;;  %p27_p4 = scmp.ge.s32.totalorder %s3557_s18, 2 }
   0x8   : > { %p188_p5 = scmp.lt.s32.totalorder (!%p160_p3), %s2791_s13, 1  ;;  %p193_p6 = scmp.lt.s32.totalorder (!%p160_p3), %s2787_s12, 8 }
   0x9   : > { %s3559_s18 = smov (%p27_p4, %s3557_s18), 0  ;;  %163 = sbr.rel (%p160_p3) target bundleno = 397 (0x18d), region = 32 }
   0xa   : > { %p2237_p7 = scmp.ne.s32.totalorder (!%p160_p3), %s2787_s12, 0 }
  0x10   : > { %s3561_s13 = smov (!%p188_p5, %s2791_s13), 1  ;;  %207 = sbr.rel (%p2237_p7) target bundleno = 27 (0x1b), region = 36 }
  0x11   : > { %s194_s19 = scalar_select %p193_p6, %s2787_s12, 8 }
  0x12   : > { %s2722_s20 = smul.u32 384, %s3561_s13  ;;  %s2322_s21 = sshll.u32 %s3561_s13, 7  ;;  %vm208_vm0 = vcmask (!%p2237_p7), 261120   ;;  %v2805_v0 = vmov (!%p2237_p7), 0.0  }
  0x13   : > { %s2723_s22 = smul.u32 18, %s194_s19  ;;  %s2863_s25 = scalar_lea.vmem %s3549_s3, %s2322_s21  ;;  %209 = vst.msk [vmem:[#allocation2] sm:$0xff] (!%p2237_p7), %vm208_vm0, %v2805_v0  ;;  %210 = vst.msk [vmem:[#allocation2 + $0x8] sm:$0xff] (!%p2237_p7), %vm208_vm0, %v2805_v0 }
  0x14   : > { %s2868_s28 = scalar_lea.vmem %s3546_s0, %s2722_s20  ;;  %211 = vst.msk [vmem:[#allocation2 + $0x10] sm:$0xff] (!%p2237_p7), %vm208_vm0, %v2805_v0  ;;  %212 = vst.msk [vmem:[#allocation2 + $0x18] sm:$0xff] (!%p2237_p7), %vm208_vm0, %v2805_v0 }
  0x15   : > { %s2873_s4 = scalar_lea.vmem %s3547_s1, %s2723_s22  ;;  %213 = vst.msk [vmem:[#allocation2 + $0x20] sm:$0xff] (!%p2237_p7), %vm208_vm0, %v2805_v0  ;;  %214 = vst.msk [vmem:[#allocation2 + $0x28] sm:$0xff] (!%p2237_p7), %vm208_vm0, %v2805_v0 }
  0x16   : > { %215 = vst.msk [vmem:[#allocation2 + $0x30] sm:$0xff] (!%p2237_p7), %vm208_vm0, %v2805_v0  ;;  %216 = vst.msk [vmem:[#allocation2 + $0x38] sm:$0xff] (!%p2237_p7), %vm208_vm0, %v2805_v0 }
  0x17   : > { %217 = vst.msk [vmem:[#allocation2 + $0x40] sm:$0xff] %vm208_vm0, %v2805_v0  ;;  %218 = vst.msk [vmem:[#allocation2 + $0x48] sm:$0xff] %vm208_vm0, %v2805_v0 }
  0x18   : > { %219 = vst.msk [vmem:[#allocation2 + $0x50] sm:$0xff] %vm208_vm0, %v2805_v0  ;;  %220 = vst.msk [vmem:[#allocation2 + $0x58] sm:$0xff] %vm208_vm0, %v2805_v0 }
  0x19   : > { %221 = vst.msk [vmem:[#allocation2 + $0x60] sm:$0xff] %vm208_vm0, %v2805_v0  ;;  %222 = vst.msk [vmem:[#allocation2 + $0x68] sm:$0xff] %vm208_vm0, %v2805_v0 }
  0x1a   : > { %223 = vst.msk [vmem:[#allocation2 + $0x70] sm:$0xff] %vm208_vm0, %v2805_v0  ;;  %224 = vst.msk [vmem:[#allocation2 + $0x78] sm:$0xff] %vm208_vm0, %v2805_v0 }
  0x1b PF: > { %v275_v1 = vld [vmem:[%s2873_s4] sm:$0x3]  ;;  %vm301_vm1 = vcmask 1041408   ;;  %v2894_v2 = vld [vmem:[%s2873_s4 + $0x8] sm:$0x3]  ;;  %s225_s5 = smul.u32 24, %s2787_s12 }
  0x1c   : > { %2712 = vmatprep.subr.msk.bf16.mxu1 %vm301_vm1, %v275_v1  ;;  %v303_v3 = vsel %vm301_vm1, %v275_v1, 0  ;;  %2716 = vmatprep.subr.msk.bf16.mxu0 %vm301_vm1, %v2894_v2  ;;  %v2903_v4 = vsel %vm301_vm1, %v2894_v2, 0  ;;  %v2246_v5 = vld [vmem:[%s2873_s4 + $0x2] sm:$0x3]  ;;  %v2282_v6 = vld [vmem:[%s2873_s4 + $0xa] sm:$0x3] }
  0x1d   : > { %2405 = vmatpush3.bf16.msra.mxu1 %v303_v3  ;;  %s2907_s6 = scalar_lea.vmem %s2868_s28, %s225_s5  ;;  %2477 = vmatpush3.bf16.msra.mxu0 %v2903_v4  ;;  %vm276_vm2 = vcmask 31744   ;;  %v534_v10 = vsel %vm301_vm1, %v2246_v5, 0  ;;  %vm1063_vm3 = vcmask 1043456   ;;  %vm1270_vm4 = vcmask 1042432   ;;  %v2291_v48 = vld [vmem:[%s2873_s4 + $0xc] sm:$0x3] }
  0x1e   : > { %v2912_v7 = vld [vmem:[%s2907_s6] sm:$0xff]  ;;  %v2915_v8 = vld [vmem:[%s2907_s6 + $0x8] sm:$0xff]  ;;  %v2918_v9 = vld [vmem:[%s2907_s6 + $0x18] sm:$0xff]  ;;  %2713 = vmatprep.subr.msk.bf16.mxu1 %vm301_vm1, %v2246_v5  ;;  %2718 = vmatprep.subr.msk.bf16.mxu0 %vm301_vm1, %v2282_v6  ;;  %v1362_v39 = vsel %vm301_vm1, %v2282_v6, 0  ;;  %vm442_vm5 = vcmask 1046528   ;;  %vm649_vm6 = vcmask 1045504  }
  0x1f   : > { %v267_v11 = vpack.c.bf16 %v2915_v8, %v2912_v7  ;;  %v2926_v12 = vld [vmem:[%s2907_s6 + $0x20] sm:$0xff]  ;;  %v2929_v13 = vld [vmem:[%s2907_s6 + $0x10] sm:$0xff]  ;;  %v1064_v14 = vrot.slane %v2912_v7, 4  ;;  %v1065_v15 = vrot.slane %v2915_v8, 4  ;;  %v2934_v16 = vld [vmem:[%s2907_s6 + $0x28] sm:$0xff]  ;;  %v1069_v17 = vrot.slane %v2918_v9, 4 }
  0x20   : > { %v268_v18 = vpack.c.bf16 %v2926_v12, %v2918_v9  ;;  %v1067_v19 = vrot.slane %v2929_v13, 4  ;;  %v1070_v20 = vrot.slane %v2926_v12, 4  ;;  %v1072_v21 = vrot.slane %v2934_v16, 4  ;;  %v2943_v22 = vld [vmem:[%s2907_s6 + $0x30] sm:$0xff]  ;;  %v2946_v23 = vld [vmem:[%s2907_s6 + $0x38] sm:$0xff]  ;;  %v2949_v24 = vld [vmem:[%s2907_s6 + $0x48] sm:$0xff] }
  0x21   : > { %2406 = vmatprep.mubr.msk.bf16.mxu1 %vm276_vm2, %v267_v11  ;;  %v1066_v25 = vsel %vm1063_vm3, %v1064_v14, %v1065_v15  ;;  %v269_v26 = vpack.c.bf16 %v2946_v23, %v2943_v22  ;;  %v2956_v27 = vld [vmem:[%s2907_s6 + $0x50] sm:$0xff]  ;;  %v2959_v28 = vld [vmem:[%s2907_s6 + $0x40] sm:$0xff]  ;;  %v1074_v29 = vrot.slane %v2943_v22, 4  ;;  %v1075_v30 = vrot.slane %v2946_v23, 4  ;;  %v2964_v31 = vld [vmem:[%s2907_s6 + $0x58] sm:$0xff]  ;;  %p2318_p8 = scmp.ne.s32.totalorder %s2787_s12, 8 }
  0x22   : > { %2407 = vmatmul.mubr.msk.bf16.vlgmr.msra.gmra.mrb[0].mxu1 %vm276_vm2, %v268_v18  ;;  %v1068_v32 = vsel %vm1063_vm3, %v1065_v15, %v1067_v19  ;;  %v1071_v33 = vsel %vm1063_vm3, %v1069_v17, %v1070_v20  ;;  %v1073_v34 = vsel %vm1063_vm3, %v1070_v20, %v1072_v21  ;;  %v1077_v38 = vrot.slane %v2959_v28, 4  ;;  %v2978_v43 = vld [vmem:[%s2907_s6 + $0x60] sm:$0xff]  ;;  %v2981_v44 = vld [vmem:[%s2907_s6 + $0x68] sm:$0xff]  ;;  %v3007_v59 = vld [vmem:[%s2907_s6 + $0x78] sm:$0xff] }
  0x23   : > { %2423 = vmatpush3.bf16.msra.mxu1 %v534_v10  ;;  %v1120_v35 = vpack.c.bf16 %v1068_v32, %v1066_v25  ;;  %v1121_v36 = vpack.c.bf16 %v1073_v34, %v1071_v33  ;;  %2410 = vmatprep.mubr.msk.bf16.mxu1 %vm276_vm2, %v269_v26  ;;  %v1076_v37 = vsel %vm1063_vm3, %v1074_v29, %v1075_v30  ;;  %v1079_v40 = vrot.slane %v2949_v24, 4  ;;  %v2989_v49 = vld [vmem:[%s2873_s4 + $0x4] sm:$0x3]  ;;  %v3017_v1 = vld [vmem:[%s2907_s6 + $0x90] sm:$0xff]  ;;  %v3020_v3 = vld [vmem:[%s2907_s6 + $0x98] sm:$0xff] }
  0x24   : > { %v1080_v41 = vrot.slane %v2956_v27, 4  ;;  %v1082_v42 = vrot.slane %v2964_v31, 4  ;;  %v1078_v45 = vsel %vm1063_vm3, %v1075_v30, %v1077_v38  ;;  %v1271_v46 = vrot.slane %v2912_v7, 5  ;;  %2714 = vmatprep.subr.msk.bf16.mxu1 %vm301_vm1, %v2989_v49  ;;  %v3011_v60 = vld [vmem:[%s2907_s6 + $0x80] sm:$0xff]  ;;  %v3039_v26 = vld [vmem:[%s2907_s6 + $0x70] sm:$0xff] }
  0x25   : > { %2478 = vmatprep.mubr.msk.bf16.mxu0 %vm276_vm2, %v1120_v35  ;;  %v1272_v47 = vrot.slane %v2915_v8, 5  ;;  %v270_v50 = vpack.c.bf16 %v2956_v27, %v2949_v24  ;;  %v1122_v51 = vpack.c.bf16 %v1078_v45, %v1076_v37  ;;  %v1274_v52 = vrot.slane %v2929_v13, 5  ;;  %v3048_v35 = vld [vmem:[%s2907_s6 + $0xa8] sm:$0xff] }
  0x26   : > { %2479 = vmatmul.mubr.msk.bf16.vlgmr.msra.gmra.mrb[0].mxu0 %vm276_vm2, %v1121_v36  ;;  %v1081_v53 = vsel %vm1063_vm3, %v1079_v40, %v1080_v41  ;;  %v1083_v54 = vsel %vm1063_vm3, %v1080_v41, %v1082_v42  ;;  %v271_v55 = vpack.c.bf16 %v2981_v44, %v2978_v43  ;;  %v1276_v62 = vrot.slane %v2918_v9, 5  ;;  %v3051_v36 = vld [vmem:[%s2907_s6 + $0xb0] sm:$0xff] }
  0x27   : > { %2495 = vmatpush3.bf16.msra.mxu0 %v1362_v39  ;;  %2482 = vmatprep.mubr.msk.bf16.mxu0 %vm276_vm2, %v1122_v51  ;;  %v1273_v56 = vsel %vm1270_vm4, %v1271_v46, %v1272_v47  ;;  %v1275_v57 = vsel %vm1270_vm4, %v1272_v47, %v1274_v52  ;;  %v1123_v58 = vpack.c.bf16 %v1083_v54, %v1081_v53  ;;  %v1277_v63 = vrot.slane %v2926_v12, 5  ;;  %v3061_v47 = vld [vmem:[%s2873_s4 + $0xe] sm:$0x3] }
  0x28   : > { %2719 = vmatprep.subr.msk.bf16.mxu0 %vm301_vm1, %v2291_v48  ;;  %v1327_v61 = vpack.c.bf16 %v1275_v57, %v1273_v56  ;;  %v1279_v0 = vrot.slane %v2934_v16, 5  ;;  %v1281_v5 = vrot.slane %v2943_v22, 5  ;;  %v1282_v6 = vrot.slane %v2946_v23, 5  ;;  %v3071_v54 = vld [vmem:[%s2907_s6 + $0x88] sm:$0xff] }
  0x29   : > { %v1284_v10 = vrot.slane %v2959_v28, 5  ;;  %v272_v11 = vpack.c.bf16 %v3011_v60, %v3007_v59  ;;  %v273_v14 = vpack.c.bf16 %v3020_v3, %v3017_v1  ;;  %v1278_v15 = vsel %vm1270_vm4, %v1276_v62, %v1277_v63 }
  0x2a   : > { %2411 = vmatmul.mubr.msk.bf16.gmra.mrb[4].mxu1 %vm276_vm2, %v270_v50  ;;  %v1280_v17 = vsel %vm1270_vm4, %v1277_v63, %v1279_v0  ;;  %v443_v18 = vrot.slane %v2912_v7, 1  ;;  %v444_v19 = vrot.slane %v2915_v8, 1  ;;  %v1283_v20 = vsel %vm1270_vm4, %v1281_v5, %v1282_v6  ;;  %v3082_v0 = vld [vmem:[%s2907_s6 + $0xa0] sm:$0xff] }
  0x2b   : > { %2414 = vmatprep.mubr.msk.bf16.mxu1 %vm276_vm2, %v271_v55  ;;  %v1285_v21 = vsel %vm1270_vm4, %v1282_v6, %v1284_v10  ;;  %v446_v25 = vrot.slane %v2929_v13, 1  ;;  %v1328_v29 = vpack.c.bf16 %v1280_v17, %v1278_v15  ;;  %v1286_v30 = vrot.slane %v2949_v24, 5 }
  0x2c   : > { %v1287_v32 = vrot.slane %v2956_v27, 5  ;;  %v1289_v33 = vrot.slane %v2964_v31, 5  ;;  %v1568_v34 = vsel %vm301_vm1, %v2291_v48, 0  ;;  %v1329_v37 = vpack.c.bf16 %v1285_v21, %v1283_v20 }
  0x2d   : > { %v445_v38 = vsel %vm442_vm5, %v443_v18, %v444_v19  ;;  %v447_v39 = vsel %vm442_vm5, %v444_v19, %v446_v25  ;;  %v1291_v40 = vrot.slane %v2978_v43, 5  ;;  %v1292_v41 = vrot.slane %v2981_v44, 5 }
  0x2e   : > { %2483 = vmatmul.mubr.msk.bf16.gmra.mrb[4].mxu0 %vm276_vm2, %v1123_v58  ;;  %v1294_v42 = vrot.slane %v3039_v26, 5  ;;  %v448_v45 = vrot.slane %v2918_v9, 1  ;;  %v449_v46 = vrot.slane %v2926_v12, 1  ;;  %v274_v48 = vpack.c.bf16 %v3051_v36, %v3048_v35 }
  0x2f   : > { %2496 = vmatprep.mubr.msk.bf16.mxu0 %vm276_vm2, %v1327_v61  ;;  %v1288_v50 = vsel %vm1270_vm4, %v1286_v30, %v1287_v32  ;;  %v1290_v51 = vsel %vm1270_vm4, %v1287_v32, %v1289_v33  ;;  %v451_v52 = vrot.slane %v2934_v16, 1  ;;  %v499_v53 = vpack.c.bf16 %v447_v39, %v445_v38  ;;  %v3106_v39 = vld [vmem:[%s2907_s6 + $0xb8] sm:$0xff] }
  0x30   : > { %v453_v55 = vrot.slane %v2943_v22, 1  ;;  %v1293_v56 = vsel %vm1270_vm4, %v1291_v40, %v1292_v41  ;;  %v1295_v57 = vsel %vm1270_vm4, %v1292_v41, %v1294_v42  ;;  %v454_v58 = vrot.slane %v2946_v23, 1 }
  0x31   : > { %v456_v61 = vrot.slane %v2959_v28, 1  ;;  %v1330_v62 = vpack.c.bf16 %v1290_v51, %v1288_v50  ;;  %v450_v63 = vsel %vm442_vm5, %v448_v45, %v449_v46  ;;  %v452_v5 = vsel %vm442_vm5, %v449_v46, %v451_v52 }
  0x32   : > { %2415 = vmatmul.mubr.msk.bf16.gmra.mrb[8].mxu1 %vm276_vm2, %v272_v11  ;;  %v1296_v6 = vrot.slane %v3007_v59, 5  ;;  %v1297_v10 = vrot.slane %v3011_v60, 5  ;;  %v1299_v11 = vrot.slane %v3071_v54, 5  ;;  %v1301_v15 = vrot.slane %v3017_v1, 5 }
  0x33   : > { %2418 = vmatprep.mubr.msk.bf16.mxu1 %vm276_vm2, %v273_v14  ;;  %v1331_v14 = vpack.c.bf16 %v1295_v57, %v1293_v56  ;;  %v1302_v17 = vrot.slane %v3020_v3, 5  ;;  %v455_v18 = vsel %vm442_vm5, %v453_v55, %v454_v58  ;;  %v457_v19 = vsel %vm442_vm5, %v454_v58, %v456_v61 }
  0x34   : > { %v1304_v20 = vrot.slane %v3082_v0, 5  ;;  %v500_v21 = vpack.c.bf16 %v452_v5, %v450_v63  ;;  %v1298_v25 = vsel %vm1270_vm4, %v1296_v6, %v1297_v10  ;;  %v458_v30 = vrot.slane %v2949_v24, 1 }
  0x35   : > { %v459_v32 = vrot.slane %v2956_v27, 1  ;;  %v741_v33 = vsel %vm301_vm1, %v2989_v49, 0  ;;  %v1303_v38 = vsel %vm1270_vm4, %v1301_v15, %v1302_v17  ;;  %v463_v41 = vrot.slane %v2978_v43, 1 }
  0x36   : > { %2497 = vmatmul.mubr.msk.bf16.vlgmr.msra.gmra.mrb[0].mxu0 %vm276_vm2, %v1328_v29  ;;  %v1300_v29 = vsel %vm1270_vm4, %v1297_v10, %v1299_v11  ;;  %v1305_v40 = vsel %vm1270_vm4, %v1302_v17, %v1304_v20  ;;  %v464_v42 = vrot.slane %v2981_v44, 1  ;;  %v466_v45 = vrot.slane %v3039_v26, 1 }
  0x37   : > { %2513 = vmatpush3.bf16.msra.mxu0 %v1568_v34  ;;  %2500 = vmatprep.mubr.msk.bf16.mxu0 %vm276_vm2, %v1329_v37  ;;  %v501_v34 = vpack.c.bf16 %v457_v19, %v455_v18  ;;  %v461_v37 = vrot.slane %v2964_v31, 1  ;;  %v1332_v46 = vpack.c.bf16 %v1300_v29, %v1298_v25  ;;  %v460_v49 = vsel %vm442_vm5, %v458_v30, %v459_v32 }
  0x38   : > { %2720 = vmatprep.subr.msk.bf16.mxu0 %vm301_vm1, %v3061_v47  ;;  %v1306_v50 = vrot.slane %v3048_v35, 5  ;;  %v1307_v51 = vrot.slane %v3051_v36, 5  ;;  %v1309_v52 = vrot.slane %v3106_v39, 5  ;;  %v1333_v55 = vpack.c.bf16 %v1305_v40, %v1303_v38 }
  0x39   : > { %v1477_v56 = vrot.slane %v2912_v7, 6  ;;  %v1478_v57 = vrot.slane %v2915_v8, 6  ;;  %v465_v58 = vsel %vm442_vm5, %v463_v41, %v464_v42  ;;  %v467_v61 = vsel %vm442_vm5, %v464_v42, %v466_v45 }
  0x3a   : > { %2419 = vmatmul.mubr.msk.bf16.gmra.mrb[12].mxu1 %vm276_vm2, %v274_v48  ;;  %v3113_v48 = vld [vmem:[%s2873_s4 + $0x6] sm:$0x3]  ;;  %v1308_v5 = vsel %vm1270_vm4, %v1306_v50, %v1307_v51  ;;  %v1310_v6 = vsel %vm1270_vm4, %v1307_v51, %v1309_v52  ;;  %v468_v10 = vrot.slane %v3007_v59, 1  ;;  %v503_v11 = vpack.c.bf16 %v467_v61, %v465_v58 }
  0x3b   : > { %2424 = vmatprep.mubr.msk.bf16.mxu1 %vm276_vm2, %v499_v53  ;;  %v462_v53 = vsel %vm442_vm5, %v459_v32, %v461_v37  ;;  %v471_v15 = vrot.slane %v3071_v54, 1  ;;  %v1479_v17 = vsel %vm301_vm1, %v1477_v56, %v1478_v57  ;;  %v473_v19 = vrot.slane %v3017_v1, 1 }
  0x3c   : > { %v502_v63 = vpack.c.bf16 %v462_v53, %v460_v49  ;;  %v474_v20 = vrot.slane %v3020_v3, 1  ;;  %v1334_v25 = vpack.c.bf16 %v1310_v6, %v1308_v5  ;;  %v1482_v29 = vrot.slane %v2918_v9, 6 }
  0x3d   : > { %v1483_v30 = vrot.slane %v2926_v12, 6  ;;  %v1485_v32 = vrot.slane %v2934_v16, 6  ;;  %v1487_v38 = vrot.slane %v2943_v22, 6  ;;  %v1488_v42 = vrot.slane %v2946_v23, 6 }
  0x3e   : > { %2501 = vmatmul.mubr.msk.bf16.gmra.mrb[4].mxu0 %vm276_vm2, %v1330_v62  ;;  %v1480_v62 = vrot.slane %v2929_v13, 6  ;;  %v475_v40 = vsel %vm442_vm5, %v473_v19, %v474_v20  ;;  %v1490_v45 = vrot.slane %v2959_v28, 6  ;;  %v479_v49 = vrot.slane %v3051_v36, 1 }
  0x3f   : > { %2504 = vmatprep.mubr.msk.bf16.mxu0 %vm276_vm2, %v1331_v14  ;;  %v469_v14 = vrot.slane %v3011_v60, 1  ;;  %v1484_v51 = vsel %vm301_vm1, %v1482_v29, %v1483_v30  ;;  %v1486_v52 = vsel %vm301_vm1, %v1483_v30, %v1485_v32  ;;  %v481_v53 = vrot.slane %v3106_v39, 1  ;;  %v3180_v30 = vld [vmem:[%s2873_s4 + $0x10] sm:$0x3] }
  0x40   : > { %v1481_v18 = vsel %vm301_vm1, %v1478_v57, %v1480_v62  ;;  %v650_v56 = vrot.slane %v2912_v7, 2  ;;  %v651_v57 = vrot.slane %v2915_v8, 2  ;;  %v1489_v58 = vsel %vm301_vm1, %v1487_v38, %v1488_v42 }
  0x41   : > { %v1533_v37 = vpack.c.bf16 %v1481_v18, %v1479_v17  ;;  %v1491_v61 = vsel %vm301_vm1, %v1488_v42, %v1490_v45  ;;  %v653_v62 = vrot.slane %v2929_v13, 2  ;;  %v482_v6 = vsel %vm442_vm5, %v479_v49, %v481_v53 }
  0x42   : > { %2425 = vmatmul.mubr.msk.bf16.vlgmr.msra.gmra.mrb[0].mxu1 %vm276_vm2, %v500_v21  ;;  %v476_v21 = vrot.slane %v3082_v0, 1  ;;  %v1535_v17 = vpack.c.bf16 %v1491_v61, %v1489_v58  ;;  %v652_v18 = vsel %vm649_vm6, %v650_v56, %v651_v57  ;;  %v658_v38 = vrot.slane %v2934_v16, 2 }
  0x43   : > { %2441 = vmatpush3.bf16.msra.mxu1 %v741_v33  ;;  %2428 = vmatprep.mubr.msk.bf16.mxu1 %vm276_vm2, %v501_v34  ;;  %v470_v33 = vsel %vm442_vm5, %v468_v10, %v469_v14  ;;  %v472_v34 = vsel %vm442_vm5, %v469_v14, %v471_v15  ;;  %v1492_v10 = vrot.slane %v2949_v24, 6  ;;  %v1495_v14 = vrot.slane %v2964_v31, 6 }
  0x44   : > { %2715 = vmatprep.subr.msk.bf16.mxu1 %vm301_vm1, %v3113_v48  ;;  %v477_v41 = vsel %vm442_vm5, %v474_v20, %v476_v21  ;;  %v504_v50 = vpack.c.bf16 %v472_v34, %v470_v33  ;;  %v1775_v15 = vsel %vm301_vm1, %v3061_v47, 0  ;;  %v654_v19 = vsel %vm649_vm6, %v651_v57, %v653_v62 }
  0x45   : > { %v1497_v20 = vrot.slane %v2978_v43, 6  ;;  %v1498_v21 = vrot.slane %v2981_v44, 6  ;;  %v655_v33 = vrot.slane %v2918_v9, 2  ;;  %v656_v34 = vrot.slane %v2926_v12, 2 }
  0x46   : > { %2505 = vmatmul.mubr.msk.bf16.gmra.mrb[8].mxu0 %vm276_vm2, %v1332_v46  ;;  %v478_v46 = vrot.slane %v3048_v35, 1  ;;  %v661_v45 = vrot.slane %v2946_v23, 2  ;;  %v1505_v53 = vrot.slane %v3071_v54, 6  ;;  %v1507_v57 = vrot.slane %v3017_v1, 6 }
  0x47   : > { %2508 = vmatprep.mubr.msk.bf16.mxu0 %vm276_vm2, %v1333_v55  ;;  %v505_v55 = vpack.c.bf16 %v477_v41, %v475_v40  ;;  %v660_v40 = vrot.slane %v2943_v22, 2  ;;  %v1499_v41 = vsel %vm301_vm1, %v1497_v20, %v1498_v21  ;;  %v1508_v58 = vrot.slane %v3020_v3, 6 }
  0x48   : > { %v480_v5 = vsel %vm442_vm5, %v478_v46, %v479_v49  ;;  %v663_v46 = vrot.slane %v2959_v28, 2  ;;  %vm1683_vm7 = vcmask 1040384   ;;  %vm856_vm8 = vcmask 1044480  }
  0x49   : > { %v506_v29 = vpack.c.bf16 %v482_v6, %v480_v5  ;;  %v662_v61 = vsel %vm649_vm6, %v660_v40, %v661_v45  ;;  %v665_v5 = vrot.slane %v2949_v24, 2  ;;  %v666_v6 = vrot.slane %v2956_v27, 2 }
  0x4a   : > { %2429 = vmatmul.mubr.msk.bf16.gmra.mrb[4].mxu1 %vm276_vm2, %v502_v63  ;;  %v1534_v63 = vpack.c.bf16 %v1486_v52, %v1484_v51  ;;  %v1502_v51 = vrot.slane %v3007_v59, 6  ;;  %v1503_v52 = vrot.slane %v3011_v60, 6  ;;  %v664_v62 = vsel %vm649_vm6, %v661_v45, %v663_v46 }
  0x4b   : > { %2432 = vmatprep.mubr.msk.bf16.mxu1 %vm276_vm2, %v503_v11  ;;  %v1493_v11 = vrot.slane %v2956_v27, 6  ;;  %v1684_v40 = vrot.slane %v2912_v7, 7  ;;  %v1687_v46 = vrot.slane %v2929_v13, 7  ;;  %vm2040_vm9 = vcmask 261120  }
  0x4d   : > { %v1494_v47 = vsel %vm301_vm1, %v1492_v10, %v1493_v11  ;;  %v1496_v32 = vsel %vm301_vm1, %v1493_v11, %v1495_v14  ;;  %v1504_v11 = vsel %vm301_vm1, %v1502_v51, %v1503_v52  ;;  %v1506_v14 = vsel %vm301_vm1, %v1503_v52, %v1505_v53 }
  0x4e   : > { %2509 = vmatmul.mubr.msk.bf16.gmra.mrb[12].mxu0 %vm276_vm2, %v1334_v25  ;;  %v1500_v25 = vrot.slane %v3039_v26, 6  ;;  %v1536_v49 = vpack.c.bf16 %v1496_v32, %v1494_v47  ;;  %v1538_v47 = vpack.c.bf16 %v1506_v14, %v1504_v11  ;;  %v667_v32 = vsel %vm649_vm6, %v665_v5, %v666_v6 }
  0x4f   : > { %2514 = vmatprep.mubr.msk.bf16.mxu0 %vm276_vm2, %v1533_v37  ;;  %v706_v37 = vpack.c.bf16 %v654_v19, %v652_v18  ;;  %v708_v18 = vpack.c.bf16 %v664_v62, %v662_v61  ;;  %v1509_v19 = vsel %vm301_vm1, %v1507_v57, %v1508_v58  ;;  %v675_v52 = vrot.slane %v3007_v59, 2 }
  0x50   : > { %v1501_v42 = vsel %vm301_vm1, %v1498_v21, %v1500_v25  ;;  %v670_v21 = vrot.slane %v2978_v43, 2  ;;  %v671_v25 = vrot.slane %v2981_v44, 2  ;;  %v676_v53 = vrot.slane %v3011_v60, 2 }
  0x51   : > { %v1537_v56 = vpack.c.bf16 %v1501_v42, %v1499_v41  ;;  %v1685_v41 = vrot.slane %v2915_v8, 7  ;;  %v681_v61 = vrot.slane %v3020_v3, 2  ;;  %v683_v62 = vrot.slane %v3082_v0, 2 }
  0x52   : > { %2433 = vmatmul.mubr.msk.bf16.gmra.mrb[8].mxu1 %vm276_vm2, %v504_v50  ;;  %v657_v50 = vsel %vm649_vm6, %v655_v33, %v656_v34  ;;  %v1512_v33 = vrot.slane %v3048_v35, 6  ;;  %v672_v42 = vsel %vm649_vm6, %v670_v21, %v671_v25  ;;  %v677_v5 = vsel %vm649_vm6, %v675_v52, %v676_v53 }
  0x53   : > { %2436 = vmatprep.mubr.msk.bf16.mxu1 %vm276_vm2, %v505_v55  ;;  %v659_v55 = vsel %vm649_vm6, %v656_v34, %v658_v38  ;;  %v1513_v34 = vrot.slane %v3051_v36, 6  ;;  %v1686_v57 = vsel %vm1683_vm7, %v1684_v40, %v1685_v41  ;;  %v1692_v11 = vrot.slane %v2934_v16, 7 }
  0x54   : > { %v707_v10 = vpack.c.bf16 %v659_v55, %v657_v50  ;;  %v1697_v21 = vrot.slane %v2959_v28, 7  ;;  %v857_v40 = vrot.slane %v2912_v7, 3  ;;  %v1702_v52 = vrot.slane %v2964_v31, 7 }
  0x55   : > { %v1514_v50 = vsel %vm301_vm1, %v1512_v33, %v1513_v34  ;;  %v688_v33 = vrot.slane %v3106_v39, 2 }
  0x56   : > { %2515 = vmatmul.mubr.msk.bf16.vlgmr.msra.gmra.mrb[0].mxu0 %vm276_vm2, %v1534_v63  ;;  %v1510_v63 = vrot.slane %v3082_v0, 6 }
  0x57   : > { %2531 = vmatpush3.bf16.msra.mxu0 %v1775_v15  ;;  %2518 = vmatprep.mubr.msk.bf16.mxu0 %vm276_vm2, %v1535_v17  ;;  %v668_v15 = vrot.slane %v2964_v31, 2  ;;  %v948_v17 = vsel %vm301_vm1, %v3113_v48, 0 }
  0x58   : > { %2721 = vmatprep.subr.msk.bf16.mxu0 %vm301_vm1, %v3180_v30  ;;  %v1511_v20 = vsel %vm301_vm1, %v1508_v58, %v1510_v63  ;;  %v680_v58 = vrot.slane %v3017_v1, 2 }
  0x59   : > { %v669_v48 = vsel %vm649_vm6, %v666_v6, %v668_v15  ;;  %v1539_v38 = vpack.c.bf16 %v1511_v20, %v1509_v19  ;;  %v1689_v6 = vrot.slane %v2918_v9, 7  ;;  %v684_v20 = vsel %vm649_vm6, %v681_v61, %v683_v62 }
  0x5a   : > { %2437 = vmatmul.mubr.msk.bf16.gmra.mrb[12].mxu1 %vm276_vm2, %v506_v29  ;;  %v673_v29 = vrot.slane %v3039_v26, 2  ;;  %v682_v19 = vsel %vm649_vm6, %v680_v58, %v681_v61  ;;  %v1707_v58 = vrot.slane %v3039_v26, 7 }
  0x5b   : > { %2442 = vmatprep.mubr.msk.bf16.mxu1 %vm276_vm2, %v706_v37  ;;  %v1515_v37 = vrot.slane %v3106_v39, 6 }
  0x5c   : > { %v674_v45 = vsel %vm649_vm6, %v671_v25, %v673_v29  ;;  %v685_v25 = vrot.slane %v3048_v35, 2  ;;  %v686_v29 = vrot.slane %v3051_v36, 2 }
  0x5d   : > { %v1516_v51 = vsel %vm301_vm1, %v1513_v34, %v1515_v37  ;;  %v710_v55 = vpack.c.bf16 %v674_v45, %v672_v42  ;;  %v712_v34 = vpack.c.bf16 %v684_v20, %v682_v19  ;;  %v860_v42 = vrot.slane %v2929_v13, 3 }
  0x5e   : > { %2519 = vmatmul.mubr.msk.bf16.gmra.mrb[4].mxu0 %vm276_vm2, %v1536_v49  ;;  %v709_v49 = vpack.c.bf16 %v669_v48, %v667_v32  ;;  %v1540_v63 = vpack.c.bf16 %v1516_v51, %v1514_v50  ;;  %v1699_v50 = vrot.slane %v2949_v24, 7  ;;  %v1700_v51 = vrot.slane %v2956_v27, 7 }
  0x5f   : > { %2522 = vmatprep.mubr.msk.bf16.mxu0 %vm276_vm2, %v1537_v56  ;;  %v678_v56 = vrot.slane %v3071_v54, 2  ;;  %v1709_v20 = vrot.slane %v3007_v59, 7 }
  0x60   : > { %v1701_v62 = vsel %vm1683_vm7, %v1699_v50, %v1700_v51 }
  0x61   : > { %v679_v14 = vsel %vm649_vm6, %v676_v53, %v678_v56  ;;  %v1704_v53 = vrot.slane %v2978_v43, 7  ;;  %v1925_v56 = vsel %vm301_vm1, %v3180_v30, 0 }
  0x62   : > { %2443 = vmatmul.mubr.msk.bf16.vlgmr.msra.gmra.mrb[0].mxu1 %vm276_vm2, %v707_v10  ;;  %v1690_v10 = vrot.slane %v2926_v12, 7 }
  0x63   : > { %2459 = vmatpush3.bf16.msra.mxu1 %v948_v17  ;;  %2446 = vmatprep.mubr.msk.bf16.mxu1 %vm276_vm2, %v708_v18  ;;  %v1694_v17 = vrot.slane %v2943_v22, 7  ;;  %v1695_v18 = vrot.slane %v2946_v23, 7 }
  0x64   : > { %2717 = vmatprep.subr.msk.bf16.mxu1 %vm301_vm1, %v2894_v2  ;;  %v1688_v2 = vsel %vm1683_vm7, %v1685_v41, %v1687_v46  ;;  %v1691_v32 = vsel %vm1683_vm7, %v1689_v6, %v1690_v10  ;;  %v1693_v48 = vsel %vm1683_vm7, %v1690_v10, %v1692_v11  ;;  %v858_v41 = vrot.slane %v2915_v8, 3 }
  0x65   : > { %v1740_v15 = vpack.c.bf16 %v1688_v2, %v1686_v57  ;;  %v1696_v37 = vsel %vm1683_vm7, %v1694_v17, %v1695_v18  ;;  %v1741_v45 = vpack.c.bf16 %v1693_v48, %v1691_v32  ;;  %v687_v46 = vsel %vm649_vm6, %v685_v25, %v686_v29 }
  0x66   : > { %2523 = vmatmul.mubr.msk.bf16.gmra.mrb[8].mxu0 %vm276_vm2, %v1538_v47  ;;  %v711_v47 = vpack.c.bf16 %v679_v14, %v677_v5  ;;  %v859_v57 = vsel %vm856_vm8, %v857_v40, %v858_v41  ;;  %v861_v2 = vsel %vm856_vm8, %v858_v41, %v860_v42  ;;  %v862_v5 = vrot.slane %v2918_v9, 3 }
  0x67   : > { %2526 = vmatprep.mubr.msk.bf16.mxu0 %vm276_vm2, %v1539_v38  ;;  %v1698_v38 = vsel %vm1683_vm7, %v1695_v18, %v1697_v21  ;;  %v863_v6 = vrot.slane %v2926_v12, 3  ;;  %v913_v30 = vpack.c.bf16 %v861_v2, %v859_v57  ;;  %v865_v10 = vrot.slane %v2934_v16, 3 }
  0x68   : > { %v1742_v7 = vpack.c.bf16 %v1698_v38, %v1696_v37  ;;  %v868_v17 = vrot.slane %v2946_v23, 3  ;;  %v870_v18 = vrot.slane %v2959_v28, 3  ;;  %v1710_v21 = vrot.slane %v3011_v60, 7 }
  0x69   : > { %v864_v9 = vsel %vm856_vm8, %v862_v5, %v863_v6  ;;  %v1712_v25 = vrot.slane %v3071_v54, 7  ;;  %v1715_v32 = vrot.slane %v3020_v3, 7  ;;  %v872_v41 = vrot.slane %v2949_v24, 3 }
  0x6a   : > { %2447 = vmatmul.mubr.msk.bf16.gmra.mrb[4].mxu1 %vm276_vm2, %v709_v49  ;;  %v689_v49 = vsel %vm649_vm6, %v686_v29, %v688_v33  ;;  %v866_v29 = vsel %vm856_vm8, %v863_v6, %v865_v10  ;;  %v871_v33 = vsel %vm856_vm8, %v868_v17, %v870_v18  ;;  %v1711_v38 = vsel %vm1683_vm7, %v1709_v20, %v1710_v21 }
  0x6b   : > { %2450 = vmatprep.mubr.msk.bf16.mxu1 %vm276_vm2, %v710_v55  ;;  %v1705_v55 = vrot.slane %v2981_v44, 7  ;;  %v713_v61 = vpack.c.bf16 %v689_v49, %v687_v46  ;;  %v914_v37 = vpack.c.bf16 %v866_v29, %v864_v9  ;;  %v1713_v40 = vsel %vm1683_vm7, %v1710_v21, %v1712_v25 }
  0x6c   : > { %v875_v46 = vrot.slane %v2964_v31, 3  ;;  %v1745_v24 = vpack.c.bf16 %v1713_v40, %v1711_v38  ;;  %v883_v10 = vrot.slane %v3011_v60, 3  ;;  %v1890_v20 = vpack.c.bf16 %v2929_v13, %v2915_v8 }
  0x6d   : > { %v1706_v11 = vsel %vm1683_vm7, %v1704_v53, %v1705_v55  ;;  %v1708_v14 = vsel %vm1683_vm7, %v1705_v55, %v1707_v58  ;;  %v1719_v53 = vrot.slane %v3048_v35, 7  ;;  %v1720_v55 = vrot.slane %v3051_v36, 7 }
  0x6e   : > { %2527 = vmatmul.mubr.msk.bf16.gmra.mrb[12].mxu0 %vm276_vm2, %v1540_v63  ;;  %v1703_v63 = vsel %vm1683_vm7, %v1700_v51, %v1702_v52  ;;  %v877_v51 = vrot.slane %v2978_v43, 3  ;;  %v878_v52 = vrot.slane %v2981_v44, 3  ;;  %v1722_v58 = vrot.slane %v3106_v39, 7 }
  0x6f   : > { %2532 = vmatprep.mubr.msk.bf16.mxu0 %vm276_vm2, %v1740_v15  ;;  %v867_v15 = vrot.slane %v2943_v22, 3  ;;  %v1743_v19 = vpack.c.bf16 %v1703_v63, %v1701_v62  ;;  %v1744_v22 = vpack.c.bf16 %v1708_v14, %v1706_v11  ;;  %v1721_v5 = vsel %vm1683_vm7, %v1719_v53, %v1720_v55 }
  0x70   : > { %v1723_v6 = vsel %vm1683_vm7, %v1720_v55, %v1722_v58  ;;  %v885_v11 = vrot.slane %v3071_v54, 3  ;;  %v887_v14 = vrot.slane %v3017_v1, 3  ;;  %v1085_v8 = vrot.slane %v2981_v44, 4 }
  0x71   : > { %v869_v48 = vsel %vm856_vm8, %v867_v15, %v868_v17  ;;  %v888_v15 = vrot.slane %v3020_v3, 3  ;;  %v890_v17 = vrot.slane %v3082_v0, 3  ;;  %v1747_v18 = vpack.c.bf16 %v1723_v6, %v1721_v5  ;;  %v254_v6 = vld [vmem:[#allocation2 + $0x18] sm:$0xff] }
  0x72   : > { %2451 = vmatmul.mubr.msk.bf16.gmra.mrb[8].mxu1 %vm276_vm2, %v711_v47  ;;  %v1714_v47 = vrot.slane %v3017_v1, 7  ;;  %v915_v42 = vpack.c.bf16 %v871_v33, %v869_v48  ;;  %v886_v9 = vsel %vm856_vm8, %v883_v10, %v885_v11  ;;  %v895_v48 = vrot.slane %v3106_v39, 3 }
  0x73   : > { %2454 = vmatprep.mubr.msk.bf16.mxu1 %vm276_vm2, %v712_v34  ;;  %v1717_v34 = vrot.slane %v3082_v0, 7  ;;  %v889_v21 = vsel %vm856_vm8, %v887_v14, %v888_v15  ;;  %v891_v25 = vsel %vm856_vm8, %v888_v15, %v890_v17  ;;  %v1084_v33 = vrot.slane %v2978_v43, 4 }
  0x74   : > { %v1716_v49 = vsel %vm1683_vm7, %v1714_v47, %v1715_v32  ;;  %v892_v47 = vrot.slane %v3048_v35, 3  ;;  %v1087_v13 = vrot.slane %v3039_v26, 4  ;;  %v1892_v40 = vpack.c.bf16 %v2959_v28, %v2946_v23 }
  0x75   : > { %v1718_v50 = vsel %vm1683_vm7, %v1715_v32, %v1717_v34  ;;  %v893_v32 = vrot.slane %v3051_v36, 3  ;;  %v1891_v34 = vpack.c.bf16 %v2934_v16, %v2926_v12  ;;  %v1086_v43 = vsel %vm1063_vm3, %v1084_v33, %v1085_v8 }
  0x76   : > { %2533 = vmatmul.mubr.msk.bf16.vlgmr.msra.gmra.mrb[0].mxu0 %vm276_vm2, %v1741_v45  ;;  %v873_v45 = vrot.slane %v2956_v27, 3  ;;  %v1746_v2 = vpack.c.bf16 %v1718_v50, %v1716_v49  ;;  %v1089_v12 = vrot.slane %v3007_v59, 4  ;;  %v1090_v16 = vrot.slane %v3011_v60, 4 }
  0x77   : > { %2549 = vmatpush3.bf16.msra.mxu0 %v1925_v56  ;;  %2536 = vmatprep.mubr.msk.bf16.mxu0 %vm276_vm2, %v1742_v7  ;;  %v880_v7 = vrot.slane %v3039_v26, 3  ;;  %v896_v38 = vsel %vm856_vm8, %v893_v32, %v895_v48  ;;  %v1094_v49 = vrot.slane %v3017_v1, 4  ;;  %v1095_v23 = vrot.slane %v3020_v3, 4 }
  0x78   : > { %v874_v56 = vsel %vm856_vm8, %v872_v41, %v873_v45  ;;  %v876_v57 = vsel %vm856_vm8, %v873_v45, %v875_v46  ;;  %v1088_v41 = vsel %vm1063_vm3, %v1085_v8, %v1087_v13  ;;  %v1092_v46 = vrot.slane %v3071_v54, 4 }
  0x79   : > { %v881_v62 = vsel %vm856_vm8, %v878_v52, %v880_v7  ;;  %v916_v63 = vpack.c.bf16 %v876_v57, %v874_v56  ;;  %v1124_v45 = vpack.c.bf16 %v1088_v41, %v1086_v43  ;;  %v1097_v28 = vrot.slane %v3082_v0, 4  ;;  %v261_v43 = vld [vmem:[#allocation2 + $0x50] sm:$0xff] }
  0x7a   : > { %2455 = vmatmul.mubr.msk.bf16.gmra.mrb[12].mxu1 %vm276_vm2, %v713_v61  ;;  %v879_v61 = vsel %vm856_vm8, %v877_v51, %v878_v52  ;;  %v1893_v50 = vpack.c.bf16 %v2964_v31, %v2956_v27  ;;  %v1091_v51 = vsel %vm1063_vm3, %v1089_v12, %v1090_v16  ;;  %v1894_v52 = vpack.c.bf16 %v3039_v26, %v2981_v44 }
  0x7b   : > { %2460 = vmatprep.mubr.msk.bf16.mxu1 %vm276_vm2, %v913_v30  ;;  %v917_v30 = vpack.c.bf16 %v881_v62, %v879_v61  ;;  %v1096_v1 = vsel %vm1063_vm3, %v1094_v49, %v1095_v23  ;;  %v1098_v7 = vsel %vm1063_vm3, %v1095_v23, %v1097_v28  ;;  %v1099_v27 = vrot.slane %v3048_v35, 4  ;;  %v260_v28 = vld [vmem:[#allocation2 + $0x48] sm:$0xff] }
  0x7c   : > { %v1126_v53 = vpack.c.bf16 %v1098_v7, %v1096_v1  ;;  %v1100_v31 = vrot.slane %v3051_v36, 4  ;;  %v1102_v55 = vrot.slane %v3106_v39, 4  ;;  %v1895_v44 = vpack.c.bf16 %v3071_v54, %v3011_v60 }
  0x7d   : > { %v1896_v57 = vpack.c.bf16 %v3082_v0, %v3020_v3  ;;  %v253_v0 = vld [vmem:[#allocation2 + $0x10] sm:$0xff] }
  0x7e   : > { %2537 = vmatmul.mubr.msk.bf16.gmra.mrb[4].mxu0 %vm276_vm2, %v1743_v19  ;;  %v1101_v26 = vsel %vm1063_vm3, %v1099_v27, %v1100_v31  ;;  %v1103_v56 = vsel %vm1063_vm3, %v1100_v31, %v1102_v55  ;;  %v265_v55 = vld [vmem:[#allocation2 + $0x70] sm:$0xff] }
  0x7f   : > { %2540 = vmatprep.mubr.msk.bf16.mxu0 %vm276_vm2, %v1744_v22  ;;  %v919_v22 = vpack.c.bf16 %v891_v25, %v889_v21  ;;  %v1127_v35 = vpack.c.bf16 %v1103_v56, %v1101_v26  ;;  %v257_v21 = vld [vmem:[#allocation2 + $0x30] sm:$0xff]  ;;  %v263_v56 = vld [vmem:[#allocation2 + $0x60] sm:$0xff] }
  0x82   : > { %2461 = vmatmul.mubr.msk.bf16.vlgmr.msra.gmra.mrb[0].mxu1 %vm276_vm2, %v914_v37  ;;  %v894_v37 = vsel %vm856_vm8, %v892_v47, %v893_v32  ;;  %v256_v32 = vld [vmem:[#allocation2 + $0x28] sm:$0xff] }
  0x83   : > { %2567 = vmatpush3.bf16.msra.mxu1 %v2903_v4  ;;  %2464 = vmatprep.mubr.msk.bf16.mxu1 %vm276_vm2, %v915_v42  ;;  %v882_v4 = vrot.slane %v3007_v59, 3  ;;  %v920_v42 = vpack.c.bf16 %v896_v38, %v894_v37  ;;  %v1093_v59 = vsel %vm1063_vm3, %v1090_v16, %v1092_v46  ;;  %v262_v46 = vld [vmem:[#allocation2 + $0x58] sm:$0xff] }
  0x85   : > { %v884_v19 = vsel %vm856_vm8, %v882_v4, %v883_v10  ;;  %v251_v4 = vld [vmem:[#allocation2] sm:$0xff]  ;;  %v252_v10 = vld [vmem:[#allocation2 + $0x8] sm:$0xff] }
  0x86   : > { %2541 = vmatmul.mubr.msk.bf16.gmra.mrb[8].mxu0 %vm276_vm2, %v1745_v24  ;;  %v918_v29 = vpack.c.bf16 %v886_v9, %v884_v19  ;;  %v1125_v24 = vpack.c.bf16 %v1093_v59, %v1091_v51 }
  0x87   : > { %2544 = vmatprep.mubr.msk.bf16.mxu0 %vm276_vm2, %v1746_v2  ;;  %v1897_v2 = vpack.c.bf16 %v3106_v39, %v3051_v36 }
  0x8a   : > { %2465 = vmatmul.mubr.msk.bf16.gmra.mrb[4].mxu1 %vm276_vm2, %v916_v63 }
  0x8b   : > { %2468 = vmatprep.mubr.msk.bf16.mxu1 %vm276_vm2, %v917_v30 }
  0x8e   : > { %2545 = vmatmul.mubr.msk.bf16.gmra.mrb[12].mxu0 %vm276_vm2, %v1747_v18 }
  0x8f   : > { %2550 = vmatprep.mubr.msk.bf16.mxu0 %vm276_vm2, %v1890_v20 }
  0x92   : > { %2469 = vmatmul.mubr.msk.bf16.gmra.mrb[8].mxu1 %vm276_vm2, %v918_v29  ;;  %v255_v29 = vld [vmem:[#allocation2 + $0x20] sm:$0xff] }
  0x93   : > { %2472 = vmatprep.mubr.msk.bf16.mxu1 %vm276_vm2, %v919_v22  ;;  %v258_v22 = vld [vmem:[#allocation2 + $0x38] sm:$0xff] }
  0x96   : > { %2551 = vmatmul.mubr.msk.bf16.vlgmr.msra.gmra.mrb[0].mxu0 %vm276_vm2, %v1891_v34 }
  0x97   : > { %2554 = vmatprep.mubr.msk.bf16.mxu0 %vm276_vm2, %v1892_v40 }
  0x9a   : > { %2473 = vmatmul.mubr.msk.bf16.gmra.mrb[12].mxu1 %vm276_vm2, %v920_v42 }
  0x9b   : > { %2486 = vmatprep.mubr.msk.bf16.mxu1 %vm276_vm2, %v1124_v45  ;;  %v259_v45 = vld [vmem:[#allocation2 + $0x40] sm:$0xff] }
  0x9e   : > { %2555 = vmatmul.mubr.msk.bf16.gmra.mrb[4].mxu0 %vm276_vm2, %v1893_v50 }
  0x9f   : > { %2558 = vmatprep.mubr.msk.bf16.mxu0 %vm276_vm2, %v1894_v52 }
  0xa2   : > { %2487 = vmatmul.mubr.msk.bf16.vlgmr.msra.gmra.mrb[8].mxu1 %vm276_vm2, %v1125_v24 }
  0xa3   : > { %2490 = vmatprep.mubr.msk.bf16.mxu1 %vm276_vm2, %v1126_v53 }
  0xa6   : > { %2559 = vmatmul.mubr.msk.bf16.gmra.mrb[8].mxu0 %vm276_vm2, %v1895_v44 }
  0xa7   : > { %2562 = vmatprep.mubr.msk.bf16.mxu0 %vm276_vm2, %v1896_v57 }
  0xaa   : > { %2491 = vmatmul.mubr.msk.bf16.gmra.mrb[12].mxu1 %vm276_vm2, %v1127_v35 }
  0xae   : > { %2563 = vmatmul.mubr.msk.bf16.gmra.mrb[12].mxu0 %vm276_vm2, %v1897_v2  ;;  %v266_v2 = vld [vmem:[#allocation2 + $0x78] sm:$0xff] }
 0x155   : > { %v2462_v60 = vpop.f32.mrb[0].mxu1 }
 0x156   : > { %v984_v54 = vpop.f32.mrb[1].mxu1  ;;  %v2568_v30 = vadd.f32 %v2462_v60, %v253_v0 }
 0x157   : > { %v2463_v58 = vpop.f32.mrb[2].mxu1  ;;  %v2570_v11 = vadd.f32 %v984_v54, %v251_v4 }
 0x158   : > { %v987_v61 = vpop.f32.mrb[3].mxu1  ;;  %v2572_v15 = vadd.f32 %v2463_v58, %v254_v6  ;;  %v264_v58 = vld [vmem:[#allocation2 + $0x68] sm:$0xff] }
 0x159   : > { %v2574_v17 = vadd.f32 %v987_v61, %v252_v10 }
 0x15d   : > { %v2466_v62 = vpop.f32.mrb[4].mxu1 }
 0x15e   : > { %v1000_v63 = vpop.f32.mrb[5].mxu1  ;;  %v2576_v47 = vadd.f32 %v2466_v62, %v257_v21 }
 0x15f   : > { %v2467_v5 = vpop.f32.mrb[6].mxu1  ;;  %v2578_v48 = vadd.f32 %v1000_v63, %v255_v29 }
 0x160   : > { %v1003_v3 = vpop.f32.mrb[7].mxu1  ;;  %v2580_v8 = vadd.f32 %v2467_v5, %v258_v22 }
 0x161   : > { %v2582_v37 = vadd.f32 %v1003_v3, %v256_v32 }
 0x169   : > { %v2552_v14 = vpop.f32.mrb[0].mxu0 }
 0x16a   : > { %v3405_v36 = vadd.f32 %v2568_v30, %v2552_v14  ;;  %v1961_v39 = vpop.f32.mrb[1].mxu0 }
 0x16b   : > { %v3407_v18 = vadd.f32 %v2570_v11, %v1961_v39  ;;  %v2553_v19 = vpop.f32.mrb[2].mxu0  ;;  %v3467_v39 = vld [vmem:[%s3548_s2] ss:$0 sm:$0xff] (!%p2318_p8) }
 0x16c   : > { %2043 = vst.msk [vmem:[#allocation2 + $0x10] sm:$0xff] %vm2040_vm9, %v3405_v36  ;;  %v3411_v9 = vadd.f32 %v2572_v15, %v2553_v19  ;;  %v1964_v20 = vpop.f32.mrb[3].mxu0 }
 0x16d   : > { %2041 = vst.msk [vmem:[#allocation2] sm:$0xff] %vm2040_vm9, %v3407_v18  ;;  %v3415_v25 = vadd.f32 %v2574_v17, %v1964_v20  ;;  %v2068_v17 = vadd.f32 (!%p2318_p8), %v3407_v18, %v3467_v39  ;;  %v2070_v20 = vadd.f32 (!%p2318_p8), %v3405_v36, %v3467_v39 }
 0x16e   : > { %2044 = vst.msk [vmem:[#allocation2 + $0x18] sm:$0xff] %vm2040_vm9, %v3411_v9  ;;  %v2071_v21 = vadd.f32 (!%p2318_p8), %v3411_v9, %v3467_v39 }
 0x16f   : > { %2042 = vst.msk [vmem:[#allocation2 + $0x8] sm:$0xff] %vm2040_vm9, %v3415_v25  ;;  %v2069_v19 = vadd.f32 (!%p2318_p8), %v3415_v25, %v3467_v39  ;;  %vm2084_vm10 = vcmp.ge.f32.partialorder (!%p2318_p8), %v2068_v17, 0.0  ;;  %v2100_v25 = vmul.f32 (!%p2318_p8), 0.25, %v2068_v17  ;;  %vm2086_vm12 = vcmp.ge.f32.partialorder (!%p2318_p8), %v2070_v20, 0.0 }
 0x170   : > { %v2102_v9 = vmul.f32 (!%p2318_p8), 0.25, %v2070_v20  ;;  %vm2087_vm13 = vcmp.ge.f32.partialorder (!%p2318_p8), %v2071_v21, 0.0  ;;  %v2103_v32 = vmul.f32 (!%p2318_p8), 0.25, %v2071_v21 }
 0x171   : > { %v2556_v33 = vpop.f32.mrb[4].mxu0  ;;  %vm2085_vm11 = vcmp.ge.f32.partialorder (!%p2318_p8), %v2069_v19, 0.0  ;;  %v2101_v36 = vmul.f32 (!%p2318_p8), 0.25, %v2069_v19 }
 0x172   : > { %v3421_v13 = vadd.f32 %v2576_v47, %v2556_v33  ;;  %v1977_v34 = vpop.f32.mrb[5].mxu0 }
 0x173   : > { %v3423_v38 = vadd.f32 %v2578_v48, %v1977_v34  ;;  %v2557_v40 = vpop.f32.mrb[6].mxu0  ;;  %v2116_v48 = vsel (!%p2318_p8), %vm2084_vm10, %v2068_v17, %v2100_v25  ;;  %v2117_v33 = vsel (!%p2318_p8), %vm2085_vm11, %v2069_v19, %v2101_v36  ;;  %v2119_v34 = vsel (!%p2318_p8), %vm2087_vm13, %v2071_v21, %v2103_v32 }
 0x174   : > { %2047 = vst.msk [vmem:[#allocation2 + $0x30] sm:$0xff] %vm2040_vm9, %v3421_v13  ;;  %v3427_v41 = vadd.f32 %v2580_v8, %v2557_v40  ;;  %v1980_v42 = vpop.f32.mrb[7].mxu0  ;;  %v2074_v47 = vadd.f32 (!%p2318_p8), %v3421_v13, %v3467_v39  ;;  %2132 = vst.msk [vmem:[%s2863_s25] sm:$0xff] (!%p2318_p8), %vm2040_vm9, %v2116_v48  ;;  %v2118_v13 = vsel (!%p2318_p8), %vm2086_vm12, %v2070_v20, %v2102_v9 }
 0x175   : > { %2045 = vst.msk [vmem:[#allocation2 + $0x20] sm:$0xff] %vm2040_vm9, %v3423_v38  ;;  %v2583_v12 = vadd.f32 %v2582_v37, %v1980_v42  ;;  %v2488_v16 = vpop.f32.mrb[8].mxu1  ;;  %v2072_v29 = vadd.f32 (!%p2318_p8), %v3423_v38, %v3467_v39  ;;  %2133 = vst.msk [vmem:[%s2863_s25 + $0x8] sm:$0xff] (!%p2318_p8), %vm2040_vm9, %v2117_v33 }
 0x176   : > { %2048 = vst.msk [vmem:[#allocation2 + $0x38] sm:$0xff] %vm2040_vm9, %v3427_v41  ;;  %v2584_v49 = vadd.f32 %v2488_v16, %v261_v43  ;;  %v1223_v23 = vpop.f32.mrb[9].mxu1  ;;  %v2075_v18 = vadd.f32 (!%p2318_p8), %v3427_v41, %v3467_v39  ;;  %2134 = vst.msk [vmem:[%s2863_s25 + $0x10] sm:$0xff] (!%p2318_p8), %vm2040_vm9, %v2118_v13  ;;  %vm2090_vm0 = vcmp.ge.f32.partialorder (!%p2318_p8), %v2074_v47, 0.0  ;;  %v2106_v40 = vmul.f32 (!%p2318_p8), 0.25, %v2074_v47 }
 0x177   : > { %2046 = vst.msk [vmem:[#allocation2 + $0x28] sm:$0xff] %vm2040_vm9, %v2583_v12  ;;  %v2586_v50 = vadd.f32 %v1223_v23, %v259_v45  ;;  %v2489_v51 = vpop.f32.mrb[10].mxu1  ;;  %v2073_v22 = vadd.f32 (!%p2318_p8), %v2583_v12, %v3467_v39  ;;  %vm2088_vm14 = vcmp.ge.f32.partialorder (!%p2318_p8), %v2072_v29, 0.0  ;;  %v2104_v8 = vmul.f32 (!%p2318_p8), 0.25, %v2072_v29  ;;  %2135 = vst.msk [vmem:[%s2863_s25 + $0x18] sm:$0xff] (!%p2318_p8), %vm2040_vm9, %v2119_v34 }
 0x178   : > { %v2588_v59 = vadd.f32 %v2489_v51, %v262_v46  ;;  %v1226_v52 = vpop.f32.mrb[11].mxu1  ;;  %vm2091_vm1 = vcmp.ge.f32.partialorder (!%p2318_p8), %v2075_v18, 0.0  ;;  %v2107_v41 = vmul.f32 (!%p2318_p8), 0.25, %v2075_v18  ;;  %v2122_v12 = vsel (!%p2318_p8), %vm2090_vm0, %v2074_v47, %v2106_v40 }
 0x179   : > { %v2590_v1 = vadd.f32 %v1226_v52, %v260_v28  ;;  %v2560_v7 = vpop.f32.mrb[8].mxu0  ;;  %vm2089_vm15 = vcmp.ge.f32.partialorder (!%p2318_p8), %v2073_v22, 0.0  ;;  %v2105_v37 = vmul.f32 (!%p2318_p8), 0.25, %v2073_v22  ;;  %v2120_v38 = vsel (!%p2318_p8), %vm2088_vm14, %v2072_v29, %v2104_v8  ;;  %2138 = vst.msk [vmem:[%s2863_s25 + $0x30] sm:$0xff] (!%p2318_p8), %vm2040_vm9, %v2122_v12 }
 0x17a   : > { %v3434_v24 = vadd.f32 %v2584_v49, %v2560_v7  ;;  %v1993_v53 = vpop.f32.mrb[9].mxu0  ;;  %2136 = vst.msk [vmem:[%s2863_s25 + $0x20] sm:$0xff] (!%p2318_p8), %vm2040_vm9, %v2120_v38  ;;  %v2123_v23 = vsel (!%p2318_p8), %vm2091_vm1, %v2075_v18, %v2107_v41 }
 0x17b   : > { %v3436_v27 = vadd.f32 %v2586_v50, %v1993_v53  ;;  %v2561_v31 = vpop.f32.mrb[10].mxu0  ;;  %v2121_v43 = vsel (!%p2318_p8), %vm2089_vm15, %v2073_v22, %v2105_v37  ;;  %2139 = vst.msk [vmem:[%s2863_s25 + $0x38] sm:$0xff] (!%p2318_p8), %vm2040_vm9, %v2123_v23 }
 0x17c   : > { %2051 = vst.msk [vmem:[#allocation2 + $0x50] sm:$0xff] %vm2040_vm9, %v3434_v24  ;;  %v3440_v44 = vadd.f32 %v2588_v59, %v2561_v31  ;;  %v1996_v26 = vpop.f32.mrb[11].mxu0  ;;  %2137 = vst.msk [vmem:[%s2863_s25 + $0x28] sm:$0xff] (!%p2318_p8), %vm2040_vm9, %v2121_v43  ;;  %v2078_v16 = vadd.f32 (!%p2318_p8), %v3434_v24, %v3467_v39 }
 0x17d   : > { %2049 = vst.msk [vmem:[#allocation2 + $0x40] sm:$0xff] %vm2040_vm9, %v3436_v27  ;;  %v3444_v57 = vadd.f32 %v2590_v1, %v1996_v26  ;;  %v2492_v35 = vpop.f32.mrb[12].mxu1  ;;  %v2076_v42 = vadd.f32 (!%p2318_p8), %v3436_v27, %v3467_v39 }
 0x17e   : > { %2052 = vst.msk [vmem:[#allocation2 + $0x58] sm:$0xff] %vm2040_vm9, %v3440_v44  ;;  %v2592_v60 = vadd.f32 %v2492_v35, %v265_v55  ;;  %v1239_v54 = vpop.f32.mrb[13].mxu1  ;;  %v2079_v46 = vadd.f32 (!%p2318_p8), %v3440_v44, %v3467_v39  ;;  %vm2094_vm4 = vcmp.ge.f32.partialorder (!%p2318_p8), %v2078_v16, 0.0  ;;  %v2110_v51 = vmul.f32 (!%p2318_p8), 0.25, %v2078_v16 }
 0x17f   : > { %2050 = vst.msk [vmem:[#allocation2 + $0x48] sm:$0xff] %vm2040_vm9, %v3444_v57  ;;  %v2594_v61 = vadd.f32 %v1239_v54, %v263_v56  ;;  %v2493_v62 = vpop.f32.mrb[14].mxu1  ;;  %v2077_v45 = vadd.f32 (!%p2318_p8), %v3444_v57, %v3467_v39  ;;  %vm2092_vm2 = vcmp.ge.f32.partialorder (!%p2318_p8), %v2076_v42, 0.0  ;;  %v2108_v28 = vmul.f32 (!%p2318_p8), 0.25, %v2076_v42 }
 0x180   : > { %v2596_v63 = vadd.f32 %v2493_v62, %v266_v2  ;;  %v1242_v5 = vpop.f32.mrb[15].mxu1  ;;  %vm2095_vm5 = vcmp.ge.f32.partialorder (!%p2318_p8), %v2079_v46, 0.0  ;;  %v2111_v52 = vmul.f32 (!%p2318_p8), 0.25, %v2079_v46  ;;  %v2126_v24 = vsel (!%p2318_p8), %vm2094_vm4, %v2078_v16, %v2110_v51 }
 0x181   : > { %v2598_v3 = vadd.f32 %v1242_v5, %v264_v58  ;;  %v2564_v0 = vpop.f32.mrb[12].mxu0  ;;  %2060 = sbr.rel (%p2318_p8) target bundleno = 397 (0x18d), region = 40  ;;  %vm2093_vm3 = vcmp.ge.f32.partialorder (!%p2318_p8), %v2077_v45, 0.0  ;;  %v2109_v50 = vmul.f32 (!%p2318_p8), 0.25, %v2077_v45  ;;  %v2124_v59 = vsel (!%p2318_p8), %vm2092_vm2, %v2076_v42, %v2108_v28  ;;  %2142 = vst.msk [vmem:[%s2863_s25 + $0x50] sm:$0xff] (!%p2318_p8), %vm2040_vm9, %v2126_v24 }
 0x182   : > { %v3450_v4 = vadd.f32 %v2592_v60, %v2564_v0  ;;  %v2009_v6 = vpop.f32.mrb[13].mxu0  ;;  %2140 = vst.msk [vmem:[%s2863_s25 + $0x40] sm:$0xff] (!%p2318_p8), %vm2040_vm9, %v2124_v59  ;;  %v2127_v31 = vsel (!%p2318_p8), %vm2095_vm5, %v2079_v46, %v2111_v52 }
 0x183   : > { %v2595_v30 = vadd.f32 %v2594_v61, %v2009_v6  ;;  %v2565_v10 = vpop.f32.mrb[14].mxu0  ;;  %v2125_v7 = vsel (!%p2318_p8), %vm2093_vm3, %v2077_v45, %v2109_v50  ;;  %2143 = vst.msk [vmem:[%s2863_s25 + $0x58] sm:$0xff] (!%p2318_p8), %vm2040_vm9, %v2127_v31 }
 0x184   : > { %2055 = vst.msk [vmem:[#allocation2 + $0x70] sm:$0xff] %vm2040_vm9, %v3450_v4  ;;  %v3454_v11 = vadd.f32 %v2596_v63, %v2565_v10  ;;  %v2012_v14 = vpop.f32.mrb[15].mxu0  ;;  %v2082_v27 = vadd.f32 (!%p2318_p8), %v3450_v4, %v3467_v39  ;;  %2141 = vst.msk [vmem:[%s2863_s25 + $0x48] sm:$0xff] (!%p2318_p8), %vm2040_vm9, %v2125_v7 }
 0x185   : > { %2053 = vst.msk [vmem:[#allocation2 + $0x60] sm:$0xff] %vm2040_vm9, %v2595_v30  ;;  %v3457_v15 = vadd.f32 %v2598_v3, %v2012_v14  ;;  %v2080_v49 = vadd.f32 (!%p2318_p8), %v2595_v30, %v3467_v39 }
 0x186   : > { %2056 = vst.msk [vmem:[#allocation2 + $0x78] sm:$0xff] %vm2040_vm9, %v3454_v11  ;;  %v2083_v44 = vadd.f32 (!%p2318_p8), %v3454_v11, %v3467_v39  ;;  %vm2098_vm8 = vcmp.ge.f32.partialorder (!%p2318_p8), %v2082_v27, 0.0  ;;  %v2114_v56 = vmul.f32 (!%p2318_p8), 0.25, %v2082_v27 }
 0x187   : > { %2054 = vst.msk [vmem:[#allocation2 + $0x68] sm:$0xff] %vm2040_vm9, %v3457_v15  ;;  %vm2096_vm6 = vcmp.ge.f32.partialorder (!%p2318_p8), %v2080_v49, 0.0  ;;  %v2112_v1 = vmul.f32 (!%p2318_p8), 0.25, %v2080_v49  ;;  %v2081_v53 = vadd.f32 (!%p2318_p8), %v3457_v15, %v3467_v39 }
 0x188   : > { %vm2099_vm10 = vcmp.ge.f32.partialorder %v2083_v44, 0.0  ;;  %v2115_v57 = vmul.f32 0.25, %v2083_v44  ;;  %v2130_v2 = vsel %vm2098_vm8, %v2082_v27, %v2114_v56 }
 0x189   : > { %v2128_v55 = vsel %vm2096_vm6, %v2080_v49, %v2112_v1  ;;  %vm2097_vm7 = vcmp.ge.f32.partialorder %v2081_v53, 0.0  ;;  %v2113_v26 = vmul.f32 0.25, %v2081_v53  ;;  %2146 = vst.msk [vmem:[%s2863_s25 + $0x70] sm:$0xff] %vm2040_vm9, %v2130_v2 }
 0x18a   : > { %2144 = vst.msk [vmem:[%s2863_s25 + $0x60] sm:$0xff] %vm2040_vm9, %v2128_v55  ;;  %v2131_v60 = vsel %vm2099_vm10, %v2083_v44, %v2115_v57 }
 0x18b   : > { %v2129_v35 = vsel %vm2097_vm7, %v2081_v53, %v2113_v26  ;;  %2147 = vst.msk [vmem:[%s2863_s25 + $0x78] sm:$0xff] %vm2040_vm9, %v2131_v60 }
 0x18c   : > { %2145 = vst.msk [vmem:[%s2863_s25 + $0x68] sm:$0xff] %vm2040_vm9, %v2129_v35 }
 0x18d PF: > { %s13_s16 = sadd.s32 1, %s2803_s16   ;;  %s3550_s12 = smov %s2795_s14 }
 0x18e   : > { %p10_p9 = scmp.ge.s32.totalorder %s13_s16, 20   ;;  %s3551_s13 = smov %s2799_s15 }
 0x18f   : > { %s3552_s14 = smov %s3555_s17  ;;  %s3553_s15 = smov %s3559_s18 }
 0x190   :  { %12 = sbr.rel (!%p10_p9) target bundleno = 3 (0x3), region = 82 }

// kernel: _lambda_.23
= control target key start
LH: loop header
LB: loop body
LE: loop exit
PB: predicated region body
PF: predicated region fallthrough
CT: control target
= control target key end

     0   :  { %v870_v6 = vmov 0.0   ;;  %v872_v7 = vmov 0.0   ;;  %v874_v8 = vmov 0.0   ;;  %v876_v9 = vmov 0.0   ;;  %s1040_s0 = inlined_call_operand.vmem [shape: f32[8,3,32,16], index: 0, kind: input, shape index: {}]   ;;  %s1041_s1 = inlined_call_operand.vmem [shape: f32[8,3,32,16], index: 1, kind: input, shape index: {}]   ;;  %s1042_s2 = inlined_call_operand.vmem [shape: f32[16,48], index: 2, kind: input, shape index: {}]   ;;  %s1043_s3 = inlined_call_operand.vmem [shape: f32[16,48], index: 3, kind: input, shape index: {}]   ;;  %s1044_s4 = inlined_call_operand.vmem [shape: f32[1,16], index: 4, kind: input, shape index: {}]   ;;  %s1045_s5 = inlined_call_operand.vmem [shape: f32[1,16], index: 5, kind: input, shape index: {}]   ;;  %s1046_s6 = inlined_call_operand.vmem [shape: f32[8,32,16], index: 6, kind: output, shape index: {0}]   ;;  %s1047_s7 = inlined_call_operand.vmem [shape: f32[8,32,16], index: 7, kind: output, shape index: {1}]  }
   0x1   :  { %v843_v0 = vld [vmem:[%s1042_s2] sm:$0xff]  ;;  %v848_v1 = vld [vmem:[%s1042_s2 + $0x8] sm:$0xff]  ;;  %v878_v10 = vmov 0.0   ;;  %v880_v11 = vmov 0.0   ;;  %v882_v12 = vmov 0.0   ;;  %v884_v13 = vmov 0.0  }
   0x2   :  { %v853_v2 = vld [vmem:[%s1043_s3] sm:$0xff]  ;;  %v858_v3 = vld [vmem:[%s1043_s3 + $0x8] sm:$0xff]  ;;  %s886_s2 = smov 0  }
   0x3   :  { %v863_v4 = vld [vmem:[%s1044_s4] ss:$0 sm:$0xff] }
   0x4   :  { %v868_v5 = vld [vmem:[%s1045_s5] ss:$0 sm:$0xff] }
   0x5 LB: > { %v594_v14 = vpack.c.bf16 %v848_v1, %v843_v0  ;;  %v598_v15 = vpack.c.bf16 %v858_v3, %v853_v2  ;;  %vm60_vm0 = vcmask 130048   ;;  %s797_s3 = smov 32   ;;  %s798_s4 = smov 112   ;;  %s795_s2 = sphi %s886_s2, %s36_s2   ;;  %v791_v13 = vphi %v884_v13, %v266_v13   ;;  %v787_v12 = vphi %v882_v12, %v1049_v12   ;;  %v783_v11 = vphi %v880_v11, %v268_v11   ;;  %v779_v10 = vphi %v878_v10, %v269_v10   ;;  %v775_v9 = vphi %v876_v9, %v1048_v9   ;;  %v771_v8 = vphi %v874_v8, %v490_v8   ;;  %v767_v7 = vphi %v872_v7, %v491_v7   ;;  %v763_v6 = vphi %v870_v6, %v492_v6  }
   0x6   : > { %219 = vrot.lane.b32.xlu0 %v863_v4, %s797_s3  ;;  %578 = vmatprep.mubr.msk.f32.mxu0 %vm60_vm0, %v791_v13  ;;  %s799_s5 = smov 96   ;;  %s45_s13 = ssub.s32 7, %s795_s2 }
   0x7   : > { %595 = vmatprep.subr.bf16.mxu0 %v594_v14  ;;  %599 = vmatprep.subr.bf16.mxu1 %v598_v15  ;;  %s270_s14 = smul.u32 96, %s45_s13  ;;  %s561_s22 = sshll.u32 %s45_s13, 5 }
   0x8   : > { %597 = vmatpush3.bf16.msra.mxu0 %v594_v14  ;;  %601 = vmatpush3.bf16.msra.mxu1 %v598_v15  ;;  %s46_s15 = smul.u32 96, %s795_s2  ;;  %s560_s23 = sshll.u32 %s795_s2, 5 }
   0x9   : > { %588 = vmatprep.mubr.msk.f32.mxu1 %vm60_vm0, %v775_v9  ;;  %s948_s18 = scalar_lea.vmem %s1041_s1, %s270_s14  ;;  %s985_s26 = scalar_lea.vmem %s1047_s7, %s561_s22 }
   0xa   : > { %442 = vrot.lane.b32.xlu0 %v868_v5, %s797_s3  ;;  %s953_s21 = scalar_lea.vmem %s1040_s0, %s46_s15  ;;  %v272_v34 = vld [vmem:[%s948_s18] sm:$0xff]  ;;  %v273_v40 = vld [vmem:[%s948_s18 + $0x8] sm:$0xff]  ;;  %v274_v48 = vld [vmem:[%s948_s18 + $0x10] sm:$0xff]  ;;  %s994_s29 = scalar_lea.vmem %s1046_s6, %s560_s23 }
   0xb   : > { %579 = vmatmul.mubr.msk.f32.vlgmr.msra.gmra.mrb[0].mxu0 %vm60_vm0, %v787_v12  ;;  %589 = vmatmul.mubr.msk.f32.vlgmr.msra.gmra.mrb[0].mxu1 %vm60_vm0, %v771_v8  ;;  %v48_v35 = vld [vmem:[%s953_s21] sm:$0xff]  ;;  %v49_v36 = vld [vmem:[%s953_s21 + $0x8] sm:$0xff]  ;;  %v50_v45 = vld [vmem:[%s953_s21 + $0x10] sm:$0xff]  ;;  %s36_s2 = sadd.s32 1, %s795_s2  }
   0xc   : > { %581 = vmatprep.mubr.msk.f32.mxu0 %vm60_vm0, %v783_v11  ;;  %591 = vmatprep.mubr.msk.f32.mxu1 %vm60_vm0, %v767_v7  ;;  %v53_v49 = vld [vmem:[%s953_s21 + $0x28] sm:$0xff]  ;;  %v51_v50 = vld [vmem:[%s953_s21 + $0x18] sm:$0xff]  ;;  %v276_v53 = vld [vmem:[%s948_s18 + $0x20] sm:$0xff]  ;;  %p33_p0 = scmp.ge.s32.totalorder %s36_s2, 8  }
   0xd   : > { %v275_v56 = vld [vmem:[%s948_s18 + $0x18] sm:$0xff]  ;;  %v277_v62 = vld [vmem:[%s948_s18 + $0x28] sm:$0xff] }
   0xf   : > { %582 = vmatmul.mubr.msk.f32.gmra.mrb[2].mxu0 %vm60_vm0, %v779_v10  ;;  %592 = vmatmul.mubr.msk.f32.gmra.mrb[2].mxu1 %vm60_vm0, %v763_v6 }
  0x78   : > { %v220_v16 = vpop.permute.xlu0 %219 }
  0x7c   : > { %v443_v21 = vpop.permute.xlu0 %442 }
  0xde   : > { %v580_v17 = vpop.f32.mrb[0].mxu0  ;;  %v590_v18 = vpop.f32.mrb[0].mxu1 }
  0xdf   : > { %184 = vrot.lane.b32.xlu1 %v580_v17, %s798_s4  ;;  %v139_v19 = vpop.f32.mrb[1].mxu0  ;;  %v362_v20 = vpop.f32.mrb[1].mxu1  ;;  %v223_v28 = vadd.f32 %v580_v17, %v220_v16  ;;  %v446_v29 = vadd.f32 %v590_v18, %v443_v21  ;;  %v159_v39 = vadd.f32 %v580_v17, %v49_v36  ;;  %v382_v44 = vadd.f32 %v590_v18, %v273_v40 }
  0xe0   : > { %405 = vrot.lane.b32.xlu0 %v362_v20, %s798_s4  ;;  %v222_v22 = vadd.f32 %v220_v16, %v139_v19  ;;  %v445_v27 = vadd.f32 %v443_v21, %v362_v20  ;;  %v381_v37 = vadd.f32 %v362_v20, %v272_v34  ;;  %v158_v38 = vadd.f32 %v139_v19, %v48_v35 }
  0xe1   : > { %v163_v43 = vmul.f32 0.5, %v159_v39  ;;  %v386_v46 = vmul.f32 0.5, %v382_v44  ;;  %v54_v39 = vld [vmem:[%s953_s21 + $0x30] sm:$0xff] }
  0xe2   : > { %v583_v23 = vpop.f32.mrb[2].mxu0  ;;  %v937_v24 = vpop.f32.mrb[2].mxu1  ;;  %v385_v41 = vmul.f32 0.5, %v381_v37  ;;  %v162_v42 = vmul.f32 0.5, %v158_v38 }
  0xe3   : > { %407 = vrot.lane.b32.xlu1 %v590_v18, %s798_s4  ;;  %v149_v25 = vpop.f32.mrb[3].mxu0  ;;  %v372_v26 = vpop.f32.mrb[3].mxu1  ;;  %v225_v32 = vadd.f32 %v583_v23, %v220_v16  ;;  %v448_v33 = vadd.f32 %v937_v24, %v443_v21  ;;  %v161_v60 = vadd.f32 %v583_v23, %v51_v50 }
  0xe4   : > { %230 = vrot.lane.b32.xlu0 %v222_v22, %s799_s5  ;;  %v224_v30 = vadd.f32 %v220_v16, %v149_v25  ;;  %v447_v31 = vadd.f32 %v443_v21, %v372_v26  ;;  %677 = vtanh.f32 %v385_v41  ;;  %v160_v47 = vadd.f32 %v149_v25, %v50_v45  ;;  %v56_v41 = vld [vmem:[%s953_s21 + $0x40] sm:$0xff] }
  0xe5   : > { %679 = vtanh.f32 %v162_v42  ;;  %v383_v52 = vadd.f32 %v372_v26, %v274_v48  ;;  %v384_v16 = vadd.f32 %v937_v24, %v275_v56  ;;  %v281_v56 = vld [vmem:[%s948_s18 + $0x48] sm:$0xff] }
  0xe6   : > { %681 = vtanh.f32 %v163_v43  ;;  %v164_v51 = vmul.f32 0.5, %v160_v47  ;;  %v57_v43 = vld [vmem:[%s953_s21 + $0x48] sm:$0xff] }
  0xe7   : > { %182 = vrot.lane.b32.xlu1 %v139_v19, %s798_s4  ;;  %683 = vtanh.f32 %v386_v46  ;;  %v387_v63 = vmul.f32 0.5, %v383_v52 }
  0xe8   : > { %453 = vrot.lane.b32.xlu0 %v445_v27, %s799_s5  ;;  %685 = vtanh.f32 %v164_v51 }
  0xeb   : > { %232 = vrot.lane.b32.xlu1 %v223_v28, %s799_s5 }
  0xec   : > { %186 = vrot.lane.b32.xlu0 %v149_v25, %s798_s4  ;;  %v165_v25 = vmul.f32 0.5, %v161_v60 }
  0xee   : > { %v678_v55 = vpop.eup %677 }
  0xef   : > { %455 = vrot.lane.b32.xlu1 %v446_v29, %s799_s5  ;;  %v680_v59 = vpop.eup %679  ;;  %v393_v19 = vadd.f32 1.0, %v678_v55  ;;  %v388_v29 = vmul.f32 0.5, %v384_v16 }
  0xf0   : > { %409 = vrot.lane.b32.xlu0 %v372_v26, %s798_s4  ;;  %v682_v15 = vpop.eup %681  ;;  %v170_v21 = vadd.f32 1.0, %v680_v59 }
  0xf1   : > { %v171_v27 = vadd.f32 1.0, %v682_v15  ;;  %v684_v28 = vpop.eup %683  ;;  %v55_v15 = vld [vmem:[%s953_s21 + $0x38] sm:$0xff] }
  0xf2   : > { %v394_v40 = vadd.f32 1.0, %v684_v28  ;;  %v686_v45 = vpop.eup %685  ;;  %v58_v28 = vld [vmem:[%s953_s21 + $0x50] sm:$0xff] }
  0xf3   : > { %188 = vrot.lane.b32.xlu1 %v583_v23, %s798_s4  ;;  %v52_v23 = vld [vmem:[%s953_s21 + $0x20] sm:$0xff]  ;;  %v175_v38 = vmul.f32 0.5, %v171_v27 }
  0xf4   : > { %234 = vrot.lane.b32.xlu0 %v224_v30, %s799_s5  ;;  %v398_v52 = vmul.f32 0.5, %v394_v40 }
  0xf7   : > { %411 = vrot.lane.b32.xlu1 %v937_v24, %s798_s4  ;;  %v397_v24 = vmul.f32 0.5, %v393_v19 }
  0xf8   : > { %457 = vrot.lane.b32.xlu0 %v447_v31, %s799_s5  ;;  %v174_v31 = vmul.f32 0.5, %v170_v21 }
  0xfb   : > { %236 = vrot.lane.b32.xlu1 %v225_v32, %s799_s5 }
  0xff   : > { %459 = vrot.lane.b32.xlu1 %v448_v33, %s799_s5  ;;  %v280_v33 = vld [vmem:[%s948_s18 + $0x40] sm:$0xff] }
 0x151   : > { %v185_v54 = vpop.permute.xlu1 %184 }
 0x152   : > { %v195_v57 = vadd.f32 %v185_v54, %v53_v49  ;;  %v406_v58 = vpop.permute.xlu0 %405 }
 0x153   : > { %v417_v61 = vadd.f32 %v406_v58, %v276_v53  ;;  %v278_v53 = vld [vmem:[%s948_s18 + $0x30] sm:$0xff]  ;;  %v172_v58 = vadd.f32 1.0, %v686_v45 }
 0x154   : > { %v199_v14 = vmul.f32 0.5, %v195_v57  ;;  %v282_v45 = vld [vmem:[%s948_s18 + $0x50] sm:$0xff] }
 0x155   : > { %v421_v17 = vmul.f32 0.5, %v417_v61  ;;  %v408_v18 = vpop.permute.xlu1 %407 }
 0x156   : > { %687 = vtanh.f32 %v199_v14  ;;  %v418_v20 = vadd.f32 %v408_v18, %v277_v62  ;;  %v231_v22 = vpop.permute.xlu0 %230 }
 0x157   : > { %689 = vtanh.f32 %v421_v17  ;;  %v242_v36 = vmul.f32 %v231_v22, %v174_v31  ;;  %v176_v22 = vmul.f32 0.5, %v172_v58 }
 0x158   : > { %691 = vtanh.f32 %v387_v63  ;;  %v422_v26 = vmul.f32 0.5, %v418_v20 }
 0x159   : > { %v183_v30 = vpop.permute.xlu1 %182  ;;  %v246_v50 = vadd.f32 %v242_v36, %v56_v41 }
 0x15a   : > { %693 = vtanh.f32 %v422_v26  ;;  %v194_v32 = vadd.f32 %v183_v30, %v52_v23  ;;  %v454_v34 = vpop.permute.xlu0 %453 }
 0x15b   : > { %695 = vtanh.f32 %v165_v25  ;;  %v465_v35 = vmul.f32 %v454_v34, %v397_v24 }
 0x15c   : > { %v198_v37 = vmul.f32 0.5, %v194_v32  ;;  %697 = vtanh.f32 %v388_v29  ;;  %v279_v32 = vld [vmem:[%s948_s18 + $0x38] sm:$0xff] }
 0x15d   : > { %v469_v42 = vadd.f32 %v465_v35, %v280_v33  ;;  %v233_v44 = vpop.permute.xlu1 %232 }
 0x15e   : > { %699 = vtanh.f32 %v198_v37  ;;  %v243_v46 = vmul.f32 %v233_v44, %v175_v38  ;;  %v187_v47 = vpop.permute.xlu0 %186 }
 0x15f   : > { %701 = vtanh.f32 %v469_v42  ;;  %v196_v48 = vadd.f32 %v187_v47, %v54_v39 }
 0x160   : > { %v688_v49 = vpop.eup %687  ;;  %v247_v51 = vadd.f32 %v243_v46, %v57_v43 }
 0x161   : > { %v690_v54 = vpop.eup %689  ;;  %v200_v55 = vmul.f32 0.5, %v196_v48  ;;  %v456_v57 = vpop.permute.xlu1 %455  ;;  %v207_v63 = vadd.f32 1.0, %v688_v49 }
 0x162   : > { %v692_v59 = vpop.eup %691  ;;  %v429_v60 = vadd.f32 1.0, %v690_v54  ;;  %703 = vtanh.f32 %v247_v51  ;;  %v466_v61 = vmul.f32 %v456_v57, %v398_v52  ;;  %v410_v62 = vpop.permute.xlu0 %409 }
 0x163   : > { %705 = vtanh.f32 %v200_v55  ;;  %v419_v14 = vadd.f32 %v410_v62, %v278_v53  ;;  %v395_v25 = vadd.f32 1.0, %v692_v59  ;;  %v211_v24 = vmul.f32 0.5, %v207_v63  ;;  %v59_v59 = vld [vmem:[%s953_s21 + $0x58] sm:$0xff] }
 0x164   : > { %v694_v16 = vpop.eup %693  ;;  %v433_v17 = vmul.f32 0.5, %v429_v60  ;;  %707 = vtanh.f32 %v246_v50  ;;  %v470_v18 = vadd.f32 %v466_v61, %v281_v56 }
 0x165   : > { %v696_v19 = vpop.eup %695  ;;  %v423_v20 = vmul.f32 0.5, %v419_v14  ;;  %v189_v21 = vpop.permute.xlu1 %188  ;;  %v430_v26 = vadd.f32 1.0, %v694_v16  ;;  %v399_v41 = vmul.f32 0.5, %v395_v25  ;;  %v255_v47 = vsub.f32 1.0, %v211_v24 }
 0x166   : > { %v477_v23 = vsub.f32 1.0, %v433_v17  ;;  %709 = vtanh.f32 %v470_v18  ;;  %v197_v27 = vadd.f32 %v189_v21, %v55_v15  ;;  %v235_v29 = vpop.permute.xlu0 %234  ;;  %v698_v30 = vpop.eup %697  ;;  %v485_v34 = vmul.f32 %v775_v9, %v433_v17 }
 0x167   : > { %711 = vtanh.f32 %v423_v20  ;;  %v244_v31 = vmul.f32 %v235_v29, %v176_v22  ;;  %v173_v36 = vadd.f32 1.0, %v696_v19  ;;  %v434_v42 = vmul.f32 0.5, %v430_v26 }
 0x168   : > { %v700_v33 = vpop.eup %699  ;;  %v201_v35 = vmul.f32 0.5, %v197_v27  ;;  %v396_v53 = vadd.f32 1.0, %v698_v30  ;;  %v263_v55 = vmul.f32 %v787_v12, %v211_v24 }
 0x169   : > { %v702_v37 = vpop.eup %701  ;;  %v206_v38 = vadd.f32 1.0, %v700_v33  ;;  %v248_v39 = vadd.f32 %v244_v31, %v58_v28  ;;  %v412_v40 = vpop.permute.xlu1 %411  ;;  %v177_v52 = vmul.f32 0.5, %v173_v36  ;;  %v478_v62 = vsub.f32 1.0, %v434_v42  ;;  %v283_v28 = vld [vmem:[%s948_s18 + $0x58] sm:$0xff] }
 0x16a   : > { %v481_v43 = vmul.f32 %v702_v37, %v477_v23  ;;  %713 = vtanh.f32 %v201_v35  ;;  %v420_v44 = vadd.f32 %v412_v40, %v279_v32  ;;  %v458_v46 = vpop.permute.xlu0 %457  ;;  %v486_v21 = vmul.f32 %v771_v8, %v434_v42 }
 0x16b   : > { %v210_v9 = vmul.f32 0.5, %v206_v38  ;;  %715 = vtanh.f32 %v248_v39  ;;  %v467_v48 = vmul.f32 %v458_v46, %v399_v41  ;;  %v400_v23 = vmul.f32 0.5, %v396_v53 }
 0x16c   : > { %v704_v49 = vpop.eup %703  ;;  %v987_v50 = vadd.f32 %v485_v34, %v481_v43   ;;  %v424_v51 = vmul.f32 0.5, %v420_v44 }
 0x16d   : > { %v706_v54 = vpop.eup %705  ;;  %v254_v56 = vsub.f32 1.0, %v210_v9  ;;  %v259_v57 = vmul.f32 %v704_v49, %v255_v47  ;;  %v471_v58 = vadd.f32 %v467_v48, %v282_v45  ;;  %v237_v60 = vpop.permute.xlu1 %236  ;;  %v262_v15 = vmul.f32 %v791_v13, %v210_v9 }
 0x16e   : > { %v708_v61 = vpop.eup %707  ;;  %501 = vst.msk [vmem:[%s985_s26] sm:$0xff] %vm60_vm0, %v987_v50  ;;  %v208_v63 = vadd.f32 1.0, %v706_v54  ;;  %717 = vtanh.f32 %v424_v51  ;;  %v245_v14 = vmul.f32 %v237_v60, %v177_v52 }
 0x16f   : > { %v258_v12 = vmul.f32 %v708_v61, %v254_v56  ;;  %v267_v16 = vadd.f32 %v263_v55, %v259_v57   ;;  %719 = vtanh.f32 %v471_v58 }
 0x170   : > { %v710_v17 = vpop.eup %709  ;;  %v212_v18 = vmul.f32 0.5, %v208_v63  ;;  %v249_v19 = vadd.f32 %v245_v14, %v59_v59 }
 0x171   : > { %v712_v20 = vpop.eup %711  ;;  %v266_v13 = vadd.f32 %v262_v15, %v258_v12   ;;  %496 = vst.msk [vmem:[%s994_s29 + $0x8] sm:$0xff] %vm60_vm0, %v267_v16  ;;  %v482_v22 = vmul.f32 %v710_v17, %v478_v62  ;;  %v460_v25 = vpop.permute.xlu1 %459  ;;  %v1049_v12 = vmov %v267_v16 }
 0x172   : > { %v256_v26 = vsub.f32 1.0, %v212_v18  ;;  %v431_v27 = vadd.f32 1.0, %v712_v20  ;;  %721 = vtanh.f32 %v249_v19  ;;  %v468_v29 = vmul.f32 %v460_v25, %v400_v23 }
 0x173   : > { %495 = vst.msk [vmem:[%s994_s29] sm:$0xff] %vm60_vm0, %v266_v13  ;;  %v490_v8 = vadd.f32 %v486_v21, %v482_v22   ;;  %v264_v24 = vmul.f32 %v783_v11, %v212_v18 }
 0x174   : > { %v714_v30 = vpop.eup %713  ;;  %v435_v31 = vmul.f32 0.5, %v431_v27  ;;  %v472_v34 = vadd.f32 %v468_v29, %v283_v28 }
 0x175   : > { %v716_v32 = vpop.eup %715  ;;  %502 = vst.msk [vmem:[%s985_s26 + $0x8] sm:$0xff] %vm60_vm0, %v490_v8  ;;  %v209_v33 = vadd.f32 1.0, %v714_v30 }
 0x176   : > { %v479_v35 = vsub.f32 1.0, %v435_v31  ;;  %v260_v36 = vmul.f32 %v716_v32, %v256_v26  ;;  %723 = vtanh.f32 %v472_v34  ;;  %v487_v39 = vmul.f32 %v767_v7, %v435_v31 }
 0x177   : > { %v213_v37 = vmul.f32 0.5, %v209_v33 }
 0x178   : > { %v718_v38 = vpop.eup %717  ;;  %v268_v11 = vadd.f32 %v264_v24, %v260_v36  }
 0x179   : > { %v720_v40 = vpop.eup %719  ;;  %v432_v41 = vadd.f32 1.0, %v718_v38  ;;  %v257_v43 = vsub.f32 1.0, %v213_v37  ;;  %v265_v46 = vmul.f32 %v779_v10, %v213_v37 }
 0x17a   : > { %497 = vst.msk [vmem:[%s994_s29 + $0x10] sm:$0xff] %vm60_vm0, %v268_v11  ;;  %v483_v42 = vmul.f32 %v720_v40, %v479_v35 }
 0x17b   : > { %v436_v45 = vmul.f32 0.5, %v432_v41 }
 0x17c   : > { %v722_v44 = vpop.eup %721  ;;  %v491_v7 = vadd.f32 %v487_v39, %v483_v42  }
 0x17d   : > { %v261_v47 = vmul.f32 %v722_v44, %v257_v43  ;;  %v480_v9 = vsub.f32 1.0, %v436_v45  ;;  %v488_v49 = vmul.f32 %v763_v6, %v436_v45 }
 0x17e   : > { %503 = vst.msk [vmem:[%s985_s26 + $0x10] sm:$0xff] %vm60_vm0, %v491_v7 }
 0x17f   : > { %v269_v10 = vadd.f32 %v265_v46, %v261_v47   ;;  %35 = sbr.rel (!%p33_p0) target bundleno = 5 (0x5), region = 63 }
 0x180   : > { %v724_v48 = vpop.eup %723 }
 0x181   : > { %498 = vst.msk [vmem:[%s994_s29 + $0x18] sm:$0xff] %vm60_vm0, %v269_v10  ;;  %v484_v51 = vmul.f32 %v724_v48, %v480_v9  ;;  %v1048_v9 = vmov %v987_v50 }
 0x183   : > { %v492_v6 = vadd.f32 %v488_v49, %v484_v51  }
 0x185   : > { %504 = vst.msk [vmem:[%s985_s26 + $0x18] sm:$0xff] %vm60_vm0, %v492_v6 }

// kernel: _lambda_.24
= control target key start
LH: loop header
LB: loop body
LE: loop exit
PB: predicated region body
PF: predicated region fallthrough
CT: control target
= control target key end

     0   :  { %vm153_vm0 = vcmask 261120   ;;  %s850_s2 = inlined_call_operand.vmem [shape: bf16[32,128], index: 2, kind: input, shape index: {}]   ;;  %s851_s0 = inlined_call_operand.vmem [shape: f32[256,32], index: 0, kind: input, shape index: {}]   ;;  %s852_s1 = inlined_call_operand.vmem [shape: f32[256,32], index: 1, kind: input, shape index: {}]   ;;  %s853_s3 = inlined_call_operand.vmem [shape: f32[1,128], index: 3, kind: input, shape index: {}]   ;;  %s854_s4 = inlined_call_operand.vmem [shape: f32[256,128], index: 4, kind: output, shape index: {}]  }
   0x1   :  { %v476_v0 = vld [vmem:[%s850_s2] sm:$0xff]   ;;  %v477_v1 = vld [vmem:[%s850_s2 + $0x8] sm:$0xff]   ;;  %v20_v12 = vld [vmem:[%s851_s0 + $0x10] sm:$0xff] }
   0x2   :  { %436 = vmatprep.subr.bf16.mxu0 %v476_v0  ;;  %472 = vmatprep.subr.bf16.mxu1 %v476_v0  ;;  %v18_v2 = vld [vmem:[%s851_s0] sm:$0xff]  ;;  %v19_v3 = vld [vmem:[%s851_s0 + $0x8] sm:$0xff]  ;;  %v21_v15 = vld [vmem:[%s851_s0 + $0x18] sm:$0xff] }
   0x3   :  { %v50_v4 = vld [vmem:[%s852_s1] sm:$0xff]  ;;  %437 = vmatpush3.bf16.msra.mxu0 %v476_v0  ;;  %474 = vmatpush3.bf16.msra.mxu1 %v476_v0  ;;  %v51_v5 = vld [vmem:[%s852_s1 + $0x8] sm:$0xff]  ;;  %v52_v16 = vld [vmem:[%s852_s1 + $0x10] sm:$0xff] }
   0x4   :  { %v82_v6 = vadd.f32 %v50_v4, %v18_v2  ;;  %v34_v7 = vld [vmem:[%s851_s0 + $0x80] sm:$0xff]  ;;  %v35_v8 = vld [vmem:[%s851_s0 + $0x88] sm:$0xff]  ;;  %438 = vmatprep.subr.bf16.mxu0 %v477_v1  ;;  %473 = vmatprep.subr.bf16.mxu1 %v477_v1  ;;  %v83_v9 = vadd.f32 %v51_v5, %v19_v3  ;;  %v53_v17 = vld [vmem:[%s852_s1 + $0x18] sm:$0xff]  ;;  %v84_v19 = vadd.f32 %v52_v16, %v20_v12 }
   0x5   :  { %v66_v10 = vld [vmem:[%s852_s1 + $0x80] sm:$0xff]  ;;  %v67_v11 = vld [vmem:[%s852_s1 + $0x88] sm:$0xff]  ;;  %v85_v20 = vadd.f32 %v53_v17, %v21_v15  ;;  %v36_v21 = vld [vmem:[%s851_s0 + $0x90] sm:$0xff] }
   0x6   :  { %v98_v13 = vadd.f32 %v66_v10, %v34_v7  ;;  %v99_v14 = vadd.f32 %v67_v11, %v35_v8  ;;  %v114_v18 = vpack.c.bf16 %v83_v9, %v82_v6  ;;  %v37_v22 = vld [vmem:[%s851_s0 + $0x98] sm:$0xff]  ;;  %v68_v23 = vld [vmem:[%s852_s1 + $0x90] sm:$0xff]  ;;  %v22_v27 = vld [vmem:[%s851_s0 + $0x20] sm:$0xff] }
   0x7   :  { %439 = vmatpush3.bf16.msra.mxu0 %v477_v1  ;;  %475 = vmatpush3.bf16.msra.mxu1 %v477_v1  ;;  %v69_v25 = vld [vmem:[%s852_s1 + $0x98] sm:$0xff]  ;;  %v100_v26 = vadd.f32 %v68_v23, %v36_v21  ;;  %v23_v28 = vld [vmem:[%s851_s0 + $0x28] sm:$0xff]  ;;  %v115_v29 = vpack.c.bf16 %v85_v20, %v84_v19  ;;  %v54_v31 = vld [vmem:[%s852_s1 + $0x20] sm:$0xff] }
   0x8   :  { %v122_v24 = vpack.c.bf16 %v99_v14, %v98_v13  ;;  %440 = vmatprep.mubr.msk.bf16.mxu0 %vm153_vm0, %v114_v18  ;;  %v101_v30 = vadd.f32 %v69_v25, %v37_v22  ;;  %v55_v32 = vld [vmem:[%s852_s1 + $0x28] sm:$0xff]  ;;  %v38_v33 = vld [vmem:[%s851_s0 + $0xa0] sm:$0xff]  ;;  %v86_v34 = vadd.f32 %v54_v31, %v22_v27  ;;  %v24_v42 = vld [vmem:[%s851_s0 + $0x30] sm:$0xff] }
   0x9   :  { %v87_v35 = vadd.f32 %v55_v32, %v23_v28  ;;  %v39_v36 = vld [vmem:[%s851_s0 + $0xa8] sm:$0xff]  ;;  %v70_v37 = vld [vmem:[%s852_s1 + $0xa0] sm:$0xff]  ;;  %v25_v43 = vld [vmem:[%s851_s0 + $0x38] sm:$0xff] }
   0xa   :  { %456 = vmatprep.mubr.msk.bf16.mxu1 %vm153_vm0, %v122_v24  ;;  %v71_v38 = vld [vmem:[%s852_s1 + $0xa8] sm:$0xff]  ;;  %441 = vmatmul.mubr.msk.bf16.vlgmr.msra.gmra.mrb[0].mxu0 %vm153_vm0, %v115_v29  ;;  %v123_v39 = vpack.c.bf16 %v101_v30, %v100_v26  ;;  %v102_v40 = vadd.f32 %v70_v37, %v38_v33  ;;  %v56_v44 = vld [vmem:[%s852_s1 + $0x30] sm:$0xff]  ;;  %v57_v46 = vld [vmem:[%s852_s1 + $0x38] sm:$0xff] }
   0xb   :  { %v103_v41 = vadd.f32 %v71_v38, %v39_v36  ;;  %v116_v45 = vpack.c.bf16 %v87_v35, %v86_v34  ;;  %v88_v47 = vadd.f32 %v56_v44, %v24_v42  ;;  %v40_v48 = vld [vmem:[%s851_s0 + $0xb0] sm:$0xff]  ;;  %v41_v49 = vld [vmem:[%s851_s0 + $0xb8] sm:$0xff]  ;;  %v89_v51 = vadd.f32 %v57_v46, %v25_v43  ;;  %v26_v54 = vld [vmem:[%s851_s0 + $0x40] sm:$0xff] }
   0xc   :  { %457 = vmatmul.mubr.msk.bf16.vlgmr.msra.gmra.mrb[0].mxu1 %vm153_vm0, %v123_v39  ;;  %v72_v52 = vld [vmem:[%s852_s1 + $0xb0] sm:$0xff]  ;;  %v73_v53 = vld [vmem:[%s852_s1 + $0xb8] sm:$0xff]  ;;  %v27_v57 = vld [vmem:[%s851_s0 + $0x48] sm:$0xff] }
   0xd   :  { %v124_v50 = vpack.c.bf16 %v103_v41, %v102_v40  ;;  %444 = vmatprep.mubr.msk.bf16.mxu0 %vm153_vm0, %v116_v45  ;;  %v104_v55 = vadd.f32 %v72_v52, %v40_v48  ;;  %v105_v56 = vadd.f32 %v73_v53, %v41_v49  ;;  %v58_v58 = vld [vmem:[%s852_s1 + $0x40] sm:$0xff]  ;;  %v59_v59 = vld [vmem:[%s852_s1 + $0x48] sm:$0xff]  ;;  %v117_v60 = vpack.c.bf16 %v89_v51, %v88_v47  ;;  %v28_v4 = vld [vmem:[%s851_s0 + $0x50] sm:$0xff] }
   0xe   :  { %v90_v61 = vadd.f32 %v58_v58, %v26_v54  ;;  %v91_v62 = vadd.f32 %v59_v59, %v27_v57  ;;  %v42_v63 = vld [vmem:[%s851_s0 + $0xc0] sm:$0xff]  ;;  %v43_v0 = vld [vmem:[%s851_s0 + $0xc8] sm:$0xff]  ;;  %v29_v5 = vld [vmem:[%s851_s0 + $0x58] sm:$0xff] }
   0xf   :  { %460 = vmatprep.mubr.msk.bf16.mxu1 %vm153_vm0, %v124_v50  ;;  %v74_v1 = vld [vmem:[%s852_s1 + $0xc0] sm:$0xff]  ;;  %v75_v2 = vld [vmem:[%s852_s1 + $0xc8] sm:$0xff]  ;;  %v125_v6 = vpack.c.bf16 %v105_v56, %v104_v55  ;;  %v60_v9 = vld [vmem:[%s852_s1 + $0x50] sm:$0xff] }
  0x10   :  { %v106_v3 = vadd.f32 %v74_v1, %v42_v63  ;;  %v118_v7 = vpack.c.bf16 %v91_v62, %v90_v61  ;;  %v107_v8 = vadd.f32 %v75_v2, %v43_v0  ;;  %v61_v10 = vld [vmem:[%s852_s1 + $0x58] sm:$0xff]  ;;  %v44_v11 = vld [vmem:[%s851_s0 + $0xd0] sm:$0xff]  ;;  %v92_v16 = vadd.f32 %v60_v9, %v28_v4  ;;  %v30_v18 = vld [vmem:[%s851_s0 + $0x60] sm:$0xff] }
  0x11   :  { %v45_v12 = vld [vmem:[%s851_s0 + $0xd8] sm:$0xff]  ;;  %v76_v13 = vld [vmem:[%s852_s1 + $0xd0] sm:$0xff]  ;;  %v93_v17 = vadd.f32 %v61_v10, %v29_v5  ;;  %v31_v19 = vld [vmem:[%s851_s0 + $0x68] sm:$0xff] }
  0x12   :  { %v77_v14 = vld [vmem:[%s852_s1 + $0xd8] sm:$0xff]  ;;  %445 = vmatmul.mubr.msk.bf16.gmra.mrb[4].mxu0 %vm153_vm0, %v117_v60  ;;  %v126_v15 = vpack.c.bf16 %v107_v8, %v106_v3  ;;  %v62_v20 = vld [vmem:[%s852_s1 + $0x60] sm:$0xff]  ;;  %v63_v21 = vld [vmem:[%s852_s1 + $0x68] sm:$0xff]  ;;  %v108_v25 = vadd.f32 %v76_v13, %v44_v11 }
  0x13   :  { %448 = vmatprep.mubr.msk.bf16.mxu0 %vm153_vm0, %v118_v7  ;;  %v94_v22 = vadd.f32 %v62_v20, %v30_v18  ;;  %v46_v23 = vld [vmem:[%s851_s0 + $0xe0] sm:$0xff]  ;;  %v47_v24 = vld [vmem:[%s851_s0 + $0xe8] sm:$0xff]  ;;  %v109_v26 = vadd.f32 %v77_v14, %v45_v12  ;;  %v95_v27 = vadd.f32 %v63_v21, %v31_v19  ;;  %v119_v32 = vpack.c.bf16 %v93_v17, %v92_v16  ;;  %v32_v33 = vld [vmem:[%s851_s0 + $0x70] sm:$0xff] }
  0x14   :  { %461 = vmatmul.mubr.msk.bf16.gmra.mrb[4].mxu1 %vm153_vm0, %v125_v6  ;;  %v78_v28 = vld [vmem:[%s852_s1 + $0xe0] sm:$0xff]  ;;  %v79_v29 = vld [vmem:[%s852_s1 + $0xe8] sm:$0xff]  ;;  %v33_v35 = vld [vmem:[%s851_s0 + $0x78] sm:$0xff] }
  0x15   :  { %464 = vmatprep.mubr.msk.bf16.mxu1 %vm153_vm0, %v126_v15  ;;  %v110_v30 = vadd.f32 %v78_v28, %v46_v23  ;;  %v111_v31 = vadd.f32 %v79_v29, %v47_v24  ;;  %v120_v34 = vpack.c.bf16 %v95_v27, %v94_v22  ;;  %v64_v36 = vld [vmem:[%s852_s1 + $0x70] sm:$0xff]  ;;  %v65_v37 = vld [vmem:[%s852_s1 + $0x78] sm:$0xff]  ;;  %v127_v38 = vpack.c.bf16 %v109_v26, %v108_v25  ;;  %v720_v50 = vld [vmem:[%s853_s3] ss:$0 sm:$0xff] }
  0x16   :  { %v48_v39 = vld [vmem:[%s851_s0 + $0xf0] sm:$0xff]  ;;  %v49_v41 = vld [vmem:[%s851_s0 + $0xf8] sm:$0xff]  ;;  %v96_v44 = vadd.f32 %v64_v36, %v32_v33  ;;  %v97_v45 = vadd.f32 %v65_v37, %v33_v35 }
  0x17   :  { %v128_v40 = vpack.c.bf16 %v111_v31, %v110_v30  ;;  %v80_v42 = vld [vmem:[%s852_s1 + $0xf0] sm:$0xff]  ;;  %v81_v43 = vld [vmem:[%s852_s1 + $0xf8] sm:$0xff] }
  0x18   :  { %v112_v46 = vadd.f32 %v80_v42, %v48_v39  ;;  %v113_v47 = vadd.f32 %v81_v43, %v49_v41  ;;  %v121_v48 = vpack.c.bf16 %v97_v45, %v96_v44 }
  0x1a   :  { %449 = vmatmul.mubr.msk.bf16.gmra.mrb[8].mxu0 %vm153_vm0, %v119_v32  ;;  %v129_v49 = vpack.c.bf16 %v113_v47, %v112_v46 }
  0x1b   :  { %452 = vmatprep.mubr.msk.bf16.mxu0 %vm153_vm0, %v120_v34 }
  0x1c   :  { %465 = vmatmul.mubr.msk.bf16.gmra.mrb[8].mxu1 %vm153_vm0, %v127_v38 }
  0x1d   :  { %468 = vmatprep.mubr.msk.bf16.mxu1 %vm153_vm0, %v128_v40 }
  0x22   :  { %453 = vmatmul.mubr.msk.bf16.gmra.mrb[12].mxu0 %vm153_vm0, %v121_v48 }
  0x24   :  { %469 = vmatmul.mubr.msk.bf16.gmra.mrb[12].mxu1 %vm153_vm0, %v129_v49 }
  0xdd   :  { %v442_v51 = vpop.f32.mrb[0].mxu0 }
  0xde   :  { %v245_v52 = vadd.f32 %v442_v51, %v720_v50  ;;  %v236_v53 = vpop.f32.mrb[1].mxu0 }
  0xdf   :  { %v458_v54 = vpop.f32.mrb[0].mxu1  ;;  %v237_v55 = vadd.f32 %v720_v50, %v236_v53  ;;  %v443_v56 = vpop.f32.mrb[2].mxu0 }
  0xe0   :  { %365 = vst [vmem:[%s854_s4 + $0x10] sm:$0xff] %v245_v52  ;;  %v309_v57 = vadd.f32 %v458_v54, %v720_v50  ;;  %v300_v58 = vpop.f32.mrb[1].mxu1  ;;  %v248_v59 = vadd.f32 %v443_v56, %v720_v50  ;;  %v239_v60 = vpop.f32.mrb[3].mxu0 }
  0xe1   :  { %363 = vst [vmem:[%s854_s4] sm:$0xff] %v237_v55  ;;  %v301_v61 = vadd.f32 %v720_v50, %v300_v58  ;;  %v459_v62 = vpop.f32.mrb[2].mxu1  ;;  %v240_v63 = vadd.f32 %v720_v50, %v239_v60 }
  0xe2   :  { %381 = vst [vmem:[%s854_s4 + $0x90] sm:$0xff] %v309_v57  ;;  %366 = vst [vmem:[%s854_s4 + $0x18] sm:$0xff] %v248_v59  ;;  %v312_v0 = vadd.f32 %v459_v62, %v720_v50  ;;  %v303_v1 = vpop.f32.mrb[3].mxu1 }
  0xe3   :  { %379 = vst [vmem:[%s854_s4 + $0x80] sm:$0xff] %v301_v61  ;;  %364 = vst [vmem:[%s854_s4 + $0x8] sm:$0xff] %v240_v63  ;;  %v304_v2 = vadd.f32 %v720_v50, %v303_v1 }
  0xe4   :  { %382 = vst [vmem:[%s854_s4 + $0x98] sm:$0xff] %v312_v0 }
  0xe5   :  { %380 = vst [vmem:[%s854_s4 + $0x88] sm:$0xff] %v304_v2  ;;  %v446_v3 = vpop.f32.mrb[4].mxu0 }
  0xe6   :  { %v261_v4 = vadd.f32 %v446_v3, %v720_v50  ;;  %v252_v5 = vpop.f32.mrb[5].mxu0 }
  0xe7   :  { %v462_v6 = vpop.f32.mrb[4].mxu1  ;;  %v253_v7 = vadd.f32 %v720_v50, %v252_v5  ;;  %v447_v8 = vpop.f32.mrb[6].mxu0 }
  0xe8   :  { %369 = vst [vmem:[%s854_s4 + $0x30] sm:$0xff] %v261_v4  ;;  %v325_v9 = vadd.f32 %v462_v6, %v720_v50  ;;  %v316_v10 = vpop.f32.mrb[5].mxu1  ;;  %v264_v11 = vadd.f32 %v447_v8, %v720_v50  ;;  %v255_v12 = vpop.f32.mrb[7].mxu0 }
  0xe9   :  { %367 = vst [vmem:[%s854_s4 + $0x20] sm:$0xff] %v253_v7  ;;  %v317_v13 = vadd.f32 %v720_v50, %v316_v10  ;;  %v463_v14 = vpop.f32.mrb[6].mxu1  ;;  %v256_v15 = vadd.f32 %v720_v50, %v255_v12 }
  0xea   :  { %385 = vst [vmem:[%s854_s4 + $0xb0] sm:$0xff] %v325_v9  ;;  %370 = vst [vmem:[%s854_s4 + $0x38] sm:$0xff] %v264_v11  ;;  %v328_v16 = vadd.f32 %v463_v14, %v720_v50  ;;  %v319_v17 = vpop.f32.mrb[7].mxu1 }
  0xeb   :  { %383 = vst [vmem:[%s854_s4 + $0xa0] sm:$0xff] %v317_v13  ;;  %368 = vst [vmem:[%s854_s4 + $0x28] sm:$0xff] %v256_v15  ;;  %v320_v18 = vadd.f32 %v720_v50, %v319_v17 }
  0xec   :  { %386 = vst [vmem:[%s854_s4 + $0xb8] sm:$0xff] %v328_v16 }
  0xed   :  { %384 = vst [vmem:[%s854_s4 + $0xa8] sm:$0xff] %v320_v18  ;;  %v450_v19 = vpop.f32.mrb[8].mxu0 }
  0xee   :  { %v277_v20 = vadd.f32 %v450_v19, %v720_v50  ;;  %v268_v21 = vpop.f32.mrb[9].mxu0 }
  0xef   :  { %v466_v22 = vpop.f32.mrb[8].mxu1  ;;  %v269_v23 = vadd.f32 %v720_v50, %v268_v21  ;;  %v451_v24 = vpop.f32.mrb[10].mxu0 }
  0xf0   :  { %373 = vst [vmem:[%s854_s4 + $0x50] sm:$0xff] %v277_v20  ;;  %v341_v25 = vadd.f32 %v466_v22, %v720_v50  ;;  %v332_v26 = vpop.f32.mrb[9].mxu1  ;;  %v280_v27 = vadd.f32 %v451_v24, %v720_v50  ;;  %v271_v28 = vpop.f32.mrb[11].mxu0 }
  0xf1   :  { %371 = vst [vmem:[%s854_s4 + $0x40] sm:$0xff] %v269_v23  ;;  %v333_v29 = vadd.f32 %v720_v50, %v332_v26  ;;  %v467_v30 = vpop.f32.mrb[10].mxu1  ;;  %v272_v31 = vadd.f32 %v720_v50, %v271_v28 }
  0xf2   :  { %389 = vst [vmem:[%s854_s4 + $0xd0] sm:$0xff] %v341_v25  ;;  %374 = vst [vmem:[%s854_s4 + $0x58] sm:$0xff] %v280_v27  ;;  %v344_v32 = vadd.f32 %v467_v30, %v720_v50  ;;  %v335_v33 = vpop.f32.mrb[11].mxu1 }
  0xf3   :  { %387 = vst [vmem:[%s854_s4 + $0xc0] sm:$0xff] %v333_v29  ;;  %372 = vst [vmem:[%s854_s4 + $0x48] sm:$0xff] %v272_v31  ;;  %v336_v34 = vadd.f32 %v720_v50, %v335_v33 }
  0xf4   :  { %390 = vst [vmem:[%s854_s4 + $0xd8] sm:$0xff] %v344_v32 }
  0xf5   :  { %388 = vst [vmem:[%s854_s4 + $0xc8] sm:$0xff] %v336_v34  ;;  %v454_v35 = vpop.f32.mrb[12].mxu0 }
  0xf6   :  { %v293_v36 = vadd.f32 %v454_v35, %v720_v50  ;;  %v284_v37 = vpop.f32.mrb[13].mxu0 }
  0xf7   :  { %v470_v38 = vpop.f32.mrb[12].mxu1  ;;  %v285_v39 = vadd.f32 %v720_v50, %v284_v37  ;;  %v455_v40 = vpop.f32.mrb[14].mxu0 }
  0xf8   :  { %377 = vst [vmem:[%s854_s4 + $0x70] sm:$0xff] %v293_v36  ;;  %v357_v41 = vadd.f32 %v470_v38, %v720_v50  ;;  %v348_v42 = vpop.f32.mrb[13].mxu1  ;;  %v296_v43 = vadd.f32 %v455_v40, %v720_v50  ;;  %v287_v44 = vpop.f32.mrb[15].mxu0 }
  0xf9   :  { %375 = vst [vmem:[%s854_s4 + $0x60] sm:$0xff] %v285_v39  ;;  %v349_v45 = vadd.f32 %v720_v50, %v348_v42  ;;  %v471_v46 = vpop.f32.mrb[14].mxu1  ;;  %v288_v47 = vadd.f32 %v720_v50, %v287_v44 }
  0xfa   :  { %393 = vst [vmem:[%s854_s4 + $0xf0] sm:$0xff] %v357_v41  ;;  %378 = vst [vmem:[%s854_s4 + $0x78] sm:$0xff] %v296_v43  ;;  %v360_v48 = vadd.f32 %v471_v46, %v720_v50  ;;  %v351_v49 = vpop.f32.mrb[15].mxu1 }
  0xfb   :  { %391 = vst [vmem:[%s854_s4 + $0xe0] sm:$0xff] %v349_v45  ;;  %376 = vst [vmem:[%s854_s4 + $0x68] sm:$0xff] %v288_v47  ;;  %v352_v51 = vadd.f32 %v720_v50, %v351_v49 }
  0xfc   :  { %394 = vst [vmem:[%s854_s4 + $0xf8] sm:$0xff] %v360_v48 }
  0xfd   :  { %392 = vst [vmem:[%s854_s4 + $0xe8] sm:$0xff] %v352_v51 }

// kernel: _lambda_.26
= control target key start
LH: loop header
LB: loop body
LE: loop exit
PB: predicated region body
PF: predicated region fallthrough
CT: control target
= control target key end

     0   :  { %v600_v6 = vmov 0.0   ;;  %v602_v7 = vmov 0.0   ;;  %v604_v8 = vmov 0.0   ;;  %v606_v9 = vmov 0.0   ;;  %s693_s0 = inlined_call_operand.vmem [shape: f32[16,3,16,16], index: 0, kind: input, shape index: {}]   ;;  %s694_s1 = inlined_call_operand.vmem [shape: f32[16,3,16,16], index: 1, kind: input, shape index: {}]   ;;  %s695_s2 = inlined_call_operand.vmem [shape: f32[16,48], index: 2, kind: input, shape index: {}]   ;;  %s696_s3 = inlined_call_operand.vmem [shape: f32[16,48], index: 3, kind: input, shape index: {}]   ;;  %s697_s4 = inlined_call_operand.vmem [shape: f32[1,16], index: 4, kind: input, shape index: {}]   ;;  %s698_s5 = inlined_call_operand.vmem [shape: f32[1,16], index: 5, kind: input, shape index: {}]   ;;  %s699_s6 = inlined_call_operand.vmem [shape: f32[16,16,16], index: 6, kind: output, shape index: {0}]   ;;  %s700_s7 = inlined_call_operand.vmem [shape: f32[16,16,16], index: 7, kind: output, shape index: {1}]  }
   0x1   :  { %v573_v0 = vld [vmem:[%s695_s2] sm:$0xff]  ;;  %v578_v1 = vld [vmem:[%s695_s2 + $0x8] sm:$0xff]  ;;  %s608_s2 = smov 0  }
   0x2   :  { %v583_v2 = vld [vmem:[%s696_s3] sm:$0xff]  ;;  %v588_v3 = vld [vmem:[%s696_s3 + $0x8] sm:$0xff] }
   0x3   :  { %v593_v4 = vld [vmem:[%s697_s4] ss:$0 sm:$0xff] }
   0x4   :  { %v598_v5 = vld [vmem:[%s698_s5] ss:$0 sm:$0xff] }
   0x5 LB: > { %v412_v10 = vpack.c.bf16 %v578_v1, %v573_v0  ;;  %v416_v11 = vpack.c.bf16 %v588_v3, %v583_v2  ;;  %vm50_vm0 = vcmask 130048   ;;  %s527_s3 = smov 32   ;;  %s528_s4 = smov 112   ;;  %s525_s2 = sphi %s608_s2, %s36_s2   ;;  %v521_v9 = vphi %v606_v9, %v190_v9   ;;  %v517_v8 = vphi %v604_v8, %v191_v8   ;;  %v513_v7 = vphi %v602_v7, %v339_v7   ;;  %v509_v6 = vphi %v600_v6, %v340_v6  }
   0x6   : > { %165 = vrot.lane.b32.xlu0 %v593_v4, %s527_s3  ;;  %402 = vmatprep.mubr.msk.f32.mxu0 %vm50_vm0, %v521_v9  ;;  %s529_s5 = smov 96   ;;  %s41_s13 = ssub.s32 15, %s525_s2 }
   0x7   : > { %413 = vmatprep.subr.bf16.mxu0 %v412_v10  ;;  %417 = vmatprep.subr.bf16.mxu1 %v416_v11  ;;  %s192_s14 = smul.u32 48, %s41_s13  ;;  %s389_s22 = sshll.u32 %s41_s13, 4 }
   0x8   : > { %415 = vmatpush3.bf16.msra.mxu0 %v412_v10  ;;  %419 = vmatpush3.bf16.msra.mxu1 %v416_v11  ;;  %s42_s15 = smul.u32 48, %s525_s2  ;;  %s346_s25 = scalar_lea.vmem %s700_s7, %s389_s22 }
   0x9   : > { %409 = vmatprep.mubr.msk.f32.mxu1 %vm50_vm0, %v513_v7  ;;  %s646_s18 = scalar_lea.vmem %s694_s1, %s192_s14  ;;  %s388_s26 = sshll.u32 %s525_s2, 4 }
   0xa   : > { %314 = vrot.lane.b32.xlu0 %v598_v5, %s527_s3  ;;  %s651_s21 = scalar_lea.vmem %s693_s0, %s42_s15  ;;  %v194_v22 = vld [vmem:[%s646_s18] sm:$0xff]  ;;  %v195_v28 = vld [vmem:[%s646_s18 + $0x8] sm:$0xff]  ;;  %v196_v35 = vld [vmem:[%s646_s18 + $0x10] sm:$0xff]  ;;  %s342_s29 = scalar_lea.vmem %s699_s6, %s388_s26 }
   0xb   : > { %403 = vmatmul.mubr.msk.f32.vlgmr.msra.gmra.mrb[0].mxu0 %vm50_vm0, %v517_v8  ;;  %410 = vmatmul.mubr.msk.f32.vlgmr.msra.gmra.mrb[0].mxu1 %vm50_vm0, %v509_v6  ;;  %v44_v23 = vld [vmem:[%s651_s21] sm:$0xff]  ;;  %v45_v24 = vld [vmem:[%s651_s21 + $0x8] sm:$0xff]  ;;  %v47_v34 = vld [vmem:[%s651_s21 + $0x18] sm:$0xff]  ;;  %s36_s2 = sadd.s32 1, %s525_s2  }
   0xc   : > { %v197_v42 = vld [vmem:[%s646_s18 + $0x18] sm:$0xff]  ;;  %v46_v51 = vld [vmem:[%s651_s21 + $0x10] sm:$0xff]  ;;  %v198_v59 = vld [vmem:[%s646_s18 + $0x20] sm:$0xff]  ;;  %p33_p0 = scmp.ge.s32.totalorder %s36_s2, 16  }
  0x78   : > { %v166_v12 = vpop.permute.xlu0 %165 }
  0x7c   : > { %v315_v18 = vpop.permute.xlu0 %314 }
  0xde   : > { %v404_v13 = vpop.f32.mrb[0].mxu0  ;;  %v411_v14 = vpop.f32.mrb[0].mxu1 }
  0xdf   : > { %146 = vrot.lane.b32.xlu1 %v404_v13, %s528_s4  ;;  %v123_v15 = vpop.f32.mrb[1].mxu0  ;;  %v272_v16 = vpop.f32.mrb[1].mxu1  ;;  %v169_v20 = vadd.f32 %v404_v13, %v166_v12  ;;  %v318_v21 = vadd.f32 %v411_v14, %v315_v18  ;;  %v133_v27 = vadd.f32 %v404_v13, %v45_v24  ;;  %v282_v32 = vadd.f32 %v411_v14, %v195_v28 }
  0xe0   : > { %293 = vrot.lane.b32.xlu0 %v272_v16, %s528_s4  ;;  %v168_v17 = vadd.f32 %v166_v12, %v123_v15  ;;  %v317_v19 = vadd.f32 %v315_v18, %v272_v16  ;;  %v281_v25 = vadd.f32 %v272_v16, %v194_v22  ;;  %v132_v26 = vadd.f32 %v123_v15, %v44_v23  ;;  %v48_v12 = vld [vmem:[%s651_s21 + $0x20] sm:$0xff]  ;;  %v199_v22 = vld [vmem:[%s646_s18 + $0x28] sm:$0xff] }
  0xe1   : > { %v135_v31 = vmul.f32 0.5, %v133_v27  ;;  %v284_v33 = vmul.f32 0.5, %v282_v32 }
  0xe2   : > { %v283_v29 = vmul.f32 0.5, %v281_v25  ;;  %v134_v30 = vmul.f32 0.5, %v132_v26 }
  0xe3   : > { %295 = vrot.lane.b32.xlu1 %v411_v14, %s528_s4  ;;  %v49_v14 = vld [vmem:[%s651_s21 + $0x28] sm:$0xff] }
  0xe4   : > { %172 = vrot.lane.b32.xlu0 %v168_v17, %s529_s5  ;;  %463 = vtanh.f32 %v283_v29 }
  0xe5   : > { %465 = vtanh.f32 %v134_v30 }
  0xe6   : > { %467 = vtanh.f32 %v135_v31 }
  0xe7   : > { %144 = vrot.lane.b32.xlu1 %v123_v15, %s528_s4  ;;  %469 = vtanh.f32 %v284_v33 }
  0xe8   : > { %321 = vrot.lane.b32.xlu0 %v317_v19, %s529_s5 }
  0xeb   : > { %174 = vrot.lane.b32.xlu1 %v169_v20, %s529_s5 }
  0xee   : > { %v464_v37 = vpop.eup %463 }
  0xef   : > { %323 = vrot.lane.b32.xlu1 %v318_v21, %s529_s5  ;;  %v466_v40 = vpop.eup %465  ;;  %v287_v47 = vadd.f32 1.0, %v464_v37 }
  0xf0   : > { %v468_v44 = vpop.eup %467  ;;  %v138_v49 = vadd.f32 1.0, %v466_v40 }
  0xf1   : > { %v139_v53 = vadd.f32 1.0, %v468_v44  ;;  %v470_v54 = vpop.eup %469  ;;  %v289_v56 = vmul.f32 0.5, %v287_v47 }
  0xf2   : > { %v140_v57 = vmul.f32 0.5, %v138_v49  ;;  %v288_v11 = vadd.f32 1.0, %v470_v54 }
  0xf3   : > { %v141_v10 = vmul.f32 0.5, %v139_v53 }
  0xf4   : > { %v290_v20 = vmul.f32 0.5, %v288_v11 }
 0x151   : > { %v147_v36 = vpop.permute.xlu1 %146 }
 0x152   : > { %v151_v38 = vadd.f32 %v147_v36, %v47_v34  ;;  %v294_v39 = vpop.permute.xlu0 %293 }
 0x153   : > { %v299_v41 = vadd.f32 %v294_v39, %v196_v35 }
 0x154   : > { %v153_v43 = vmul.f32 0.5, %v151_v38 }
 0x155   : > { %v301_v45 = vmul.f32 0.5, %v299_v41  ;;  %v296_v46 = vpop.permute.xlu1 %295 }
 0x156   : > { %471 = vtanh.f32 %v153_v43  ;;  %v300_v48 = vadd.f32 %v296_v46, %v197_v42  ;;  %v173_v50 = vpop.permute.xlu0 %172 }
 0x157   : > { %473 = vtanh.f32 %v301_v45  ;;  %v178_v62 = vmul.f32 %v173_v50, %v140_v57 }
 0x158   : > { %v302_v52 = vmul.f32 0.5, %v300_v48 }
 0x159   : > { %v145_v55 = vpop.permute.xlu1 %144  ;;  %v180_v18 = vadd.f32 %v178_v62, %v48_v12 }
 0x15a   : > { %475 = vtanh.f32 %v302_v52  ;;  %v150_v58 = vadd.f32 %v145_v55, %v46_v51  ;;  %v322_v60 = vpop.permute.xlu0 %321 }
 0x15b   : > { %v327_v61 = vmul.f32 %v322_v60, %v289_v56 }
 0x15c   : > { %v152_v63 = vmul.f32 0.5, %v150_v58 }
 0x15d   : > { %v329_v13 = vadd.f32 %v327_v61, %v198_v59  ;;  %v175_v15 = vpop.permute.xlu1 %174 }
 0x15e   : > { %477 = vtanh.f32 %v152_v63  ;;  %v179_v16 = vmul.f32 %v175_v15, %v141_v10 }
 0x15f   : > { %479 = vtanh.f32 %v329_v13 }
 0x160   : > { %v472_v17 = vpop.eup %471  ;;  %v181_v19 = vadd.f32 %v179_v16, %v49_v14 }
 0x161   : > { %v474_v21 = vpop.eup %473  ;;  %v324_v23 = vpop.permute.xlu1 %323  ;;  %v157_v26 = vadd.f32 1.0, %v472_v17 }
 0x162   : > { %v305_v24 = vadd.f32 1.0, %v474_v21  ;;  %481 = vtanh.f32 %v181_v19  ;;  %v328_v25 = vmul.f32 %v324_v23, %v290_v20 }
 0x163   : > { %483 = vtanh.f32 %v180_v18  ;;  %v159_v31 = vmul.f32 0.5, %v157_v26 }
 0x164   : > { %v476_v27 = vpop.eup %475  ;;  %v307_v28 = vmul.f32 0.5, %v305_v24  ;;  %v330_v29 = vadd.f32 %v328_v25, %v199_v22 }
 0x165   : > { %v306_v32 = vadd.f32 1.0, %v476_v27  ;;  %v185_v38 = vsub.f32 1.0, %v159_v31  ;;  %v189_v42 = vmul.f32 %v517_v8, %v159_v31 }
 0x166   : > { %v333_v30 = vsub.f32 1.0, %v307_v28  ;;  %485 = vtanh.f32 %v330_v29  ;;  %v337_v34 = vmul.f32 %v513_v7, %v307_v28 }
 0x167   : > { %v308_v39 = vmul.f32 0.5, %v306_v32 }
 0x168   : > { %v478_v33 = vpop.eup %477 }
 0x169   : > { %v480_v35 = vpop.eup %479  ;;  %v156_v36 = vadd.f32 1.0, %v478_v33  ;;  %v334_v46 = vsub.f32 1.0, %v308_v39  ;;  %v338_v50 = vmul.f32 %v509_v6, %v308_v39 }
 0x16a   : > { %v335_v37 = vmul.f32 %v480_v35, %v333_v30 }
 0x16b   : > { %v158_v40 = vmul.f32 0.5, %v156_v36 }
 0x16c   : > { %v482_v41 = vpop.eup %481  ;;  %v339_v7 = vadd.f32 %v337_v34, %v335_v37  }
 0x16d   : > { %v184_v43 = vsub.f32 1.0, %v158_v40  ;;  %v187_v44 = vmul.f32 %v482_v41, %v185_v38  ;;  %v484_v45 = vpop.eup %483  ;;  %v188_v48 = vmul.f32 %v521_v9, %v158_v40 }
 0x16e   : > { %347 = vst.msk [vmem:[%s346_s25] sm:$0xff] %vm50_vm0, %v339_v7 }
 0x16f   : > { %v186_v47 = vmul.f32 %v484_v45, %v184_v43  ;;  %v191_v8 = vadd.f32 %v189_v42, %v187_v44   ;;  %35 = sbr.rel (!%p33_p0) target bundleno = 5 (0x5), region = 63 }
 0x170   : > { %v486_v49 = vpop.eup %485 }
 0x171   : > { %v190_v9 = vadd.f32 %v188_v48, %v186_v47   ;;  %344 = vst.msk [vmem:[%s342_s29 + $0x8] sm:$0xff] %vm50_vm0, %v191_v8  ;;  %v336_v51 = vmul.f32 %v486_v49, %v334_v46 }
 0x173   : > { %343 = vst.msk [vmem:[%s342_s29] sm:$0xff] %vm50_vm0, %v190_v9  ;;  %v340_v6 = vadd.f32 %v338_v50, %v336_v51  }
 0x175   : > { %348 = vst.msk [vmem:[%s346_s25 + $0x8] sm:$0xff] %vm50_vm0, %v340_v6 }

// kernel: _lambda_.35
= control target key start
LH: loop header
LB: loop body
LE: loop exit
PB: predicated region body
PF: predicated region fallthrough
CT: control target
= control target key end

     0   :  { %9 = vsyncpa [#allocation4], 0  ;;  %s2014_s0 = inlined_call_operand.vmem [shape: f32[2,10,18,32], index: 0, kind: input, shape index: {}]   ;;  %s2015_s1 = inlined_call_operand.vmem [shape: bf16[3,3,32,32], index: 1, kind: input, shape index: {}]   ;;  %s2016_s2 = inlined_call_operand.vmem [shape: f32[1,32], index: 2, kind: input, shape index: {}]   ;;  %s2017_s3 = inlined_call_operand.vmem [shape: f32[2,128,32], index: 3, kind: input, shape index: {}]   ;;  %s2018_s4 = inlined_call_operand.hbm [shape: f32[2,128,32], index: 4, kind: output, shape index: {}]  }
   0x1   :  { %11 = vsyncpa [#allocation4 + $0x1], 0  ;;  %s1547_s15 = smov 0   ;;  %s1549_s16 = smov 0  }
   0x2   :  { %s1551_s17 = smov 0   ;;  %s1553_s18 = smov 0  }
   0x3   :  { %s1555_s19 = smov 0   ;;  %s1557_s20 = smov 0  }
   0x4   :  { %s1559_s21 = smov 0   ;;  %s1561_s22 = smov 0  }
   0x5 LB: > { %2022 = sst [smem:[#allocation6_spill]] %s1512_s21  ;;  %s1140_s23 = sadd.s32 4294967295, %s1516_s22   ;;  %s1516_s22 = sphi %s1561_s22, %s17_s22   ;;  %s1512_s21 = sphi %s1559_s21, %s2030_s21   ;;  %s1508_s20 = sphi %s1557_s20, %s2035_s20   ;;  %s1504_s19 = sphi %s1555_s19, %s2028_s19   ;;  %s1500_s18 = sphi %s1553_s18, %s2034_s18   ;;  %s1496_s17 = sphi %s1551_s17, %s2033_s17   ;;  %s1492_s16 = sphi %s1549_s16, %s2032_s16   ;;  %s1488_s15 = sphi %s1547_s15, %s2031_s15  }
   0x6   : > { %s1141_s24 = sadd.s32 4294967294, %s1516_s22   ;;  %s26_s25 = sadd.s32 1, %s1508_s20 }
   0x7   : > { %p27_p0 = scmp.ge.s32.totalorder %s26_s25, 3  ;;  %s29_s26 = sadd.s32 1, %s1512_s21 }
   0x8   : > { %p145_p1 = scmp.ne.s32.totalorder %s1496_s17, %s1492_s16  ;;  %p146_p2 = scmp.eq.s32.totalorder %s1140_s23, 5 }
   0x9   : > { %s2037_s25 = smov (%p27_p0, %s26_s25), 0  ;;  %s2039_s26 = smov (!%p27_p0, %s29_s26), %s1512_s21 }
   0xa   : > { %2023 = sst [smem:[#allocation7_spill]] %s2037_s25  ;;  %p1596_p3 = por %p146_p2, %p145_p1 }
   0xb   : > { %p151_p4 = scmp.ne.s32.totalorder %s1492_s16, %s1488_s15  ;;  %p31_p5 = scmp.ge.s32.totalorder %s2039_s26, 2 }
   0xc   : > { %p152_p6 = scmp.eq.s32.totalorder %s1141_s24, 5  ;;  %p1144_p7 = scmp.ge.s32.totalorder %s1516_s22, 1 }
   0xd   : > { %p197_p8 = scmp.lt.s32.totalorder %s1516_s22, 7  ;;  %s2041_s26 = smov (%p31_p5, %s2039_s26), 0 }
   0xe   : > { %2025 = sst [smem:[#allocation8_spill]] %s2041_s26  ;;  %p1606_p9 = por %p152_p6, %p151_p4 }
   0xf   : > { %p198_p10 = pnand %p1144_p7, %p197_p8  ;;  %s132_s29 = ssub.s32 %s1512_s21, %s2041_s26 }
  0x10   : > { %s135_s30 = sadd.s32 1, %s1496_s17  ;;  %p133_p11 = scmp.eq.s32.totalorder %s132_s29, 0 }
  0x11   : > { %201 = sbr.rel (%p198_p10) target bundleno = 334 (0x14e), region = 36  ;;  %s2020_s6 = sand.u32 (!%p198_p10), 1, %s1492_s16  }
  0x12   : > { %s1614_s5 = scalar_select %p133_p11, %s1496_s17, %s135_s30  }
  0x13   : > { %p233_p12 = scmp.lt.s32.totalorder (!%p198_p10), %s1504_s19, 1  ;;  %s1145_s7 = sshll.u32 (!%p198_p10), %s2020_s6, 7 }
  0x14   : > { %p238_p13 = scmp.lt.s32.totalorder (!%p198_p10), %s1500_s18, 2  ;;  %s1638_s21 = scalar_lea.vmem (!%p198_p10), [#allocation3], %s1145_s7 }
  0x15   : > { %p1150_p0 = scmp.ne.s32.totalorder (!%p198_p10), %s1500_s18, 0 }
  0x18   : > { %s234_s8 = scalar_select %p233_p12, %s1504_s19, 1 }
  0x19   : > { %s239_s9 = scalar_select %p238_p13, %s1500_s18, 2 }
  0x1a   : > { %s1340_s10 = smul.u32 240, %s234_s8  ;;  %s1196_s11 = sshll.u32 %s234_s8, 7  ;;  %vm253_vm0 = vcmask (!%p1150_p0), 261120   ;;  %v1518_v0 = vmov (!%p1150_p0), 0.0  }
  0x1b   : > { %s1341_s12 = smul.u32 48, %s239_s9  ;;  %s1626_s23 = scalar_lea.vmem %s2017_s3, %s1196_s11  ;;  %254 = vst.msk [vmem:[#allocation2] sm:$0xff] (!%p1150_p0), %vm253_vm0, %v1518_v0  ;;  %255 = vst.msk [vmem:[#allocation2 + $0x8] sm:$0xff] (!%p1150_p0), %vm253_vm0, %v1518_v0 }
  0x1c   : > { %s1631_s30 = scalar_lea.vmem %s2014_s0, %s1340_s10  ;;  %252 = sbr.rel (%p1150_p0) target bundleno = 35 (0x23), region = 40  ;;  %256 = vst.msk [vmem:[#allocation2 + $0x10] sm:$0xff] (!%p1150_p0), %vm253_vm0, %v1518_v0  ;;  %257 = vst.msk [vmem:[#allocation2 + $0x18] sm:$0xff] (!%p1150_p0), %vm253_vm0, %v1518_v0 }
  0x1d   : > { %s1636_s6 = scalar_lea.vmem %s2015_s1, %s1341_s12  ;;  %258 = vst.msk [vmem:[#allocation2 + $0x20] sm:$0xff] (!%p1150_p0), %vm253_vm0, %v1518_v0  ;;  %259 = vst.msk [vmem:[#allocation2 + $0x28] sm:$0xff] (!%p1150_p0), %vm253_vm0, %v1518_v0 }
  0x1e   : > { %260 = vst.msk [vmem:[#allocation2 + $0x30] sm:$0xff] (!%p1150_p0), %vm253_vm0, %v1518_v0  ;;  %261 = vst.msk [vmem:[#allocation2 + $0x38] sm:$0xff] (!%p1150_p0), %vm253_vm0, %v1518_v0 }
  0x1f   : > { %262 = vst.msk [vmem:[#allocation2 + $0x40] sm:$0xff] (!%p1150_p0), %vm253_vm0, %v1518_v0  ;;  %263 = vst.msk [vmem:[#allocation2 + $0x48] sm:$0xff] (!%p1150_p0), %vm253_vm0, %v1518_v0 }
  0x20   : > { %264 = vst.msk [vmem:[#allocation2 + $0x50] sm:$0xff] (!%p1150_p0), %vm253_vm0, %v1518_v0  ;;  %265 = vst.msk [vmem:[#allocation2 + $0x58] sm:$0xff] (!%p1150_p0), %vm253_vm0, %v1518_v0 }
  0x21   : > { %266 = vst.msk [vmem:[#allocation2 + $0x60] sm:$0xff] (!%p1150_p0), %vm253_vm0, %v1518_v0  ;;  %267 = vst.msk [vmem:[#allocation2 + $0x68] sm:$0xff] (!%p1150_p0), %vm253_vm0, %v1518_v0 }
  0x22   : > { %268 = vst.msk [vmem:[#allocation2 + $0x70] sm:$0xff] (!%p1150_p0), %vm253_vm0, %v1518_v0  ;;  %269 = vst.msk [vmem:[#allocation2 + $0x78] sm:$0xff] (!%p1150_p0), %vm253_vm0, %v1518_v0 }
  0x23 PF: > { %v1416_v1 = vld [vmem:[%s1636_s6] sm:$0xff]   ;;  %s270_s25 = smul.u32 24, %s1500_s18  ;;  %v1417_v2 = vld [vmem:[%s1636_s6 + $0x10] sm:$0xff]   ;;  %v1418_v3 = vld [vmem:[%s1636_s6 + $0x8] sm:$0xff]   ;;  %vm336_vm1 = vcmask 261120   ;;  %vm498_vm2 = vcmask 1046528  }
  0x24   : > { %1228 = vmatprep.subr.bf16.mxu1 %v1416_v1  ;;  %1248 = vmatprep.subr.bf16.mxu0 %v1417_v2  ;;  %v1665_v4 = vld [vmem:[%s1636_s6 + $0x18] sm:$0xff]   ;;  %v1420_v13 = vld [vmem:[%s1636_s6 + $0x20] sm:$0xff]   ;;  %vm717_vm3 = vcmask 1045504   ;;  %v1421_v38 = vld [vmem:[%s1636_s6 + $0x28] sm:$0xff]   ;;  %p1189_p1 = scmp.ne.s32.totalorder %s1500_s18, 2 }
  0x25   : > { %s1662_s26 = scalar_lea.vmem %s1631_s30, %s270_s25  ;;  %1229 = vmatpush3.bf16.msra.mxu1 %v1416_v1  ;;  %1249 = vmatpush3.bf16.msra.mxu0 %v1417_v2 }
  0x26   : > { %1230 = vmatprep.subr.bf16.mxu1 %v1418_v3  ;;  %v1668_v5 = vld [vmem:[%s1662_s26] sm:$0xff]  ;;  %v1671_v6 = vld [vmem:[%s1662_s26 + $0x8] sm:$0xff]  ;;  %v1674_v7 = vld [vmem:[%s1662_s26 + $0x10] sm:$0x3]  ;;  %1250 = vmatprep.subr.bf16.mxu0 %v1665_v4 }
  0x27   : > { %v312_v8 = vpack.c.bf16 %v1671_v6, %v1668_v5  ;;  %v499_v9 = vrot.slane %v1668_v5, 1  ;;  %v500_v10 = vrot.slane %v1671_v6, 1  ;;  %v1682_v11 = vld [vmem:[%s1662_s26 + $0x18] sm:$0xff]  ;;  %v1685_v12 = vld [vmem:[%s1662_s26 + $0x20] sm:$0xff]  ;;  %v502_v14 = vrot.slane %v1674_v7, 1  ;;  %v1695_v17 = vld [vmem:[%s1662_s26 + $0x30] sm:$0xff] }
  0x28   : > { %v313_v15 = vpack.c.bf16 %v1685_v12, %v1682_v11  ;;  %v1692_v16 = vld [vmem:[%s1662_s26 + $0x28] sm:$0x3]  ;;  %v504_v19 = vrot.slane %v1682_v11, 1  ;;  %v505_v20 = vrot.slane %v1685_v12, 1  ;;  %v1702_v21 = vld [vmem:[%s1662_s26 + $0x38] sm:$0xff]  ;;  %v509_v28 = vrot.slane %v1695_v17, 1 }
  0x29   : > { %1231 = vmatpush3.bf16.msra.mxu1 %v1418_v3  ;;  %1232 = vmatprep.mubr.msk.bf16.mxu1 %vm336_vm1, %v312_v8  ;;  %v501_v18 = vsel %vm498_vm2, %v499_v9, %v500_v10  ;;  %v503_v22 = vsel %vm498_vm2, %v500_v10, %v502_v14  ;;  %v507_v23 = vrot.slane %v1692_v16, 1  ;;  %v1708_v24 = vld [vmem:[%s1662_s26 + $0x48] sm:$0xff]  ;;  %v314_v27 = vpack.c.bf16 %v1702_v21, %v1695_v17  ;;  %v280_v29 = vld [vmem:[%s1662_s26 + $0x40] sm:$0x3]  ;;  %v1716_v30 = vld [vmem:[%s1662_s26 + $0x50] sm:$0xff] }
  0x2a   : > { %1251 = vmatpush3.bf16.msra.mxu0 %v1665_v4  ;;  %1288 = vmatprep.subr.bf16.mxu1 %v1417_v2  ;;  %v555_v25 = vpack.c.bf16 %v503_v22, %v501_v18  ;;  %v506_v26 = vsel %vm498_vm2, %v504_v19, %v505_v20  ;;  %v1719_v31 = vld [vmem:[%s1662_s26 + $0x58] sm:$0x3]  ;;  %v510_v33 = vrot.slane %v1702_v21, 1  ;;  %v718_v34 = vrot.slane %v1668_v5, 2  ;;  %v1734_v43 = vld [vmem:[%s1662_s26 + $0x60] sm:$0xff]  ;;  %v1737_v44 = vld [vmem:[%s1662_s26 + $0x68] sm:$0xff] }
  0x2b   : > { %1268 = vmatprep.subr.bf16.mxu0 %v1420_v13  ;;  %v508_v32 = vsel %vm498_vm2, %v505_v20, %v507_v23  ;;  %v719_v35 = vrot.slane %v1671_v6, 2  ;;  %v512_v37 = vrot.slane %v280_v29, 1  ;;  %v721_v39 = vrot.slane %v1674_v7, 2  ;;  %v1761_v61 = vld [vmem:[%s1662_s26 + $0x78] sm:$0xff]  ;;  %v1764_v62 = vld [vmem:[%s1662_s26 + $0x80] sm:$0xff]  ;;  %v1767_v63 = vld [vmem:[%s1662_s26 + $0x90] sm:$0xff] }
  0x2c   : > { %1233 = vmatmul.mubr.msk.bf16.vlgmr.msra.gmra.mrb[0].mxu1 %vm336_vm1, %v313_v15  ;;  %1252 = vmatprep.mubr.msk.bf16.mxu0 %vm336_vm1, %v555_v25  ;;  %v556_v36 = vpack.c.bf16 %v508_v32, %v506_v26  ;;  %v511_v40 = vsel %vm498_vm2, %v509_v28, %v510_v33  ;;  %v514_v41 = vrot.slane %v1708_v24, 1  ;;  %v515_v42 = vrot.slane %v1716_v30, 1  ;;  %v1770_v0 = vld [vmem:[%s1662_s26 + $0x98] sm:$0xff]  ;;  %v293_v19 = vld [vmem:[%s1662_s26 + $0xa8] sm:$0xff]  ;;  %v294_v20 = vld [vmem:[%s1662_s26 + $0xb0] sm:$0xff] }
  0x2d   : > { %1290 = vmatpush3.bf16.msra.mxu1 %v1417_v2  ;;  %1236 = vmatprep.mubr.msk.bf16.mxu1 %vm336_vm1, %v314_v27  ;;  %v513_v45 = vsel %vm498_vm2, %v510_v33, %v512_v37  ;;  %v517_v46 = vrot.slane %v1719_v31, 1  ;;  %v315_v48 = vpack.c.bf16 %v1716_v30, %v1708_v24  ;;  %v316_v51 = vpack.c.bf16 %v1737_v44, %v1734_v43  ;;  %v286_v2 = vld [vmem:[%s1662_s26 + $0x70] sm:$0x3]  ;;  %v289_v22 = vld [vmem:[%s1662_s26 + $0x88] sm:$0x3] }
  0x2e   : > { %1289 = vmatprep.subr.bf16.mxu1 %v1665_v4  ;;  %1253 = vmatmul.mubr.msk.bf16.vlgmr.msra.gmra.mrb[0].mxu0 %vm336_vm1, %v556_v36  ;;  %v557_v47 = vpack.c.bf16 %v513_v45, %v511_v40  ;;  %v516_v49 = vsel %vm498_vm2, %v514_v41, %v515_v42  ;;  %v720_v52 = vsel %vm717_vm3, %v718_v34, %v719_v35  ;;  %v723_v55 = vrot.slane %v1682_v11, 2  ;;  %v292_v26 = vld [vmem:[%s1662_s26 + $0xa0] sm:$0x3] }
  0x2f   : > { %1269 = vmatpush3.bf16.msra.mxu0 %v1420_v13  ;;  %v518_v50 = vsel %vm498_vm2, %v515_v42, %v517_v46  ;;  %v722_v53 = vsel %vm717_vm3, %v719_v35, %v721_v39  ;;  %v724_v56 = vrot.slane %v1685_v12, 2  ;;  %v726_v57 = vrot.slane %v1692_v16, 2 }
  0x30   : > { %1270 = vmatprep.subr.bf16.mxu0 %v1421_v38  ;;  %1256 = vmatprep.mubr.msk.bf16.mxu0 %vm336_vm1, %v557_v47  ;;  %v558_v54 = vpack.c.bf16 %v518_v50, %v516_v49  ;;  %v774_v58 = vpack.c.bf16 %v722_v53, %v720_v52  ;;  %v728_v59 = vrot.slane %v1695_v17, 2  ;;  %v729_v60 = vrot.slane %v1702_v21, 2  ;;  %v295_v50 = vld [vmem:[%s1662_s26 + $0xb8] sm:$0x3] }
  0x31   : > { %1291 = vmatpush3.bf16.msra.mxu1 %v1665_v4  ;;  %v731_v1 = vrot.slane %v280_v29, 2  ;;  %v725_v3 = vsel %vm717_vm3, %v723_v55, %v724_v56  ;;  %v317_v4 = vpack.c.bf16 %v1764_v62, %v1761_v61  ;;  %v727_v5 = vsel %vm717_vm3, %v724_v56, %v726_v57 }
  0x32   : > { %v318_v6 = vpack.c.bf16 %v1770_v0, %v1767_v63  ;;  %v730_v7 = vsel %vm717_vm3, %v728_v59, %v729_v60  ;;  %v519_v9 = vrot.slane %v1734_v43, 1  ;;  %v520_v10 = vrot.slane %v1737_v44, 1 }
  0x33   : > { %1271 = vmatpush3.bf16.msra.mxu0 %v1421_v38  ;;  %v732_v8 = vsel %vm717_vm3, %v729_v60, %v731_v1  ;;  %v522_v11 = vrot.slane %v286_v2, 1  ;;  %v775_v12 = vpack.c.bf16 %v727_v5, %v725_v3  ;;  %v733_v13 = vrot.slane %v1708_v24, 2 }
  0x34   : > { %1237 = vmatmul.mubr.msk.bf16.gmra.mrb[4].mxu1 %vm336_vm1, %v315_v48  ;;  %v734_v14 = vrot.slane %v1716_v30, 2  ;;  %v776_v15 = vpack.c.bf16 %v732_v8, %v730_v7  ;;  %v736_v16 = vrot.slane %v1719_v31, 2  ;;  %v738_v17 = vrot.slane %v1734_v43, 2 }
  0x35   : > { %1240 = vmatprep.mubr.msk.bf16.mxu1 %vm336_vm1, %v316_v51  ;;  %v739_v18 = vrot.slane %v1737_v44, 2  ;;  %v741_v21 = vrot.slane %v286_v2, 2  ;;  %v521_v23 = vsel %vm498_vm2, %v519_v9, %v520_v10  ;;  %v523_v24 = vsel %vm498_vm2, %v520_v10, %v522_v11 }
  0x36   : > { %1257 = vmatmul.mubr.msk.bf16.gmra.mrb[4].mxu0 %vm336_vm1, %v558_v54  ;;  %v524_v25 = vrot.slane %v1761_v61, 1  ;;  %v525_v27 = vrot.slane %v1764_v62, 1  ;;  %v319_v28 = vpack.c.bf16 %v294_v20, %v293_v19  ;;  %v735_v29 = vsel %vm717_vm3, %v733_v13, %v734_v14 }
  0x37   : > { %1272 = vmatprep.mubr.msk.bf16.mxu0 %vm336_vm1, %v774_v58  ;;  %v737_v30 = vsel %vm717_vm3, %v734_v14, %v736_v16  ;;  %v527_v31 = vrot.slane %v289_v22, 1  ;;  %v559_v32 = vpack.c.bf16 %v523_v24, %v521_v23  ;;  %v740_v33 = vsel %vm717_vm3, %v738_v17, %v739_v18  ;;  %v296_v16 = vld [vmem:[#allocation2] sm:$0xff]  ;;  %v299_v17 = vld [vmem:[#allocation2 + $0x18] sm:$0xff] }
  0x38   : > { %v742_v34 = vsel %vm717_vm3, %v739_v18, %v741_v21  ;;  %v529_v35 = vrot.slane %v1767_v63, 1  ;;  %v530_v36 = vrot.slane %v1770_v0, 1  ;;  %v532_v37 = vrot.slane %v292_v26, 1 }
  0x39   : > { %v743_v38 = vrot.slane %v1761_v61, 2  ;;  %v777_v39 = vpack.c.bf16 %v737_v30, %v735_v29  ;;  %v526_v40 = vsel %vm498_vm2, %v524_v25, %v525_v27  ;;  %v744_v41 = vrot.slane %v1764_v62, 2  ;;  %v302_v30 = vld [vmem:[#allocation2 + $0x30] sm:$0xff] }
  0x3a   : > { %v778_v42 = vpack.c.bf16 %v742_v34, %v740_v33  ;;  %v746_v43 = vrot.slane %v289_v22, 2  ;;  %v528_v44 = vsel %vm498_vm2, %v525_v27, %v527_v31  ;;  %v748_v45 = vrot.slane %v1767_v63, 2  ;;  %v303_v33 = vld [vmem:[#allocation2 + $0x38] sm:$0xff] }
  0x3b   : > { %v749_v46 = vrot.slane %v1770_v0, 2  ;;  %v751_v47 = vrot.slane %v292_v26, 2  ;;  %v531_v48 = vsel %vm498_vm2, %v529_v35, %v530_v36  ;;  %v533_v49 = vsel %vm498_vm2, %v530_v36, %v532_v37  ;;  %v301_v35 = vld [vmem:[#allocation2 + $0x28] sm:$0xff] }
  0x3c   : > { %1241 = vmatmul.mubr.msk.bf16.gmra.mrb[8].mxu1 %vm336_vm1, %v317_v4  ;;  %v534_v51 = vrot.slane %v293_v19, 1  ;;  %v535_v52 = vrot.slane %v294_v20, 1  ;;  %v560_v53 = vpack.c.bf16 %v528_v44, %v526_v40  ;;  %v745_v54 = vsel %vm717_vm3, %v743_v38, %v744_v41 }
  0x3d   : > { %1244 = vmatprep.mubr.msk.bf16.mxu1 %vm336_vm1, %v318_v6  ;;  %v747_v55 = vsel %vm717_vm3, %v744_v41, %v746_v43  ;;  %v561_v56 = vpack.c.bf16 %v533_v49, %v531_v48  ;;  %v750_v57 = vsel %vm717_vm3, %v748_v45, %v749_v46  ;;  %v752_v58 = vsel %vm717_vm3, %v749_v46, %v751_v47  ;;  %v306_v46 = vld [vmem:[#allocation2 + $0x50] sm:$0xff]  ;;  %v304_v48 = vld [vmem:[#allocation2 + $0x40] sm:$0xff] }
  0x3e   : > { %1273 = vmatmul.mubr.msk.bf16.vlgmr.msra.gmra.mrb[0].mxu0 %vm336_vm1, %v775_v12  ;;  %v537_v59 = vrot.slane %v295_v50, 1  ;;  %v779_v60 = vpack.c.bf16 %v747_v55, %v745_v54  ;;  %v753_v61 = vrot.slane %v293_v19, 2  ;;  %v754_v62 = vrot.slane %v294_v20, 2  ;;  %v297_v19 = vld [vmem:[#allocation2 + $0x8] sm:$0xff] }
  0x3f   : > { %1276 = vmatprep.mubr.msk.bf16.mxu0 %vm336_vm1, %v776_v15  ;;  %v780_v63 = vpack.c.bf16 %v752_v58, %v750_v57  ;;  %v756_v0 = vrot.slane %v295_v50, 2  ;;  %v536_v1 = vsel %vm498_vm2, %v534_v51, %v535_v52  ;;  %v298_v15 = vld [vmem:[#allocation2 + $0x10] sm:$0xff]  ;;  %v307_v50 = vld [vmem:[#allocation2 + $0x58] sm:$0xff] }
  0x40   : > { %v538_v2 = vsel %vm498_vm2, %v535_v52, %v537_v59  ;;  %v755_v4 = vsel %vm717_vm3, %v753_v61, %v754_v62 }
  0x41   : > { %v562_v3 = vpack.c.bf16 %v538_v2, %v536_v1  ;;  %v757_v5 = vsel %vm717_vm3, %v754_v62, %v756_v0  ;;  %v310_v2 = vld [vmem:[#allocation2 + $0x70] sm:$0xff] }
  0x42   : > { %v781_v6 = vpack.c.bf16 %v757_v5, %v755_v4  ;;  %v308_v4 = vld [vmem:[#allocation2 + $0x60] sm:$0xff] }
  0x44   : > { %1245 = vmatmul.mubr.msk.bf16.gmra.mrb[12].mxu1 %vm336_vm1, %v319_v28 }
  0x45   : > { %1260 = vmatprep.mubr.msk.bf16.mxu1 %vm336_vm1, %v559_v32  ;;  %v300_v32 = vld [vmem:[#allocation2 + $0x20] sm:$0xff] }
  0x46   : > { %1277 = vmatmul.mubr.msk.bf16.gmra.mrb[4].mxu0 %vm336_vm1, %v777_v39 }
  0x47   : > { %1280 = vmatprep.mubr.msk.bf16.mxu0 %vm336_vm1, %v778_v42 }
  0x4c   : > { %1261 = vmatmul.mubr.msk.bf16.vlgmr.msra.gmra.mrb[8].mxu1 %vm336_vm1, %v560_v53  ;;  %v305_v53 = vld [vmem:[#allocation2 + $0x48] sm:$0xff] }
  0x4d   : > { %1264 = vmatprep.mubr.msk.bf16.mxu1 %vm336_vm1, %v561_v56 }
  0x4e   : > { %1281 = vmatmul.mubr.msk.bf16.gmra.mrb[8].mxu0 %vm336_vm1, %v779_v60 }
  0x4f   : > { %1284 = vmatprep.mubr.msk.bf16.mxu0 %vm336_vm1, %v780_v63 }
  0x54   : > { %1265 = vmatmul.mubr.msk.bf16.gmra.mrb[12].mxu1 %vm336_vm1, %v562_v3 }
  0x56   : > { %1285 = vmatmul.mubr.msk.bf16.gmra.mrb[12].mxu0 %vm336_vm1, %v781_v6  ;;  %v311_v6 = vld [vmem:[#allocation2 + $0x78] sm:$0xff] }
  0xff   : > { %v1234_v7 = vpop.f32.mrb[0].mxu1 }
 0x100   : > { %v395_v8 = vpop.f32.mrb[1].mxu1  ;;  %v460_v18 = vadd.f32 %v1234_v7, %v298_v15 }
 0x101   : > { %v1235_v9 = vpop.f32.mrb[2].mxu1  ;;  %v458_v20 = vadd.f32 %v395_v8, %v296_v16 }
 0x102   : > { %v398_v10 = vpop.f32.mrb[3].mxu1  ;;  %v461_v22 = vadd.f32 %v1235_v9, %v299_v17  ;;  %v309_v9 = vld [vmem:[#allocation2 + $0x68] sm:$0xff] }
 0x103   : > { %v459_v25 = vadd.f32 %v398_v10, %v297_v19 }
 0x107   : > { %v1238_v11 = vpop.f32.mrb[4].mxu1 }
 0x108   : > { %v411_v12 = vpop.f32.mrb[5].mxu1  ;;  %v464_v34 = vadd.f32 %v1238_v11, %v302_v30 }
 0x109   : > { %v1239_v13 = vpop.f32.mrb[6].mxu1  ;;  %v462_v36 = vadd.f32 %v411_v12, %v300_v32 }
 0x10a   : > { %v414_v14 = vpop.f32.mrb[7].mxu1  ;;  %v465_v38 = vadd.f32 %v1239_v13, %v303_v33  ;;  %v981_v33 = vld [vmem:[%s1626_s23 + $0x10] sm:$0xff] (!%p1189_p1) }
 0x10b   : > { %v463_v41 = vadd.f32 %v414_v14, %v301_v35  ;;  %v982_v35 = vld [vmem:[%s1626_s23 + $0x18] sm:$0xff] (!%p1189_p1) }
 0x111   : > { %v1274_v21 = vpop.f32.mrb[0].mxu0 }
 0x112   : > { %v1835_v23 = vadd.f32 %v1274_v21, %v460_v18  ;;  %v857_v24 = vpop.f32.mrb[1].mxu0 }
 0x113   : > { %v1837_v26 = vadd.f32 %v857_v24, %v458_v20  ;;  %v1275_v27 = vpop.f32.mrb[2].mxu0  ;;  %v1190_v24 = vld [vmem:[%s2016_s2] ss:$0 sm:$0xff] (!%p1189_p1) }
 0x114   : > { %938 = vst.msk [vmem:[#allocation2 + $0x10] sm:$0xff] %vm336_vm1, %v1835_v23  ;;  %v1841_v28 = vadd.f32 %v1275_v27, %v461_v22  ;;  %v860_v29 = vpop.f32.mrb[3].mxu0  ;;  %v980_v27 = vld [vmem:[%s1626_s23 + $0x8] sm:$0xff] (!%p1189_p1)  ;;  %v965_v32 = vadd.f32 (!%p1189_p1), %v1835_v23, %v1190_v24 }
 0x115   : > { %936 = vst.msk [vmem:[#allocation2] sm:$0xff] %vm336_vm1, %v1837_v26  ;;  %v1845_v31 = vadd.f32 %v860_v29, %v459_v25  ;;  %v979_v25 = vld [vmem:[%s1626_s23] sm:$0xff] (!%p1189_p1)  ;;  %v963_v29 = vadd.f32 (!%p1189_p1), %v1837_v26, %v1190_v24 }
 0x116   : > { %939 = vst.msk [vmem:[#allocation2 + $0x18] sm:$0xff] %vm336_vm1, %v1841_v28 }
 0x117   : > { %937 = vst.msk [vmem:[#allocation2 + $0x8] sm:$0xff] %vm336_vm1, %v1845_v31  ;;  %v964_v30 = vadd.f32 (!%p1189_p1), %v1845_v31, %v1190_v24  ;;  %v985_v31 = vld [vmem:[%s1626_s23 + $0x30] sm:$0xff] (!%p1189_p1) }
 0x119   : > { %v1278_v37 = vpop.f32.mrb[4].mxu0 }
 0x11a   : > { %v1851_v39 = vadd.f32 %v1278_v37, %v464_v34  ;;  %v873_v40 = vpop.f32.mrb[5].mxu0  ;;  %v966_v34 = vadd.f32 (!%p1189_p1), %v1841_v28, %v1190_v24  ;;  %v995_v28 = vadd.f32 (!%p1189_p1), %v979_v25, %v963_v29 }
 0x11b   : > { %v1853_v42 = vadd.f32 %v873_v40, %v462_v36  ;;  %v1279_v43 = vpop.f32.mrb[6].mxu0  ;;  %v983_v36 = vld [vmem:[%s1626_s23 + $0x20] sm:$0xff] (!%p1189_p1)  ;;  %v984_v40 = vld [vmem:[%s1626_s23 + $0x28] sm:$0xff] (!%p1189_p1) }
 0x11c   : > { %942 = vst.msk [vmem:[#allocation2 + $0x30] sm:$0xff] %vm336_vm1, %v1851_v39  ;;  %v1857_v44 = vadd.f32 %v1279_v43, %v465_v38  ;;  %v876_v45 = vpop.f32.mrb[7].mxu0  ;;  %v969_v26 = vadd.f32 (!%p1189_p1), %v1851_v39, %v1190_v24  ;;  %v996_v43 = vadd.f32 (!%p1189_p1), %v980_v27, %v964_v30  ;;  %1011 = vst.msk [vmem:[%s1638_s21] sm:$0xff] (!%p1189_p1), %vm336_vm1, %v995_v28 }
 0x11d   : > { %940 = vst.msk [vmem:[#allocation2 + $0x20] sm:$0xff] %vm336_vm1, %v1853_v42  ;;  %v1861_v47 = vadd.f32 %v876_v45, %v463_v41  ;;  %v967_v37 = vadd.f32 (!%p1189_p1), %v1853_v42, %v1190_v24  ;;  %v986_v41 = vld [vmem:[%s1626_s23 + $0x38] sm:$0xff] (!%p1189_p1)  ;;  %v997_v45 = vadd.f32 (!%p1189_p1), %v981_v33, %v965_v32  ;;  %v998_v42 = vadd.f32 (!%p1189_p1), %v982_v35, %v966_v34 }
 0x11e   : > { %943 = vst.msk [vmem:[#allocation2 + $0x38] sm:$0xff] %vm336_vm1, %v1857_v44  ;;  %v970_v23 = vadd.f32 (!%p1189_p1), %v1857_v44, %v1190_v24  ;;  %v1001_v39 = vadd.f32 (!%p1189_p1), %v985_v31, %v969_v26  ;;  %v989_v44 = vld [vmem:[%s1626_s23 + $0x50] sm:$0xff] (!%p1189_p1)  ;;  %1012 = vst.msk [vmem:[%s1638_s21 + $0x8] sm:$0xff] (!%p1189_p1), %vm336_vm1, %v996_v43 }
 0x11f   : > { %v1262_v49 = vpop.f32.mrb[8].mxu1  ;;  %941 = vst.msk [vmem:[#allocation2 + $0x28] sm:$0xff] %vm336_vm1, %v1861_v47  ;;  %v968_v38 = vadd.f32 (!%p1189_p1), %v1861_v47, %v1190_v24  ;;  %v988_v47 = vld [vmem:[%s1626_s23 + $0x48] sm:$0xff] (!%p1189_p1)  ;;  %1013 = vst.msk [vmem:[%s1638_s21 + $0x10] sm:$0xff] (!%p1189_p1), %vm336_vm1, %v997_v45 }
 0x120   : > { %v1308_v51 = vadd.f32 %v1262_v49, %v306_v46  ;;  %v670_v52 = vpop.f32.mrb[9].mxu1  ;;  %v987_v46 = vld [vmem:[%s1626_s23 + $0x40] sm:$0xff] (!%p1189_p1)  ;;  %1014 = vst.msk [vmem:[%s1638_s21 + $0x18] sm:$0xff] (!%p1189_p1), %vm336_vm1, %v998_v42  ;;  %1017 = vst.msk [vmem:[%s1638_s21 + $0x30] sm:$0xff] (!%p1189_p1), %vm336_vm1, %v1001_v39 }
 0x121   : > { %v1310_v54 = vadd.f32 %v670_v52, %v304_v48  ;;  %v1263_v55 = vpop.f32.mrb[10].mxu1  ;;  %v1282_v56 = vpop.f32.mrb[8].mxu0  ;;  %v999_v48 = vadd.f32 (!%p1189_p1), %v983_v36, %v967_v37  ;;  %v1000_v49 = vadd.f32 (!%p1189_p1), %v984_v40, %v968_v38  ;;  %v991_v52 = vld [vmem:[%s1626_s23 + $0x60] sm:$0xff] (!%p1189_p1) }
 0x122   : > { %v1312_v57 = vadd.f32 %v1263_v55, %v307_v50  ;;  %v673_v58 = vpop.f32.mrb[11].mxu1  ;;  %v1867_v59 = vadd.f32 %v1308_v51, %v1282_v56  ;;  %v889_v60 = vpop.f32.mrb[9].mxu0  ;;  %v1002_v50 = vadd.f32 (!%p1189_p1), %v986_v41, %v970_v23  ;;  %v990_v51 = vld [vmem:[%s1626_s23 + $0x58] sm:$0xff] (!%p1189_p1) }
 0x123   : > { %v1314_v61 = vadd.f32 %v673_v58, %v305_v53  ;;  %v1869_v62 = vadd.f32 %v1310_v54, %v889_v60  ;;  %v1283_v63 = vpop.f32.mrb[10].mxu0  ;;  %v993_v58 = vld [vmem:[%s1626_s23 + $0x70] sm:$0xff] (!%p1189_p1)  ;;  %v994_v60 = vld [vmem:[%s1626_s23 + $0x78] sm:$0xff] (!%p1189_p1)  ;;  %1015 = vst.msk [vmem:[%s1638_s21 + $0x20] sm:$0xff] (!%p1189_p1), %vm336_vm1, %v999_v48  ;;  %1016 = vst.msk [vmem:[%s1638_s21 + $0x28] sm:$0xff] (!%p1189_p1), %vm336_vm1, %v1000_v49 }
 0x124   : > { %946 = vst.msk [vmem:[#allocation2 + $0x50] sm:$0xff] %vm336_vm1, %v1867_v59  ;;  %v1873_v0 = vadd.f32 %v1312_v57, %v1283_v63  ;;  %v892_v1 = vpop.f32.mrb[11].mxu0  ;;  %v973_v55 = vadd.f32 (!%p1189_p1), %v1867_v59, %v1190_v24  ;;  %v992_v57 = vld [vmem:[%s1626_s23 + $0x68] sm:$0xff] (!%p1189_p1)  ;;  %1018 = vst.msk [vmem:[%s1638_s21 + $0x38] sm:$0xff] (!%p1189_p1), %vm336_vm1, %v1002_v50 }
 0x125   : > { %944 = vst.msk [vmem:[#allocation2 + $0x40] sm:$0xff] %vm336_vm1, %v1869_v62  ;;  %v1877_v3 = vadd.f32 %v1314_v61, %v892_v1  ;;  %v971_v53 = vadd.f32 (!%p1189_p1), %v1869_v62, %v1190_v24 }
 0x126   : > { %947 = vst.msk [vmem:[#allocation2 + $0x58] sm:$0xff] %vm336_vm1, %v1873_v0  ;;  %v974_v56 = vadd.f32 (!%p1189_p1), %v1873_v0, %v1190_v24 }
 0x127   : > { %v1266_v5 = vpop.f32.mrb[12].mxu1  ;;  %945 = vst.msk [vmem:[#allocation2 + $0x48] sm:$0xff] %vm336_vm1, %v1877_v3  ;;  %v972_v54 = vadd.f32 (!%p1189_p1), %v1877_v3, %v1190_v24  ;;  %v1003_v0 = vadd.f32 (!%p1189_p1), %v987_v46, %v971_v53 }
 0x128   : > { %v1316_v7 = vadd.f32 %v1266_v5, %v310_v2  ;;  %v686_v8 = vpop.f32.mrb[13].mxu1  ;;  %v1005_v2 = vadd.f32 (!%p1189_p1), %v989_v44, %v973_v55  ;;  %v1006_v3 = vadd.f32 (!%p1189_p1), %v990_v51, %v974_v56 }
 0x129   : > { %v1318_v10 = vadd.f32 %v686_v8, %v308_v4  ;;  %v1267_v11 = vpop.f32.mrb[14].mxu1  ;;  %v1286_v12 = vpop.f32.mrb[12].mxu0  ;;  %955 = sbr.rel (%p1189_p1) target bundleno = 308 (0x134), region = 44  ;;  %v1004_v1 = vadd.f32 (!%p1189_p1), %v988_v47, %v972_v54  ;;  %1019 = vst.msk [vmem:[%s1638_s21 + $0x40] sm:$0xff] (!%p1189_p1), %vm336_vm1, %v1003_v0 }
 0x12a   : > { %v1320_v13 = vadd.f32 %v1267_v11, %v311_v6  ;;  %v689_v14 = vpop.f32.mrb[15].mxu1  ;;  %v1317_v15 = vadd.f32 %v1316_v7, %v1286_v12  ;;  %v905_v16 = vpop.f32.mrb[13].mxu0  ;;  %1021 = vst.msk [vmem:[%s1638_s21 + $0x50] sm:$0xff] (!%p1189_p1), %vm336_vm1, %v1005_v2  ;;  %1022 = vst.msk [vmem:[%s1638_s21 + $0x58] sm:$0xff] (!%p1189_p1), %vm336_vm1, %v1006_v3 }
 0x12b   : > { %v1322_v17 = vadd.f32 %v689_v14, %v309_v9  ;;  %v1319_v18 = vadd.f32 %v1318_v10, %v905_v16  ;;  %v1287_v19 = vpop.f32.mrb[14].mxu0  ;;  %1020 = vst.msk [vmem:[%s1638_s21 + $0x48] sm:$0xff] (!%p1189_p1), %vm336_vm1, %v1004_v1 }
 0x12c   : > { %950 = vst.msk [vmem:[#allocation2 + $0x70] sm:$0xff] %vm336_vm1, %v1317_v15  ;;  %v1321_v20 = vadd.f32 %v1320_v13, %v1287_v19  ;;  %v908_v21 = vpop.f32.mrb[15].mxu0  ;;  %v977_v62 = vadd.f32 (!%p1189_p1), %v1317_v15, %v1190_v24 }
 0x12d   : > { %948 = vst.msk [vmem:[#allocation2 + $0x60] sm:$0xff] %vm336_vm1, %v1319_v18  ;;  %v1323_v22 = vadd.f32 %v1322_v17, %v908_v21  ;;  %v975_v61 = vadd.f32 (!%p1189_p1), %v1319_v18, %v1190_v24 }
 0x12e   : > { %951 = vst.msk [vmem:[#allocation2 + $0x78] sm:$0xff] %vm336_vm1, %v1321_v20  ;;  %v978_v63 = vadd.f32 (!%p1189_p1), %v1321_v20, %v1190_v24  ;;  %v1009_v6 = vadd.f32 (!%p1189_p1), %v993_v58, %v977_v62 }
 0x12f   : > { %949 = vst.msk [vmem:[#allocation2 + $0x68] sm:$0xff] %vm336_vm1, %v1323_v22  ;;  %v976_v59 = vadd.f32 (!%p1189_p1), %v1323_v22, %v1190_v24  ;;  %v1007_v4 = vadd.f32 (!%p1189_p1), %v991_v52, %v975_v61 }
 0x130   : > { %v1010_v7 = vadd.f32 %v994_v60, %v978_v63  ;;  %1025 = vst.msk [vmem:[%s1638_s21 + $0x70] sm:$0xff] %vm336_vm1, %v1009_v6 }
 0x131   : > { %v1008_v5 = vadd.f32 %v992_v57, %v976_v59  ;;  %1023 = vst.msk [vmem:[%s1638_s21 + $0x60] sm:$0xff] %vm336_vm1, %v1007_v4 }
 0x132   : > { %1026 = vst.msk [vmem:[%s1638_s21 + $0x78] sm:$0xff] %vm336_vm1, %v1010_v7 }
 0x133   : > { %1024 = vst.msk [vmem:[%s1638_s21 + $0x68] sm:$0xff] %vm336_vm1, %v1008_v5 }
 0x134 PF: > { %s1197_s18 = sshll.u32 %s1504_s19, 11  ;;  %s1041_s11 = sshll.u32 %s1638_s21, 4  ;;  %s1958_s11 = int_to_ptr.vmem [resolvable:$true] %s1041_s11 }
 0x135   : > { %s1955_s10 = scalar_lea.hbm %s2018_s4, %s1197_s18  ;;  %s2027_s12 = sand.u32 1, %s1492_s16  }
 0x136   : > { %s1962_s13 = scalar_lea.sflag [#allocation4], %s2027_s12  ;;  %s1422_s14 = scalar_lea.vmem %s1958_s11, 2048 }
 0x137   : > { %p1423_p2 = scmp.ne.s32.totalorder %s1958_s11, %s1422_s14  ;;  %s1519_s19 = smov [#allocation3]  }
 0x138   : > { %s1426_s23 = sshll.u32 %s1519_s19, 4  ;;  %s1427_s23 = int_to_ptr.vmem [resolvable:$false] %s1426_s23 }
 0x139   : > { %p1424_p4 = pnand %p1423_p2, %p1596_p3  ;;  %s1428_s24 = scalar_lea.vmem %s1427_s23, 4096 }
 0x13a   : > { %p1429_p6 = scmp.lt.s32.totalorder %s1958_s11, %s1427_s23  ;;  %p1430_p7 = scmp.lt.s32.totalorder %s1428_s24, %s1422_s14 }
 0x13b   : > { %p1425_p5 = pneg %p1424_p4 }
 0x13c   : > { %p1431_p8 = por %p1430_p7, %p1429_p6 }
 0x13e   : > { %p1432_p10 = pnand %p1431_p8, %p1425_p5 }
 0x140   : > { %1435 = shalt.err (!%p1432_p10)
}
 0x141   : > { %s1436_s21 = scalar_lea.hbm %s1955_s10, 2048  ;;  %s1440_s25 = scalar_lea.hbm %s2018_s4, 4096 }
 0x142   : > { %p1437_p11 = scmp.ne.s32.totalorder %s1955_s10, %s1436_s21  ;;  %p1441_p0 = scmp.lt.u32.totalorder %s1955_s10, %s2018_s4 }
 0x143   : > { %p1442_p1 = scmp.lt.u32.totalorder %s1440_s25, %s1436_s21  ;;  %p1444_p4 = scmp.lt.u32.totalorder %s1436_s21, %s1955_s10 }
 0x144   : > { %p1438_p12 = pnand %p1437_p11, %p1596_p3 }
 0x145   : > { %p1443_p2 = por %p1442_p1, %p1441_p0 }
 0x146   : > { %p1439_p13 = pneg %p1438_p12 }
 0x147   : > { %p1445_p5 = por %p1444_p4, %p1443_p2 }
 0x149   : > { %p1446_p6 = pnand %p1445_p5, %p1439_p13 }
 0x14b   : > { %1449 = shalt.err (!%p1446_p6)
}
 0x14c   : > { %s1520_s7 = smov 128   ;;  %s1521_s18 = smov 8  }
 0x14d   : > { %1342 = dma.vmem_to_hbm [thread:$0]  (%p1596_p3), %s1958_s11, 2048, %s1955_s10, %s1962_s13, %s1520_s7, %s1520_s7, %s1521_s18  }
 0x14e PF: > { %p1348_p7 = scmp.ge.s32.totalorder %s1516_s22, 2  ;;  %s1056_s8 = sand.u32 1, %s1488_s15  }
 0x14f   : > { %s1057_s9 = scalar_lea.sflag [#allocation4], %s1056_s8 }
 0x150   : > { %p1345_p8 = pnand %p1348_p7, %p1606_p9 }
 0x152   : > { %1483 = dma.done.wait (!%p1345_p8), %s1057_s9, 2048  }
 0x153   : > { %1485 = vsyncadd (!%p1345_p8), %s1057_s9, 4294965248  ;;  %s17_s22 = sadd.s32 1, %s1516_s22   ;;  %s2028_s19 = sld [smem:[#allocation6_spill]] }
 0x154   : > { %p14_p10 = scmp.ge.s32.totalorder %s17_s22, 8   ;;  %s2029_s27 = sld [smem:[#allocation7_spill]] }
 0x155   : > { %s2030_s21 = sld [smem:[#allocation8_spill]]  ;;  %s2031_s15 = smov %s1492_s16 }
 0x156   : > { %s2032_s16 = smov %s1496_s17  ;;  %s2033_s17 = smov %s1614_s5 }
 0x157   : > { %s2034_s18 = smov %s1508_s20  ;;  %16 = sbr.rel (!%p14_p10) target bundleno = 5 (0x5), region = 88 }
 0x15a   : > { %s2035_s20 = smov %s2029_s27 }
 0x15e   :  { %1062 = vsyncpa [#allocation4], 1 }
 0x15f   :  { %1064 = vsyncpa [#allocation4 + $0x1], 1 }

</bundles_post_ra>
